<compile_context>
chip_gen: v5e
topology: v5e:2x2
jax: 0.10.0
libtpu: 0.0.40
codegen_flags: <defaults>
</compile_context>

<pallas_src>
import functools

import numpy as np

import jax
import jax.numpy as jnp
from jax.experimental import pallas as pl
from jax.experimental.pallas import tpu as pltpu


NUM_CLASSES = 10
FC_N_PAD = 128                      # pad fc output columns 10 -> 128 (lane-dense)
_VMEM_LIMIT = 32 * 1024 * 1024      # safe on v5e/v6e/v7x; usage is ~10 MiB/step


def _round_up(x, m):
    return ((x + m - 1) // m) * m


# ---------------------------------------------------------------------------
# Pallas kernels
# ---------------------------------------------------------------------------
def _conv_bn_relu_pool_kernel(x_ref, w_ref, scale_ref, shift_ref, o_ref,
                              lhs_e_ref, lhs_o_ref, *,
                              nb, hp2, ho, row_lanes, w_in, kh, n_half,
                              pad_top, pad_bot):
    """Fused conv + BN affine + ReLU + 2x2 max-pool for one chunk of nb images.

    x_ref:     (nb*hp2, 2*row_lanes) f32  paired-row input: row r = [img row 2r | 2r+1]
    w_ref:     (kh*w_in, 2*n_half)   bf16 Toeplitz slab, [even cols | odd cols]
    scale_ref: (1, 2*n_half)         f32  BN scale (0 on pad lanes)
    shift_ref: (1, 2*n_half)         f32  BN shift + folded conv bias (0 on pad lanes)
    o_ref:     (nb, pad_top+ho+pad_bot, n_half) f32 pooled output (+ embedded zero pads)
    lhs_*_ref: (nb*hp2-2, kh*w_in)   bf16 scratch (K-folded LHS per output-row parity)
    """
    rv = nb * hp2 - 2          # rows computed (includes 2 discarded tail rows / image)

    # Build the K-folded LHS for each output-row parity with kh contiguous
    # slice-copies each (f32 -> bf16 cast fused into the copy).  Conv output
    # row 2r+p, tap j needs input row 2r+p+j = paired row r+(j+p)//2,
    # lane half (j+p)%2 -- all contiguous static slices.
    for p, lhs_ref in ((0, lhs_e_ref), (1, lhs_o_ref)):
        for j in range(kh):
            rj = (j + p) // 2
            cj = ((j + p) % 2) * row_lanes
            lhs_ref[:, j * w_in:(j + 1) * w_in] = (
                x_ref[rj:rj + rv, cj:cj + w_in].astype(jnp.bfloat16))

    scale = scale_ref[...]
    shift = shift_ref[...]
    w = w_ref[...]

    # One MXU matmul per output-row parity; affine + ReLU before pooling
    # (exact PyTorch order, safe for negative BN gamma).
    ye = jnp.dot(lhs_e_ref[...], w, preferred_element_type=jnp.float32)
    ye = jnp.maximum(ye * scale + shift, 0.0)
    yo = jnp.dot(lhs_o_ref[...], w, preferred_element_type=jnp.float32)
    yo = jnp.maximum(yo * scale + shift, 0.0)

    y = jnp.maximum(ye, yo)                                # height half of the pool
    pooled = jnp.maximum(y[:, :n_half], y[:, n_half:])     # width half (aligned lanes)

    zrow_top = jnp.zeros((pad_top, n_half), jnp.float32) if pad_top else None
    zrow_bot = jnp.zeros((pad_bot, n_half), jnp.float32) if pad_bot else None
    for n in range(nb):
        o_ref[n, pad_top:pad_top + ho, :] = pooled[n * hp2:n * hp2 + ho, :]
        if pad_top:
            o_ref[n, 0:pad_top, :] = zrow_top
        if pad_bot:
            o_ref[n, pad_top + ho:pad_top + ho + pad_bot, :] = zrow_bot


def _fc_kernel(x_ref, w_ref, b_ref, o_ref):
    """out = x @ w + b for one (TM, N) output tile (bf16 MXU, f32 accumulate)."""
    x = x_ref[...].astype(jnp.bfloat16)
    o_ref[...] = jnp.dot(x, w_ref[...], preferred_element_type=jnp.float32) + b_ref[...]


# ---------------------------------------------------------------------------
# Wrappers
# ---------------------------------------------------------------------------
def conv_bn_relu_pool(x_rows, w, scale, shift, *, nb, hp2, ho, row_lanes, w_in,
                      n_half, pad_top, pad_bot):
    """x_rows: (Bp*hp2, 2*row_lanes) f32 paired-row input -> (Bp, out_rows, n_half) f32."""
    R, L = x_rows.shape
    Bp = R // hp2
    assert Bp % nb == 0, (Bp, nb)
    kh = w.shape[0] // w_in
    out_rows = pad_top + ho + pad_bot
    rv = nb * hp2 - 2

    kernel = functools.partial(
        _conv_bn_relu_pool_kernel,
        nb=nb, hp2=hp2, ho=ho, row_lanes=row_lanes, w_in=w_in, kh=kh,
        n_half=n_half, pad_top=pad_top, pad_bot=pad_bot)

    return pl.pallas_call(
        kernel,
        out_shape=jax.ShapeDtypeStruct((Bp, out_rows, n_half), jnp.float32),
        grid=(Bp // nb,),
        in_specs=[
            # nb images per grid step (pipelined); weights / affine vectors are
            # resident in VMEM (constant index_map -> DMA'd once).
            pl.BlockSpec((nb * hp2, L), lambda i: (i, 0)),
            pl.BlockSpec(w.shape, lambda i: (0, 0)),
            pl.BlockSpec(scale.shape, lambda i: (0, 0)),
            pl.BlockSpec(shift.shape, lambda i: (0, 0)),
        ],
        out_specs=pl.BlockSpec((nb, out_rows, n_half), lambda i: (i, 0, 0)),
        scratch_shapes=[pltpu.VMEM((rv, kh * w_in), jnp.bfloat16),
                        pltpu.VMEM((rv, kh * w_in), jnp.bfloat16)],
        compiler_params=pltpu.CompilerParams(
            dimension_semantics=("parallel",),
            vmem_limit_bytes=_VMEM_LIMIT,
        ),
    )(x_rows, w, scale, shift)


def fc_layer(x, w, b, *, tm=256):
    """Row-tiled x @ w + b.  x:(M,K) f32, w:(K,N) bf16 resident, out (M,N) f32."""
    M, K = x.shape
    N = w.shape[1]
    Mp = _round_up(M, 8)
    tm = min(tm, Mp)
    Mp = _round_up(Mp, tm)
    if Mp != M:
        x = jnp.pad(x, ((0, Mp - M), (0, 0)))

    out = pl.pallas_call(
        _fc_kernel,
        out_shape=jax.ShapeDtypeStruct((Mp, N), jnp.float32),
        grid=(Mp // tm,),
        in_specs=[
            pl.BlockSpec((tm, K), lambda i: (i, 0)),
            pl.BlockSpec((K, N), lambda i: (0, 0)),
            pl.BlockSpec((1, N), lambda i: (0, 0)),
        ],
        out_specs=pl.BlockSpec((tm, N), lambda i: (i, 0)),
        compiler_params=pltpu.CompilerParams(
            dimension_semantics=("parallel",),
            vmem_limit_bytes=_VMEM_LIMIT,
        ),
    )(x, w, b.reshape(1, N))
    return out[:M]


# ---------------------------------------------------------------------------
# Offline parameter re-layout (PyTorch layout -> kernel layout)
# ---------------------------------------------------------------------------
def _conv_weight_slab(conv_w, wp_dim, n_half, out_pos0):
    """(Cout,Cin,KH,KW) -> (KH*Wp*Cin, 2*n_half) bf16 Toeplitz slab.

    K layout: tap ki major, then padded-width position wp, then input channel
    ci (matching the activation row lane layout wp*Cin + ci).
    N layout: [even output columns | odd output columns]; within a half, pooled
    column c sits at lanes (out_pos0 + c)*Cout .. +Cout, so layer-2's width
    zero-padding is embedded directly in layer-1's output.
    """
    w = np.asarray(conv_w, np.float32)
    cout, cin, kh, kw = w.shape
    width = wp_dim - (kw - 1)            # un-padded conv output width
    wo = width // 2
    slab = np.zeros((kh * wp_dim * cin, 2 * n_half), np.float32)
    for q in range(2):                   # output-column parity
        for c in range(wo):
            ow = 2 * c + q
            ncol = q * n_half + (out_pos0 + c) * cout
            for ki in range(kh):
                for kj in range(kw):
                    wp = ow + kj
                    krow = ki * wp_dim * cin + wp * cin
                    slab[krow:krow + cin, ncol:ncol + cout] = w[:, :, ki, kj].T
    return jnp.asarray(slab, jnp.bfloat16)


def _affine_vectors(scale_c, shift_c, wo, cout, out_pos0, n_half):
    """Per-lane BN scale/shift, tiled per pooled column; zero on pad lanes."""
    v_scale = np.zeros((n_half,), np.float32)
    v_shift = np.zeros((n_half,), np.float32)
    for c in range(wo):
        lo = (out_pos0 + c) * cout
        v_scale[lo:lo + cout] = scale_c
        v_shift[lo:lo + cout] = shift_c
    scale = np.concatenate([v_scale, v_scale]).reshape(1, 2 * n_half)
    shift = np.concatenate([v_shift, v_shift]).reshape(1, 2 * n_half)
    return jnp.asarray(scale), jnp.asarray(shift)


def _fc_weight(fc_w, fc_b, num_classes=NUM_CLASSES):
    """Permute fc weight from NCHW flatten to the kernel's (row, col*32+ch, pad) order."""
    w = np.asarray(fc_w, np.float32)                     # (10, 32*7*7), index c*49+h*7+w
    k = w.shape[0]
    wf = np.zeros((7 * 256, FC_N_PAD), np.float32)
    for h in range(7):
        for wcol in range(7):
            for c in range(32):
                wf[h * 256 + wcol * 32 + c, :k] = w[:, c * 49 + h * 7 + wcol]
    bf = np.zeros((FC_N_PAD,), np.float32)
    bf[:k] = np.asarray(fc_b, np.float32)
    return jnp.asarray(wf, jnp.bfloat16), jnp.asarray(bf, jnp.float32)


def make_raw_params(key, num_classes=NUM_CLASSES):
    """Deterministic parameters in PyTorch layout (Conv2d / BatchNorm2d / Linear)."""
    ks = jax.random.split(key, 14)

    def bn_params(kg, kb, km, kv, c):
        return dict(
            gamma=1.0 + 0.1 * jax.random.normal(kg, (c,), jnp.float32),
            beta=0.1 * jax.random.normal(kb, (c,), jnp.float32),
            mean=0.1 * jax.random.normal(km, (c,), jnp.float32),
            var=jnp.abs(jax.random.normal(kv, (c,), jnp.float32)) + 0.5,
        )

    return dict(
        conv1_w=0.1 * jax.random.normal(ks[0], (16, 1, 5, 5), jnp.float32),
        conv1_b=0.1 * jax.random.normal(ks[1], (16,), jnp.float32),
        bn1=bn_params(ks[2], ks[3], ks[4], ks[5], 16),
        conv2_w=0.1 * jax.random.normal(ks[6], (32, 16, 5, 5), jnp.float32),
        conv2_b=0.1 * jax.random.normal(ks[7], (32,), jnp.float32),
        bn2=bn_params(ks[8], ks[9], ks[10], ks[11], 32),
        fc_w=0.02 * jax.random.normal(ks[12], (num_classes, 7 * 7 * 32), jnp.float32),
        fc_b=0.02 * jax.random.normal(ks[13], (num_classes,), jnp.float32),
    )


def prepare_kernel_params(raw, num_classes=NUM_CLASSES):
    """One-time offline re-layout of the PyTorch-layout parameters for the kernels."""
    eps = 1e-5

    def conv_layer(conv_w, conv_b, bn, wp_dim, n_half, out_pos0):
        cout = conv_w.shape[0]
        wo = (wp_dim - 4) // 2
        s = bn["gamma"] / jnp.sqrt(bn["var"] + eps)
        t = bn["beta"] - bn["mean"] * s + conv_b * s      # conv bias folded in
        scale, shift = _affine_vectors(np.asarray(s, np.float32),
                                       np.asarray(t, np.float32),
                                       wo, cout, out_pos0, n_half)
        return dict(w=_conv_weight_slab(conv_w, wp_dim, n_half, out_pos0),
                    scale=scale, shift=shift)

    fc_w, fc_b = _fc_weight(raw["fc_w"], raw["fc_b"], num_classes)
    return dict(
        layer1=conv_layer(raw["conv1_w"], raw["conv1_b"], raw["bn1"], 32, 384, 2),
        layer2=conv_layer(raw["conv2_w"], raw["conv2_b"], raw["bn2"], 18, 256, 0),
        fc_w=fc_w,
        fc_b=fc_b,
    )


# ---------------------------------------------------------------------------
# Forward pass
# ---------------------------------------------------------------------------
def convnet_forward(x_nchw, params, *, nb_max=32):
    B = x_nchw.shape[0]
    nb = B if B <= nb_max else nb_max
    Bp = _round_up(B, nb)

    # NCHW -> (B, H, W): Cin == 1, pure reshape.  Pad batch, then conv1 padding.
    x = x_nchw.reshape(B, 28, 28).astype(jnp.float32)
    if Bp != B:
        x = jnp.pad(x, ((0, Bp - B), (0, 0), (0, 0)))
    x1 = jnp.pad(x, ((0, 0), (2, 2), (2, 2)))            # (Bp, 32, 32)
    xr1 = x1.reshape(Bp * 16, 64)                        # paired-row layout (free reshape)

    # layer1: conv(1->16) + BN + ReLU + pool -> (Bp, 18, 384); the 4 zero rows
    # and the zero lanes ARE layer-2's height/width padding (no wrapper pads).
    l1 = params["layer1"]
    y1 = conv_bn_relu_pool(xr1, l1["w"], l1["scale"], l1["shift"],
                           nb=nb, hp2=16, ho=14, row_lanes=32, w_in=32,
                           n_half=384, pad_top=2, pad_bot=2)

    # layer2: conv(16->32) + BN + ReLU + pool -> (Bp, 7, 256) (224 real lanes).
    xr2 = y1.reshape(Bp * 9, 768)                        # paired-row layout (free reshape)
    l2 = params["layer2"]
    y2 = conv_bn_relu_pool(xr2, l2["w"], l2["scale"], l2["shift"],
                           nb=nb, hp2=9, ho=7, row_lanes=384, w_in=288,
                           n_half=256, pad_top=0, pad_bot=0)

    # fc: flatten is a pure reshape; the fc weight was permuted offline (and its
    # rows for the 32 pad lanes per row are zero), so no transpose / slice here.
    flat = y2.reshape(Bp, 7 * 256)
    logits = fc_layer(flat, params["fc_w"], params["fc_b"])
    return logits[:B, :NUM_CLASSES]


# ---------------------------------------------------------------------------
# Plain-JAX reference (PyTorch semantics, eval-mode BN).  Weights and the
# inter-layer / fc activations are rounded to bf16 to mirror the kernels'
# MXU input precision; all accumulation stays in f32, as in the kernels.
# ---------------------------------------------------------------------------
def reference_forward(x_nchw, raw):
    eps = 1e-5
    q = lambda a: a.astype(jnp.bfloat16).astype(jnp.float32)

    def block(x, w, b, bn):
        y = jax.lax.conv_general_dilated(
            q(x), q(w), (1, 1), ((2, 2), (2, 2)),
            dimension_numbers=("NCHW", "OIHW", "NCHW"))
        scale = bn["gamma"] / jnp.sqrt(bn["var"] + eps)
        y = (y + b[None, :, None, None] - bn["mean"][None, :, None, None]) \
            * scale[None, :, None, None] + bn["beta"][None, :, None, None]
        y = jnp.maximum(y, 0.0)
        B, C, H, W = y.shape
        return y.reshape(B, C, H // 2, 2, W // 2, 2).max(axis=(3, 5))

    y = block(x_nchw.astype(jnp.float32), raw["conv1_w"], raw["conv1_b"], raw["bn1"])
    y = block(y, raw["conv2_w"], raw["conv2_b"], raw["bn2"])
    flat = y.reshape(y.shape[0], -1)                     # NCHW flatten (PyTorch)
    return q(flat) @ q(raw["fc_w"]).T + raw["fc_b"]


if __name__ == "__main__":
    key = jax.random.PRNGKey(0)
    k_x, k_p = jax.random.split(key)

    # MNIST-shaped input (the fc layer fixes spatial = 28x28, cin = 1); batch = 2.
    x = jax.random.normal(k_x, (2, 1, 28, 28), jnp.float32)

    raw = make_raw_params(k_p)
    params = prepare_kernel_params(raw)

    logits = jax.jit(convnet_forward)(x, params)
    jax.block_until_ready(logits)

    assert logits.shape == (2, NUM_CLASSES)
    assert bool(jnp.all(jnp.isfinite(logits)))

    ref = reference_forward(x, raw)
    max_err = float(jnp.max(jnp.abs(logits - ref)))
    assert max_err < 2e-2, f"max abs error vs reference: {max_err}"

    print("KERNEL_OK")
</pallas_src>

<mosaic_0001>
module attributes {stable_mosaic.version = 11 : i64} {
  func.func @_conv_bn_relu_pool_kernel(%arg0: i32, %arg1: memref<18x768xf32, #tpu.memory_space<vmem>>, %arg2: memref<1440x512xbf16, #tpu.memory_space<vmem>>, %arg3: memref<1x512xf32, #tpu.memory_space<vmem>>, %arg4: memref<1x512xf32, #tpu.memory_space<vmem>>, %arg5: memref<2x7x256xf32, #tpu.memory_space<vmem>>, %arg6: memref<16x1440xbf16, #tpu.memory_space<vmem>>, %arg7: memref<16x1440xbf16, #tpu.memory_space<vmem>>) attributes {dimension_semantics = [#tpu.dimension_semantics<parallel>], iteration_bounds = array<i64: 1>, scalar_prefetch = 0 : i64, scratch_operands = 2 : i64, tpu.core_type = #tpu.core_type<tc>, window_params = [{transform_indices = @transform_0, window_bounds = array<i64: 18, 768>}, {pipeline_mode = #tpu.pipeline_mode<synchronous>, transform_indices = @transform_1, window_bounds = array<i64: 1440, 512>}, {pipeline_mode = #tpu.pipeline_mode<synchronous>, transform_indices = @transform_2, window_bounds = array<i64: 1, 512>}, {pipeline_mode = #tpu.pipeline_mode<synchronous>, transform_indices = @transform_3, window_bounds = array<i64: 1, 512>}, {transform_indices = @transform_4, window_bounds = array<i64: 2, 7, 256>}]} {
    %c0 = arith.constant 0 : index
    %c0_0 = arith.constant 0 : index
    %0 = vector.load %arg1[%c0, %c0_0] : memref<18x768xf32, #tpu.memory_space<vmem>>, vector<16x288xf32>
    %1 = arith.truncf %0 : vector<16x288xf32> to vector<16x288xbf16>
    %c0_1 = arith.constant 0 : index
    %c0_2 = arith.constant 0 : index
    %2 = vector.load %arg6[%c0_1, %c0_2] : memref<16x1440xbf16, #tpu.memory_space<vmem>>, vector<16x288xbf16>
    tpu.vector_store %arg6[%c0_1, %c0_2], %1 {strides = array<i32>} : memref<16x1440xbf16, #tpu.memory_space<vmem>>, vector<16x288xbf16>,
    %c0_3 = arith.constant 0 : index
    %c384 = arith.constant 384 : index
    %3 = vector.load %arg1[%c0_3, %c384] : memref<18x768xf32, #tpu.memory_space<vmem>>, vector<16x288xf32>
    %4 = arith.truncf %3 : vector<16x288xf32> to vector<16x288xbf16>
    %c0_4 = arith.constant 0 : index
    %c288 = arith.constant 288 : index
    %5 = vector.load %arg6[%c0_4, %c288] : memref<16x1440xbf16, #tpu.memory_space<vmem>>, vector<16x288xbf16>
    tpu.vector_store %arg6[%c0_4, %c288], %4 {strides = array<i32>} : memref<16x1440xbf16, #tpu.memory_space<vmem>>, vector<16x288xbf16>,
    %c1 = arith.constant 1 : index
    %c0_5 = arith.constant 0 : index
    %6 = vector.load %arg1[%c1, %c0_5] : memref<18x768xf32, #tpu.memory_space<vmem>>, vector<16x288xf32>
    %7 = arith.truncf %6 : vector<16x288xf32> to vector<16x288xbf16>
    %c0_6 = arith.constant 0 : index
    %c576 = arith.constant 576 : index
    %8 = vector.load %arg6[%c0_6, %c576] : memref<16x1440xbf16, #tpu.memory_space<vmem>>, vector<16x288xbf16>
    tpu.vector_store %arg6[%c0_6, %c576], %7 {strides = array<i32>} : memref<16x1440xbf16, #tpu.memory_space<vmem>>, vector<16x288xbf16>,
    %c1_7 = arith.constant 1 : index
    %c384_8 = arith.constant 384 : index
    %9 = vector.load %arg1[%c1_7, %c384_8] : memref<18x768xf32, #tpu.memory_space<vmem>>, vector<16x288xf32>
    %10 = arith.truncf %9 : vector<16x288xf32> to vector<16x288xbf16>
    %c0_9 = arith.constant 0 : index
    %c864 = arith.constant 864 : index
    %11 = vector.load %arg6[%c0_9, %c864] : memref<16x1440xbf16, #tpu.memory_space<vmem>>, vector<16x288xbf16>
    tpu.vector_store %arg6[%c0_9, %c864], %10 {strides = array<i32>} : memref<16x1440xbf16, #tpu.memory_space<vmem>>, vector<16x288xbf16>,
    %c2 = arith.constant 2 : index
    %c0_10 = arith.constant 0 : index
    %12 = vector.load %arg1[%c2, %c0_10] : memref<18x768xf32, #tpu.memory_space<vmem>>, vector<16x288xf32>
    %13 = arith.truncf %12 : vector<16x288xf32> to vector<16x288xbf16>
    %c0_11 = arith.constant 0 : index
    %c1152 = arith.constant 1152 : index
    %14 = vector.load %arg6[%c0_11, %c1152] : memref<16x1440xbf16, #tpu.memory_space<vmem>>, vector<16x288xbf16>
    tpu.vector_store %arg6[%c0_11, %c1152], %13 {strides = array<i32>} : memref<16x1440xbf16, #tpu.memory_space<vmem>>, vector<16x288xbf16>,
    %c0_12 = arith.constant 0 : index
    %c384_13 = arith.constant 384 : index
    %15 = vector.load %arg1[%c0_12, %c384_13] : memref<18x768xf32, #tpu.memory_space<vmem>>, vector<16x288xf32>
    %16 = arith.truncf %15 : vector<16x288xf32> to vector<16x288xbf16>
    %c0_14 = arith.constant 0 : index
    %c0_15 = arith.constant 0 : index
    %17 = vector.load %arg7[%c0_14, %c0_15] : memref<16x1440xbf16, #tpu.memory_space<vmem>>, vector<16x288xbf16>
    tpu.vector_store %arg7[%c0_14, %c0_15], %16 {strides = array<i32>} : memref<16x1440xbf16, #tpu.memory_space<vmem>>, vector<16x288xbf16>,
    %c1_16 = arith.constant 1 : index
    %c0_17 = arith.constant 0 : index
    %18 = vector.load %arg1[%c1_16, %c0_17] : memref<18x768xf32, #tpu.memory_space<vmem>>, vector<16x288xf32>
    %19 = arith.truncf %18 : vector<16x288xf32> to vector<16x288xbf16>
    %c0_18 = arith.constant 0 : index
    %c288_19 = arith.constant 288 : index
    %20 = vector.load %arg7[%c0_18, %c288_19] : memref<16x1440xbf16, #tpu.memory_space<vmem>>, vector<16x288xbf16>
    tpu.vector_store %arg7[%c0_18, %c288_19], %19 {strides = array<i32>} : memref<16x1440xbf16, #tpu.memory_space<vmem>>, vector<16x288xbf16>,
    %c1_20 = arith.constant 1 : index
    %c384_21 = arith.constant 384 : index
    %21 = vector.load %arg1[%c1_20, %c384_21] : memref<18x768xf32, #tpu.memory_space<vmem>>, vector<16x288xf32>
    %22 = arith.truncf %21 : vector<16x288xf32> to vector<16x288xbf16>
    %c0_22 = arith.constant 0 : index
    %c576_23 = arith.constant 576 : index
    %23 = vector.load %arg7[%c0_22, %c576_23] : memref<16x1440xbf16, #tpu.memory_space<vmem>>, vector<16x288xbf16>
    tpu.vector_store %arg7[%c0_22, %c576_23], %22 {strides = array<i32>} : memref<16x1440xbf16, #tpu.memory_space<vmem>>, vector<16x288xbf16>,
    %c2_24 = arith.constant 2 : index
    %c0_25 = arith.constant 0 : index
    %24 = vector.load %arg1[%c2_24, %c0_25] : memref<18x768xf32, #tpu.memory_space<vmem>>, vector<16x288xf32>
    %25 = arith.truncf %24 : vector<16x288xf32> to vector<16x288xbf16>
    %c0_26 = arith.constant 0 : index
    %c864_27 = arith.constant 864 : index
    %26 = vector.load %arg7[%c0_26, %c864_27] : memref<16x1440xbf16, #tpu.memory_space<vmem>>, vector<16x288xbf16>
    tpu.vector_store %arg7[%c0_26, %c864_27], %25 {strides = array<i32>} : memref<16x1440xbf16, #tpu.memory_space<vmem>>, vector<16x288xbf16>,
    %c2_28 = arith.constant 2 : index
    %c384_29 = arith.constant 384 : index
    %27 = vector.load %arg1[%c2_28, %c384_29] : memref<18x768xf32, #tpu.memory_space<vmem>>, vector<16x288xf32>
    %28 = arith.truncf %27 : vector<16x288xf32> to vector<16x288xbf16>
    %c0_30 = arith.constant 0 : index
    %c1152_31 = arith.constant 1152 : index
    %29 = vector.load %arg7[%c0_30, %c1152_31] : memref<16x1440xbf16, #tpu.memory_space<vmem>>, vector<16x288xbf16>
    tpu.vector_store %arg7[%c0_30, %c1152_31], %28 {strides = array<i32>} : memref<16x1440xbf16, #tpu.memory_space<vmem>>, vector<16x288xbf16>,
    %c0_32 = arith.constant 0 : index
    %c0_33 = arith.constant 0 : index
    %30 = vector.load %arg3[%c0_32, %c0_33] : memref<1x512xf32, #tpu.memory_space<vmem>>, vector<1x512xf32>
    %c0_34 = arith.constant 0 : index
    %c0_35 = arith.constant 0 : index
    %31 = vector.load %arg4[%c0_34, %c0_35] : memref<1x512xf32, #tpu.memory_space<vmem>>, vector<1x512xf32>
    %c0_36 = arith.constant 0 : index
    %c0_37 = arith.constant 0 : index
    %32 = vector.load %arg2[%c0_36, %c0_37] : memref<1440x512xbf16, #tpu.memory_space<vmem>>, vector<1440x512xbf16>
    %c0_38 = arith.constant 0 : index
    %c0_39 = arith.constant 0 : index
    %33 = vector.load %arg6[%c0_38, %c0_39] : memref<16x1440xbf16, #tpu.memory_space<vmem>>, vector<16x1440xbf16>
    %cst = arith.constant dense<0.000000e+00> : vector<16x512xf32>
    %34 = tpu.matmul %33, %32, %cst {dimension_numbers = #tpu.dot_dimension_numbers<[1], [0], [0], [1], [0, 0, 1, 1], [], []>} : vector<16x1440xbf16>, vector<1440x512xbf16>, vector<16x512xf32> -> vector<16x512xf32>
    %35 = vector.broadcast %30 : vector<1x512xf32> to vector<16x512xf32>
    %36 = arith.mulf %34, %35 : vector<16x512xf32>
    %37 = vector.broadcast %31 : vector<1x512xf32> to vector<16x512xf32>
    %38 = arith.addf %36, %37 : vector<16x512xf32>
    %cst_40 = arith.constant 0.000000e+00 : f32
    %39 = vector.broadcast %cst_40 : f32 to vector<16x512xf32>
    %40 = arith.maximumf %38, %39 : vector<16x512xf32>
    %c0_41 = arith.constant 0 : index
    %c0_42 = arith.constant 0 : index
    %41 = vector.load %arg7[%c0_41, %c0_42] : memref<16x1440xbf16, #tpu.memory_space<vmem>>, vector<16x1440xbf16>
    %cst_43 = arith.constant dense<0.000000e+00> : vector<16x512xf32>
    %42 = tpu.matmul %41, %32, %cst_43 {dimension_numbers = #tpu.dot_dimension_numbers<[1], [0], [0], [1], [0, 0, 1, 1], [], []>} : vector<16x1440xbf16>, vector<1440x512xbf16>, vector<16x512xf32> -> vector<16x512xf32>
    %43 = vector.broadcast %30 : vector<1x512xf32> to vector<16x512xf32>
    %44 = arith.mulf %42, %43 : vector<16x512xf32>
    %45 = vector.broadcast %31 : vector<1x512xf32> to vector<16x512xf32>
    %46 = arith.addf %44, %45 : vector<16x512xf32>
    %cst_44 = arith.constant 0.000000e+00 : f32
    %47 = vector.broadcast %cst_44 : f32 to vector<16x512xf32>
    %48 = arith.maximumf %46, %47 : vector<16x512xf32>
    %49 = arith.maximumf %40, %48 : vector<16x512xf32>
    %50 = vector.extract_strided_slice %49 {offsets = [0, 0], sizes = [16, 256], strides = [1, 1]} : vector<16x512xf32> to vector<16x256xf32>
    %51 = vector.extract_strided_slice %49 {offsets = [0, 256], sizes = [16, 256], strides = [1, 1]} : vector<16x512xf32> to vector<16x256xf32>
    %52 = arith.maximumf %50, %51 : vector<16x256xf32>
    %53 = vector.extract_strided_slice %52 {offsets = [0, 0], sizes = [7, 256], strides = [1, 1]} : vector<16x256xf32> to vector<7x256xf32>
    %c0_45 = arith.constant 0 : index
    %c0_46 = arith.constant 0 : index
    %c0_47 = arith.constant 0 : index
    %54 = vector.load %arg5[%c0_45, %c0_46, %c0_47] : memref<2x7x256xf32, #tpu.memory_space<vmem>>, vector<1x7x256xf32>
    %55 = vector.shape_cast %54 : vector<1x7x256xf32> to vector<7x256xf32>
    %56 = vector.shape_cast %53 : vector<7x256xf32> to vector<1x7x256xf32>
    tpu.vector_store %arg5[%c0_45, %c0_46, %c0_47], %56 {strides = array<i32>} : memref<2x7x256xf32, #tpu.memory_space<vmem>>, vector<1x7x256xf32>,
    %57 = vector.extract_strided_slice %52 {offsets = [9, 0], sizes = [7, 256], strides = [1, 1]} : vector<16x256xf32> to vector<7x256xf32>
    %c1_48 = arith.constant 1 : index
    %c0_49 = arith.constant 0 : index
    %c0_50 = arith.constant 0 : index
    %58 = vector.load %arg5[%c1_48, %c0_49, %c0_50] : memref<2x7x256xf32, #tpu.memory_space<vmem>>, vector<1x7x256xf32>
    %59 = vector.shape_cast %58 : vector<1x7x256xf32> to vector<7x256xf32>
    %60 = vector.shape_cast %57 : vector<7x256xf32> to vector<1x7x256xf32>
    tpu.vector_store %arg5[%c1_48, %c0_49, %c0_50], %60 {strides = array<i32>} : memref<2x7x256xf32, #tpu.memory_space<vmem>>, vector<1x7x256xf32>,
    return
  }
  func.func @transform_0(%arg0: i32) -> (i32, i32) {
    %c0_i32 = arith.constant 0 : i32
    %c0_i32_0 = arith.constant 0 : i32
    return %arg0, %c0_i32 : i32, i32
  }
  func.func @transform_1(%arg0: i32) -> (i32, i32) {
    %c0_i32 = arith.constant 0 : i32
    %c0_i32_0 = arith.constant 0 : i32
    %c0_i32_1 = arith.constant 0 : i32
    return %c0_i32, %c0_i32_0 : i32, i32
  }
  func.func @transform_2(%arg0: i32) -> (i32, i32) {
    %c0_i32 = arith.constant 0 : i32
    %c0_i32_0 = arith.constant 0 : i32
    %c0_i32_1 = arith.constant 0 : i32
    return %c0_i32, %c0_i32_0 : i32, i32
  }
  func.func @transform_3(%arg0: i32) -> (i32, i32) {
    %c0_i32 = arith.constant 0 : i32
    %c0_i32_0 = arith.constant 0 : i32
    %c0_i32_1 = arith.constant 0 : i32
    return %c0_i32, %c0_i32_0 : i32, i32
  }
  func.func @transform_4(%arg0: i32) -> (i32, i32, i32) {
    %c0_i32 = arith.constant 0 : i32
    %c0_i32_0 = arith.constant 0 : i32
    %c0_i32_1 = arith.constant 0 : i32
    return %arg0, %c0_i32, %c0_i32_0 : i32, i32, i32
  }
}

module attributes {stable_mosaic.version = 11 : i64} {
  func.func @_conv_bn_relu_pool_kernel(%arg0: i32, %arg1: memref<32x64xf32, #tpu.memory_space<vmem>>, %arg2: memref<160x768xbf16, #tpu.memory_space<vmem>>, %arg3: memref<1x768xf32, #tpu.memory_space<vmem>>, %arg4: memref<1x768xf32, #tpu.memory_space<vmem>>, %arg5: memref<2x18x384xf32, #tpu.memory_space<vmem>>, %arg6: memref<30x160xbf16, #tpu.memory_space<vmem>>, %arg7: memref<30x160xbf16, #tpu.memory_space<vmem>>) attributes {dimension_semantics = [#tpu.dimension_semantics<parallel>], iteration_bounds = array<i64: 1>, scalar_prefetch = 0 : i64, scratch_operands = 2 : i64, tpu.core_type = #tpu.core_type<tc>, window_params = [{transform_indices = @transform_0, window_bounds = array<i64: 32, 64>}, {pipeline_mode = #tpu.pipeline_mode<synchronous>, transform_indices = @transform_1, window_bounds = array<i64: 160, 768>}, {pipeline_mode = #tpu.pipeline_mode<synchronous>, transform_indices = @transform_2, window_bounds = array<i64: 1, 768>}, {pipeline_mode = #tpu.pipeline_mode<synchronous>, transform_indices = @transform_3, window_bounds = array<i64: 1, 768>}, {transform_indices = @transform_4, window_bounds = array<i64: 2, 18, 384>}]} {
    %c0 = arith.constant 0 : index
    %c0_0 = arith.constant 0 : index
    %0 = vector.load %arg1[%c0, %c0_0] : memref<32x64xf32, #tpu.memory_space<vmem>>, vector<30x32xf32>
    %1 = arith.truncf %0 : vector<30x32xf32> to vector<30x32xbf16>
    %c0_1 = arith.constant 0 : index
    %c0_2 = arith.constant 0 : index
    %2 = vector.load %arg6[%c0_1, %c0_2] : memref<30x160xbf16, #tpu.memory_space<vmem>>, vector<30x32xbf16>
    tpu.vector_store %arg6[%c0_1, %c0_2], %1 {strides = array<i32>} : memref<30x160xbf16, #tpu.memory_space<vmem>>, vector<30x32xbf16>,
    %c0_3 = arith.constant 0 : index
    %c32 = arith.constant 32 : index
    %3 = vector.load %arg1[%c0_3, %c32] : memref<32x64xf32, #tpu.memory_space<vmem>>, vector<30x32xf32>
    %4 = arith.truncf %3 : vector<30x32xf32> to vector<30x32xbf16>
    %c0_4 = arith.constant 0 : index
    %c32_5 = arith.constant 32 : index
    %5 = vector.load %arg6[%c0_4, %c32_5] : memref<30x160xbf16, #tpu.memory_space<vmem>>, vector<30x32xbf16>
    tpu.vector_store %arg6[%c0_4, %c32_5], %4 {strides = array<i32>} : memref<30x160xbf16, #tpu.memory_space<vmem>>, vector<30x32xbf16>,
    %c1 = arith.constant 1 : index
    %c0_6 = arith.constant 0 : index
    %6 = vector.load %arg1[%c1, %c0_6] : memref<32x64xf32, #tpu.memory_space<vmem>>, vector<30x32xf32>
    %7 = arith.truncf %6 : vector<30x32xf32> to vector<30x32xbf16>
    %c0_7 = arith.constant 0 : index
    %c64 = arith.constant 64 : index
    %8 = vector.load %arg6[%c0_7, %c64] : memref<30x160xbf16, #tpu.memory_space<vmem>>, vector<30x32xbf16>
    tpu.vector_store %arg6[%c0_7, %c64], %7 {strides = array<i32>} : memref<30x160xbf16, #tpu.memory_space<vmem>>, vector<30x32xbf16>,
    %c1_8 = arith.constant 1 : index
    %c32_9 = arith.constant 32 : index
    %9 = vector.load %arg1[%c1_8, %c32_9] : memref<32x64xf32, #tpu.memory_space<vmem>>, vector<30x32xf32>
    %10 = arith.truncf %9 : vector<30x32xf32> to vector<30x32xbf16>
    %c0_10 = arith.constant 0 : index
    %c96 = arith.constant 96 : index
    %11 = vector.load %arg6[%c0_10, %c96] : memref<30x160xbf16, #tpu.memory_space<vmem>>, vector<30x32xbf16>
    tpu.vector_store %arg6[%c0_10, %c96], %10 {strides = array<i32>} : memref<30x160xbf16, #tpu.memory_space<vmem>>, vector<30x32xbf16>,
    %c2 = arith.constant 2 : index
    %c0_11 = arith.constant 0 : index
    %12 = vector.load %arg1[%c2, %c0_11] : memref<32x64xf32, #tpu.memory_space<vmem>>, vector<30x32xf32>
    %13 = arith.truncf %12 : vector<30x32xf32> to vector<30x32xbf16>
    %c0_12 = arith.constant 0 : index
    %c128 = arith.constant 128 : index
    %14 = vector.load %arg6[%c0_12, %c128] : memref<30x160xbf16, #tpu.memory_space<vmem>>, vector<30x32xbf16>
    tpu.vector_store %arg6[%c0_12, %c128], %13 {strides = array<i32>} : memref<30x160xbf16, #tpu.memory_space<vmem>>, vector<30x32xbf16>,
    %c0_13 = arith.constant 0 : index
    %c32_14 = arith.constant 32 : index
    %15 = vector.load %arg1[%c0_13, %c32_14] : memref<32x64xf32, #tpu.memory_space<vmem>>, vector<30x32xf32>
    %16 = arith.truncf %15 : vector<30x32xf32> to vector<30x32xbf16>
    %c0_15 = arith.constant 0 : index
    %c0_16 = arith.constant 0 : index
    %17 = vector.load %arg7[%c0_15, %c0_16] : memref<30x160xbf16, #tpu.memory_space<vmem>>, vector<30x32xbf16>
    tpu.vector_store %arg7[%c0_15, %c0_16], %16 {strides = array<i32>} : memref<30x160xbf16, #tpu.memory_space<vmem>>, vector<30x32xbf16>,
    %c1_17 = arith.constant 1 : index
    %c0_18 = arith.constant 0 : index
    %18 = vector.load %arg1[%c1_17, %c0_18] : memref<32x64xf32, #tpu.memory_space<vmem>>, vector<30x32xf32>
    %19 = arith.truncf %18 : vector<30x32xf32> to vector<30x32xbf16>
    %c0_19 = arith.constant 0 : index
    %c32_20 = arith.constant 32 : index
    %20 = vector.load %arg7[%c0_19, %c32_20] : memref<30x160xbf16, #tpu.memory_space<vmem>>, vector<30x32xbf16>
    tpu.vector_store %arg7[%c0_19, %c32_20], %19 {strides = array<i32>} : memref<30x160xbf16, #tpu.memory_space<vmem>>, vector<30x32xbf16>,
    %c1_21 = arith.constant 1 : index
    %c32_22 = arith.constant 32 : index
    %21 = vector.load %arg1[%c1_21, %c32_22] : memref<32x64xf32, #tpu.memory_space<vmem>>, vector<30x32xf32>
    %22 = arith.truncf %21 : vector<30x32xf32> to vector<30x32xbf16>
    %c0_23 = arith.constant 0 : index
    %c64_24 = arith.constant 64 : index
    %23 = vector.load %arg7[%c0_23, %c64_24] : memref<30x160xbf16, #tpu.memory_space<vmem>>, vector<30x32xbf16>
    tpu.vector_store %arg7[%c0_23, %c64_24], %22 {strides = array<i32>} : memref<30x160xbf16, #tpu.memory_space<vmem>>, vector<30x32xbf16>,
    %c2_25 = arith.constant 2 : index
    %c0_26 = arith.constant 0 : index
    %24 = vector.load %arg1[%c2_25, %c0_26] : memref<32x64xf32, #tpu.memory_space<vmem>>, vector<30x32xf32>
    %25 = arith.truncf %24 : vector<30x32xf32> to vector<30x32xbf16>
    %c0_27 = arith.constant 0 : index
    %c96_28 = arith.constant 96 : index
    %26 = vector.load %arg7[%c0_27, %c96_28] : memref<30x160xbf16, #tpu.memory_space<vmem>>, vector<30x32xbf16>
    tpu.vector_store %arg7[%c0_27, %c96_28], %25 {strides = array<i32>} : memref<30x160xbf16, #tpu.memory_space<vmem>>, vector<30x32xbf16>,
    %c2_29 = arith.constant 2 : index
    %c32_30 = arith.constant 32 : index
    %27 = vector.load %arg1[%c2_29, %c32_30] : memref<32x64xf32, #tpu.memory_space<vmem>>, vector<30x32xf32>
    %28 = arith.truncf %27 : vector<30x32xf32> to vector<30x32xbf16>
    %c0_31 = arith.constant 0 : index
    %c128_32 = arith.constant 128 : index
    %29 = vector.load %arg7[%c0_31, %c128_32] : memref<30x160xbf16, #tpu.memory_space<vmem>>, vector<30x32xbf16>
    tpu.vector_store %arg7[%c0_31, %c128_32], %28 {strides = array<i32>} : memref<30x160xbf16, #tpu.memory_space<vmem>>, vector<30x32xbf16>,
    %c0_33 = arith.constant 0 : index
    %c0_34 = arith.constant 0 : index
    %30 = vector.load %arg3[%c0_33, %c0_34] : memref<1x768xf32, #tpu.memory_space<vmem>>, vector<1x768xf32>
    %c0_35 = arith.constant 0 : index
    %c0_36 = arith.constant 0 : index
    %31 = vector.load %arg4[%c0_35, %c0_36] : memref<1x768xf32, #tpu.memory_space<vmem>>, vector<1x768xf32>
    %c0_37 = arith.constant 0 : index
    %c0_38 = arith.constant 0 : index
    %32 = vector.load %arg2[%c0_37, %c0_38] : memref<160x768xbf16, #tpu.memory_space<vmem>>, vector<160x768xbf16>
    %c0_39 = arith.constant 0 : index
    %c0_40 = arith.constant 0 : index
    %33 = vector.load %arg6[%c0_39, %c0_40] : memref<30x160xbf16, #tpu.memory_space<vmem>>, vector<30x160xbf16>
    %cst = arith.constant dense<0.000000e+00> : vector<30x768xf32>
    %34 = tpu.matmul %33, %32, %cst {dimension_numbers = #tpu.dot_dimension_numbers<[1], [0], [0], [1], [0, 0, 1, 1], [], []>} : vector<30x160xbf16>, vector<160x768xbf16>, vector<30x768xf32> -> vector<30x768xf32>
    %35 = vector.broadcast %30 : vector<1x768xf32> to vector<30x768xf32>
    %36 = arith.mulf %34, %35 : vector<30x768xf32>
    %37 = vector.broadcast %31 : vector<1x768xf32> to vector<30x768xf32>
    %38 = arith.addf %36, %37 : vector<30x768xf32>
    %cst_41 = arith.constant 0.000000e+00 : f32
    %39 = vector.broadcast %cst_41 : f32 to vector<30x768xf32>
    %40 = arith.maximumf %38, %39 : vector<30x768xf32>
    %c0_42 = arith.constant 0 : index
    %c0_43 = arith.constant 0 : index
    %41 = vector.load %arg7[%c0_42, %c0_43] : memref<30x160xbf16, #tpu.memory_space<vmem>>, vector<30x160xbf16>
    %cst_44 = arith.constant dense<0.000000e+00> : vector<30x768xf32>
    %42 = tpu.matmul %41, %32, %cst_44 {dimension_numbers = #tpu.dot_dimension_numbers<[1], [0], [0], [1], [0, 0, 1, 1], [], []>} : vector<30x160xbf16>, vector<160x768xbf16>, vector<30x768xf32> -> vector<30x768xf32>
    %43 = vector.broadcast %30 : vector<1x768xf32> to vector<30x768xf32>
    %44 = arith.mulf %42, %43 : vector<30x768xf32>
    %45 = vector.broadcast %31 : vector<1x768xf32> to vector<30x768xf32>
    %46 = arith.addf %44, %45 : vector<30x768xf32>
    %cst_45 = arith.constant 0.000000e+00 : f32
    %47 = vector.broadcast %cst_45 : f32 to vector<30x768xf32>
    %48 = arith.maximumf %46, %47 : vector<30x768xf32>
    %49 = arith.maximumf %40, %48 : vector<30x768xf32>
    %50 = vector.extract_strided_slice %49 {offsets = [0, 0], sizes = [30, 384], strides = [1, 1]} : vector<30x768xf32> to vector<30x384xf32>
    %51 = vector.extract_strided_slice %49 {offsets = [0, 384], sizes = [30, 384], strides = [1, 1]} : vector<30x768xf32> to vector<30x384xf32>
    %52 = arith.maximumf %50, %51 : vector<30x384xf32>
    %cst_46 = arith.constant 0.000000e+00 : f32
    %53 = vector.broadcast %cst_46 : f32 to vector<2x384xf32>
    %cst_47 = arith.constant 0.000000e+00 : f32
    %54 = vector.broadcast %cst_47 : f32 to vector<2x384xf32>
    %55 = vector.extract_strided_slice %52 {offsets = [0, 0], sizes = [14, 384], strides = [1, 1]} : vector<30x384xf32> to vector<14x384xf32>
    %c0_48 = arith.constant 0 : index
    %c2_49 = arith.constant 2 : index
    %c0_50 = arith.constant 0 : index
    %56 = vector.load %arg5[%c0_48, %c2_49, %c0_50] : memref<2x18x384xf32, #tpu.memory_space<vmem>>, vector<1x14x384xf32>
    %57 = vector.shape_cast %56 : vector<1x14x384xf32> to vector<14x384xf32>
    %58 = vector.shape_cast %55 : vector<14x384xf32> to vector<1x14x384xf32>
    tpu.vector_store %arg5[%c0_48, %c2_49, %c0_50], %58 {strides = array<i32>} : memref<2x18x384xf32, #tpu.memory_space<vmem>>, vector<1x14x384xf32>,
    %c0_51 = arith.constant 0 : index
    %c0_52 = arith.constant 0 : index
    %c0_53 = arith.constant 0 : index
    %59 = vector.load %arg5[%c0_51, %c0_52, %c0_53] : memref<2x18x384xf32, #tpu.memory_space<vmem>>, vector<1x2x384xf32>
    %60 = vector.shape_cast %59 : vector<1x2x384xf32> to vector<2x384xf32>
    %61 = vector.shape_cast %53 : vector<2x384xf32> to vector<1x2x384xf32>
    tpu.vector_store %arg5[%c0_51, %c0_52, %c0_53], %61 {strides = array<i32>} : memref<2x18x384xf32, #tpu.memory_space<vmem>>, vector<1x2x384xf32>,
    %c0_54 = arith.constant 0 : index
    %c16 = arith.constant 16 : index
    %c0_55 = arith.constant 0 : index
    %62 = vector.load %arg5[%c0_54, %c16, %c0_55] : memref<2x18x384xf32, #tpu.memory_space<vmem>>, vector<1x2x384xf32>
    %63 = vector.shape_cast %62 : vector<1x2x384xf32> to vector<2x384xf32>
    %64 = vector.shape_cast %54 : vector<2x384xf32> to vector<1x2x384xf32>
    tpu.vector_store %arg5[%c0_54, %c16, %c0_55], %64 {strides = array<i32>} : memref<2x18x384xf32, #tpu.memory_space<vmem>>, vector<1x2x384xf32>,
    %65 = vector.extract_strided_slice %52 {offsets = [16, 0], sizes = [14, 384], strides = [1, 1]} : vector<30x384xf32> to vector<14x384xf32>
    %c1_56 = arith.constant 1 : index
    %c2_57 = arith.constant 2 : index
    %c0_58 = arith.constant 0 : index
    %66 = vector.load %arg5[%c1_56, %c2_57, %c0_58] : memref<2x18x384xf32, #tpu.memory_space<vmem>>, vector<1x14x384xf32>
    %67 = vector.shape_cast %66 : vector<1x14x384xf32> to vector<14x384xf32>
    %68 = vector.shape_cast %65 : vector<14x384xf32> to vector<1x14x384xf32>
    tpu.vector_store %arg5[%c1_56, %c2_57, %c0_58], %68 {strides = array<i32>} : memref<2x18x384xf32, #tpu.memory_space<vmem>>, vector<1x14x384xf32>,
    %c1_59 = arith.constant 1 : index
    %c0_60 = arith.constant 0 : index
    %c0_61 = arith.constant 0 : index
    %69 = vector.load %arg5[%c1_59, %c0_60, %c0_61] : memref<2x18x384xf32, #tpu.memory_space<vmem>>, vector<1x2x384xf32>
    %70 = vector.shape_cast %69 : vector<1x2x384xf32> to vector<2x384xf32>
    %71 = vector.shape_cast %53 : vector<2x384xf32> to vector<1x2x384xf32>
    tpu.vector_store %arg5[%c1_59, %c0_60, %c0_61], %71 {strides = array<i32>} : memref<2x18x384xf32, #tpu.memory_space<vmem>>, vector<1x2x384xf32>,
    %c1_62 = arith.constant 1 : index
    %c16_63 = arith.constant 16 : index
    %c0_64 = arith.constant 0 : index
    %72 = vector.load %arg5[%c1_62, %c16_63, %c0_64] : memref<2x18x384xf32, #tpu.memory_space<vmem>>, vector<1x2x384xf32>
    %73 = vector.shape_cast %72 : vector<1x2x384xf32> to vector<2x384xf32>
    %74 = vector.shape_cast %54 : vector<2x384xf32> to vector<1x2x384xf32>
    tpu.vector_store %arg5[%c1_62, %c16_63, %c0_64], %74 {strides = array<i32>} : memref<2x18x384xf32, #tpu.memory_space<vmem>>, vector<1x2x384xf32>,
    return
  }
  func.func @transform_0(%arg0: i32) -> (i32, i32) {
    %c0_i32 = arith.constant 0 : i32
    %c0_i32_0 = arith.constant 0 : i32
    return %arg0, %c0_i32 : i32, i32
  }
  func.func @transform_1(%arg0: i32) -> (i32, i32) {
    %c0_i32 = arith.constant 0 : i32
    %c0_i32_0 = arith.constant 0 : i32
    %c0_i32_1 = arith.constant 0 : i32
    return %c0_i32, %c0_i32_0 : i32, i32
  }
  func.func @transform_2(%arg0: i32) -> (i32, i32) {
    %c0_i32 = arith.constant 0 : i32
    %c0_i32_0 = arith.constant 0 : i32
    %c0_i32_1 = arith.constant 0 : i32
    return %c0_i32, %c0_i32_0 : i32, i32
  }
  func.func @transform_3(%arg0: i32) -> (i32, i32) {
    %c0_i32 = arith.constant 0 : i32
    %c0_i32_0 = arith.constant 0 : i32
    %c0_i32_1 = arith.constant 0 : i32
    return %c0_i32, %c0_i32_0 : i32, i32
  }
  func.func @transform_4(%arg0: i32) -> (i32, i32, i32) {
    %c0_i32 = arith.constant 0 : i32
    %c0_i32_0 = arith.constant 0 : i32
    %c0_i32_1 = arith.constant 0 : i32
    return %arg0, %c0_i32, %c0_i32_0 : i32, i32, i32
  }
}

module attributes {stable_mosaic.version = 11 : i64} {
  func.func @_fc_kernel(%arg0: i32, %arg1: memref<8x1792xf32, #tpu.memory_space<vmem>>, %arg2: memref<1792x128xbf16, #tpu.memory_space<vmem>>, %arg3: memref<1x128xf32, #tpu.memory_space<vmem>>, %arg4: memref<8x128xf32, #tpu.memory_space<vmem>>) attributes {dimension_semantics = [#tpu.dimension_semantics<parallel>], iteration_bounds = array<i64: 1>, scalar_prefetch = 0 : i64, scratch_operands = 0 : i64, tpu.core_type = #tpu.core_type<tc>, window_params = [{transform_indices = @transform_0, window_bounds = array<i64: 8, 1792>}, {pipeline_mode = #tpu.pipeline_mode<synchronous>, transform_indices = @transform_1, window_bounds = array<i64: 1792, 128>}, {pipeline_mode = #tpu.pipeline_mode<synchronous>, transform_indices = @transform_2, window_bounds = array<i64: 1, 128>}, {transform_indices = @transform_3, window_bounds = array<i64: 8, 128>}]} {
    %c0 = arith.constant 0 : index
    %c0_0 = arith.constant 0 : index
    %0 = vector.load %arg1[%c0, %c0_0] : memref<8x1792xf32, #tpu.memory_space<vmem>>, vector<8x1792xf32>
    %1 = arith.truncf %0 : vector<8x1792xf32> to vector<8x1792xbf16>
    %c0_1 = arith.constant 0 : index
    %c0_2 = arith.constant 0 : index
    %2 = vector.load %arg2[%c0_1, %c0_2] : memref<1792x128xbf16, #tpu.memory_space<vmem>>, vector<1792x128xbf16>
    %cst = arith.constant dense<0.000000e+00> : vector<8x128xf32>
    %3 = tpu.matmul %1, %2, %cst {dimension_numbers = #tpu.dot_dimension_numbers<[1], [0], [0], [1], [0, 0, 1, 1], [], []>} : vector<8x1792xbf16>, vector<1792x128xbf16>, vector<8x128xf32> -> vector<8x128xf32>
    %c0_3 = arith.constant 0 : index
    %c0_4 = arith.constant 0 : index
    %4 = vector.load %arg3[%c0_3, %c0_4] : memref<1x128xf32, #tpu.memory_space<vmem>>, vector<1x128xf32>
    %5 = vector.broadcast %4 : vector<1x128xf32> to vector<8x128xf32>
    %6 = arith.addf %3, %5 : vector<8x128xf32>
    %c0_5 = arith.constant 0 : index
    %c0_6 = arith.constant 0 : index
    %7 = vector.load %arg4[%c0_5, %c0_6] : memref<8x128xf32, #tpu.memory_space<vmem>>, vector<8x128xf32>
    tpu.vector_store %arg4[%c0_5, %c0_6], %6 {strides = array<i32>} : memref<8x128xf32, #tpu.memory_space<vmem>>, vector<8x128xf32>,
    return
  }
  func.func @transform_0(%arg0: i32) -> (i32, i32) {
    %c0_i32 = arith.constant 0 : i32
    %c0_i32_0 = arith.constant 0 : i32
    return %arg0, %c0_i32 : i32, i32
  }
  func.func @transform_1(%arg0: i32) -> (i32, i32) {
    %c0_i32 = arith.constant 0 : i32
    %c0_i32_0 = arith.constant 0 : i32
    %c0_i32_1 = arith.constant 0 : i32
    return %c0_i32, %c0_i32_0 : i32, i32
  }
  func.func @transform_2(%arg0: i32) -> (i32, i32) {
    %c0_i32 = arith.constant 0 : i32
    %c0_i32_0 = arith.constant 0 : i32
    %c0_i32_1 = arith.constant 0 : i32
    return %c0_i32, %c0_i32_0 : i32, i32
  }
  func.func @transform_3(%arg0: i32) -> (i32, i32) {
    %c0_i32 = arith.constant 0 : i32
    %c0_i32_0 = arith.constant 0 : i32
    return %arg0, %c0_i32 : i32, i32
  }
}

</mosaic_0001>

<bundles_post_ra>
// kernel: convnet_forward.5
= control target key start
LH: loop header
LB: loop body
LE: loop exit
PB: predicated region body
PF: predicated region fallthrough
CT: control target
= control target key end

     0   :  { %8 = vsyncpa [#allocation3], 0  ;;  %s1853_s0 = inlined_call_operand.vmem [shape: f32[8,1792], index: 0, kind: input, shape index: {}]   ;;  %s1854_s1 = inlined_call_operand.hbm [shape: bf16[1792,128], index: 1, kind: input, shape index: {}]   ;;  %s1855_s2 = inlined_call_operand.hbm [shape: f32[1,128], index: 2, kind: input, shape index: {}]   ;;  %s1856_s3 = inlined_call_operand.vmem [shape: f32[8,128], index: 3, kind: output, shape index: {}]  }
   0x1   :  { %s16_s14 = sshll.u32 %s1854_s1, 4  ;;  %s17_s14 = int_to_ptr.hbm [resolvable:$true] %s16_s14 }
   0x2   :  { %9 = vsyncpa [#allocation5], 0  ;;  %s1778_s15 = smov [#allocation2]   ;;  %s30_s19 = sshll.u32 %s1855_s2, 4  ;;  %s31_s19 = int_to_ptr.hbm [resolvable:$true] %s30_s19 }
   0x3   :  { %s18_s16 = sshll.u32 %s1778_s15, 4  ;;  %s1779_s20 = smov 64   ;;  %s19_s16 = int_to_ptr.vmem [resolvable:$true] %s18_s16 }
   0x4   :  { %s1780_s21 = smov 4   ;;  %s1781_s22 = smov [#allocation4]  }
   0x5   :  { %24 = dma.hbm_to_vmem [thread:$0]  %s17_s14, 14336, %s19_s16, [#allocation3], %s1779_s20, %s1779_s20, %s1780_s21  }
   0x6   :  { %s32_s23 = sshll.u32 %s1781_s22, 4  ;;  %s33_s23 = int_to_ptr.vmem [resolvable:$true] %s32_s23 }
   0x7   :  { %35 = dma.hbm_to_vmem [thread:$0]  %s31_s19, 16, %s33_s23, [#allocation5]  }
   0x8   :  { %1774 = dma.done.wait [#allocation3], 14336  }
   0x9   :  { %1775 = vsyncadd [#allocation3], 4294952960 }
   0xa   :  { %1776 = dma.done.wait [#allocation5], 16  }
   0xb   :  { %1777 = vsyncadd [#allocation5], 4294967280  ;;  %v1616_v0 = vld [vmem:[#allocation2 + $0x38] sm:$0xff]  ;;  %v1615_v4 = vld [vmem:[#allocation2 + $0x30] sm:$0xff] }
   0xc   :  { %v1624_v1 = vld [vmem:[#allocation2 + $0x78] sm:$0xff]  ;;  %972 = vmatpush.bf16.msra.mxu0 %v1616_v0  ;;  %v1623_v5 = vld [vmem:[#allocation2 + $0x70] sm:$0xff]  ;;  %v1614_v8 = vld [vmem:[#allocation2 + $0x28] sm:$0xff] }
   0xd   :  { %v1632_v2 = vld [vmem:[#allocation2 + $0xb8] sm:$0xff]  ;;  %985 = vmatpush.bf16.msra.mxu1 %v1624_v1  ;;  %v1631_v6 = vld [vmem:[#allocation2 + $0xb0] sm:$0xff]  ;;  %v1622_v9 = vld [vmem:[#allocation2 + $0x68] sm:$0xff] }
   0xe   :  { %v1640_v3 = vld [vmem:[#allocation2 + $0xf8] sm:$0xff]  ;;  %998 = vmatpush.bf16.msra.mxu2 %v1632_v2  ;;  %v1639_v7 = vld [vmem:[#allocation2 + $0xf0] sm:$0xff]  ;;  %v1630_v10 = vld [vmem:[#allocation2 + $0xa8] sm:$0xff] }
   0xf   :  { %1011 = vmatpush.bf16.msra.mxu3 %v1640_v3  ;;  %v1638_v11 = vld [vmem:[#allocation2 + $0xe8] sm:$0xff]  ;;  %v1613_v12 = vld [vmem:[#allocation2 + $0x20] sm:$0xff]  ;;  %v1612_v16 = vld [vmem:[#allocation2 + $0x18] sm:$0xff] }
  0x10   :  { %973 = vmatpush.bf16.msra.mxu0 %v1615_v4  ;;  %v1621_v13 = vld [vmem:[#allocation2 + $0x60] sm:$0xff]  ;;  %v1620_v17 = vld [vmem:[#allocation2 + $0x58] sm:$0xff]  ;;  %v1611_v20 = vld [vmem:[#allocation2 + $0x10] sm:$0xff] }
  0x11   :  { %986 = vmatpush.bf16.msra.mxu1 %v1623_v5  ;;  %v1629_v14 = vld [vmem:[#allocation2 + $0xa0] sm:$0xff]  ;;  %v1628_v18 = vld [vmem:[#allocation2 + $0x98] sm:$0xff]  ;;  %v1619_v21 = vld [vmem:[#allocation2 + $0x50] sm:$0xff] }
  0x12   :  { %999 = vmatpush.bf16.msra.mxu2 %v1631_v6  ;;  %v1637_v15 = vld [vmem:[#allocation2 + $0xe0] sm:$0xff]  ;;  %v1636_v19 = vld [vmem:[#allocation2 + $0xd8] sm:$0xff]  ;;  %v1627_v22 = vld [vmem:[#allocation2 + $0x90] sm:$0xff] }
  0x13   :  { %1012 = vmatpush.bf16.msra.mxu3 %v1639_v7  ;;  %v1635_v23 = vld [vmem:[#allocation2 + $0xd0] sm:$0xff]  ;;  %v1610_v24 = vld [vmem:[#allocation2 + $0x8] sm:$0xff]  ;;  %v1609_v28 = vld [vmem:[#allocation2] sm:$0xff] }
  0x14   :  { %974 = vmatpush.bf16.msra.mxu0 %v1614_v8  ;;  %v1618_v25 = vld [vmem:[#allocation2 + $0x48] sm:$0xff]  ;;  %v1617_v29 = vld [vmem:[#allocation2 + $0x40] sm:$0xff]  ;;  %v1648_v32 = vld [vmem:[#allocation2 + $0x138] sm:$0xff] }
  0x15   :  { %987 = vmatpush.bf16.msra.mxu1 %v1622_v9  ;;  %v1626_v26 = vld [vmem:[#allocation2 + $0x88] sm:$0xff]  ;;  %v44_v30 = vld [vmem:[%s1853_s0] sm:$0xff]  ;;  %v46_v33 = vld [vmem:[%s1853_s0 + $0x10] sm:$0xff] }
  0x16   :  { %1000 = vmatpush.bf16.msra.mxu2 %v1630_v10  ;;  %v1634_v27 = vld [vmem:[#allocation2 + $0xc8] sm:$0xff]  ;;  %v1625_v31 = vld [vmem:[#allocation2 + $0x80] sm:$0xff]  ;;  %v1656_v34 = vld [vmem:[#allocation2 + $0x178] sm:$0xff]  ;;  %v58_v38 = vpack.c.bf16 %v44_v30, %v44_v30  ;;  %v60_v40 = vpack.c.bf16 %v46_v33, %v46_v33 }
  0x17   :  { %1013 = vmatpush.bf16.msra.mxu3 %v1638_v11  ;;  %v1664_v35 = vld [vmem:[#allocation2 + $0x1b8] sm:$0xff]  ;;  %v45_v36 = vld [vmem:[%s1853_s0 + $0x8] sm:$0xff]  ;;  %v1633_v37 = vld [vmem:[#allocation2 + $0xc0] sm:$0xff] }
  0x18   :  { %975 = vmatpush.bf16.msra.mxu0 %v1613_v12  ;;  %v1672_v39 = vld [vmem:[#allocation2 + $0x1f8] sm:$0xff]  ;;  %v1647_v42 = vld [vmem:[#allocation2 + $0x130] sm:$0xff]  ;;  %v59_v43 = vpack.c.bf16 %v45_v36, %v45_v36  ;;  %v1646_v48 = vld [vmem:[#allocation2 + $0x128] sm:$0xff] }
  0x19   :  { %988 = vmatpush.bf16.msra.mxu1 %v1621_v13  ;;  %v47_v41 = vld [vmem:[%s1853_s0 + $0x18] sm:$0xff]  ;;  %v1655_v44 = vld [vmem:[#allocation2 + $0x170] sm:$0xff]  ;;  %v1654_v49 = vld [vmem:[#allocation2 + $0x168] sm:$0xff] }
  0x1a   :  { %1001 = vmatpush.bf16.msra.mxu2 %v1629_v14  ;;  %v1663_v45 = vld [vmem:[#allocation2 + $0x1b0] sm:$0xff]  ;;  %v61_v46 = vpack.c.bf16 %v47_v41, %v47_v41  ;;  %v1662_v50 = vld [vmem:[#allocation2 + $0x1a8] sm:$0xff]  ;;  %v1645_v52 = vld [vmem:[#allocation2 + $0x120] sm:$0xff] }
  0x1b   :  { %1014 = vmatpush.bf16.msra.mxu3 %v1637_v15  ;;  %v1671_v47 = vld [vmem:[#allocation2 + $0x1f0] sm:$0xff]  ;;  %v1670_v51 = vld [vmem:[#allocation2 + $0x1e8] sm:$0xff]  ;;  %v1653_v53 = vld [vmem:[#allocation2 + $0x160] sm:$0xff] }
  0x1c   :  { %976 = vmatpush.bf16.msra.mxu0 %v1612_v16  ;;  %v1661_v54 = vld [vmem:[#allocation2 + $0x1a0] sm:$0xff]  ;;  %v1644_v56 = vld [vmem:[#allocation2 + $0x118] sm:$0xff]  ;;  %v1643_v60 = vld [vmem:[#allocation2 + $0x110] sm:$0xff] }
  0x1d   :  { %989 = vmatpush.bf16.msra.mxu1 %v1620_v17  ;;  %v1669_v55 = vld [vmem:[#allocation2 + $0x1e0] sm:$0xff]  ;;  %v1652_v57 = vld [vmem:[#allocation2 + $0x158] sm:$0xff]  ;;  %v1651_v61 = vld [vmem:[#allocation2 + $0x150] sm:$0xff] }
  0x1e   :  { %1002 = vmatpush.bf16.msra.mxu2 %v1628_v18  ;;  %v1660_v58 = vld [vmem:[#allocation2 + $0x198] sm:$0xff]  ;;  %v1659_v62 = vld [vmem:[#allocation2 + $0x190] sm:$0xff]  ;;  %v1642_v0 = vld [vmem:[#allocation2 + $0x108] sm:$0xff] }
  0x1f   :  { %1015 = vmatpush.bf16.msra.mxu3 %v1636_v19  ;;  %v1668_v59 = vld [vmem:[#allocation2 + $0x1d8] sm:$0xff]  ;;  %v1667_v63 = vld [vmem:[#allocation2 + $0x1d0] sm:$0xff]  ;;  %v1650_v1 = vld [vmem:[#allocation2 + $0x148] sm:$0xff] }
  0x20   :  { %977 = vmatpush.bf16.msra.mxu0 %v1611_v20  ;;  %v1658_v2 = vld [vmem:[#allocation2 + $0x188] sm:$0xff]  ;;  %v1641_v4 = vld [vmem:[#allocation2 + $0x100] sm:$0xff]  ;;  %v1680_v7 = vld [vmem:[#allocation2 + $0x238] sm:$0xff] }
  0x21   :  { %990 = vmatpush.bf16.msra.mxu1 %v1619_v21  ;;  %v1666_v3 = vld [vmem:[#allocation2 + $0x1c8] sm:$0xff]  ;;  %v1649_v5 = vld [vmem:[#allocation2 + $0x140] sm:$0xff]  ;;  %v50_v8 = vld [vmem:[%s1853_s0 + $0x30] sm:$0xff] }
  0x22   :  { %1003 = vmatpush.bf16.msra.mxu2 %v1627_v22  ;;  %v1657_v6 = vld [vmem:[#allocation2 + $0x180] sm:$0xff]  ;;  %v1688_v9 = vld [vmem:[#allocation2 + $0x278] sm:$0xff]  ;;  %v49_v11 = vld [vmem:[%s1853_s0 + $0x28] sm:$0xff]  ;;  %v64_v15 = vpack.c.bf16 %v50_v8, %v50_v8 }
  0x23   :  { %1016 = vmatpush.bf16.msra.mxu3 %v1635_v23  ;;  %v48_v10 = vld [vmem:[%s1853_s0 + $0x20] sm:$0xff]  ;;  %v1696_v12 = vld [vmem:[#allocation2 + $0x2b8] sm:$0xff]  ;;  %v63_v18 = vpack.c.bf16 %v49_v11, %v49_v11  ;;  %v1679_v19 = vld [vmem:[#allocation2 + $0x230] sm:$0xff] }
  0x24   :  { %978 = vmatpush.bf16.msra.mxu0 %v1610_v24  ;;  %v1665_v13 = vld [vmem:[#allocation2 + $0x1c0] sm:$0xff]  ;;  %v1704_v14 = vld [vmem:[#allocation2 + $0x2f8] sm:$0xff]  ;;  %v62_v17 = vpack.c.bf16 %v48_v10, %v48_v10  ;;  %v1687_v20 = vld [vmem:[#allocation2 + $0x270] sm:$0xff] }
  0x25   :  { %991 = vmatpush.bf16.msra.mxu1 %v1618_v25  ;;  %v51_v16 = vld [vmem:[%s1853_s0 + $0x38] sm:$0xff]  ;;  %v1695_v21 = vld [vmem:[#allocation2 + $0x2b0] sm:$0xff]  ;;  %v1678_v24 = vld [vmem:[#allocation2 + $0x228] sm:$0xff] }
  0x26   :  { %1004 = vmatpush.bf16.msra.mxu2 %v1626_v26  ;;  %v65_v22 = vpack.c.bf16 %v51_v16, %v51_v16  ;;  %v1703_v23 = vld [vmem:[#allocation2 + $0x2f0] sm:$0xff]  ;;  %v1686_v25 = vld [vmem:[#allocation2 + $0x268] sm:$0xff]  ;;  %v1693_v30 = vld [vmem:[#allocation2 + $0x2a0] sm:$0xff] }
  0x27   :  { %1017 = vmatpush.bf16.msra.mxu3 %v1634_v27  ;;  %v1694_v26 = vld [vmem:[#allocation2 + $0x2a8] sm:$0xff]  ;;  %v1684_v33 = vld [vmem:[#allocation2 + $0x258] sm:$0xff]  ;;  %v1675_v36 = vld [vmem:[#allocation2 + $0x210] sm:$0xff] }
  0x28   :  { %979 = vmatpush.bf16.msra.mxu0 %v1609_v28  ;;  %v1702_v27 = vld [vmem:[#allocation2 + $0x2e8] sm:$0xff]  ;;  %v1677_v28 = vld [vmem:[#allocation2 + $0x220] sm:$0xff] }
  0x29   :  { %992 = vmatpush.bf16.msra.mxu1 %v1617_v29  ;;  %v1685_v29 = vld [vmem:[#allocation2 + $0x260] sm:$0xff]  ;;  %v1682_v41 = vld [vmem:[#allocation2 + $0x248] sm:$0xff] }
  0x2a   :  { %1005 = vmatpush.bf16.msra.mxu2 %v1625_v31  ;;  %v1701_v31 = vld [vmem:[#allocation2 + $0x2e0] sm:$0xff] }
  0x2b   :  { %1018 = vmatpush.bf16.msra.mxu3 %v1633_v37  ;;  %980 = vmatmul.bf16.vlgmr.msra.gmra.mxu0 %v58_v38  ;;  %v1683_v37 = vld [vmem:[#allocation2 + $0x250] sm:$0xff]  ;;  %v1713_v8 = vld [vmem:[#allocation2 + $0x340] sm:$0xff] }
  0x2c   :  { %1024 = vmatpush.bf16.msrb.mxu0 %v1648_v32  ;;  %993 = vmatmul.bf16.vlgmr.msra.gmra.mxu1 %v59_v43  ;;  %v1676_v32 = vld [vmem:[#allocation2 + $0x218] sm:$0xff]  ;;  %v1691_v38 = vld [vmem:[#allocation2 + $0x290] sm:$0xff]  ;;  %v1698_v43 = vld [vmem:[#allocation2 + $0x2c8] sm:$0xff] }
  0x2d   :  { %1037 = vmatpush.bf16.msrb.mxu1 %v1656_v34  ;;  %1006 = vmatmul.bf16.vlgmr.msra.gmra.mxu2 %v60_v40  ;;  %v1692_v34 = vld [vmem:[#allocation2 + $0x298] sm:$0xff]  ;;  %v1674_v40 = vld [vmem:[#allocation2 + $0x208] sm:$0xff] }
  0x2e   :  { %1050 = vmatpush.bf16.msrb.mxu2 %v1664_v35  ;;  %1019 = vmatmul.bf16.vlgmr.msra.gmra.mxu3 %v61_v46  ;;  %v1700_v35 = vld [vmem:[#allocation2 + $0x2d8] sm:$0xff]  ;;  %v52_v46 = vld [vmem:[%s1853_s0 + $0x40] sm:$0xff] }
  0x2f   :  { %1063 = vmatpush.bf16.msrb.mxu3 %v1672_v39  ;;  %v1699_v39 = vld [vmem:[#allocation2 + $0x2d0] sm:$0xff] }
  0x30   :  { %1025 = vmatpush.bf16.msrb.mxu0 %v1647_v42  ;;  %v1690_v42 = vld [vmem:[#allocation2 + $0x288] sm:$0xff] }
  0x31   :  { %1038 = vmatpush.bf16.msrb.mxu1 %v1655_v44  ;;  %v1673_v44 = vld [vmem:[#allocation2 + $0x200] sm:$0xff] }
  0x32   :  { %1051 = vmatpush.bf16.msrb.mxu2 %v1663_v45  ;;  %v1681_v45 = vld [vmem:[#allocation2 + $0x240] sm:$0xff] }
  0x33   :  { %1064 = vmatpush.bf16.msrb.mxu3 %v1671_v47  ;;  %v53_v47 = vld [vmem:[%s1853_s0 + $0x48] sm:$0xff] }
  0x34   :  { %1026 = vmatpush.bf16.msrb.mxu0 %v1646_v48  ;;  %v1689_v48 = vld [vmem:[#allocation2 + $0x280] sm:$0xff] }
  0x35   :  { %1039 = vmatpush.bf16.msrb.mxu1 %v1654_v49  ;;  %v1712_v49 = vld [vmem:[#allocation2 + $0x338] sm:$0xff] }
  0x36   :  { %1052 = vmatpush.bf16.msrb.mxu2 %v1662_v50  ;;  %v54_v50 = vld [vmem:[%s1853_s0 + $0x50] sm:$0xff] }
  0x37   :  { %1065 = vmatpush.bf16.msrb.mxu3 %v1670_v51  ;;  %v1720_v51 = vld [vmem:[#allocation2 + $0x378] sm:$0xff] }
  0x38   :  { %1027 = vmatpush.bf16.msrb.mxu0 %v1645_v52  ;;  %v1697_v52 = vld [vmem:[#allocation2 + $0x2c0] sm:$0xff] }
  0x39   :  { %1040 = vmatpush.bf16.msrb.mxu1 %v1653_v53  ;;  %v55_v53 = vld [vmem:[%s1853_s0 + $0x58] sm:$0xff] }
  0x3a   :  { %1053 = vmatpush.bf16.msrb.mxu2 %v1661_v54  ;;  %v66_v54 = vpack.c.bf16 %v52_v46, %v52_v46 }
  0x3b   :  { %1066 = vmatpush.bf16.msrb.mxu3 %v1669_v55  ;;  %v67_v55 = vpack.c.bf16 %v53_v47, %v53_v47 }
  0x3c   :  { %1028 = vmatpush.bf16.msrb.mxu0 %v1644_v56  ;;  %v68_v56 = vpack.c.bf16 %v54_v50, %v54_v50 }
  0x3d   :  { %1041 = vmatpush.bf16.msrb.mxu1 %v1652_v57  ;;  %v69_v57 = vpack.c.bf16 %v55_v53, %v55_v53 }
  0x3e   :  { %1054 = vmatpush.bf16.msrb.mxu2 %v1660_v58  ;;  %v1711_v58 = vld [vmem:[#allocation2 + $0x330] sm:$0xff] }
  0x3f   :  { %1067 = vmatpush.bf16.msrb.mxu3 %v1668_v59  ;;  %v1719_v59 = vld [vmem:[#allocation2 + $0x370] sm:$0xff] }
  0x40   :  { %1029 = vmatpush.bf16.msrb.mxu0 %v1643_v60  ;;  %v1710_v60 = vld [vmem:[#allocation2 + $0x328] sm:$0xff] }
  0x41   :  { %1042 = vmatpush.bf16.msrb.mxu1 %v1651_v61  ;;  %v1718_v61 = vld [vmem:[#allocation2 + $0x368] sm:$0xff] }
  0x42   :  { %1055 = vmatpush.bf16.msrb.mxu2 %v1659_v62  ;;  %v1709_v62 = vld [vmem:[#allocation2 + $0x320] sm:$0xff] }
  0x43   :  { %1068 = vmatpush.bf16.msrb.mxu3 %v1667_v63  ;;  %v1717_v63 = vld [vmem:[#allocation2 + $0x360] sm:$0xff] }
  0x44   :  { %1030 = vmatpush.bf16.msrb.mxu0 %v1642_v0  ;;  %v1708_v0 = vld [vmem:[#allocation2 + $0x318] sm:$0xff] }
  0x45   :  { %1043 = vmatpush.bf16.msrb.mxu1 %v1650_v1  ;;  %v1716_v1 = vld [vmem:[#allocation2 + $0x358] sm:$0xff] }
  0x46   :  { %1056 = vmatpush.bf16.msrb.mxu2 %v1658_v2  ;;  %v1707_v2 = vld [vmem:[#allocation2 + $0x310] sm:$0xff] }
  0x47   :  { %1069 = vmatpush.bf16.msrb.mxu3 %v1666_v3  ;;  %v1715_v3 = vld [vmem:[#allocation2 + $0x350] sm:$0xff] }
  0x48   :  { %1031 = vmatpush.bf16.msrb.mxu0 %v1641_v4  ;;  %v1706_v4 = vld [vmem:[#allocation2 + $0x308] sm:$0xff] }
  0x49   :  { %1044 = vmatpush.bf16.msrb.mxu1 %v1649_v5  ;;  %v1714_v5 = vld [vmem:[#allocation2 + $0x348] sm:$0xff] }
  0x4a   :  { %1057 = vmatpush.bf16.msrb.mxu2 %v1657_v6  ;;  %v1705_v6 = vld [vmem:[#allocation2 + $0x300] sm:$0xff] }
  0x4b   :  { %1070 = vmatpush.bf16.msrb.mxu3 %v1665_v13  ;;  %1032 = vmatmul.bf16.vlgmr.msrb.gmra.mxu0 %v62_v17 }
  0x4c   :  { %1076 = vmatpush.bf16.msra.mxu0 %v1680_v7  ;;  %1045 = vmatmul.bf16.vlgmr.msrb.gmra.mxu1 %v63_v18  ;;  %v56_v7 = vld [vmem:[%s1853_s0 + $0x60] sm:$0xff] }
  0x4d   :  { %1089 = vmatpush.bf16.msra.mxu1 %v1688_v9  ;;  %1058 = vmatmul.bf16.vlgmr.msrb.gmra.mxu2 %v64_v15  ;;  %v57_v9 = vld [vmem:[%s1853_s0 + $0x68] sm:$0xff]  ;;  %v70_v10 = vpack.c.bf16 %v56_v7, %v56_v7 }
  0x4e   :  { %1102 = vmatpush.bf16.msra.mxu2 %v1696_v12  ;;  %1071 = vmatmul.bf16.vlgmr.msrb.gmra.mxu3 %v65_v22  ;;  %v71_v11 = vpack.c.bf16 %v57_v9, %v57_v9  ;;  %v1725_v12 = vld [vmem:[#allocation4] ss:$0 sm:$0xff] }
  0x4f   :  { %1115 = vmatpush.bf16.msra.mxu3 %v1704_v14 }
  0x50   :  { %1077 = vmatpush.bf16.msra.mxu0 %v1679_v19 }
  0x51   :  { %1090 = vmatpush.bf16.msra.mxu1 %v1687_v20 }
  0x52   :  { %1103 = vmatpush.bf16.msra.mxu2 %v1695_v21 }
  0x53   :  { %1116 = vmatpush.bf16.msra.mxu3 %v1703_v23 }
  0x54   :  { %1078 = vmatpush.bf16.msra.mxu0 %v1678_v24 }
  0x55   :  { %1091 = vmatpush.bf16.msra.mxu1 %v1686_v25 }
  0x56   :  { %1104 = vmatpush.bf16.msra.mxu2 %v1694_v26 }
  0x57   :  { %1117 = vmatpush.bf16.msra.mxu3 %v1702_v27 }
  0x58   :  { %1079 = vmatpush.bf16.msra.mxu0 %v1677_v28 }
  0x59   :  { %1092 = vmatpush.bf16.msra.mxu1 %v1685_v29 }
  0x5a   :  { %1105 = vmatpush.bf16.msra.mxu2 %v1693_v30 }
  0x5b   :  { %1118 = vmatpush.bf16.msra.mxu3 %v1701_v31 }
  0x5c   :  { %1080 = vmatpush.bf16.msra.mxu0 %v1676_v32 }
  0x5d   :  { %1093 = vmatpush.bf16.msra.mxu1 %v1684_v33 }
  0x5e   :  { %1106 = vmatpush.bf16.msra.mxu2 %v1692_v34 }
  0x5f   :  { %1119 = vmatpush.bf16.msra.mxu3 %v1700_v35 }
  0x60   :  { %1081 = vmatpush.bf16.msra.mxu0 %v1675_v36 }
  0x61   :  { %1094 = vmatpush.bf16.msra.mxu1 %v1683_v37 }
  0x62   :  { %1107 = vmatpush.bf16.msra.mxu2 %v1691_v38 }
  0x63   :  { %1120 = vmatpush.bf16.msra.mxu3 %v1699_v39 }
  0x64   :  { %1082 = vmatpush.bf16.msra.mxu0 %v1674_v40 }
  0x65   :  { %1095 = vmatpush.bf16.msra.mxu1 %v1682_v41 }
  0x66   :  { %1108 = vmatpush.bf16.msra.mxu2 %v1690_v42 }
  0x67   :  { %1121 = vmatpush.bf16.msra.mxu3 %v1698_v43 }
  0x68   :  { %1083 = vmatpush.bf16.msra.mxu0 %v1673_v44 }
  0x69   :  { %1096 = vmatpush.bf16.msra.mxu1 %v1681_v45 }
  0x6a   :  { %1109 = vmatpush.bf16.msra.mxu2 %v1689_v48 }
  0x6b   :  { %1122 = vmatpush.bf16.msra.mxu3 %v1697_v52  ;;  %1084 = vmatmul.bf16.vlgmr.msra.gmra.mxu0 %v66_v54 }
  0x6c   :  { %1128 = vmatpush.bf16.msrb.mxu0 %v1712_v49  ;;  %1097 = vmatmul.bf16.vlgmr.msra.gmra.mxu1 %v67_v55 }
  0x6d   :  { %1141 = vmatpush.bf16.msrb.mxu1 %v1720_v51  ;;  %1110 = vmatmul.bf16.vlgmr.msra.gmra.mxu2 %v68_v56 }
  0x6e   :  { %1123 = vmatmul.bf16.vlgmr.msra.gmra.mxu3 %v69_v57 }
  0x70   :  { %1129 = vmatpush.bf16.msrb.mxu0 %v1711_v58 }
  0x71   :  { %1142 = vmatpush.bf16.msrb.mxu1 %v1719_v59 }
  0x74   :  { %1130 = vmatpush.bf16.msrb.mxu0 %v1710_v60 }
  0x75   :  { %1143 = vmatpush.bf16.msrb.mxu1 %v1718_v61 }
  0x78   :  { %1131 = vmatpush.bf16.msrb.mxu0 %v1709_v62 }
  0x79   :  { %1144 = vmatpush.bf16.msrb.mxu1 %v1717_v63 }
  0x7c   :  { %1132 = vmatpush.bf16.msrb.mxu0 %v1708_v0 }
  0x7d   :  { %1145 = vmatpush.bf16.msrb.mxu1 %v1716_v1 }
  0x80   :  { %1133 = vmatpush.bf16.msrb.mxu0 %v1707_v2 }
  0x81   :  { %1146 = vmatpush.bf16.msrb.mxu1 %v1715_v3 }
  0x84   :  { %1134 = vmatpush.bf16.msrb.mxu0 %v1706_v4 }
  0x85   :  { %1147 = vmatpush.bf16.msrb.mxu1 %v1714_v5 }
  0x88   :  { %1135 = vmatpush.bf16.msrb.mxu0 %v1705_v6 }
  0x89   :  { %1148 = vmatpush.bf16.msrb.mxu1 %v1713_v8 }
  0x8b   :  { %1136 = vmatmul.bf16.vlgmr.msrb.gmra.mxu0 %v70_v10 }
  0x8c   :  { %1149 = vmatmul.bf16.vlgmr.msrb.gmra.mxu1 %v71_v11 }
  0xa8   :  { %v981_v13 = vpop.f32.mrf.mxu0 }
  0xa9   :  { %v982_v14 = vadd.f32 %v1725_v12, %v981_v13  ;;  %v994_v15 = vpop.f32.mrf.mxu1 }
  0xab   :  { %v995_v16 = vadd.f32 %v994_v15, %v982_v14 }
  0xb0   :  { %v1007_v17 = vpop.f32.mrf.mxu2  ;;  %v983_v18 = vpop.f32.mrf.mxu0 }
  0xb1   :  { %v1020_v19 = vpop.f32.mrf.mxu3  ;;  %v996_v20 = vpop.f32.mrf.mxu1  ;;  %v1008_v31 = vadd.f32 %v1007_v17, %v995_v16 }
  0xb3   :  { %v1021_v32 = vadd.f32 %v1020_v19, %v1008_v31 }
  0xb8   :  { %v1009_v21 = vpop.f32.mrf.mxu2 }
  0xb9   :  { %v1022_v22 = vpop.f32.mrf.mxu3 }
  0xc8   :  { %v1033_v23 = vpop.f32.mrf.mxu0 }
  0xc9   :  { %v1046_v24 = vpop.f32.mrf.mxu1  ;;  %v1034_v35 = vadd.f32 %v1033_v23, %v1021_v32 }
  0xcb   :  { %v1047_v37 = vadd.f32 %v1046_v24, %v1034_v35 }
  0xd0   :  { %v1059_v25 = vpop.f32.mrf.mxu2  ;;  %v1035_v27 = vpop.f32.mrf.mxu0 }
  0xd1   :  { %v1072_v26 = vpop.f32.mrf.mxu3  ;;  %v1048_v28 = vpop.f32.mrf.mxu1  ;;  %v1060_v41 = vadd.f32 %v1059_v25, %v1047_v37 }
  0xd3   :  { %v1073_v43 = vadd.f32 %v1072_v26, %v1060_v41 }
  0xd8   :  { %v1061_v29 = vpop.f32.mrf.mxu2 }
  0xd9   :  { %v1074_v30 = vpop.f32.mrf.mxu3 }
  0xe8   :  { %v1085_v33 = vpop.f32.mrf.mxu0 }
  0xe9   :  { %v1098_v34 = vpop.f32.mrf.mxu1  ;;  %v1086_v45 = vadd.f32 %v1085_v33, %v1073_v43 }
  0xeb   :  { %v1099_v46 = vadd.f32 %v1098_v34, %v1086_v45 }
  0xf0   :  { %v1111_v36 = vpop.f32.mrf.mxu2  ;;  %v1087_v39 = vpop.f32.mrf.mxu0 }
  0xf1   :  { %v1124_v38 = vpop.f32.mrf.mxu3  ;;  %v1100_v40 = vpop.f32.mrf.mxu1  ;;  %v1112_v47 = vadd.f32 %v1111_v36, %v1099_v46 }
  0xf3   :  { %v1125_v48 = vadd.f32 %v1124_v38, %v1112_v47 }
  0xf8   :  { %v1113_v42 = vpop.f32.mrf.mxu2 }
  0xf9   :  { %v1126_v44 = vpop.f32.mrf.mxu3 }
 0x108   :  { %v1137_v49 = vpop.f32.mrf.mxu0 }
 0x109   :  { %v1138_v50 = vadd.f32 %v1137_v49, %v1125_v48  ;;  %v1150_v51 = vpop.f32.mrf.mxu1 }
 0x10b   :  { %v1151_v52 = vadd.f32 %v1150_v51, %v1138_v50 }
 0x10d   :  { %1154 = vst [vmem:[%s1856_s3] sm:$0xff] %v1151_v52 }
 0x110   :  { %v1139_v53 = vpop.f32.mrf.mxu0 }
 0x111   :  { %v1152_v54 = vpop.f32.mrf.mxu1 }
 0x112   :  { %1159 = vsyncpa [#allocation3], 1 }
 0x113   :  { %1160 = vsyncpa [#allocation5], 1 }

// kernel: convnet_forward.3
= control target key start
LH: loop header
LB: loop body
LE: loop exit
PB: predicated region body
PF: predicated region fallthrough
CT: control target
= control target key end

     0   :  { %9 = vsyncpa [#allocation5], 0  ;;  %s2850_s0 = inlined_call_operand.vmem [shape: f32[32,64], index: 0, kind: input, shape index: {}]   ;;  %s2851_s1 = inlined_call_operand.hbm [shape: bf16[160,768], index: 1, kind: input, shape index: {}]   ;;  %s2852_s2 = inlined_call_operand.hbm [shape: f32[1,768], index: 2, kind: input, shape index: {}]   ;;  %s2853_s3 = inlined_call_operand.hbm [shape: f32[1,768], index: 3, kind: input, shape index: {}]   ;;  %s2854_s4 = inlined_call_operand.vmem [shape: f32[2,18,384], index: 4, kind: output, shape index: {}]  }
   0x1   :  { %10 = vsyncpa [#allocation7], 0  ;;  %s31_s17 = sshll.u32 %s2852_s2, 4  ;;  %s1927_s18 = smov [#allocation6]   ;;  %s32_s17 = int_to_ptr.hbm [resolvable:$true] %s31_s17 }
   0x2   :  { %s33_s19 = sshll.u32 %s1927_s18, 4  ;;  %s17_s22 = sshll.u32 %s2851_s1, 4  ;;  %s34_s19 = int_to_ptr.vmem [resolvable:$true] %s33_s19  ;;  %s18_s22 = int_to_ptr.hbm [resolvable:$true] %s17_s22 }
   0x3   :  { %36 = dma.hbm_to_vmem [thread:$0]  %s32_s17, 96, %s34_s19, [#allocation7]  }
   0x4   :  { %s1928_s23 = smov [#allocation4]   ;;  %s1929_s25 = smov 384  }
   0x5   :  { %s19_s24 = sshll.u32 %s1928_s23, 4  ;;  %s1930_s26 = smov 24   ;;  %s20_s24 = int_to_ptr.vmem [resolvable:$true] %s19_s24 }
   0x6   :  { %25 = dma.hbm_to_vmem [thread:$0]  %s18_s22, 7680, %s20_s24, [#allocation5], %s1929_s25, %s1929_s25, %s1930_s26  }
   0x7   :  { %s42_s2 = sshll.u32 %s2853_s3, 4  ;;  %s1931_s29 = smov [#allocation8]   ;;  %s43_s2 = int_to_ptr.hbm [resolvable:$true] %s42_s2 }
   0x8   :  { %s44_s30 = sshll.u32 %s1931_s29, 4  ;;  %s45_s30 = int_to_ptr.vmem [resolvable:$true] %s44_s30 }
   0x9   :  { %47 = dma.hbm_to_vmem [thread:$0]  %s43_s2, 96, %s45_s30, [#allocation7]  }
   0xa   :  { %1923 = dma.done.wait [#allocation5], 7680  }
   0xb   :  { %1924 = vsyncadd [#allocation5], 4294959616 }
   0xc   :  { %1925 = dma.done.wait [#allocation7], 192  }
   0xd   :  { %1926 = vsyncadd [#allocation7], 4294967104  ;;  %v1932_v0 = vmov 0.0   ;;  %v89_v1 = vld [vmem:[%s2850_s0 + $0x1] sm:$0xff]  ;;  %v121_v2 = vld [vmem:[%s2850_s0 + $0x11] sm:$0xff]  ;;  %s1933_s27 = smov 64  }
   0xe   :  { %1410 = vst [vmem:[%s2854_s4] sm:$0x3] %v1932_v0  ;;  %v93_v3 = vpack.c.bf16 %v89_v1, %v89_v1  ;;  %v2003_v4 = vpack.c.bf16 %v121_v2, %v121_v2  ;;  %v90_v5 = vld [vmem:[%s2850_s0 + $0x9] sm:$0xff]  ;;  %v92_v6 = vld [vmem:[%s2850_s0 + $0x19] sm:$0x3f]  ;;  %v161_v10 = vld [vmem:[%s2850_s0] sm:$0xff]  ;;  %s1934_s13 = smov 96  }
   0xf   :  { %1411 = vst [vmem:[%s2854_s4 + $0x8] sm:$0x3] %v1932_v0  ;;  %v94_v7 = vpack.c.bf16 %v90_v5, %v90_v5  ;;  %v96_v8 = vpack.c.bf16 %v92_v6, %v92_v6  ;;  %v122_v9 = vld [vmem:[%s2850_s0 + $0x19] sm:$0x3f]  ;;  %v2027_v12 = vpack.c.bf16 %v161_v10, %v161_v10  ;;  %v162_v13 = vld [vmem:[%s2850_s0 + $0x8] sm:$0xff]  ;;  %s1935_s18 = smov 32  }
  0x10   :  { %1412 = vst [vmem:[%s2854_s4 + $0x10] sm:$0x3] %v1932_v0  ;;  %101 = vrot.lane.b32.xlu0 %v93_v3, %s1933_s27  ;;  %131 = vrot.lane.b32.xlu1 %v93_v3, %s1933_s27  ;;  %v126_v11 = vpack.c.bf16 %v122_v9, %v122_v9  ;;  %v2035_v14 = vpack.c.bf16 %v162_v13, %v162_v13  ;;  %v273_v15 = vld [vmem:[%s2850_s0 + $0x2] sm:$0xff]  ;;  %v1818_v17 = vld [vmem:[#allocation4 + $0x1b4] sm:$0xf]  ;;  %vm69_vm0 = vcmask 257024  }
  0x11   :  { %1413 = vst [vmem:[%s2854_s4 + $0x30] sm:$0x3] %v1932_v0  ;;  %105 = vrot.lane.b32.xlu2 %v2003_v4, %s1933_s27  ;;  %v246_v16 = vld [vmem:[%s2850_s0 + $0xa] sm:$0xff]  ;;  %v247_v19 = vld [vmem:[%s2850_s0 + $0x12] sm:$0xff]  ;;  %v277_v20 = vpack.c.bf16 %v273_v15, %v273_v15  ;;  %v1812_v26 = vld [vmem:[#allocation4 + $0x184] sm:$0xf] }
  0x12   :  { %1414 = vst [vmem:[%s2854_s4 + $0x38] sm:$0x3] %v1932_v0  ;;  %v1692_v18 = vld [vmem:[#allocation4 + $0x1c8] sm:$0xf0]  ;;  %v250_v22 = vpack.c.bf16 %v246_v16, %v246_v16  ;;  %v163_v23 = vld [vmem:[%s2850_s0 + $0x10] sm:$0xff]  ;;  %v2056_v24 = vpack.c.bf16 %v247_v19, %v247_v19  ;;  %vm685_vm1 = vcmask 261120  }
  0x13   :  { %1415 = vst [vmem:[%s2854_s4 + $0x40] sm:$0x3] %v1932_v0  ;;  %v2050_v21 = vor.u32 %v1818_v17, %v1692_v18  ;;  %v2060_v25 = vpack.c.bf16 %v163_v23, %v163_v23  ;;  %v1668_v27 = vld [vmem:[#allocation4 + $0x198] sm:$0xf0]  ;;  %vm73_vm2 = vcmask 256000   ;;  %vm83_vm3 = vcmask 519424  }
  0x14   :  { %1758 = vst [vmem:[%s2854_s4 + $0x48] sm:$0x3] %v1932_v0  ;;  %v2070_v28 = vor.u32 %v1812_v26, %v1668_v27  ;;  %v152_v32 = vld [vmem:[%s2850_s0 + $0x1a] sm:$0x3f]  ;;  %v1690_v35 = vld [vmem:[#allocation4 + $0x1b0] sm:$0xf] }
  0x15   :  { %1759 = vst [vmem:[%s2854_s4 + $0x50] sm:$0x3] %v1932_v0  ;;  %755 = vmatpush.bf16.msra.mxu3 %v2050_v21  ;;  %v164_v33 = vld [vmem:[%s2850_s0 + $0x18] sm:$0x3f]  ;;  %v156_v34 = vpack.c.bf16 %v152_v32, %v152_v32  ;;  %v1821_v36 = vld [vmem:[#allocation4 + $0x1c4] sm:$0xf0] }
  0x16   :  { %1760 = vst [vmem:[%s2854_s4 + $0x58] sm:$0x3] %v1932_v0  ;;  %v1698_v37 = vld [vmem:[#allocation4 + $0x1b8] sm:$0xf]  ;;  %v1822_v38 = vld [vmem:[#allocation4 + $0x1cc] sm:$0xf0]  ;;  %v2090_v39 = vor.u32 %v1821_v36, %v1690_v35  ;;  %v168_v43 = vpack.c.bf16 %v164_v33, %v164_v33 }
  0x17   :  { %1761 = vst [vmem:[%s2854_s4 + $0x78] sm:$0x3] %v1932_v0  ;;  %v2092_v40 = vor.u32 %v1822_v38, %v1698_v37  ;;  %v1666_v41 = vld [vmem:[#allocation4 + $0x180] sm:$0xf]  ;;  %v1815_v42 = vld [vmem:[#allocation4 + $0x194] sm:$0xf0] }
  0x18   :  { %1762 = vst [vmem:[%s2854_s4 + $0x80] sm:$0x3] %v1932_v0  ;;  %103 = vrot.lane.b32.xlu0 %v94_v7, %s1933_s27  ;;  %133 = vrot.lane.b32.xlu1 %v94_v7, %s1933_s27  ;;  %v1674_v44 = vld [vmem:[#allocation4 + $0x188] sm:$0xf]  ;;  %v1816_v45 = vld [vmem:[#allocation4 + $0x19c] sm:$0xf0]  ;;  %v2096_v47 = vor.u32 %v1815_v42, %v1666_v41 }
  0x19   :  { %1763 = vst [vmem:[%s2854_s4 + $0x88] sm:$0x3] %v1932_v0  ;;  %107 = vrot.lane.b32.xlu2 %v96_v8, %s1933_s27  ;;  %756 = vmatpush.bf16.msra.mxu3 %v2070_v28  ;;  %v1642_v46 = vld [vmem:[#allocation4 + $0x150] sm:$0xf]  ;;  %v1809_v48 = vld [vmem:[#allocation4 + $0x164] sm:$0xf0]  ;;  %v2098_v52 = vor.u32 %v1816_v45, %v1674_v44 }
  0x1a   :  { %157 = vst.msk [vmem:[#allocation2 + $0x4] sm:$0xf] %vm69_vm0, %v277_v20  ;;  %717 = vmatpush.bf16.msra.mxu1 %v2090_v39  ;;  %v1806_v49 = vld [vmem:[#allocation4 + $0x154] sm:$0xf]  ;;  %v1644_v50 = vld [vmem:[#allocation4 + $0x168] sm:$0xf0]  ;;  %v2100_v53 = vor.u32 %v1809_v48, %v1642_v46 }
  0x1b   :  { %158 = vst.msk [vmem:[#allocation2 + $0xc] sm:$0xf] %vm69_vm0, %v250_v22  ;;  %v1650_v54 = vld [vmem:[#allocation4 + $0x158] sm:$0xf]  ;;  %v1810_v55 = vld [vmem:[#allocation4 + $0x16c] sm:$0xf0]  ;;  %v2102_v56 = vor.u32 %v1806_v49, %v1644_v50 }
  0x1c   :  { %159 = vst.msk [vmem:[#allocation2 + $0x14] sm:$0xf] %vm69_vm0, %v2056_v24  ;;  %v2104_v57 = vor.u32 %v1810_v55, %v1650_v54  ;;  %v1618_v58 = vld [vmem:[#allocation4 + $0x120] sm:$0xf]  ;;  %v1803_v59 = vld [vmem:[#allocation4 + $0x134] sm:$0xf0]  ;;  %692 = vmatpush.bf16.msra.mxu0 %v2100_v53 }
  0x1d   :  { %70 = vst.msk [vmem:[#allocation2] sm:$0xf] %vm69_vm0, %v2027_v12  ;;  %793 = vmatpush.bf16.msrb.mxu3 %v2092_v40  ;;  %v1800_v60 = vld [vmem:[#allocation4 + $0x124] sm:$0xf]  ;;  %v1620_v61 = vld [vmem:[#allocation4 + $0x138] sm:$0xf0]  ;;  %730 = vmatpush.bf16.msra.mxu2 %v2102_v56 }
  0x1e   :  { %72 = vst.msk [vmem:[#allocation2 + $0x10] sm:$0xf] %vm69_vm0, %v2060_v25  ;;  %v1626_v62 = vld [vmem:[#allocation4 + $0x128] sm:$0xf]  ;;  %v1804_v63 = vld [vmem:[#allocation4 + $0x13c] sm:$0xf0]  ;;  %718 = vmatpush.bf16.msra.mxu1 %v2096_v47  ;;  %v2126_v8 = vor.u32 %v1800_v60, %v1620_v61 }
  0x1f   :  { %71 = vst.msk [vmem:[#allocation2 + $0x8] sm:$0xf] %vm69_vm0, %v2035_v14  ;;  %v192_v0 = vld [vmem:[%s2850_s0 + $0x19] sm:$0x3f]  ;;  %v1594_v5 = vld [vmem:[#allocation4 + $0xf0] sm:$0xf]  ;;  %v2128_v9 = vor.u32 %v1804_v63, %v1626_v62 }
  0x20   :  { %135 = vrot.lane.b32.xlu0 %v2003_v4, %s1933_s27  ;;  %137 = vrot.lane.b32.xlu1 %v126_v11, %s1933_s27  ;;  %160 = vst.msk [vmem:[#allocation2 + $0x1c] sm:$0x7] %vm73_vm2, %v156_v34  ;;  %v220_v1 = vld [vmem:[%s2850_s0 + $0x19] sm:$0x3f]  ;;  %v1797_v6 = vld [vmem:[#allocation4 + $0x104] sm:$0xf0]  ;;  %v196_v13 = vpack.c.bf16 %v192_v0, %v192_v0 }
  0x21   :  { %173 = vrot.lane.b32.xlu2 %v2027_v12, %s1934_s13  ;;  %v1824_v29 = vld [vmem:[#allocation2 + $0x4] sm:$0xf]  ;;  %794 = vmatpush.bf16.msrb.mxu3 %v2098_v52  ;;  %v1794_v10 = vld [vmem:[#allocation4 + $0xf4] sm:$0xf]  ;;  %v1596_v11 = vld [vmem:[#allocation4 + $0x108] sm:$0xf0]  ;;  %v224_v17 = vpack.c.bf16 %v220_v1, %v220_v1  ;;  %v2141_v18 = vor.u32 %v1797_v6, %v1594_v5 }
  0x22   :  { %v1460_v30 = vld [vmem:[#allocation2 + $0x8] sm:$0xf0]  ;;  %768 = vmatpush.bf16.msrb.mxu1 %v2104_v57  ;;  %84 = vst.msk [vmem:[#allocation2] sm:$0xf] %vm83_vm3, %v2027_v12  ;;  %v1602_v15 = vld [vmem:[#allocation4 + $0xf8] sm:$0xf]  ;;  %731 = vmatpush.bf16.msra.mxu2 %v2126_v8  ;;  %v2145_v12 = vor.u32 %v1794_v10, %v1596_v11 }
  0x23   :  { %v2076_v31 = vor.u32 %v1824_v29, %v1460_v30  ;;  %v1826_v51 = vld [vmem:[#allocation2 + $0x14] sm:$0xf]  ;;  %v1798_v16 = vld [vmem:[#allocation4 + $0x10c] sm:$0xf0]  ;;  %86 = vst.msk [vmem:[#allocation2 + $0x10] sm:$0xf] %vm83_vm3, %v2060_v25 }
  0x24   :  { %85 = vst.msk [vmem:[#allocation2 + $0x8] sm:$0xf] %vm83_vm3, %v2035_v14  ;;  %v2147_v19 = vor.u32 %v1798_v16, %v1602_v15  ;;  %v1570_v23 = vld [vmem:[#allocation4 + $0xc0] sm:$0xf]  ;;  %v1788_v26 = vld [vmem:[#allocation4 + $0xc4] sm:$0xf] }
  0x25   :  { %1714 = vmatmul.msk.bf16.vlgmr.msra.gmra.mxu3 %vm685_vm1, %v2076_v31  ;;  %1712 = vmatmul.msk.bf16.vlgmr.msra.gmra.mxu1 %vm685_vm1, %v2076_v31  ;;  %v1572_v29 = vld [vmem:[#allocation4 + $0xd8] sm:$0xf0]  ;;  %v1578_v30 = vld [vmem:[#allocation4 + $0xc8] sm:$0xf]  ;;  %v1792_v32 = vld [vmem:[#allocation4 + $0xdc] sm:$0xf0] }
  0x26   :  { %769 = vmatpush.bf16.msrb.mxu1 %v2128_v9  ;;  %732 = vmatpush.bf16.msra.mxu2 %v2145_v12  ;;  %v2174_v33 = vor.u32 %v1788_v26, %v1572_v29  ;;  %v1546_v34 = vld [vmem:[#allocation4 + $0x90] sm:$0xf]  ;;  %v1785_v35 = vld [vmem:[#allocation4 + $0xa4] sm:$0xf0]  ;;  %v1782_v36 = vld [vmem:[#allocation4 + $0x94] sm:$0xf] }
  0x27   :  { %v1468_v2 = vld [vmem:[#allocation2 + $0x18] sm:$0x70]  ;;  %v2181_v37 = vor.u32 %v1785_v35, %v1546_v34  ;;  %v1548_v38 = vld [vmem:[#allocation4 + $0xa8] sm:$0xf0]  ;;  %v1554_v41 = vld [vmem:[#allocation4 + $0x98] sm:$0xf] }
  0x28   :  { %175 = vrot.lane.b32.xlu0 %v2035_v14, %s1934_s13  ;;  %201 = vrot.lane.b32.xlu1 %v93_v3, %s1935_s18  ;;  %v248_v14 = vld [vmem:[%s2850_s0 + $0x1a] sm:$0x3f]  ;;  %v1786_v42 = vld [vmem:[#allocation4 + $0xac] sm:$0xf0]  ;;  %v1522_v45 = vld [vmem:[#allocation4 + $0x60] sm:$0xf] }
  0x29   :  { %203 = vrot.lane.b32.xlu2 %v94_v7, %s1935_s18  ;;  %v2187_v44 = vor.u32 %v1786_v42, %v1554_v41  ;;  %v1779_v46 = vld [vmem:[#allocation4 + $0x74] sm:$0xf0]  ;;  %v1776_v48 = vld [vmem:[#allocation4 + $0x64] sm:$0xf]  ;;  %v1524_v50 = vld [vmem:[#allocation4 + $0x78] sm:$0xf0] }
  0x2a   :  { %770 = vmatpush.bf16.msrb.mxu1 %v2147_v19  ;;  %733 = vmatpush.bf16.msra.mxu2 %v2174_v33  ;;  %v2192_v49 = vor.u32 %v1779_v46, %v1522_v45  ;;  %v1780_v54 = vld [vmem:[#allocation4 + $0x7c] sm:$0xf0]  ;;  %v2194_v55 = vor.u32 %v1776_v48, %v1524_v50  ;;  %vm113_vm4 = vcmask 781824   ;;  %v1819_v60 = vld [vmem:[#allocation4 + $0x1bc] sm:$0xf]  ;;  %vm87_vm5 = vcmask 518400  }
  0x2b   :  { %v1700_v61 = vld [vmem:[#allocation4 + $0x1d0] sm:$0xf0]  ;;  %v1498_v63 = vld [vmem:[#allocation4 + $0x30] sm:$0xf]  ;;  %v1773_v0 = vld [vmem:[#allocation4 + $0x44] sm:$0xf0] }
  0x2c   :  { %v2202_v62 = vor.u32 %v1819_v60, %v1700_v61  ;;  %v2204_v1 = vor.u32 %v1773_v0, %v1498_v63  ;;  %v1500_v5 = vld [vmem:[#allocation4 + $0x48] sm:$0xf0]  ;;  %v1506_v6 = vld [vmem:[#allocation4 + $0x38] sm:$0xf]  ;;  %v1774_v11 = vld [vmem:[#allocation4 + $0x4c] sm:$0xf0] }
  0x2d   :  { %v1676_v15 = vld [vmem:[#allocation4 + $0x1a0] sm:$0xf0]  ;;  %v2210_v16 = vor.u32 %v1774_v11, %v1506_v6  ;;  %vm117_vm6 = vcmask 780800   ;;  %v1768_v34 = vld [vmem:[#allocation4 + $0x1c] sm:$0xf0]  ;;  %vm143_vm7 = vcmask 1044224  }
  0x2e   :  { %1832 = vmatpush.bf16.msra.mxu3 %v2202_v62  ;;  %v1764_v26 = vld [vmem:[#allocation4 + $0x4] sm:$0xf]  ;;  %v1807_v41 = vld [vmem:[#allocation4 + $0x15c] sm:$0xf]  ;;  %v1652_v42 = vld [vmem:[#allocation4 + $0x170] sm:$0xf0] }
  0x2f   :  { %v1658_v45 = vld [vmem:[#allocation4 + $0x160] sm:$0xf]  ;;  %v2238_v46 = vor.u32 %v1807_v41, %v1652_v42  ;;  %v1811_v48 = vld [vmem:[#allocation4 + $0x174] sm:$0xf0]  ;;  %v1805_v61 = vld [vmem:[#allocation4 + $0x144] sm:$0xf0] }
  0x30   :  { %229 = vrot.lane.b32.xlu0 %v93_v3, %s1935_s18  ;;  %231 = vrot.lane.b32.xlu1 %v94_v7, %s1935_s18  ;;  %v2120_v3 = vor.u32 %v1803_v59, %v1618_v58  ;;  %v2122_v7 = vor.u32 %v1826_v51, %v1468_v2  ;;  %v1530_v51 = vld [vmem:[#allocation4 + $0x68] sm:$0xf]  ;;  %v1770_v2 = vld [vmem:[#allocation4 + $0x34] sm:$0xf]  ;;  %v2240_v50 = vor.u32 %v1811_v48, %v1658_v45  ;;  %v1795_v11 = vld [vmem:[#allocation4 + $0xfc] sm:$0xf] }
  0x31   :  { %257 = vrot.lane.b32.xlu2 %v277_v20, %s1934_s13  ;;  %v2196_v58 = vor.u32 %v1780_v54, %v1530_v51  ;;  %v2207_v10 = vor.u32 %v1770_v2, %v1500_v5  ;;  %v1801_v51 = vld [vmem:[#allocation4 + $0x12c] sm:$0xf]  ;;  %v1628_v54 = vld [vmem:[#allocation4 + $0x140] sm:$0xf0]  ;;  %v1706_v2 = vld [vmem:[#allocation4 + $0x1c0] sm:$0xf] }
  0x32   :  { %693 = vmatpush.bf16.msra.mxu0 %v2120_v3  ;;  %v2245_v60 = vor.u32 %v1801_v51, %v1628_v54  ;;  %v1823_v5 = vld [vmem:[#allocation4 + $0x1d4] sm:$0xf0]  ;;  %v1793_v42 = vld [vmem:[#allocation4 + $0xe4] sm:$0xf0]  ;;  %v1783_v51 = vld [vmem:[#allocation4 + $0x9c] sm:$0xf] }
  0x33   :  { %v2251_v6 = vor.u32 %v1823_v5, %v1706_v2  ;;  %v1556_v54 = vld [vmem:[#allocation4 + $0xb0] sm:$0xf0]  ;;  %v1532_v5 = vld [vmem:[#allocation4 + $0x80] sm:$0xf0]  ;;  %vm147_vm8 = vcmask 1043200   ;;  %vm1388_vm9 = vcmask 1041408  }
  0x35   :  { %1715 = vmatmul.msk.bf16.gmra.mxu3 %vm685_vm1, %v2122_v7  ;;  %1713 = vmatmul.msk.bf16.gmra.mxu1 %vm685_vm1, %v2122_v7 }
  0x36   :  { %694 = vmatpush.bf16.msra.mxu0 %v2141_v18 }
  0x38   :  { %259 = vrot.lane.b32.xlu0 %v250_v22, %s1934_s13  ;;  %285 = vrot.lane.b32.xlu1 %v277_v20, %s1934_s13  ;;  %v252_v20 = vpack.c.bf16 %v248_v14, %v248_v14  ;;  %v64_v14 = vld [vmem:[%s2850_s0 + $0x18] sm:$0x3f] }
  0x39   :  { %287 = vrot.lane.b32.xlu2 %v250_v22, %s1934_s13 }
  0x40   :  { %177 = vrot.lane.b32.xlu0 %v2060_v25, %s1934_s13  ;;  %179 = vrot.lane.b32.xlu1 %v168_v43, %s1934_s13  ;;  %v1791_v25 = vld [vmem:[#allocation4 + $0xd4] sm:$0xf0]  ;;  %v2185_v43 = vor.u32 %v1782_v36, %v1548_v38 }
  0x41   :  { %205 = vrot.lane.b32.xlu2 %v2003_v4, %s1935_s18  ;;  %v2172_v27 = vor.u32 %v1791_v25, %v1570_v23  ;;  %v1474_v23 = vld [vmem:[#allocation4] sm:$0xf]  ;;  %v1767_v25 = vld [vmem:[#allocation4 + $0x14] sm:$0xf0] }
  0x42   :  { %734 = vmatpush.bf16.msra.mxu2 %v2185_v43  ;;  %v2222_v29 = vor.u32 %v1767_v25, %v1474_v23  ;;  %v1817_v23 = vld [vmem:[#allocation4 + $0x1a4] sm:$0xf0] }
  0x43   :  { %695 = vmatpush.bf16.msra.mxu0 %v2172_v27 }
  0x45   :  { %1716 = vmatmul.msk.bf16.vlgmr.msrb.gmra.mxu3 %vm685_vm1, %v2076_v31 }
  0x46   :  { %735 = vmatpush.bf16.msra.mxu2 %v2194_v55 }
  0x47   :  { %696 = vmatpush.bf16.msra.mxu0 %v2181_v37 }
  0x48   :  { %207 = vrot.lane.b32.xlu0 %v196_v13, %s1935_s18  ;;  %233 = vrot.lane.b32.xlu1 %v2003_v4, %s1935_s18  ;;  %v276_v4 = vld [vmem:[%s2850_s0 + $0x1a] sm:$0x3f]  ;;  %v1813_v13 = vld [vmem:[#allocation4 + $0x18c] sm:$0xf] }
  0x49   :  { %235 = vrot.lane.b32.xlu2 %v224_v17, %s1935_s18  ;;  %v280_v22 = vpack.c.bf16 %v276_v4, %v276_v4  ;;  %v2212_v17 = vor.u32 %v1813_v13, %v1676_v15  ;;  %v68_v4 = vpack.c.bf16 %v64_v14, %v64_v14  ;;  %v1604_v13 = vld [vmem:[#allocation4 + $0x110] sm:$0xf0]  ;;  %v1610_v14 = vld [vmem:[#allocation4 + $0x100] sm:$0xf] }
  0x4a   :  { %736 = vmatpush.bf16.msra.mxu2 %v2207_v10  ;;  %v2254_v15 = vor.u32 %v1795_v11, %v1604_v13  ;;  %v1538_v11 = vld [vmem:[#allocation4 + $0x70] sm:$0xf] }
  0x4b   :  { %697 = vmatpush.bf16.msra.mxu0 %v2192_v49  ;;  %1833 = vmatpush.bf16.msra.mxu3 %v2212_v17  ;;  %74 = vst.msk [vmem:[#allocation2 + $0x18] sm:$0x7] %vm73_vm2, %v68_v4  ;;  %v1682_v4 = vld [vmem:[#allocation4 + $0x190] sm:$0xf] }
  0x4c   :  { %v2259_v25 = vor.u32 %v1817_v23, %v1682_v4  ;;  %v1781_v4 = vld [vmem:[#allocation4 + $0x84] sm:$0xf0]  ;;  %v1771_v23 = vld [vmem:[#allocation4 + $0x3c] sm:$0xf] }
  0x4f   :  { %698 = vmatpush.bf16.msra.mxu0 %v2204_v1  ;;  %869 = vmatpush.bf16.msrb.mxu3 %v2251_v6 }
  0x50   :  { %261 = vrot.lane.b32.xlu0 %v2056_v24, %s1934_s13  ;;  %263 = vrot.lane.b32.xlu1 %v252_v20, %s1934_s13  ;;  %v78_v20 = vld [vmem:[%s2850_s0 + $0x18] sm:$0x3f] }
  0x51   :  { %289 = vrot.lane.b32.xlu2 %v2056_v24, %s1934_s13  ;;  %v2176_v24 = vor.u32 %v1792_v32, %v1578_v30  ;;  %v1476_v30 = vld [vmem:[#allocation4 + $0x18] sm:$0xf0]  ;;  %v1482_v32 = vld [vmem:[#allocation4 + $0x8] sm:$0xf] }
  0x52   :  { %v2226_v35 = vor.u32 %v1764_v26, %v1476_v30  ;;  %v2228_v36 = vor.u32 %v1768_v34, %v1482_v32  ;;  %v1789_v26 = vld [vmem:[#allocation4 + $0xcc] sm:$0xf]  ;;  %v1580_v30 = vld [vmem:[#allocation4 + $0xe0] sm:$0xf0]  ;;  %v1586_v32 = vld [vmem:[#allocation4 + $0xd0] sm:$0xf] }
  0x53   :  { %771 = vmatpush.bf16.msrb.mxu1 %v2176_v24  ;;  %699 = vmatpush.bf16.msra.mxu0 %v2222_v29  ;;  %v2264_v41 = vor.u32 %v1789_v26, %v1580_v30  ;;  %v2269_v48 = vor.u32 %v1793_v42, %v1586_v32  ;;  %v1508_v26 = vld [vmem:[#allocation4 + $0x50] sm:$0xf0]  ;;  %v1514_v32 = vld [vmem:[#allocation4 + $0x40] sm:$0xf]  ;;  %v1765_v42 = vld [vmem:[#allocation4 + $0xc] sm:$0xf] }
  0x54   :  { %737 = vmatpush.bf16.msra.mxu2 %v2226_v35  ;;  %870 = vmatpush.bf16.msrb.mxu3 %v2259_v25 }
  0x55   :  { %1717 = vmatmul.msk.bf16.gmra.mxu3 %vm685_vm1, %v2122_v7 }
  0x57   :  { %772 = vmatpush.bf16.msrb.mxu1 %v2187_v44  ;;  %806 = vmatpush.bf16.msrb.mxu0 %v2238_v46 }
  0x58   :  { %291 = vrot.lane.b32.xlu0 %v280_v22, %s1934_s13  ;;  %v82_v22 = vpack.c.bf16 %v78_v20, %v78_v20  ;;  %831 = vmatpush.bf16.msrb.mxu2 %v2202_v62  ;;  %v1799_v20 = vld [vmem:[#allocation4 + $0x114] sm:$0xf0] }
  0x5a   :  { %88 = vst.msk [vmem:[#allocation2 + $0x18] sm:$0x7] %vm87_vm5, %v82_v22  ;;  %v2257_v22 = vor.u32 %v1799_v20, %v1610_v14 }
  0x5b   :  { %773 = vmatpush.bf16.msrb.mxu1 %v2196_v58  ;;  %807 = vmatpush.bf16.msrb.mxu0 %v2245_v60 }
  0x5c   :  { %832 = vmatpush.bf16.msrb.mxu2 %v2212_v17 }
  0x5f   :  { %774 = vmatpush.bf16.msrb.mxu1 %v2210_v16  ;;  %808 = vmatpush.bf16.msrb.mxu0 %v2254_v15 }
  0x63   :  { %775 = vmatpush.bf16.msrb.mxu1 %v2228_v36  ;;  %809 = vmatpush.bf16.msrb.mxu0 %v2264_v41 }
  0x65   :  { %1719 = vmatmul.msk.bf16.vlgmr.msra.gmra.mxu3 %vm685_vm1, %v2122_v7 }
  0x66   :  { %1071 = vmatpush.bf16.msra.mxu3 %v2090_v39  ;;  %v1777_v39 = vld [vmem:[#allocation4 + $0x6c] sm:$0xf] }
  0x67   :  { %844 = vmatpush.bf16.msra.mxu1 %v2240_v50  ;;  %v2285_v20 = vor.u32 %v1777_v39, %v1532_v5  ;;  %v1769_v5 = vld [vmem:[#allocation4 + $0x24] sm:$0xf0] }
  0x6a   :  { %1072 = vmatpush.bf16.msra.mxu3 %v2096_v47  ;;  %v2290_v47 = vor.u32 %v1781_v4, %v1538_v11 }
  0x6b   :  { %v106_v59 = vpop.permute.xlu2 %105 }
  0x6c   :  { %116 = vst.msk [vmem:[#allocation2 + $0x10] sm:$0xf] %vm113_vm4, %v106_v59  ;;  %v1634_v59 = vld [vmem:[#allocation4 + $0x130] sm:$0xf] }
  0x6d   :  { %v2247_v0 = vor.u32 %v1805_v61, %v1634_v59  ;;  %v1562_v59 = vld [vmem:[#allocation4 + $0xa0] sm:$0xf]  ;;  %v2277_v61 = vor.u32 %v1783_v51, %v1556_v54  ;;  %v1484_v51 = vld [vmem:[#allocation4 + $0x20] sm:$0xf0]  ;;  %v1490_v54 = vld [vmem:[#allocation4 + $0x10] sm:$0xf] }
  0x6e   :  { %v2302_v39 = vor.u32 %v1765_v42, %v1484_v51  ;;  %v1708_v42 = vld [vmem:[#allocation4 + $0x1d8] sm:$0xf0] }
  0x6f   :  { %845 = vmatpush.bf16.msra.mxu1 %v2247_v0  ;;  %810 = vmatpush.bf16.msrb.mxu0 %v2277_v61 }
  0x73   :  { %v108_v38 = vpop.permute.xlu2 %107  ;;  %846 = vmatpush.bf16.msra.mxu1 %v2257_v22  ;;  %811 = vmatpush.bf16.msrb.mxu0 %v2285_v20 }
  0x74   :  { %118 = vst.msk [vmem:[#allocation2 + $0x18] sm:$0x7] %vm117_vm6, %v108_v38 }
  0x75   :  { %1720 = vmatmul.msk.bf16.vlgmr.msrb.gmra.mxu3 %vm685_vm1, %v2076_v31 }
  0x76   :  { %1147 = vmatpush.bf16.msrb.mxu3 %v2092_v40  ;;  %v2294_v40 = vor.u32 %v1771_v23, %v1508_v26  ;;  %v1808_v23 = vld [vmem:[#allocation4 + $0x164] sm:$0xf]  ;;  %v1660_v26 = vld [vmem:[#allocation4 + $0x178] sm:$0xf0] }
  0x77   :  { %847 = vmatpush.bf16.msra.mxu1 %v2269_v48 }
  0x78   :  { %812 = vmatpush.bf16.msrb.mxu0 %v2294_v40 }
  0x7a   :  { %1148 = vmatpush.bf16.msrb.mxu3 %v2098_v52 }
  0x7b   :  { %v174_v63 = vpop.permute.xlu2 %173 }
  0x7c   :  { %185 = vst.msk [vmem:[#allocation3] sm:$0xf] %vm69_vm0, %v174_v63  ;;  %v1787_v63 = vld [vmem:[#allocation4 + $0xb4] sm:$0xf0]  ;;  %813 = vmatpush.bf16.msrb.mxu0 %v2302_v39 }
  0x7d   :  { %v2279_v2 = vor.u32 %v1787_v63, %v1562_v59 }
  0x7f   :  { %848 = vmatpush.bf16.msra.mxu1 %v2279_v2 }
  0x82   :  { %v102_v34 = vpop.permute.xlu0 %101  ;;  %v132_v38 = vpop.permute.xlu1 %131 }
  0x83   :  { %114 = vst.msk [vmem:[#allocation2] sm:$0xf] %vm113_vm4, %v102_v34  ;;  %v2267_v45 = vpop.permute.xlu2 %203  ;;  %v1775_v34 = vld [vmem:[#allocation4 + $0x54] sm:$0xf0]  ;;  %849 = vmatpush.bf16.msra.mxu1 %v2290_v47 }
  0x84   :  { %144 = vst.msk [vmem:[#allocation2] sm:$0xf] %vm143_vm7, %v132_v38  ;;  %v2298_v38 = vor.u32 %v1775_v34, %v1514_v32  ;;  %v2315_v32 = vor.u32 %v1808_v23, %v1660_v26  ;;  %v1820_v34 = vld [vmem:[#allocation4 + $0x1c4] sm:$0xf] }
  0x85   :  { %1721 = vmatmul.msk.bf16.gmra.mxu3 %vm685_vm1, %v2122_v7  ;;  %v2320_v51 = vor.u32 %v1820_v34, %v1708_v42  ;;  %v1796_v34 = vld [vmem:[#allocation4 + $0x104] sm:$0xf] }
  0x87   :  { %850 = vmatpush.bf16.msra.mxu1 %v2298_v38 }
  0x8a   :  { %v104_v13 = vpop.permute.xlu0 %103  ;;  %v134_v14 = vpop.permute.xlu1 %133 }
  0x8b   :  { %115 = vst.msk [vmem:[#allocation2 + $0x8] sm:$0xf] %vm113_vm4, %v104_v13  ;;  %v2288_v30 = vpop.permute.xlu2 %257  ;;  %v1458_v52 = vld [vmem:[#allocation2] sm:$0xf] }
  0x8c   :  { %145 = vst.msk [vmem:[#allocation2 + $0x8] sm:$0xf] %vm143_vm7, %v134_v14  ;;  %v2305_v14 = vor.u32 %v1769_v5, %v1490_v54  ;;  %v1802_v54 = vld [vmem:[#allocation4 + $0x134] sm:$0xf] }
  0x8e   :  { %851 = vmatpush.bf16.msra.mxu1 %v2305_v14 }
  0x92   :  { %v136_v59 = vpop.permute.xlu0 %135  ;;  %v138_v63 = vpop.permute.xlu1 %137 }
  0x93   :  { %146 = vst.msk [vmem:[#allocation2 + $0x10] sm:$0xf] %vm143_vm7, %v136_v59  ;;  %v1825_v11 = vld [vmem:[#allocation2 + $0x4] sm:$0xf0]  ;;  %v288_v13 = vpop.permute.xlu2 %287  ;;  %v1636_v59 = vld [vmem:[#allocation4 + $0x148] sm:$0xf0] }
  0x94   :  { %v2307_v4 = vor.u32 %v1825_v11, %v1458_v52  ;;  %148 = vst.msk [vmem:[#allocation2 + $0x18] sm:$0x7] %vm147_vm8, %v138_v63  ;;  %v2325_v52 = vor.u32 %v1802_v54, %v1636_v59  ;;  %v1814_v11 = vld [vmem:[#allocation4 + $0x194] sm:$0xf] }
  0x95   :  { %298 = vst.msk [vmem:[#allocation3 + $0xc] sm:$0xf] %vm69_vm0, %v288_v13  ;;  %v1684_v13 = vld [vmem:[#allocation4 + $0x1a8] sm:$0xf0] }
  0x96   :  { %700 = vmatmul.bf16.vlgmr.msra.gmra.mxu0 %v2307_v4  ;;  %738 = vmatmul.bf16.vlgmr.msra.gmra.mxu2 %v2307_v4  ;;  %2860 = vst [vmem:[#allocation11_spill] sm:$0xff] %v2325_v52  ;;  %v2328_v26 = vor.u32 %v1814_v11, %v1684_v13  ;;  %v1588_v11 = vld [vmem:[#allocation4 + $0xe8] sm:$0xf0] }
  0x97   :  { %776 = vmatmul.bf16.vlgmr.msrb.gmra.mxu1 %v2307_v4  ;;  %882 = vmatpush.bf16.msra.mxu0 %v2315_v32 }
  0x98   :  { %1046 = vmatpush.bf16.msrb.mxu1 %v2100_v53  ;;  %907 = vmatpush.bf16.msra.mxu2 %v2320_v51  ;;  %v1612_v53 = vld [vmem:[#allocation4 + $0x118] sm:$0xf0] }
  0x99   :  { %v2335_v42 = vor.u32 %v1796_v34, %v1612_v53  ;;  %v1564_v34 = vld [vmem:[#allocation4 + $0xb8] sm:$0xf0] }
  0x9a   :  { %v176_v63 = vpop.permute.xlu0 %175  ;;  %v202_v5 = vpop.permute.xlu1 %201  ;;  %v1466_v54 = vld [vmem:[#allocation2 + $0x10] sm:$0xf] }
  0x9b   :  { %186 = vst.msk [vmem:[#allocation3 + $0x8] sm:$0xf] %vm69_vm0, %v176_v63  ;;  %v206_v23 = vpop.permute.xlu2 %205  ;;  %883 = vmatpush.bf16.msra.mxu0 %v2325_v52  ;;  %v1827_v59 = vld [vmem:[#allocation2 + $0x14] sm:$0x70]  ;;  %v1790_v63 = vld [vmem:[#allocation4 + $0xd4] sm:$0xf] }
  0x9c   :  { %214 = vst.msk [vmem:[#allocation3 + $0x8] sm:$0xf] %vm83_vm3, %v2267_v45  ;;  %1047 = vmatpush.bf16.msrb.mxu1 %v2120_v3  ;;  %908 = vmatpush.bf16.msra.mxu2 %v2328_v26  ;;  %v2340_v13 = vor.u32 %v1827_v59, %v1466_v54  ;;  %v2342_v3 = vor.u32 %v1790_v63, %v1588_v11  ;;  %v1540_v54 = vld [vmem:[#allocation4 + $0x88] sm:$0xf0]  ;;  %v1772_v11 = vld [vmem:[#allocation4 + $0x44] sm:$0xf] }
  0x9d   :  { %213 = vst.msk [vmem:[#allocation3] sm:$0xf] %vm83_vm3, %v202_v5 }
  0x9f   :  { %884 = vmatpush.bf16.msra.mxu0 %v2335_v42 }
  0xa0   :  { %1048 = vmatpush.bf16.msrb.mxu1 %v2141_v18  ;;  %v1784_v18 = vld [vmem:[#allocation4 + $0xa4] sm:$0xf] }
  0xa1   :  { %v2352_v53 = vor.u32 %v1784_v18, %v1564_v34  ;;  %v1492_v34 = vld [vmem:[#allocation4 + $0x28] sm:$0xf0] }
  0xa2   :  { %v230_v45 = vpop.permute.xlu0 %229  ;;  %v232_v52 = vpop.permute.xlu1 %231 }
  0xa3   :  { %241 = vst.msk [vmem:[#allocation3] sm:$0xf] %vm113_vm4, %v230_v45  ;;  %v236_v5 = vpop.permute.xlu2 %235  ;;  %885 = vmatpush.bf16.msra.mxu0 %v2342_v3  ;;  %v1516_v45 = vld [vmem:[#allocation4 + $0x58] sm:$0xf0] }
  0xa4   :  { %269 = vst.msk [vmem:[#allocation3] sm:$0xf] %vm143_vm7, %v2288_v30  ;;  %1049 = vmatpush.bf16.msrb.mxu1 %v2172_v27  ;;  %v1778_v30 = vld [vmem:[#allocation4 + $0x74] sm:$0xf]  ;;  %v2363_v18 = vor.u32 %v1772_v11, %v1516_v45 }
  0xa5   :  { %242 = vst.msk [vmem:[#allocation3 + $0x8] sm:$0xf] %vm113_vm4, %v232_v52  ;;  %v2357_v63 = vor.u32 %v1778_v30, %v1540_v54  ;;  %v1728_v54 = vld [vmem:[#allocation3 + $0x8] sm:$0xf0] }
  0xa6   :  { %705 = vmatmul.bf16.gmra.mxu0 %v2340_v13  ;;  %743 = vmatmul.bf16.gmra.mxu2 %v2340_v13  ;;  %2861 = vst [vmem:[#allocation12_spill] sm:$0xff] %v2352_v53 }
  0xa7   :  { %781 = vmatmul.bf16.gmra.mxu1 %v2340_v13  ;;  %886 = vmatpush.bf16.msra.mxu0 %v2352_v53 }
  0xa8   :  { %1050 = vmatpush.bf16.msrb.mxu1 %v2181_v37  ;;  %v1766_v37 = vld [vmem:[#allocation4 + $0x14] sm:$0xf] }
  0xa9   :  { %v2368_v30 = vor.u32 %v1766_v37, %v1492_v34 }
  0xaa   :  { %v260_v59 = vpop.permute.xlu0 %259  ;;  %v286_v27 = vpop.permute.xlu1 %285 }
  0xab   :  { %270 = vst.msk [vmem:[#allocation3 + $0x8] sm:$0xf] %vm143_vm7, %v260_v59  ;;  %v290_v52 = vpop.permute.xlu2 %289  ;;  %887 = vmatpush.bf16.msra.mxu0 %v2357_v63 }
  0xac   :  { %297 = vst.msk [vmem:[#allocation3 + $0x4] sm:$0xf] %vm69_vm0, %v286_v27  ;;  %1051 = vmatpush.bf16.msrb.mxu1 %v2192_v49 }
  0xad   :  { %299 = vst.msk [vmem:[#allocation3 + $0x14] sm:$0xf] %vm69_vm0, %v290_v52 }
  0xaf   :  { %888 = vmatpush.bf16.msra.mxu0 %v2363_v18 }
  0xb0   :  { %1052 = vmatpush.bf16.msrb.mxu1 %v2204_v1  ;;  %v2386_v1 = vpop.f32.mrf.mxu3 }
  0xb2   :  { %v178_v59 = vpop.permute.xlu0 %177  ;;  %v180_v53 = vpop.permute.xlu1 %179 }
  0xb3   :  { %187 = vst.msk [vmem:[#allocation3 + $0x10] sm:$0xf] %vm69_vm0, %v178_v59  ;;  %v1828_v27 = vld [vmem:[#allocation3 + $0x4] sm:$0xf]  ;;  %889 = vmatpush.bf16.msra.mxu0 %v2368_v30 }
  0xb4   :  { %215 = vst.msk [vmem:[#allocation3 + $0x10] sm:$0xf] %vm83_vm3, %v206_v23  ;;  %v2372_v49 = vor.u32 %v1828_v27, %v1728_v54  ;;  %1053 = vmatpush.bf16.msrb.mxu1 %v2222_v29 }
  0xb5   :  { %188 = vst.msk [vmem:[#allocation3 + $0x18] sm:$0x7] %vm73_vm2, %v180_v53 }
  0xb6   :  { %814 = vmatmul.bf16.vlgmr.msrb.gmra.mxu0 %v2307_v4  ;;  %1718 = vmatmul.msk.bf16.vlgmr.msrb.gmra.mxu2 %vm685_vm1, %v2076_v31 }
  0xb7   :  { %852 = vmatmul.bf16.vlgmr.msra.gmra.mxu1 %v2307_v4  ;;  %1740 = vmatmul.msk.bf16.vlgmr.msra.gmra.mxu3 %vm685_vm1, %v2372_v49 }
  0xb8   :  { %1109 = vmatpush.bf16.msrb.mxu2 %v2050_v21  ;;  %1084 = vmatpush.bf16.msrb.mxu0 %v2102_v56  ;;  %v2398_v21 = vpop.f32.mrf.mxu3 }
  0xb9   :  { %1122 = vmatpush.bf16.msra.mxu1 %v2104_v57  ;;  %1223 = vmatpush.bf16.msra.mxu3 %v2251_v6 }
  0xba   :  { %v208_v29 = vpop.permute.xlu0 %207  ;;  %v234_v23 = vpop.permute.xlu1 %233 }
  0xbb   :  { %216 = vst.msk [vmem:[#allocation3 + $0x18] sm:$0x7] %vm87_vm5, %v208_v29 }
  0xbc   :  { %244 = vst.msk [vmem:[#allocation3 + $0x18] sm:$0x7] %vm117_vm6, %v236_v5  ;;  %1110 = vmatpush.bf16.msrb.mxu2 %v2070_v28  ;;  %1085 = vmatpush.bf16.msrb.mxu0 %v2126_v8 }
  0xbd   :  { %243 = vst.msk [vmem:[#allocation3 + $0x10] sm:$0xf] %vm113_vm4, %v234_v23  ;;  %1123 = vmatpush.bf16.msra.mxu1 %v2128_v9  ;;  %1224 = vmatpush.bf16.msra.mxu3 %v2259_v25 }
  0xc0   :  { %1086 = vmatpush.bf16.msrb.mxu0 %v2145_v12  ;;  %v2413_v8 = vpop.f32.mrf.mxu3  ;;  %v1726_v12 = vld [vmem:[#allocation3] sm:$0xf] }
  0xc1   :  { %1124 = vmatpush.bf16.msra.mxu1 %v2147_v19  ;;  %v1829_v19 = vld [vmem:[#allocation3 + $0x4] sm:$0xf0] }
  0xc2   :  { %v262_v56 = vpop.permute.xlu0 %261  ;;  %v264_v57 = vpop.permute.xlu1 %263 }
  0xc3   :  { %271 = vst.msk [vmem:[#allocation3 + $0x10] sm:$0xf] %vm143_vm7, %v262_v56 }
  0xc4   :  { %272 = vst.msk [vmem:[#allocation3 + $0x18] sm:$0x7] %vm147_vm8, %v264_v57  ;;  %1087 = vmatpush.bf16.msrb.mxu0 %v2174_v33 }
  0xc5   :  { %1125 = vmatpush.bf16.msra.mxu1 %v2176_v24  ;;  %v2424_v24 = vor.u32 %v1829_v19, %v1726_v12 }
  0xc6   :  { %819 = vmatmul.bf16.gmra.mxu0 %v2340_v13  ;;  %1722 = vmatmul.msk.bf16.vlgmr.msra.gmra.mxu2 %vm685_vm1, %v2076_v31  ;;  %v1830_v31 = vld [vmem:[#allocation3 + $0x14] sm:$0xf] }
  0xc7   :  { %857 = vmatmul.bf16.gmra.mxu1 %v2340_v13  ;;  %1185 = vmatpush.bf16.msra.mxu2 %v2202_v62 }
  0xc8   :  { %1088 = vmatpush.bf16.msrb.mxu0 %v2185_v43  ;;  %v2430_v43 = vpop.f32.mrf.mxu3 }
  0xc9   :  { %1126 = vmatpush.bf16.msra.mxu1 %v2187_v44 }
  0xca   :  { %v292_v28 = vpop.permute.xlu0 %291  ;;  %v1734_v44 = vld [vmem:[#allocation3 + $0x10] sm:$0xf] }
  0xcb   :  { %300 = vst.msk [vmem:[#allocation3 + $0x1c] sm:$0x7] %vm73_vm2, %v292_v28  ;;  %1186 = vmatpush.bf16.msra.mxu2 %v2212_v17 }
  0xcc   :  { %1089 = vmatpush.bf16.msrb.mxu0 %v2194_v55  ;;  %v1831_v55 = vld [vmem:[#allocation3 + $0x14] sm:$0x70] }
  0xcd   :  { %1127 = vmatpush.bf16.msra.mxu1 %v2196_v58 }
  0xd0   :  { %1090 = vmatpush.bf16.msrb.mxu0 %v2207_v10  ;;  %v796_v58 = vpop.f32.mrf.mxu3  ;;  %v720_v10 = vpop.f32.mrf.mxu1 }
  0xd1   :  { %1128 = vmatpush.bf16.msra.mxu1 %v2210_v16 }
  0xd2   :  { %v1736_v9 = vld [vmem:[#allocation3 + $0x18] sm:$0x70] }
  0xd3   :  { %v2419_v33 = vor.u32 %v1830_v31, %v1736_v9 }
  0xd4   :  { %1091 = vmatpush.bf16.msrb.mxu0 %v2226_v35  ;;  %v2862_v35 = vld [vmem:[#allocation11_spill] sm:$0xff] }
  0xd5   :  { %1741 = vmatmul.msk.bf16.gmra.mxu3 %vm685_vm1, %v2419_v33  ;;  %1129 = vmatpush.bf16.msra.mxu1 %v2228_v36 }
  0xd6   :  { %890 = vmatmul.bf16.vlgmr.msra.gmra.mxu0 %v2307_v4  ;;  %1723 = vmatmul.msk.bf16.gmra.mxu2 %vm685_vm1, %v2122_v7  ;;  %v2439_v7 = vor.u32 %v1831_v55, %v1734_v44 }
  0xd7   :  { %1054 = vmatmul.bf16.vlgmr.msrb.gmra.mxu1 %v2424_v24 }
  0xd8   :  { %1160 = vmatpush.bf16.msra.mxu0 %v2238_v46  ;;  %v798_v62 = vpop.f32.mrf.mxu3  ;;  %v2466_v17 = vpop.f32.mrf.mxu1 }
  0xd9   :  { %1198 = vmatpush.bf16.msrb.mxu1 %v2240_v50  ;;  %v2863_v50 = vld [vmem:[#allocation12_spill] sm:$0xff] }
  0xdc   :  { %1161 = vmatpush.bf16.msra.mxu0 %v2245_v60 }
  0xdd   :  { %1199 = vmatpush.bf16.msrb.mxu1 %v2247_v0 }
  0xe0   :  { %1162 = vmatpush.bf16.msra.mxu0 %v2254_v15  ;;  %v801_v16 = vpop.f32.mrf.mxu3  ;;  %v725_v46 = vpop.f32.mrf.mxu1 }
  0xe1   :  { %1200 = vmatpush.bf16.msrb.mxu1 %v2257_v22 }
  0xe4   :  { %1163 = vmatpush.bf16.msra.mxu0 %v2264_v41 }
  0xe5   :  { %1201 = vmatpush.bf16.msrb.mxu1 %v2269_v48  ;;  %1744 = vmatmul.msk.bf16.vlgmr.msrb.gmra.mxu3 %vm685_vm1, %v2372_v49 }
  0xe6   :  { %895 = vmatmul.bf16.gmra.mxu0 %v2340_v13  ;;  %1742 = vmatmul.msk.bf16.vlgmr.msrb.gmra.mxu2 %vm685_vm1, %v2372_v49 }
  0xe7   :  { %1059 = vmatmul.bf16.gmra.mxu1 %v2439_v7  ;;  %1261 = vmatpush.bf16.msrb.mxu2 %v2320_v51 }
  0xe8   :  { %1164 = vmatpush.bf16.msra.mxu0 %v2277_v61  ;;  %v803_v36 = vpop.f32.mrf.mxu3  ;;  %v727_v0 = vpop.f32.mrf.mxu1 }
  0xe9   :  { %1202 = vmatpush.bf16.msrb.mxu1 %v2279_v2 }
  0xeb   :  { %1262 = vmatpush.bf16.msrb.mxu2 %v2328_v26 }
  0xec   :  { %1165 = vmatpush.bf16.msra.mxu0 %v2285_v20 }
  0xed   :  { %1203 = vmatpush.bf16.msrb.mxu1 %v2290_v47 }
  0xf0   :  { %1166 = vmatpush.bf16.msra.mxu0 %v2294_v40  ;;  %v2482_v60 = vpop.f32.mrf.mxu3 }
  0xf1   :  { %1204 = vmatpush.bf16.msrb.mxu1 %v2298_v38 }
  0xf4   :  { %1167 = vmatpush.bf16.msra.mxu0 %v2302_v39 }
  0xf5   :  { %1205 = vmatpush.bf16.msrb.mxu1 %v2305_v14  ;;  %1745 = vmatmul.msk.bf16.gmra.mxu3 %vm685_vm1, %v2419_v33 }
  0xf6   :  { %1092 = vmatmul.bf16.vlgmr.msrb.gmra.mxu0 %v2424_v24  ;;  %1743 = vmatmul.msk.bf16.gmra.mxu2 %vm685_vm1, %v2419_v33 }
  0xf7   :  { %1130 = vmatmul.bf16.vlgmr.msra.gmra.mxu1 %v2424_v24 }
  0xf8   :  { %1236 = vmatpush.bf16.msrb.mxu0 %v2315_v32  ;;  %v2489_v6 = vpop.f32.mrf.mxu3 }
  0xf9   :  { %1834 = vmatpush.bf16.msra.mxu1 %v2315_v32 }
  0xfc   :  { %1237 = vmatpush.bf16.msrb.mxu0 %v2862_v35 }
  0xfd   :  { %1835 = vmatpush.bf16.msra.mxu1 %v2862_v35 }
 0x100   :  { %1238 = vmatpush.bf16.msrb.mxu0 %v2335_v42  ;;  %v872_v20 = vpop.f32.mrf.mxu3 }
 0x101   :  { %1836 = vmatpush.bf16.msra.mxu1 %v2335_v42 }
 0x104   :  { %1239 = vmatpush.bf16.msrb.mxu0 %v2342_v3 }
 0x105   :  { %1837 = vmatpush.bf16.msra.mxu1 %v2342_v3  ;;  %1748 = vmatmul.msk.bf16.vlgmr.msra.gmra.mxu3 %vm685_vm1, %v2372_v49 }
 0x106   :  { %1097 = vmatmul.bf16.gmra.mxu0 %v2439_v7  ;;  %1746 = vmatmul.msk.bf16.vlgmr.msra.gmra.mxu2 %vm685_vm1, %v2372_v49 }
 0x107   :  { %1135 = vmatmul.bf16.gmra.mxu1 %v2439_v7 }
 0x108   :  { %1240 = vmatpush.bf16.msrb.mxu0 %v2863_v50  ;;  %v874_v32 = vpop.f32.mrf.mxu3 }
 0x109   :  { %1838 = vmatpush.bf16.msra.mxu1 %v2863_v50 }
 0x10c   :  { %1241 = vmatpush.bf16.msrb.mxu0 %v2357_v63 }
 0x10d   :  { %1839 = vmatpush.bf16.msra.mxu1 %v2357_v63 }
 0x110   :  { %1242 = vmatpush.bf16.msrb.mxu0 %v2363_v18  ;;  %v877_v5 = vpop.f32.mrf.mxu3 }
 0x111   :  { %1840 = vmatpush.bf16.msra.mxu1 %v2363_v18 }
 0x113   :  { %v701_v15 = vpop.f32.mrf.mxu0 }
 0x114   :  { %1243 = vmatpush.bf16.msrb.mxu0 %v2368_v30  ;;  %v2492_v22 = vadd.f32 %v720_v10, %v701_v15  ;;  %v777_v25 = vpop.f32.mrf.mxu1 }
 0x115   :  { %1841 = vmatpush.bf16.msra.mxu1 %v2368_v30  ;;  %v2495_v41 = vadd.f32 %v796_v58, %v777_v25  ;;  %1749 = vmatmul.msk.bf16.gmra.mxu3 %vm685_vm1, %v2419_v33 }
 0x116   :  { %1168 = vmatmul.bf16.vlgmr.msra.gmra.mxu0 %v2424_v24  ;;  %1747 = vmatmul.msk.bf16.gmra.mxu2 %vm685_vm1, %v2419_v33 }
 0x117   :  { %1206 = vmatmul.bf16.vlgmr.msrb.gmra.mxu1 %v2424_v24 }
 0x118   :  { %v879_v37 = vpop.f32.mrf.mxu3 }
 0x119   :  { %v2503_v48 = vpop.f32.mrf.mxu2 }
 0x11b   :  { %v2505_v61 = vpop.f32.mrf.mxu0 }
 0x11c   :  { %v779_v2 = vpop.f32.mrf.mxu1 }
 0x11d   :  { %v2507_v47 = vadd.f32 %v798_v62, %v779_v2 }
 0x11f   :  { %2864 = vst [vmem:[#allocation11_spill] sm:$0xff] %v2507_v47 }
 0x121   :  { %v2509_v40 = vpop.f32.mrf.mxu2 }
 0x123   :  { %v706_v38 = vpop.f32.mrf.mxu0 }
 0x124   :  { %v2511_v39 = vadd.f32 %v725_v46, %v706_v38  ;;  %v782_v14 = vpop.f32.mrf.mxu1 }
 0x125   :  { %v2513_v4 = vadd.f32 %v801_v16, %v782_v14 }
 0x126   :  { %1173 = vmatmul.bf16.gmra.mxu0 %v2439_v7  ;;  %1750 = vmatmul.msk.bf16.vlgmr.msrb.gmra.mxu2 %vm685_vm1, %v2372_v49 }
 0x127   :  { %2865 = vst [vmem:[#allocation12_spill] sm:$0xff] %v2513_v4  ;;  %1211 = vmatmul.bf16.gmra.mxu1 %v2439_v7 }
 0x129   :  { %v2519_v51 = vpop.f32.mrf.mxu2 }
 0x12b   :  { %v708_v26 = vpop.f32.mrf.mxu0 }
 0x12c   :  { %v2521_v42 = vadd.f32 %v727_v0, %v708_v26  ;;  %v784_v13 = vpop.f32.mrf.mxu1 }
 0x12d   :  { %v2523_v3 = vadd.f32 %v803_v36, %v784_v13 }
 0x12f   :  { %2866 = vst [vmem:[#allocation13_spill] sm:$0xff] %v2523_v3 }
 0x131   :  { %v2525_v53 = vpop.f32.mrf.mxu2 }
 0x133   :  { %v815_v63 = vpop.f32.mrf.mxu0 }
 0x134   :  { %v853_v52 = vpop.f32.mrf.mxu1 }
 0x135   :  { %v2527_v11 = vadd.f32 %v872_v20, %v853_v52 }
 0x136   :  { %1244 = vmatmul.bf16.vlgmr.msrb.gmra.mxu0 %v2424_v24  ;;  %1751 = vmatmul.msk.bf16.gmra.mxu2 %vm685_vm1, %v2419_v33 }
 0x137   :  { %1249 = vmatmul.bf16.vlgmr.msra.gmra.mxu1 %v2439_v7 }
 0x139   :  { %v834_v45 = vpop.f32.mrf.mxu2 }
 0x13a   :  { %v2533_v18 = vadd.f32 %v834_v45, %v815_v63  ;;  %v1074_v23 = vpop.f32.mrf.mxu3 }
 0x13b   :  { %v817_v34 = vpop.f32.mrf.mxu0 }
 0x13c   :  { %v855_v30 = vpop.f32.mrf.mxu1 }
 0x13d   :  { %v2535_v54 = vadd.f32 %v874_v32, %v855_v30 }
 0x141   :  { %v836_v59 = vpop.f32.mrf.mxu2 }
 0x142   :  { %v2537_v27 = vadd.f32 %v836_v59, %v817_v34  ;;  %v2547_v12 = vpop.f32.mrf.mxu3 }
 0x143   :  { %v2539_v49 = vpop.f32.mrf.mxu0 }
 0x144   :  { %v858_v29 = vpop.f32.mrf.mxu1 }
 0x145   :  { %v2541_v56 = vadd.f32 %v877_v5, %v858_v29 }
 0x149   :  { %v910_v57 = vpop.f32.mrf.mxu2 }
 0x14b   :  { %v2543_v28 = vpop.f32.mrf.mxu0 }
 0x14c   :  { %v860_v31 = vpop.f32.mrf.mxu1 }
 0x14d   :  { %v2545_v9 = vadd.f32 %v879_v37, %v860_v31  ;;  %v2581_v37 = vld [vmem:[#allocation6] sm:$0x3f]  ;;  %v759_v31 = vadd.f32 %v2386_v1, %v2503_v48 }
 0x14e   :  { %v2590_v29 = vperm.slane %v2581_v37, 0 }
 0x151   :  { %v912_v19 = vpop.f32.mrf.mxu2 }
 0x153   :  { %v891_v33 = vpop.f32.mrf.mxu0 }
 0x154   :  { %v2549_v24 = vadd.f32 %v910_v57, %v891_v33  ;;  %v1055_v44 = vpop.f32.mrf.mxu1  ;;  %v2592_v57 = vld [vmem:[#allocation8] sm:$0x3f]  ;;  %v723_v33 = vadd.f32 %v2466_v17, %v2505_v61  ;;  %v764_v17 = vadd.f32 %v2413_v8, %v2519_v51  ;;  %v945_v8 = vmul.f32 %v2590_v29, %v2511_v39 }
 0x155   :  { %v2610_v1 = vperm.slane %v2592_v57, 1  ;;  %v2632_v51 = vperm.slane %v2581_v37, 3 }
 0x156   :  { %v939_v48 = vmul.f32 %v2590_v29, %v723_v33 }
 0x158   :  { %v2551_v55 = vpop.f32.mrf.mxu3 }
 0x159   :  { %v915_v58 = vpop.f32.mrf.mxu2 }
 0x15b   :  { %v893_v7 = vpop.f32.mrf.mxu0 }
 0x15c   :  { %v2553_v62 = vadd.f32 %v912_v19, %v893_v7  ;;  %v2555_v10 = vpop.f32.mrf.mxu1  ;;  %v2597_v19 = vperm.slane %v2581_v37, 1  ;;  %v2604_v7 = vperm.slane %v2592_v57, 0 }
 0x15e   :  { %2867 = vst [vmem:[#allocation14_spill] sm:$0xff] %v2553_v62 }
 0x160   :  { %v2557_v16 = vpop.f32.mrf.mxu3 }
 0x161   :  { %v917_v35 = vpop.f32.mrf.mxu2 }
 0x163   :  { %v896_v36 = vpop.f32.mrf.mxu0 }
 0x164   :  { %v2559_v46 = vadd.f32 %v915_v58, %v896_v36  ;;  %v2561_v50 = vpop.f32.mrf.mxu1  ;;  %v933_v58 = vmul.f32 %v2590_v29, %v2492_v22  ;;  %v761_v36 = vadd.f32 %v2398_v21, %v2509_v40  ;;  %v2618_v22 = vperm.slane %v2581_v37, 2 }
 0x165   :  { %v2626_v40 = vperm.slane %v2581_v37, 4 }
 0x166   :  { %2868 = vst [vmem:[#allocation15_spill] sm:$0xff] %v2559_v46  ;;  %v2623_v21 = vadd.f32 %v2604_v7, %v933_v58  ;;  %v940_v33 = vmul.f32 %v2597_v19, %v761_v36  ;;  %v946_v58 = vmul.f32 %v2597_v19, %v764_v17 }
 0x167   :  { %v937_v36 = vmul.f32 %v2626_v40, %v2527_v11 }
 0x168   :  { %v2563_v0 = vpop.f32.mrf.mxu3  ;;  %v2655_v62 = vadd.f32 %v2610_v1, %v940_v33  ;;  %v2667_v46 = vadd.f32 %v2610_v1, %v946_v58 }
 0x169   :  { %v1112_v15 = vpop.f32.mrf.mxu2 }
 0x16b   :  { %v898_v25 = vpop.f32.mrf.mxu0 }
 0x16c   :  { %v2565_v2 = vadd.f32 %v917_v35, %v898_v25  ;;  %v2567_v20 = vpop.f32.mrf.mxu1  ;;  %v934_v25 = vmul.f32 %v2597_v19, %v759_v31 }
 0x16e   :  { %2869 = vst [vmem:[#allocation16_spill] sm:$0xff] %v2565_v2  ;;  %v1075_v2 = vadd.f32 %v1074_v23, %v1055_v44  ;;  %v971_v23 = vadd.f32 %v2610_v1, %v934_v25  ;;  %v2636_v44 = vadd.f32 %v2604_v7, %v939_v48  ;;  %v2651_v25 = vperm.slane %v2592_v57, 4 }
 0x170   :  { %v2569_v38 = vpop.f32.mrf.mxu3  ;;  %v1274_v39 = vmul.f32 %v1075_v2, %v2590_v29  ;;  %v936_v2 = vmul.f32 %v2632_v51, %v2533_v18  ;;  %v995_v47 = vmax.f32 %v971_v23, 0.0  ;;  %v766_v23 = vadd.f32 %v2430_v43, %v2525_v53 }
 0x171   :  { %2870 = vst [vmem:[#allocation17_spill] sm:$0xff] %v2569_v38  ;;  %v1114_v14 = vpop.f32.mrf.mxu2  ;;  %v974_v11 = vadd.f32 %v2651_v25, %v937_v36 }
 0x172   :  { %v1298_v4 = vadd.f32 %v1274_v39, %v2604_v7 }
 0x173   :  { %v1093_v32 = vpop.f32.mrf.mxu0 }
 0x174   :  { %v2571_v26 = vpop.f32.mrf.mxu1  ;;  %v1113_v31 = vadd.f32 %v1112_v15, %v1093_v32  ;;  %v2644_v15 = vperm.slane %v2592_v57, 2  ;;  %v994_v32 = vmax.f32 %v2623_v21, 0.0  ;;  %v2663_v21 = vperm.slane %v2592_v57, 3 }
 0x176   :  { %2875 = vst [vmem:[#allocation22_spill] sm:$0xff] %v2644_v15  ;;  %v1275_v48 = vmul.f32 %v1113_v31, %v2597_v19  ;;  %v1077_v31 = vadd.f32 %v2547_v12, %v2555_v10  ;;  %v973_v10 = vadd.f32 %v2663_v21, %v936_v2  ;;  %v998_v2 = vmax.f32 %v974_v11, 0.0 }
 0x178   :  { %v2575_v5 = vpop.f32.mrf.mxu3  ;;  %v1299_v58 = vadd.f32 %v1275_v48, %v2610_v1  ;;  %v1280_v43 = vmul.f32 %v1077_v31, %v2590_v29  ;;  %v952_v48 = vmul.f32 %v2597_v19, %v766_v23  ;;  %v840_v31 = vadd.f32 %v2482_v60, %v2539_v49 }
 0x179   :  { %v2573_v13 = vpop.f32.mrf.mxu2  ;;  %v1080_v23 = vadd.f32 %v2551_v55, %v2561_v50 }
 0x17b   :  { %v1095_v63 = vpop.f32.mrf.mxu0 }
 0x17c   :  { %v2577_v52 = vpop.f32.mrf.mxu1  ;;  %v1115_v38 = vadd.f32 %v1114_v14, %v1095_v63  ;;  %v943_v63 = vmul.f32 %v2626_v40, %v2535_v54  ;;  %v997_v14 = vmax.f32 %v973_v10, 0.0 }
 0x17d   :  { %2871 = vst [vmem:[#allocation18_spill] sm:$0xff] %v2577_v52 }
 0x180   :  { %v2585_v30 = vpop.f32.mrf.mxu3 }
 0x181   :  { %v2579_v45 = vpop.f32.mrf.mxu2  ;;  %2872 = vst [vmem:[#allocation19_spill] sm:$0xff] %v2585_v30 }
 0x183   :  { %v2583_v34 = vpop.f32.mrf.mxu0 }
 0x184   :  { %v2587_v59 = vpop.f32.mrf.mxu1  ;;  %v1118_v60 = vadd.f32 %v2573_v13, %v2583_v34  ;;  %v2715_v34 = vadd.f32 %v2610_v1, %v952_v48 }
 0x188   :  { %v1226_v30 = vpop.f32.mrf.mxu3 }
 0x189   :  { %v1188_v35 = vpop.f32.mrf.mxu2 }
 0x18b   :  { %v2615_v61 = vpop.f32.mrf.mxu0 }
 0x18c   :  { %v2620_v3 = vpop.f32.mrf.mxu1 }
 0x18d   :  { %2873 = vst [vmem:[#allocation20_spill] sm:$0xff] %v2620_v3  ;;  %v2641_v3 = vmul.f32 %v2618_v22, %v2495_v41  ;;  %v2658_v41 = vadd.f32 %v2604_v7, %v945_v8  ;;  %v951_v8 = vmul.f32 %v2590_v29, %v2521_v42 }
 0x18f   :  { %2874 = vst [vmem:[#allocation21_spill] sm:$0xff] %v2641_v3 }
 0x190   :  { %v1228_v39 = vpop.f32.mrf.mxu3 }
 0x191   :  { %v1190_v17 = vpop.f32.mrf.mxu2 }
 0x193   :  { %v1169_v33 = vpop.f32.mrf.mxu0 }
 0x194   :  { %v1189_v18 = vadd.f32 %v1188_v35, %v1169_v33  ;;  %v1207_v52 = vpop.f32.mrf.mxu1  ;;  %v2688_v35 = vadd.f32 %v2604_v7, %v951_v8  ;;  %v1323_v33 = vmax.f32 %v1299_v58, 0.0  ;;  %v1304_v8 = vadd.f32 %v1280_v43, %v2604_v7 }
 0x195   :  { %v1227_v15 = vadd.f32 %v1226_v30, %v1207_v52  ;;  %v1322_v52 = vmax.f32 %v1298_v4, 0.0  ;;  %v1281_v30 = vmul.f32 %v1115_v38, %v2597_v19  ;;  %v980_v38 = vadd.f32 %v2651_v25, %v943_v63 }
 0x196   :  { %v1277_v42 = vmul.f32 %v1189_v18, %v2632_v51  ;;  %2876 = vst [vmem:[#allocation23_spill] sm:$0xff] %v2688_v35  ;;  %v948_v43 = vmul.f32 %v2632_v51, %v840_v31  ;;  %v1328_v50 = vmax.f32 %v1304_v8, 0.0  ;;  %v2877_v31 = vmax.f32 %v2636_v44, 0.0 }
 0x197   :  { %v1278_v53 = vmul.f32 %v1227_v15, %v2626_v40  ;;  %v942_v15 = vmul.f32 %v2632_v51, %v2537_v27  ;;  %v1347_v27 = vmax.f32 %v995_v47, %v1323_v33  ;;  %v2711_v47 = vperm.slane %v2581_v37, 5 }
 0x198   :  { %v1301_v36 = vadd.f32 %v1277_v42, %v2663_v21  ;;  %v1346_v42 = vmax.f32 %v994_v32, %v1322_v52  ;;  %v1286_v32 = vmul.f32 %v1080_v23, %v2590_v29  ;;  %v1004_v33 = vmax.f32 %v980_v38, 0.0  ;;  %v1231_v37 = vpop.f32.mrf.mxu3 }
 0x199   :  { %v1302_v18 = vadd.f32 %v1278_v53, %v2651_v25  ;;  %v1193_v54 = vpop.f32.mrf.mxu2  ;;  %v1305_v53 = vadd.f32 %v1281_v30, %v2610_v1  ;;  %v979_v63 = vadd.f32 %v2663_v21, %v942_v15  ;;  %v1287_v30 = vmul.f32 %v1118_v60, %v2597_v19 }
 0x19a   :  { %v1325_v4 = vmax.f32 %v1301_v36, 0.0  ;;  %v949_v15 = vmul.f32 %v2626_v40, %v2541_v56  ;;  %v985_v48 = vadd.f32 %v2663_v21, %v948_v43  ;;  %v1310_v8 = vadd.f32 %v1286_v32, %v2604_v7 }
 0x19b   :  { %v1326_v11 = vmax.f32 %v1302_v18, 0.0  ;;  %v1171_v58 = vpop.f32.mrf.mxu0  ;;  %v1003_v18 = vmax.f32 %v979_v63, 0.0  ;;  %v1082_v56 = vadd.f32 %v2557_v16, %v2567_v20  ;;  %v1311_v44 = vadd.f32 %v1287_v30, %v2610_v1 }
 0x19c   :  { %v1349_v10 = vmax.f32 %v997_v14, %v1325_v4  ;;  %v1191_v12 = vadd.f32 %v1190_v17, %v1171_v58  ;;  %v1209_v3 = vpop.f32.mrf.mxu1  ;;  %v1329_v14 = vmax.f32 %v1305_v53, 0.0  ;;  %v1352_v4 = vmax.f32 %v2877_v31, %v1328_v50 }
 0x19d   :  { %v1350_v49 = vmax.f32 %v998_v2, %v1326_v11  ;;  %v1229_v36 = vadd.f32 %v1228_v39, %v1209_v3  ;;  %v2878_v11 = vmax.f32 %v2655_v62, 0.0  ;;  %v842_v63 = vadd.f32 %v2489_v6, %v2543_v28 }
 0x19e   :  { %v1370_v35 = vmax.f32 %v1346_v42, %v1349_v10  ;;  %v1283_v55 = vmul.f32 %v1191_v12, %v2632_v51  ;;  %v1009_v62 = vmax.f32 %v985_v48, 0.0  ;;  %v1292_v50 = vmul.f32 %v1082_v56, %v2590_v29 }
 0x19f   :  { %v1371_v52 = vmax.f32 %v1347_v27, %v1350_v49  ;;  %v1284_v17 = vmul.f32 %v1229_v36, %v2626_v40  ;;  %v1353_v58 = vmax.f32 %v2878_v11, %v1329_v14  ;;  %v1120_v27 = vadd.f32 %v2579_v45, %v2615_v61 }
 0x1a0   :  { %v1389_v13 = vrot.slane %v1370_v35, 6  ;;  %v1307_v3 = vadd.f32 %v1283_v55, %v2663_v21  ;;  %v986_v36 = vadd.f32 %v2651_v25, %v949_v15  ;;  %v1334_v55 = vmax.f32 %v1310_v8, 0.0 }
 0x1a1   :  { %v1390_v39 = vrot.slane %v1371_v52, 6  ;;  %v1308_v12 = vadd.f32 %v1284_v17, %v2651_v25  ;;  %v1195_v2 = vpop.f32.mrf.mxu2  ;;  %v1335_v61 = vmax.f32 %v1311_v44, 0.0  ;;  %v1293_v52 = vmul.f32 %v1120_v27, %v2597_v19 }
 0x1a2   :  { %1404 = vst [vmem:[%s2854_s4] sm:$0xfc] %v1389_v13  ;;  %v1331_v35 = vmax.f32 %v1307_v3, 0.0  ;;  %v1010_v14 = vmax.f32 %v986_v36, 0.0  ;;  %v954_v3 = vmul.f32 %v2632_v51, %v842_v63  ;;  %v1151_v29 = vadd.f32 %v2563_v0, %v2571_v26  ;;  %v2882_v36 = vld [vmem:[#allocation22_spill] sm:$0xff] }
 0x1a3   :  { %1405 = vst [vmem:[%s2854_s4 + $0x8] sm:$0xfc] %v1390_v39  ;;  %v1332_v38 = vmax.f32 %v1308_v12, 0.0  ;;  %v1174_v23 = vpop.f32.mrf.mxu0  ;;  %v2880_v31 = vmax.f32 %v2667_v46, 0.0 }
 0x1a4   :  { %v1355_v42 = vmax.f32 %v1003_v18, %v1331_v35  ;;  %v1194_v53 = vadd.f32 %v1193_v54, %v1174_v23  ;;  %v1212_v10 = vpop.f32.mrf.mxu1  ;;  %v2768_v23 = vperm.slane %v2592_v57, 5  ;;  %v1156_v57 = vadd.f32 %v2575_v5, %v2587_v59 }
 0x1a5   :  { %v1356_v60 = vmax.f32 %v1004_v33, %v1332_v38  ;;  %v1232_v49 = vadd.f32 %v1231_v37, %v1212_v10  ;;  %v955_v33 = vmul.f32 %v2626_v40, %v2545_v9  ;;  %v2879_v37 = vmax.f32 %v2658_v41, 0.0  ;;  %v1233_v9 = vpop.f32.mrf.mxu3 }
 0x1a6   :  { %v1373_v43 = vmax.f32 %v1352_v4, %v1355_v42  ;;  %v1289_v16 = vmul.f32 %v1194_v53, %v2632_v51  ;;  %v1359_v4 = vmax.f32 %v2880_v31, %v1335_v61  ;;  %v991_v41 = vadd.f32 %v2663_v21, %v954_v3 }
 0x1a7   :  { %v1374_v20 = vmax.f32 %v1353_v58, %v1356_v60  ;;  %v1290_v54 = vmul.f32 %v1232_v49, %v2626_v40  ;;  %v1358_v35 = vmax.f32 %v2879_v37, %v1334_v55  ;;  %v992_v11 = vadd.f32 %v2651_v25, %v955_v33  ;;  %v2881_v49 = vld [vmem:[#allocation21_spill] sm:$0xff]  ;;  %v2887_v33 = vld [vmem:[#allocation15_spill] sm:$0xff] }
 0x1a8   :  { %v1392_v32 = vrot.slane %v1373_v43, 6  ;;  %v1313_v45 = vadd.f32 %v1289_v16, %v2663_v21  ;;  %v972_v63 = vadd.f32 %v2882_v36, %v2881_v49  ;;  %v2883_v43 = vld [vmem:[#allocation23_spill] sm:$0xff]  ;;  %v1015_v16 = vmax.f32 %v991_v41, 0.0  ;;  %v2885_v55 = vld [vmem:[#allocation17_spill] sm:$0xff] }
 0x1a9   :  { %v1394_v17 = vrot.slane %v1374_v20, 6  ;;  %v1314_v6 = vadd.f32 %v1290_v54, %v2651_v25  ;;  %v1264_v28 = vpop.f32.mrf.mxu2  ;;  %v2884_v54 = vld [vmem:[#allocation18_spill] sm:$0xff] }
 0x1aa   :  { %v1393_v30 = vsel %vm1388_vm9, %v1389_v13, %v1392_v32  ;;  %v1337_v12 = vmax.f32 %v1313_v45, 0.0  ;;  %v1316_v13 = vadd.f32 %v1292_v50, %v2604_v7  ;;  %v1153_v50 = vadd.f32 %v2885_v55, %v2884_v54 }
 0x1ab   :  { %1407 = vst [vmem:[%s2854_s4 + $0x18] sm:$0xff] %v1393_v30  ;;  %v1395_v19 = vsel %vm1388_vm9, %v1390_v39, %v1394_v17  ;;  %v1338_v18 = vmax.f32 %v1314_v6, 0.0  ;;  %v1176_v15 = vpop.f32.mrf.mxu0  ;;  %v1317_v39 = vadd.f32 %v1293_v52, %v2610_v1  ;;  %v938_v1 = vmul.f32 %v2711_v47, %v2549_v24  ;;  %v2886_v30 = vld [vmem:[#allocation12_spill] sm:$0xff] }
 0x1ac   :  { %1408 = vst [vmem:[%s2854_s4 + $0x20] sm:$0xff] %v1395_v19  ;;  %v1361_v48 = vmax.f32 %v1009_v62, %v1337_v12  ;;  %v1196_v0 = vadd.f32 %v1195_v2, %v1176_v15  ;;  %v1214_v26 = vpop.f32.mrf.mxu1  ;;  %v1276_v2 = vmul.f32 %v1151_v29, %v2618_v22  ;;  %v1340_v42 = vmax.f32 %v1316_v13, 0.0 }
 0x1ad   :  { %v1362_v8 = vmax.f32 %v1010_v14, %v1338_v18  ;;  %v1234_v38 = vadd.f32 %v1233_v9, %v1214_v26  ;;  %v1341_v44 = vmax.f32 %v1317_v39, 0.0  ;;  %v1016_v62 = vmax.f32 %v992_v11, 0.0 }
 0x1ae   :  { %v1376_v7 = vmax.f32 %v1358_v35, %v1361_v48  ;;  %v1295_v56 = vmul.f32 %v1196_v0, %v2632_v51  ;;  %v1300_v5 = vadd.f32 %v1276_v2, %v2882_v36  ;;  %v975_v61 = vadd.f32 %v2768_v23, %v938_v1  ;;  %v2889_v0 = vld [vmem:[#allocation14_spill] sm:$0xff] }
 0x1af   :  { %v1377_v58 = vmax.f32 %v1359_v4, %v1362_v8  ;;  %v1296_v46 = vmul.f32 %v1234_v38, %v2626_v40  ;;  %v1012_v40 = vmax.f32 %v2883_v43, 0.0  ;;  %v1288_v52 = vmul.f32 %v1156_v57, %v2618_v22  ;;  %v2890_v8 = vld [vmem:[#allocation20_spill] sm:$0xff]  ;;  %v2891_v38 = vld [vmem:[#allocation19_spill] sm:$0xff] }
 0x1b0   :  { %v1422_v53 = vrot.slane %v1376_v7, 6  ;;  %v1319_v10 = vadd.f32 %v1295_v56, %v2663_v21  ;;  %v1013_v21 = vmax.f32 %v2715_v34, 0.0  ;;  %v996_v6 = vmax.f32 %v972_v63, 0.0 }
 0x1b1   :  { %v1423_v27 = vrot.slane %v1377_v58, 6  ;;  %v1320_v51 = vadd.f32 %v1296_v46, %v2651_v25  ;;  %v1266_v60 = vpop.f32.mrf.mxu2  ;;  %v1364_v20 = vmax.f32 %v1012_v40, %v1340_v42  ;;  %v947_v12 = vmul.f32 %v2618_v22, %v2886_v30 }
 0x1b2   :  { %1752 = vst [vmem:[%s2854_s4 + $0x48] sm:$0xfc] %v1422_v53  ;;  %v1343_v24 = vmax.f32 %v1319_v10, 0.0  ;;  %v1365_v34 = vmax.f32 %v1013_v21, %v1341_v44  ;;  %v950_v29 = vmul.f32 %v2711_v47, %v2887_v33  ;;  %v1324_v19 = vmax.f32 %v1300_v5, 0.0  ;;  %v2892_v21 = vld [vmem:[#allocation13_spill] sm:$0xff] }
 0x1b3   :  { %1753 = vst [vmem:[%s2854_s4 + $0x50] sm:$0xfc] %v1423_v27  ;;  %v1344_v59 = vmax.f32 %v1320_v51, 0.0  ;;  %v1245_v25 = vpop.f32.mrf.mxu0  ;;  %v1282_v35 = vmul.f32 %v1153_v50, %v2618_v22  ;;  %v999_v48 = vmax.f32 %v975_v61, 0.0  ;;  %v944_v26 = vmul.f32 %v2711_v47, %v2889_v0 }
 0x1b4   :  { %v1367_v32 = vmax.f32 %v1015_v16, %v1343_v24  ;;  %v1265_v45 = vadd.f32 %v1264_v28, %v1245_v25  ;;  %v1250_v15 = vpop.f32.mrf.mxu1  ;;  %v2888_v28 = vld [vmem:[#allocation11_spill] sm:$0xff]  ;;  %v1312_v31 = vadd.f32 %v1288_v52, %v2882_v36  ;;  %v1158_v41 = vadd.f32 %v2891_v38, %v2890_v8 }
 0x1b5   :  { %v1368_v17 = vmax.f32 %v1016_v62, %v1344_v59  ;;  %v941_v37 = vmul.f32 %v2618_v22, %v2888_v28  ;;  %v984_v2 = vadd.f32 %v2882_v36, %v947_v12  ;;  %v987_v58 = vadd.f32 %v2768_v23, %v950_v29  ;;  %v2893_v59 = vld [vmem:[#allocation16_spill] sm:$0xff] }
 0x1b6   :  { %v1379_v14 = vmax.f32 %v1364_v20, %v1367_v32  ;;  %v1279_v3 = vmul.f32 %v1265_v45, %v2711_v47  ;;  %v1348_v46 = vmax.f32 %v996_v6, %v1324_v19  ;;  %v1306_v10 = vadd.f32 %v1282_v35, %v2882_v36 }
 0x1b7   :  { %v1380_v18 = vmax.f32 %v1365_v34, %v1368_v17  ;;  %v978_v51 = vadd.f32 %v2882_v36, %v941_v37  ;;  %v981_v49 = vadd.f32 %v2768_v23, %v944_v26  ;;  %v1336_v63 = vmax.f32 %v1312_v31, 0.0 }
 0x1b8   :  { %v1425_v13 = vrot.slane %v1379_v14, 6  ;;  %v1303_v9 = vadd.f32 %v1279_v3, %v2768_v23  ;;  %v1294_v43 = vmul.f32 %v1158_v41, %v2618_v22  ;;  %v1008_v24 = vmax.f32 %v984_v2, 0.0 }
 0x1b9   :  { %v1427_v4 = vrot.slane %v1380_v18, 6  ;;  %v1269_v39 = vpop.f32.mrf.mxu2  ;;  %v953_v62 = vmul.f32 %v2618_v22, %v2892_v21  ;;  %v1011_v5 = vmax.f32 %v987_v58, 0.0  ;;  %v1330_v25 = vmax.f32 %v1306_v10, 0.0 }
 0x1ba   :  { %v1426_v7 = vsel %vm1388_vm9, %v1422_v53, %v1425_v13  ;;  %v1327_v56 = vmax.f32 %v1303_v9, 0.0  ;;  %v1270_v11 = vadd.f32 %v1269_v39, %v1250_v15  ;;  %v1002_v50 = vmax.f32 %v978_v51, 0.0 }
 0x1bb   :  { %1755 = vst [vmem:[%s2854_s4 + $0x60] sm:$0xff] %v1426_v7  ;;  %v1428_v1 = vsel %vm1388_vm9, %v1423_v27, %v1427_v4  ;;  %v1247_v42 = vpop.f32.mrf.mxu0  ;;  %v1005_v32 = vmax.f32 %v981_v49, 0.0  ;;  %v1360_v45 = vmax.f32 %v1008_v24, %v1336_v63  ;;  %v1318_v34 = vadd.f32 %v1294_v43, %v2882_v36 }
 0x1bc   :  { %1756 = vst [vmem:[%s2854_s4 + $0x68] sm:$0xff] %v1428_v1  ;;  %v1351_v53 = vmax.f32 %v999_v48, %v1327_v56  ;;  %v1291_v57 = vmul.f32 %v1270_v11, %v2711_v47  ;;  %v1267_v44 = vadd.f32 %v1266_v60, %v1247_v42  ;;  %v956_v60 = vmul.f32 %v2711_v47, %v2893_v59  ;;  %v1252_v61 = vpop.f32.mrf.mxu1 }
 0x1bd   :  { %v990_v14 = vadd.f32 %v2882_v36, %v953_v62  ;;  %v1354_v30 = vmax.f32 %v1002_v50, %v1330_v25  ;;  %v1342_v19 = vmax.f32 %v1318_v34, 0.0 }
 0x1be   :  { %v1372_v40 = vmax.f32 %v1348_v46, %v1351_v53  ;;  %v1315_v27 = vadd.f32 %v1291_v57, %v2768_v23  ;;  %v1285_v16 = vmul.f32 %v1267_v44, %v2711_v47  ;;  %v993_v3 = vadd.f32 %v2768_v23, %v956_v60 }
 0x1bf   :  { %v1014_v37 = vmax.f32 %v990_v14, 0.0 }
 0x1c0   :  { %v1391_v20 = vrot.slane %v1372_v40, 6  ;;  %v1339_v54 = vmax.f32 %v1315_v27, 0.0  ;;  %v1309_v55 = vadd.f32 %v1285_v16, %v2768_v23  ;;  %v1017_v35 = vmax.f32 %v993_v3, 0.0 }
 0x1c1   :  { %v1271_v52 = vpop.f32.mrf.mxu2  ;;  %v1366_v9 = vmax.f32 %v1014_v37, %v1342_v19 }
 0x1c2   :  { %1406 = vst [vmem:[%s2854_s4 + $0x10] sm:$0xfc] %v1391_v20  ;;  %v1363_v22 = vmax.f32 %v1011_v5, %v1339_v54  ;;  %v1333_v17 = vmax.f32 %v1309_v55, 0.0  ;;  %v1272_v6 = vadd.f32 %v1271_v52, %v1252_v61 }
 0x1c4   :  { %v1378_v12 = vmax.f32 %v1360_v45, %v1363_v22  ;;  %v1357_v33 = vmax.f32 %v1005_v32, %v1333_v17  ;;  %v1297_v29 = vmul.f32 %v1272_v6, %v2711_v47 }
 0x1c6   :  { %v1424_v18 = vrot.slane %v1378_v12, 6  ;;  %v1375_v15 = vmax.f32 %v1354_v30, %v1357_v33  ;;  %v1321_v28 = vadd.f32 %v1297_v29, %v2768_v23 }
 0x1c8   :  { %1754 = vst [vmem:[%s2854_s4 + $0x58] sm:$0xfc] %v1424_v18  ;;  %v1396_v13 = vrot.slane %v1375_v15, 6  ;;  %v1345_v36 = vmax.f32 %v1321_v28, 0.0 }
 0x1ca   :  { %v1397_v48 = vsel %vm1388_vm9, %v1391_v20, %v1396_v13  ;;  %v1369_v0 = vmax.f32 %v1017_v35, %v1345_v36 }
 0x1cb   :  { %1409 = vst [vmem:[%s2854_s4 + $0x28] sm:$0xff] %v1397_v48 }
 0x1cc   :  { %v1381_v47 = vmax.f32 %v1366_v9, %v1369_v0 }
 0x1ce   :  { %v1429_v26 = vrot.slane %v1381_v47, 6 }
 0x1d0   :  { %v1430_v23 = vsel %vm1388_vm9, %v1424_v18, %v1429_v26 }
 0x1d1   :  { %1757 = vst [vmem:[%s2854_s4 + $0x70] sm:$0xff] %v1430_v23 }
 0x1d2   :  { %1454 = vsyncpa [#allocation5], 1 }
 0x1d3   :  { %1455 = vsyncpa [#allocation7], 1 }

// kernel: convnet_forward.4
= control target key start
LH: loop header
LB: loop body
LE: loop exit
PB: predicated region body
PF: predicated region fallthrough
CT: control target
= control target key end

     0   :  { %9 = vsyncpa [#allocation5], 0  ;;  %s8724_s0 = inlined_call_operand.vmem [shape: f32[18,768], index: 0, kind: input, shape index: {}]   ;;  %s8725_s1 = inlined_call_operand.hbm [shape: bf16[1440,512], index: 1, kind: input, shape index: {}]   ;;  %s8726_s2 = inlined_call_operand.hbm [shape: f32[1,512], index: 2, kind: input, shape index: {}]   ;;  %s8727_s3 = inlined_call_operand.hbm [shape: f32[1,512], index: 3, kind: input, shape index: {}]   ;;  %s8728_s4 = inlined_call_operand.vmem [shape: f32[2,7,256], index: 4, kind: output, shape index: {}]  }
   0x1   :  { %10 = vsyncpa [#allocation7], 0  ;;  %s31_s17 = sshll.u32 %s8726_s2, 4  ;;  %s6397_s18 = smov [#allocation6]   ;;  %s32_s17 = int_to_ptr.hbm [resolvable:$true] %s31_s17 }
   0x2   :  { %s33_s19 = sshll.u32 %s6397_s18, 4  ;;  %s17_s22 = sshll.u32 %s8725_s1, 4  ;;  %s34_s19 = int_to_ptr.vmem [resolvable:$true] %s33_s19  ;;  %s18_s22 = int_to_ptr.hbm [resolvable:$true] %s17_s22 }
   0x3   :  { %36 = dma.hbm_to_vmem [thread:$0]  %s32_s17, 64, %s34_s19, [#allocation7]  }
   0x4   :  { %s6398_s23 = smov [#allocation4]   ;;  %s6399_s25 = smov 256  }
   0x5   :  { %s19_s24 = sshll.u32 %s6398_s23, 4  ;;  %s6400_s26 = smov 16   ;;  %s20_s24 = int_to_ptr.vmem [resolvable:$true] %s19_s24 }
   0x6   :  { %25 = dma.hbm_to_vmem [thread:$0]  %s18_s22, 46080, %s20_s24, [#allocation5], %s6399_s25, %s6399_s25, %s6400_s26  }
   0x7   :  { %s42_s2 = sshll.u32 %s8727_s3, 4  ;;  %s6401_s29 = smov [#allocation8]   ;;  %s43_s2 = int_to_ptr.hbm [resolvable:$true] %s42_s2 }
   0x8   :  { %s44_s30 = sshll.u32 %s6401_s29, 4  ;;  %s45_s30 = int_to_ptr.vmem [resolvable:$true] %s44_s30 }
   0x9   :  { %47 = dma.hbm_to_vmem [thread:$0]  %s43_s2, 64, %s45_s30, [#allocation7]  }
   0xa   :  { %6393 = dma.done.wait [#allocation5], 46080  }
   0xb   :  { %6394 = vsyncadd [#allocation5], 4294921216 }
   0xc   :  { %6395 = dma.done.wait [#allocation7], 128  }
   0xd   :  { %6396 = vsyncadd [#allocation7], 4294967168  ;;  %v76_v0 = vld [vmem:[%s8724_s0 + $0x18] sm:$0xff]  ;;  %v77_v1 = vld [vmem:[%s8724_s0 + $0x20] sm:$0xff]  ;;  %vm132_vm0 = vsmask.f32 3328 }
   0xe   :  { %v79_v2 = vld [vmem:[%s8724_s0 + $0x48] sm:$0xff]  ;;  %v82_v3 = vpack.c.bf16 %v77_v1, %v76_v0  ;;  %v80_v4 = vld [vmem:[%s8724_s0 + $0x50] sm:$0xff]  ;;  %v117_v5 = vld [vmem:[%s8724_s0] sm:$0xfe]  ;;  %vm133_vm1 = vsmask.f32 7440 }
   0xf   :  { %v118_v6 = vld [vmem:[%s8724_s0 + $0x8] sm:$0xfe]  ;;  %v84_v7 = vpack.c.bf16 %v80_v4, %v79_v2  ;;  %v120_v8 = vld [vmem:[%s8724_s0 + $0x30] sm:$0xff]  ;;  %v121_v9 = vld [vmem:[%s8724_s0 + $0x38] sm:$0xff]  ;;  %s6402_s21 = smov 32   ;;  %s6403_s3 = smov 64  }
  0x10   :  { %v126_v10 = vpack.c.bf16 %v118_v6, %v117_v5  ;;  %v209_v11 = vld [vmem:[%s8724_s0 + $0x18] sm:$0xfe]  ;;  %90 = vrot.lane.b32.xlu0 %v82_v3, %s6402_s21  ;;  %v128_v12 = vpack.c.bf16 %v121_v9, %v120_v8  ;;  %v210_v13 = vld [vmem:[%s8724_s0 + $0x20] sm:$0xfe]  ;;  %v119_v14 = vld [vmem:[%s8724_s0 + $0x10] sm:$0xfe] }
  0x11   :  { %v122_v15 = vld [vmem:[%s8724_s0 + $0x40] sm:$0xff]  ;;  %v218_v18 = vpack.c.bf16 %v210_v13, %v209_v11  ;;  %v234_v19 = vshll.u32 %v84_v7, 16  ;;  %v127_v21 = vpack.c.bf16 %v119_v14, %v119_v14  ;;  %v124_v24 = vld [vmem:[%s8724_s0 + $0x68] sm:$0x1]  ;;  %v215_v30 = vld [vmem:[%s8724_s0 + $0x78] sm:$0x1] }
  0x12   :  { %v136_v16 = vshrl.u32 %v126_v10, 16  ;;  %v139_v17 = vshll.u32 %v126_v10, 16  ;;  %v145_v20 = vshll.u32 %v128_v12, 16  ;;  %v6476_v22 = vpack.c.bf16 %v122_v15, %v122_v15  ;;  %v123_v23 = vld [vmem:[%s8724_s0 + $0x60] sm:$0x1]  ;;  %vm6493_vm2 = vmor %vm132_vm0, %vm133_vm1  ;;  %74 = vst [vmem:[#allocation2 + $0x30] sm:$0xff] %v128_v12 }
  0x13   :  { %v163_v25 = vshrl.u32 %v128_v12, 16  ;;  %v225_v28 = vshrl.u32 %v218_v18, 16  ;;  %v228_v29 = vshll.u32 %v218_v18, 16  ;;  %v150_v32 = vshrl.u32 %v127_v21, 16  ;;  %v216_v34 = vld [vmem:[%s8724_s0 + $0x80] sm:$0x1] }
  0x14   :  { %v138_v26 = vrot.slane %v136_v16, 4  ;;  %v141_v27 = vrot.slane %v139_v17, 5  ;;  %v147_v31 = vrot.slane %v145_v20, 5  ;;  %v153_v33 = vshll.u32 %v127_v21, 16  ;;  %v125_v52 = vld [vmem:[%s8724_s0 + $0x70] sm:$0x1] }
  0x15   :  { %v227_v36 = vrot.slane %v225_v28, 4  ;;  %v230_v37 = vrot.slane %v228_v29, 5  ;;  %v159_v38 = vshll.u32 %v6476_v22, 16  ;;  %v152_v40 = vrot.slane %v150_v32, 4  ;;  %v211_v61 = vld [vmem:[%s8724_s0 + $0x28] sm:$0xfe] }
  0x16   :  { %v142_v35 = vor.u32 %v141_v27, %v138_v26  ;;  %v155_v41 = vrot.slane %v153_v33, 5  ;;  %v130_v42 = vpack.c.bf16 %v124_v24, %v123_v23  ;;  %v165_v43 = vrot.slane %v163_v25, 4  ;;  %v81_v63 = vld [vmem:[%s8724_s0 + $0x58] sm:$0xff]  ;;  %v4545_v2 = vld [vmem:[#allocation4 + $0xe0] sm:$0xf]  ;;  %s6404_s14 = smov 96  }
  0x17   :  { %v231_v45 = vor.u32 %v230_v37, %v227_v36  ;;  %v236_v46 = vrot.slane %v234_v19, 5  ;;  %v222_v47 = vpack.c.bf16 %v216_v34, %v215_v30  ;;  %v252_v51 = vshrl.u32 %v84_v7, 16  ;;  %v5959_v3 = vld [vmem:[#allocation4 + $0xec] sm:$0xf0]  ;;  %v4673_v9 = vld [vmem:[#allocation4 + $0x1e0] sm:$0xf] }
  0x18   :  { %v143_v44 = vrot.slane %v142_v35, 4  ;;  %94 = vrot.lane.b32.xlu0 %v84_v7, %s6402_s21  ;;  %v156_v48 = vor.u32 %v155_v41, %v152_v40  ;;  %v166_v49 = vor.u32 %v165_v43, %v147_v31  ;;  %v169_v50 = vshll.u32 %v130_v42, 16  ;;  %v5991_v10 = vld [vmem:[#allocation4 + $0x1ec] sm:$0xf0]  ;;  %v4529_v15 = vld [vmem:[#allocation4 + $0xc0] sm:$0xf] }
  0x19   :  { %v232_v54 = vrot.slane %v231_v45, 4  ;;  %v161_v55 = vrot.slane %v159_v38, 5  ;;  %v258_v56 = vshll.u32 %v222_v47, 16  ;;  %v254_v60 = vrot.slane %v252_v51, 4  ;;  %v5955_v16 = vld [vmem:[#allocation4 + $0xcc] sm:$0xf0] }
  0x1a   :  { %v148_v53 = vsel %vm6493_vm2, %v143_v44, %v147_v31  ;;  %v157_v57 = vrot.slane %v156_v48, 4  ;;  %v167_v58 = vrot.slane %v166_v49, 4  ;;  %v171_v59 = vrot.slane %v169_v50, 5  ;;  %v217_v21 = vld [vmem:[%s8724_s0 + $0x88] sm:$0x1] }
  0x1b   :  { %183 = vrot.lane.b32.xlu1 %v148_v53, %s6403_s3  ;;  %v237_v62 = vsel %vm6493_vm2, %v232_v54, %v236_v46  ;;  %v131_v0 = vpack.c.bf16 %v125_v52, %v125_v52  ;;  %v173_v1 = vshrl.u32 %v6476_v22, 16  ;;  %v255_v4 = vor.u32 %v254_v60, %v236_v46  ;;  %v4657_v23 = vld [vmem:[#allocation4 + $0x1c0] sm:$0xf]  ;;  %v5987_v25 = vld [vmem:[#allocation4 + $0x1cc] sm:$0xf0]  ;;  %v78_v48 = vld [vmem:[%s8724_s0 + $0x28] sm:$0xff] }
  0x1c   :  { %272 = vrot.lane.b32.xlu2 %v237_v62, %s6404_s14  ;;  %v162_v5 = vsel %vm6493_vm2, %v157_v57, %v161_v55  ;;  %v260_v6 = vrot.slane %v258_v56, 5  ;;  %v219_v8 = vpack.c.bf16 %v211_v61, %v211_v61  ;;  %v172_v11 = vsel %vm6493_vm2, %v167_v58, %v171_v59  ;;  %v4513_v26 = vld [vmem:[#allocation4 + $0xa0] sm:$0xf]  ;;  %v5951_v29 = vld [vmem:[#allocation4 + $0xac] sm:$0xf0] }
  0x1d   :  { %v175_v7 = vrot.slane %v173_v1, 4  ;;  %v256_v12 = vrot.slane %v255_v4, 4  ;;  %v6518_v13 = vpack.c.bf16 %v81_v63, %v81_v63  ;;  %v6520_v14 = vor.u32 %v5959_v3, %v4545_v2  ;;  %v4801_v30 = vld [vmem:[#allocation4 + $0x2e0] sm:$0xf]  ;;  %v6023_v31 = vld [vmem:[#allocation4 + $0x2ec] sm:$0xf0] }
  0x1e   :  { %v179_v18 = vshll.u32 %v131_v0, 16  ;;  %v239_v19 = vshrl.u32 %v219_v8, 16  ;;  %v242_v20 = vshll.u32 %v219_v8, 16  ;;  %v6530_v28 = vor.u32 %v5991_v10, %v4673_v9  ;;  %v4641_v40 = vld [vmem:[#allocation4 + $0x1a0] sm:$0xf] }
  0x1f   :  { %v176_v17 = vor.u32 %v175_v7, %v161_v55  ;;  %v262_v24 = vshrl.u32 %v6518_v13, 16  ;;  %2864 = vmatpush.bf16.msra.mxu0 %v6520_v14  ;;  %v261_v27 = vsel %vm6493_vm2, %v256_v12, %v260_v6  ;;  %v248_v34 = vshll.u32 %v6518_v13, 16  ;;  %v4785_v41 = vld [vmem:[#allocation4 + $0x2c0] sm:$0xf]  ;;  %v5983_v45 = vld [vmem:[#allocation4 + $0x1ac] sm:$0xf0] }
  0x20   :  { %185 = vrot.lane.b32.xlu0 %v162_v5, %s6403_s3  ;;  %v241_v32 = vrot.slane %v239_v19, 4  ;;  %v244_v33 = vrot.slane %v242_v20, 5  ;;  %v6534_v35 = vor.u32 %v5955_v16, %v4529_v15  ;;  %v181_v37 = vrot.slane %v179_v18, 5  ;;  %2878 = vmatpush.bf16.msra.mxu1 %v6530_v28  ;;  %v6019_v47 = vld [vmem:[#allocation4 + $0x2cc] sm:$0xf0] }
  0x21   :  { %v177_v36 = vrot.slane %v176_v17, 4  ;;  %v6537_v38 = vor.u32 %v5987_v25, %v4657_v23  ;;  %v223_v42 = vpack.c.bf16 %v217_v21, %v217_v21  ;;  %v264_v43 = vrot.slane %v262_v24, 4  ;;  %v4497_v49 = vld [vmem:[#allocation4 + $0x80] sm:$0xf]  ;;  %v5947_v50 = vld [vmem:[#allocation4 + $0x8c] sm:$0xf0] }
  0x22   :  { %v6541_v44 = vor.u32 %v5951_v29, %v4513_v26  ;;  %v6543_v46 = vor.u32 %v6023_v31, %v4801_v30  ;;  %v245_v51 = vor.u32 %v244_v33, %v241_v32  ;;  %v250_v52 = vrot.slane %v248_v34, 5  ;;  %v4625_v53 = vld [vmem:[#allocation4 + $0x180] sm:$0xf]  ;;  %v5979_v57 = vld [vmem:[#allocation4 + $0x18c] sm:$0xf0] }
  0x23   :  { %187 = vrot.lane.b32.xlu1 %v172_v11, %s6403_s3  ;;  %2865 = vmatpush.bf16.msra.mxu0 %v6534_v35  ;;  %v6549_v54 = vor.u32 %v6019_v47, %v4785_v41  ;;  %v182_v55 = vsel %vm6493_vm2, %v177_v36, %v181_v37  ;;  %v6554_v56 = vor.u32 %v5983_v45, %v4641_v40  ;;  %v4769_v58 = vld [vmem:[#allocation4 + $0x2a0] sm:$0xf]  ;;  %v6015_v59 = vld [vmem:[#allocation4 + $0x2ac] sm:$0xf0]  ;;  %v268_v62 = vshll.u32 %v223_v42, 16 }
  0x24   :  { %276 = vrot.lane.b32.xlu2 %v261_v27, %s6404_s14  ;;  %2892 = vmatpush.bf16.msra.mxu2 %v6543_v46  ;;  %v83_v60 = vpack.c.bf16 %v78_v48, %v78_v48  ;;  %v265_v61 = vor.u32 %v264_v43, %v250_v52  ;;  %v6559_v63 = vor.u32 %v5947_v50, %v4497_v49  ;;  %v4929_v0 = vld [vmem:[#allocation4 + $0x3e0] sm:$0xf]  ;;  %v6055_v1 = vld [vmem:[#allocation4 + $0x3ec] sm:$0xf0]  ;;  %v246_v5 = vrot.slane %v245_v51, 4 }
  0x25   :  { %9057 = vst [vmem:[#allocation11_spill] sm:$0xff] %v6549_v54  ;;  %2879 = vmatpush.bf16.msra.mxu1 %v6537_v38  ;;  %v4481_v2 = vld [vmem:[#allocation4 + $0x60] sm:$0xf]  ;;  %v5943_v3 = vld [vmem:[#allocation4 + $0x6c] sm:$0xf0]  ;;  %v6561_v4 = vor.u32 %v6055_v1, %v4929_v0  ;;  %v6565_v6 = vor.u32 %v6015_v59, %v4769_v58  ;;  %v6568_v8 = vor.u32 %v5979_v57, %v4625_v53  ;;  %v270_v15 = vrot.slane %v268_v62, 5 }
  0x26   :  { %v4753_v7 = vld [vmem:[#allocation4 + $0x280] sm:$0xf]  ;;  %v6011_v9 = vld [vmem:[#allocation4 + $0x28c] sm:$0xf0]  ;;  %v266_v12 = vrot.slane %v265_v61, 4  ;;  %v6573_v16 = vor.u32 %v5943_v3, %v4481_v2  ;;  %v251_v26 = vsel %vm6493_vm2, %v246_v5, %v250_v52  ;;  %vm72_vm3 = vcmask 257024  }
  0x27   :  { %2866 = vmatpush.bf16.msra.mxu0 %v6541_v44  ;;  %9058 = vst [vmem:[#allocation12_spill] sm:$0xff] %v6561_v4  ;;  %2906 = vmatpush.bf16.msra.mxu3 %v6561_v4  ;;  %v4913_v10 = vld [vmem:[#allocation4 + $0x3c0] sm:$0xf]  ;;  %v6051_v11 = vld [vmem:[#allocation4 + $0x3cc] sm:$0xf0]  ;;  %v6578_v24 = vor.u32 %v6011_v9, %v4753_v7  ;;  %vm318_vm4 = vcmask 1042432  }
  0x28   :  { %96 = vrot.lane.b32.xlu0 %v6518_v13, %s6402_s21  ;;  %2893 = vmatpush.bf16.msra.mxu2 %v6549_v54  ;;  %9059 = vst [vmem:[#allocation13_spill] sm:$0xff] %v6565_v6  ;;  %v4609_v17 = vld [vmem:[#allocation4 + $0x160] sm:$0xf]  ;;  %v5975_v18 = vld [vmem:[#allocation4 + $0x16c] sm:$0xf0]  ;;  %v6575_v19 = vor.u32 %v6051_v11, %v4913_v10  ;;  %v271_v36 = vsel %vm6493_vm2, %v266_v12, %v270_v15  ;;  %vm319_vm5 = vcmask 1046532  }
  0x29   :  { %2880 = vmatpush.bf16.msra.mxu1 %v6554_v56  ;;  %9060 = vst [vmem:[#allocation14_spill] sm:$0xff] %v6573_v16  ;;  %v4465_v20 = vld [vmem:[#allocation4 + $0x40] sm:$0xf]  ;;  %v5939_v21 = vld [vmem:[#allocation4 + $0x4c] sm:$0xf0]  ;;  %v6583_v27 = vor.u32 %v5975_v18, %v4609_v17  ;;  %vm6702_vm6 = vmor %vm318_vm4, %vm319_vm5  ;;  %vm109_vm7 = vcmask 1043712  }
  0x2a   :  { %9061 = vst [vmem:[#allocation15_spill] sm:$0xff] %v6575_v19  ;;  %v4897_v23 = vld [vmem:[#allocation4 + $0x3a0] sm:$0xf]  ;;  %v6047_v25 = vld [vmem:[#allocation4 + $0x3ac] sm:$0xf0]  ;;  %v6589_v32 = vor.u32 %v5939_v21, %v4465_v20  ;;  %vm110_vm8 = vcmask 1047556  }
  0x2b   :  { %189 = vrot.lane.b32.xlu1 %v182_v55, %s6403_s3  ;;  %2867 = vmatpush.bf16.msra.mxu0 %v6559_v63  ;;  %9062 = vst [vmem:[#allocation16_spill] sm:$0xff] %v6578_v24  ;;  %v4737_v29 = vld [vmem:[#allocation4 + $0x260] sm:$0xf]  ;;  %v6007_v30 = vld [vmem:[#allocation4 + $0x26c] sm:$0xf0]  ;;  %v6586_v31 = vor.u32 %v6047_v25, %v4897_v23  ;;  %vm100_vm9 = vcmask 261120   ;;  %vm6815_vm10 = vmor %vm110_vm8, %vm109_vm7 }
  0x2c   :  { %92 = vrot.lane.b32.xlu2 %v83_v60, %s6402_s21  ;;  %2894 = vmatpush.bf16.msra.mxu2 %v6565_v6  ;;  %9063 = vst [vmem:[#allocation17_spill] sm:$0xff] %v6583_v27  ;;  %v4593_v33 = vld [vmem:[#allocation4 + $0x140] sm:$0xf]  ;;  %v5971_v34 = vld [vmem:[#allocation4 + $0x14c] sm:$0xf0]  ;;  %v6595_v41 = vor.u32 %v6007_v30, %v4737_v29  ;;  %vm113_vm11 = vcmask 519168  }
  0x2d   :  { %2881 = vmatpush.bf16.msra.mxu1 %v6568_v8  ;;  %2907 = vmatpush.bf16.msra.mxu3 %v6575_v19  ;;  %9064 = vst [vmem:[#allocation18_spill] sm:$0xff] %v6586_v31  ;;  %v4449_v37 = vld [vmem:[#allocation4 + $0x20] sm:$0xf]  ;;  %v5935_v40 = vld [vmem:[#allocation4 + $0x2c] sm:$0xf0]  ;;  %v6598_v42 = vor.u32 %v5971_v34, %v4593_v33  ;;  %vm202_vm12 = vcmask 1043968  }
  0x2e   :  { %9065 = vst [vmem:[#allocation19_spill] sm:$0xff] %v6589_v32  ;;  %v4721_v43 = vld [vmem:[#allocation4 + $0x240] sm:$0xf]  ;;  %v6003_v45 = vld [vmem:[#allocation4 + $0x24c] sm:$0xf0]  ;;  %v6603_v47 = vor.u32 %v5935_v40, %v4449_v37  ;;  %vm193_vm13 = vcmask 523264   ;;  %vm6855_vm14 = vmor %vm110_vm8, %vm202_vm12 }
  0x2f   :  { %2868 = vmatpush.bf16.msra.mxu0 %v6573_v16  ;;  %9066 = vst [vmem:[#allocation20_spill] sm:$0xff] %v6595_v41  ;;  %v4577_v48 = vld [vmem:[#allocation4 + $0x120] sm:$0xf]  ;;  %v5967_v49 = vld [vmem:[#allocation4 + $0x12c] sm:$0xf0]  ;;  %v6606_v55 = vor.u32 %v6003_v45, %v4721_v43  ;;  %vm282_vm15 = vcmask 785408  }
  0x30   :  { %2895 = vmatpush.bf16.msra.mxu2 %v6578_v24  ;;  %9067 = vst [vmem:[#allocation21_spill] sm:$0xff] %v6598_v42  ;;  %v4433_v50 = vld [vmem:[#allocation4] sm:$0xf]  ;;  %v5931_v51 = vld [vmem:[#allocation4 + $0xc] sm:$0xf0]  ;;  %v6609_v57 = vor.u32 %v5967_v49, %v4577_v48  ;;  %vm291_vm0 = vcmask 1044224  }
  0x31   :  { %2882 = vmatpush.bf16.msra.mxu1 %v6583_v27  ;;  %2908 = vmatpush.bf16.msra.mxu3 %v6586_v31  ;;  %9068 = vst [vmem:[#allocation22_spill] sm:$0xff] %v6603_v47  ;;  %v5057_v52 = vld [vmem:[#allocation4 + $0x4e0] sm:$0xf]  ;;  %v6087_v53 = vld [vmem:[#allocation4 + $0x4ec] sm:$0xf0]  ;;  %v6612_v58 = vor.u32 %v5931_v51, %v4433_v50  ;;  %vm205_vm1 = vcmask 781312   ;;  %vm6877_vm4 = vmor %vm110_vm8, %vm291_vm0 }
  0x32   :  { %9069 = vst [vmem:[#allocation23_spill] sm:$0xff] %v6606_v55  ;;  %v4561_v59 = vld [vmem:[#allocation4 + $0x100] sm:$0xf]  ;;  %v5963_v60 = vld [vmem:[#allocation4 + $0x10c] sm:$0xf0]  ;;  %v6614_v61 = vor.u32 %v6087_v53, %v5057_v52 }
  0x33   :  { %274 = vrot.lane.b32.xlu1 %v251_v26, %s6404_s14  ;;  %2869 = vmatpush.bf16.msra.mxu0 %v6589_v32  ;;  %9070 = vst [vmem:[#allocation24_spill] sm:$0xff] %v6609_v57  ;;  %v5185_v62 = vld [vmem:[#allocation4 + $0x5e0] sm:$0xf]  ;;  %v6119_v0 = vld [vmem:[#allocation4 + $0x5ec] sm:$0xf0]  ;;  %v6618_v3 = vor.u32 %v5963_v60, %v4561_v59 }
  0x34   :  { %278 = vrot.lane.b32.xlu2 %v271_v36, %s6404_s14  ;;  %2896 = vmatpush.bf16.msra.mxu2 %v6595_v41  ;;  %9071 = vst [vmem:[#allocation25_spill] sm:$0xff] %v6612_v58  ;;  %v5041_v1 = vld [vmem:[#allocation4 + $0x4c0] sm:$0xf]  ;;  %v6083_v2 = vld [vmem:[#allocation4 + $0x4cc] sm:$0xf0]  ;;  %v6621_v5 = vor.u32 %v6119_v0, %v5185_v62 }
  0x35   :  { %2883 = vmatpush.bf16.msra.mxu1 %v6598_v42  ;;  %9072 = vst [vmem:[#allocation26_spill] sm:$0xff] %v6614_v61  ;;  %v6624_v7 = vor.u32 %v6083_v2, %v5041_v1  ;;  %v5169_v9 = vld [vmem:[#allocation4 + $0x5c0] sm:$0xf]  ;;  %v6115_v10 = vld [vmem:[#allocation4 + $0x5cc] sm:$0xf0] }
  0x36   :  { %9073 = vst [vmem:[#allocation27_spill] sm:$0xff] %v6618_v3  ;;  %v6628_v11 = vor.u32 %v6115_v10, %v5169_v9  ;;  %v4881_v12 = vld [vmem:[#allocation4 + $0x380] sm:$0xf]  ;;  %v6043_v15 = vld [vmem:[#allocation4 + $0x38c] sm:$0xf0] }
  0x37   :  { %2870 = vmatpush.bf16.msra.mxu0 %v6603_v47  ;;  %9074 = vst [vmem:[#allocation28_spill] sm:$0xff] %v6621_v5  ;;  %v5025_v17 = vld [vmem:[#allocation4 + $0x4a0] sm:$0xf]  ;;  %v6632_v18 = vor.u32 %v6043_v15, %v4881_v12  ;;  %v6079_v20 = vld [vmem:[#allocation4 + $0x4ac] sm:$0xf0] }
  0x38   :  { %2897 = vmatpush.bf16.msra.mxu2 %v6606_v55  ;;  %9075 = vst [vmem:[#allocation29_spill] sm:$0xff] %v6624_v7  ;;  %v5153_v21 = vld [vmem:[#allocation4 + $0x5a0] sm:$0xf]  ;;  %v6111_v23 = vld [vmem:[#allocation4 + $0x5ac] sm:$0xf0]  ;;  %v6634_v25 = vor.u32 %v6079_v20, %v5025_v17 }
  0x39   :  { %2884 = vmatpush.bf16.msra.mxu1 %v6609_v57  ;;  %9076 = vst [vmem:[#allocation30_spill] sm:$0xff] %v6628_v11  ;;  %v6636_v26 = vor.u32 %v6111_v23, %v5153_v21  ;;  %v4705_v29 = vld [vmem:[#allocation4 + $0x220] sm:$0xf]  ;;  %v5999_v30 = vld [vmem:[#allocation4 + $0x22c] sm:$0xf0]  ;;  %2909 = vmatpush.bf16.msra.mxu3 %v6632_v18 }
  0x3a   :  { %9077 = vst [vmem:[#allocation31_spill] sm:$0xff] %v6632_v18  ;;  %v6639_v33 = vor.u32 %v5999_v30, %v4705_v29  ;;  %v4865_v34 = vld [vmem:[#allocation4 + $0x360] sm:$0xf]  ;;  %v6039_v36 = vld [vmem:[#allocation4 + $0x36c] sm:$0xf0] }
  0x3b   :  { %2871 = vmatpush.bf16.msra.mxu0 %v6612_v58  ;;  %9078 = vst [vmem:[#allocation32_spill] sm:$0xff] %v6634_v25  ;;  %v5009_v37 = vld [vmem:[#allocation4 + $0x480] sm:$0xf]  ;;  %v6644_v40 = vor.u32 %v6039_v36, %v4865_v34  ;;  %v6075_v43 = vld [vmem:[#allocation4 + $0x48c] sm:$0xf0]  ;;  %v62_v34 = vld [vmem:[%s8724_s0 + $0x8] sm:$0xff] }
  0x3c   :  { %9079 = vst [vmem:[#allocation33_spill] sm:$0xff] %v6636_v26  ;;  %2898 = vmatpush.bf16.msra.mxu2 %v6639_v33  ;;  %v5137_v45 = vld [vmem:[#allocation4 + $0x580] sm:$0xf]  ;;  %v6107_v48 = vld [vmem:[#allocation4 + $0x58c] sm:$0xf0]  ;;  %v6646_v49 = vor.u32 %v6075_v43, %v5009_v37 }
  0x3d   :  { %2885 = vmatpush.bf16.msra.mxu1 %v6618_v3  ;;  %9080 = vst [vmem:[#allocation34_spill] sm:$0xff] %v6639_v33  ;;  %v6648_v50 = vor.u32 %v6107_v48, %v5137_v45  ;;  %v4689_v51 = vld [vmem:[#allocation4 + $0x200] sm:$0xf]  ;;  %v5995_v52 = vld [vmem:[#allocation4 + $0x20c] sm:$0xf0]  ;;  %2910 = vmatpush.bf16.msra.mxu3 %v6644_v40 }
  0x3e   :  { %9081 = vst [vmem:[#allocation35_spill] sm:$0xff] %v6644_v40  ;;  %v5313_v53 = vld [vmem:[#allocation4 + $0x6e0] sm:$0xf]  ;;  %v6651_v59 = vor.u32 %v5995_v52, %v4689_v51  ;;  %v6151_v60 = vld [vmem:[#allocation4 + $0x6ec] sm:$0xf0] }
  0x3f   :  { %2920 = vmatpush.bf16.msrb.mxu0 %v6614_v61  ;;  %9082 = vst [vmem:[#allocation36_spill] sm:$0xff] %v6646_v49  ;;  %v6655_v62 = vor.u32 %v6151_v60, %v5313_v53  ;;  %v4849_v0 = vld [vmem:[#allocation4 + $0x340] sm:$0xf]  ;;  %v6035_v1 = vld [vmem:[#allocation4 + $0x34c] sm:$0xf0] }
  0x40   :  { %9083 = vst [vmem:[#allocation37_spill] sm:$0xff] %v6648_v50  ;;  %v4993_v2 = vld [vmem:[#allocation4 + $0x460] sm:$0xf]  ;;  %2899 = vmatpush.bf16.msra.mxu2 %v6651_v59  ;;  %v6658_v9 = vor.u32 %v6035_v1, %v4849_v0  ;;  %v6071_v10 = vld [vmem:[#allocation4 + $0x46c] sm:$0xf0] }
  0x41   :  { %2934 = vmatpush.bf16.msrb.mxu1 %v6621_v5  ;;  %9084 = vst [vmem:[#allocation38_spill] sm:$0xff] %v6651_v59  ;;  %v5121_v12 = vld [vmem:[#allocation4 + $0x560] sm:$0xf]  ;;  %v6103_v15 = vld [vmem:[#allocation4 + $0x56c] sm:$0xf0]  ;;  %v6661_v17 = vor.u32 %v6071_v10, %v4993_v2 }
  0x42   :  { %9085 = vst [vmem:[#allocation39_spill] sm:$0xff] %v6655_v62  ;;  %v6663_v20 = vor.u32 %v6103_v15, %v5121_v12  ;;  %v5297_v21 = vld [vmem:[#allocation4 + $0x6c0] sm:$0xf]  ;;  %v6147_v23 = vld [vmem:[#allocation4 + $0x6cc] sm:$0xf0]  ;;  %2911 = vmatpush.bf16.msra.mxu3 %v6658_v9 }
  0x43   :  { %2921 = vmatpush.bf16.msrb.mxu0 %v6624_v7  ;;  %9086 = vst [vmem:[#allocation40_spill] sm:$0xff] %v6658_v9  ;;  %v6666_v29 = vor.u32 %v6147_v23, %v5297_v21  ;;  %v61_v30 = vld [vmem:[%s8724_s0] sm:$0xff]  ;;  %v6031_v37 = vld [vmem:[#allocation4 + $0x32c] sm:$0xf0]  ;;  %v586_v15 = vld [vmem:[%s8724_s0 + $0x28] sm:$0xfc] }
  0x44   :  { %2948 = vmatpush.bf16.msrb.mxu2 %v6655_v62  ;;  %9087 = vst [vmem:[#allocation41_spill] sm:$0xff] %v6661_v17  ;;  %v4833_v36 = vld [vmem:[#allocation4 + $0x320] sm:$0xf]  ;;  %v6067_v48 = vld [vmem:[#allocation4 + $0x44c] sm:$0xf0]  ;;  %v67_v53 = vpack.c.bf16 %v62_v34, %v61_v30  ;;  %v327_v23 = vrot.slane %v6476_v22, 5  ;;  %v594_v30 = vpack.c.bf16 %v586_v15, %v586_v15 }
  0x45   :  { %2935 = vmatpush.bf16.msrb.mxu1 %v6628_v11  ;;  %9088 = vst [vmem:[#allocation42_spill] sm:$0xff] %v6663_v20  ;;  %v4977_v43 = vld [vmem:[#allocation4 + $0x440] sm:$0xf]  ;;  %v6676_v45 = vor.u32 %v6031_v37, %v4833_v36  ;;  %v6099_v52 = vld [vmem:[#allocation4 + $0x54c] sm:$0xf0] }
  0x46   :  { %9089 = vst [vmem:[#allocation43_spill] sm:$0xff] %v6666_v29  ;;  %v5105_v51 = vld [vmem:[#allocation4 + $0x540] sm:$0xf]  ;;  %v6679_v60 = vor.u32 %v6067_v48, %v4977_v43  ;;  %v299_v1 = vld [vmem:[%s8724_s0 + $0x10] sm:$0xfc] }
  0x47   :  { %2922 = vmatpush.bf16.msrb.mxu0 %v6634_v25  ;;  %9090 = vst [vmem:[#allocation44_spill] sm:$0xff] %v6676_v45  ;;  %v6681_v0 = vor.u32 %v6099_v52, %v5105_v51  ;;  %v305_v2 = vld [vmem:[%s8724_s0 + $0x70] sm:$0x3]  ;;  %2912 = vmatpush.bf16.msra.mxu3 %v6676_v45  ;;  %v307_v10 = vpack.c.bf16 %v299_v1, %v299_v1  ;;  %v592_v21 = vld [vmem:[%s8724_s0 + $0x88] sm:$0x3]  ;;  %v611_v52 = vrot.slane %v6518_v13, 5 }
  0x48   :  { %2949 = vmatpush.bf16.msrb.mxu2 %v6666_v29  ;;  %9091 = vst [vmem:[#allocation45_spill] sm:$0xff] %v6679_v60  ;;  %v311_v12 = vpack.c.bf16 %v305_v2, %v305_v2  ;;  %v63_v34 = vld [vmem:[%s8724_s0 + $0x10] sm:$0xff]  ;;  %v5281_v36 = vld [vmem:[#allocation4 + $0x6a0] sm:$0xf]  ;;  %v598_v51 = vpack.c.bf16 %v592_v21, %v592_v21  ;;  %v332_v2 = vrot.slane %v327_v23, 4 }
  0x49   :  { %2936 = vmatpush.bf16.msrb.mxu1 %v6636_v26  ;;  %9092 = vst [vmem:[#allocation46_spill] sm:$0xff] %v6681_v0  ;;  %v4378_v43 = vrot.slane %v307_v10, 9  ;;  %v6143_v1 = vld [vmem:[#allocation4 + $0x6ac] sm:$0xf0]  ;;  %v4817_v15 = vld [vmem:[#allocation4 + $0x300] sm:$0xf] }
  0x4a   :  { %v333_v48 = vrot.slane %v311_v12, 5  ;;  %71 = vst [vmem:[#allocation2] sm:$0xff] %v67_v53  ;;  %v6707_v45 = vor.u32 %v6143_v1, %v5281_v36  ;;  %v617_v9 = vrot.slane %v598_v51, 5  ;;  %v4961_v62 = vld [vmem:[#allocation4 + $0x420] sm:$0xf] }
  0x4b   :  { %2923 = vmatpush.bf16.msrb.mxu0 %v6646_v49  ;;  %v328_v29 = vsel %vm6702_vm6, %v4378_v43, %v327_v23  ;;  %v6063_v12 = vld [vmem:[#allocation4 + $0x42c] sm:$0xf0]  ;;  %v5089_v21 = vld [vmem:[#allocation4 + $0x520] sm:$0xf]  ;;  %75 = vst.msk [vmem:[#allocation2 + $0x38] sm:$0xf] %vm72_vm3, %v6476_v22 }
  0x4c   :  { %9095 = vst [vmem:[#allocation47_spill] sm:$0xff] %v6707_v45  ;;  %v334_v10 = vsel %vm6702_vm6, %v332_v2, %v333_v48  ;;  %2950 = vmatpush.bf16.msrb.mxu2 %v6707_v45  ;;  %v5441_v36 = vld [vmem:[#allocation4 + $0x7e0] sm:$0xf]  ;;  %v6139_v48 = vld [vmem:[#allocation4 + $0x68c] sm:$0xf0] }
  0x4d   :  { %2937 = vmatpush.bf16.msrb.mxu1 %v6648_v50  ;;  %340 = vst.msk [vmem:[#allocation2 + $0x2c] sm:$0xf] %vm72_vm3, %v328_v29  ;;  %v5073_v51 = vld [vmem:[#allocation4 + $0x500] sm:$0xf]  ;;  %v6091_v1 = vld [vmem:[#allocation4 + $0x50c] sm:$0xf0] }
  0x4e   :  { %342 = vst.msk [vmem:[#allocation2 + $0x5c] sm:$0xf] %vm72_vm3, %v334_v10  ;;  %v5425_v2 = vld [vmem:[#allocation4 + $0x7c0] sm:$0xf]  ;;  %v6740_v10 = vor.u32 %v6091_v1, %v5073_v51  ;;  %v6135_v1 = vld [vmem:[#allocation4 + $0x66c] sm:$0xf0] }
  0x4f   :  { %2924 = vmatpush.bf16.msrb.mxu0 %v6661_v17  ;;  %v68_v17 = vpack.c.bf16 %v63_v34, %v63_v34  ;;  %v6095_v34 = vld [vmem:[#allocation4 + $0x52c] sm:$0xf0]  ;;  %v5249_v51 = vld [vmem:[#allocation4 + $0x660] sm:$0xf]  ;;  %v4595_v7 = vld [vmem:[#allocation4 + $0x150] sm:$0xf0] }
  0x50   :  { %v6726_v29 = vor.u32 %v6095_v34, %v5089_v21  ;;  %9102 = vst [vmem:[#allocation54_spill] sm:$0xff] %v6740_v10  ;;  %v4387_v34 = vld [vmem:[#allocation2 + $0x30] sm:$0xf0]  ;;  %v5809_v45 = vld [vmem:[#allocation4 + $0xac0] sm:$0xf] }
  0x51   :  { %2938 = vmatpush.bf16.msrb.mxu1 %v6663_v20  ;;  %v616_v20 = vrot.slane %v611_v52, 4  ;;  %73 = vst.msk [vmem:[#allocation2 + $0x8] sm:$0xf] %vm72_vm3, %v68_v17  ;;  %v4385_v17 = vld [vmem:[#allocation2] sm:$0xf] }
  0x52   :  { %9098 = vst [vmem:[#allocation50_spill] sm:$0xff] %v6726_v29  ;;  %v6275_v59 = vld [vmem:[#allocation4 + $0xacc] sm:$0xf0]  ;;  %v5948_v41 = vld [vmem:[#allocation4 + $0x94] sm:$0xf0] }
  0x53   :  { %2925 = vmatpush.bf16.msrb.mxu0 %v6679_v60  ;;  %v6027_v60 = vld [vmem:[#allocation4 + $0x30c] sm:$0xf0]  ;;  %v618_v23 = vsel %vm6702_vm6, %v616_v20, %v617_v9  ;;  %v4945_v9 = vld [vmem:[#allocation4 + $0x400] sm:$0xf]  ;;  %v6064_v19 = vld [vmem:[#allocation4 + $0x434] sm:$0xf0] }
  0x54   :  { %v6717_v53 = vor.u32 %v6027_v60, %v4817_v15  ;;  %v5265_v60 = vld [vmem:[#allocation4 + $0x680] sm:$0xf]  ;;  %626 = vst.msk [vmem:[#allocation3 + $0x5c] sm:$0xf] %vm72_vm3, %v618_v23  ;;  %v6059_v20 = vld [vmem:[#allocation4 + $0x40c] sm:$0xf0] }
  0x55   :  { %2939 = vmatpush.bf16.msrb.mxu1 %v6681_v0  ;;  %v4382_v0 = vrot.slane %v594_v30, 9  ;;  %v6722_v30 = vor.u32 %v6063_v12, %v4961_v62  ;;  %v6734_v62 = vor.u32 %v6139_v48, %v5265_v60  ;;  %v6179_v15 = vld [vmem:[#allocation4 + $0x7cc] sm:$0xf0]  ;;  %v6289_v23 = vld [vmem:[#allocation2 + $0x4] sm:$0xf] }
  0x56   :  { %9096 = vst [vmem:[#allocation48_spill] sm:$0xff] %v6717_v53  ;;  %2913 = vmatpush.bf16.msra.mxu3 %v6717_v53  ;;  %v6295_v12 = vld [vmem:[#allocation2 + $0x2c] sm:$0xf0]  ;;  %v5697_v48 = vld [vmem:[#allocation4 + $0x9e0] sm:$0xf] }
  0x57   :  { %v612_v13 = vsel %vm6702_vm6, %v4382_v0, %v611_v52  ;;  %9097 = vst [vmem:[#allocation49_spill] sm:$0xff] %v6722_v30  ;;  %v6183_v0 = vld [vmem:[#allocation4 + $0x7ec] sm:$0xf0]  ;;  %2926 = vmatpush.bf16.msrb.mxu0 %v6722_v30  ;;  %v6737_v52 = vor.u32 %v6059_v20, %v4945_v9  ;;  %2951 = vmatpush.bf16.msrb.mxu2 %v6734_v62  ;;  %v5257_v3 = vld [vmem:[#allocation4 + $0x668] sm:$0xf] }
  0x58   :  { %624 = vst.msk [vmem:[#allocation3 + $0x2c] sm:$0xf] %vm72_vm3, %v612_v13  ;;  %v6730_v43 = vor.u32 %v6183_v0, %v5441_v36  ;;  %v6742_v13 = vor.u32 %v6179_v15, %v5425_v2  ;;  %v6747_v21 = vor.u32 %v6295_v12, %v4385_v17  ;;  %v5569_v36 = vld [vmem:[#allocation4 + $0x8e0] sm:$0xf]  ;;  %v6750_v0 = vor.u32 %v6289_v23, %v4387_v34  ;;  %v6215_v60 = vld [vmem:[#allocation4 + $0x8ec] sm:$0xf0] }
  0x59   :  { %2940 = vmatpush.bf16.msrb.mxu1 %v6726_v29  ;;  %9100 = vst [vmem:[#allocation52_spill] sm:$0xff] %v6734_v62  ;;  %v6247_v9 = vld [vmem:[#allocation4 + $0x9ec] sm:$0xf0]  ;;  %v6754_v22 = vor.u32 %v6215_v60, %v5569_v36  ;;  %v6759_v2 = vor.u32 %v6135_v1, %v5249_v51  ;;  %v5409_v15 = vld [vmem:[#allocation4 + $0x7a0] sm:$0xf] }
  0x5a   :  { %9099 = vst [vmem:[#allocation51_spill] sm:$0xff] %v6730_v43  ;;  %2962 = vmatpush.bf16.msrb.mxu3 %v6730_v43  ;;  %2872 = vmatmul.bf16.vlgmr.msra.gmra.mxu0 %v6747_v21  ;;  %v6756_v20 = vor.u32 %v6247_v9, %v5697_v48  ;;  %v6175_v17 = vld [vmem:[#allocation4 + $0x7ac] sm:$0xf0]  ;;  %v5553_v23 = vld [vmem:[#allocation4 + $0x8c0] sm:$0xf] }
  0x5b   :  { %9101 = vst [vmem:[#allocation53_spill] sm:$0xff] %v6737_v52  ;;  %2927 = vmatpush.bf16.msrb.mxu0 %v6737_v52  ;;  %2886 = vmatmul.bf16.vlgmr.msra.gmra.mxu1 %v6750_v0  ;;  %v6763_v12 = vor.u32 %v6175_v17, %v5409_v15  ;;  %v6211_v34 = vld [vmem:[#allocation4 + $0x8cc] sm:$0xf0]  ;;  %v5681_v36 = vld [vmem:[#allocation4 + $0x9c0] sm:$0xf] }
  0x5c   :  { %9103 = vst [vmem:[#allocation55_spill] sm:$0xff] %v6742_v13  ;;  %2952 = vmatpush.bf16.msrb.mxu2 %v6759_v2  ;;  %v6766_v60 = vor.u32 %v6211_v34, %v5553_v23  ;;  %v6243_v48 = vld [vmem:[#allocation4 + $0x9cc] sm:$0xf0]  ;;  %v5233_v9 = vld [vmem:[#allocation4 + $0x640] sm:$0xf] }
  0x5d   :  { %2941 = vmatpush.bf16.msrb.mxu1 %v6740_v10  ;;  %9104 = vst [vmem:[#allocation56_spill] sm:$0xff] %v6754_v22  ;;  %v6769_v51 = vor.u32 %v6243_v48, %v5681_v36  ;;  %v5393_v10 = vld [vmem:[#allocation4 + $0x780] sm:$0xf]  ;;  %v6207_v52 = vld [vmem:[#allocation4 + $0x8ac] sm:$0xf0] }
  0x5e   :  { %2963 = vmatpush.bf16.msrb.mxu3 %v6742_v13  ;;  %9105 = vst [vmem:[#allocation57_spill] sm:$0xff] %v6756_v20  ;;  %v6131_v13 = vld [vmem:[#allocation4 + $0x64c] sm:$0xf0]  ;;  %v5217_v36 = vld [vmem:[#allocation4 + $0x620] sm:$0xf] }
  0x5f   :  { %9106 = vst [vmem:[#allocation58_spill] sm:$0xff] %v6759_v2  ;;  %2976 = vmatpush.bf16.msra.mxu0 %v6754_v22  ;;  %v6771_v1 = vor.u32 %v6131_v13, %v5233_v9  ;;  %v5537_v22 = vld [vmem:[#allocation4 + $0x8a0] sm:$0xf]  ;;  %v6239_v34 = vld [vmem:[#allocation4 + $0x9ac] sm:$0xf0] }
  0x60   :  { %9107 = vst [vmem:[#allocation59_spill] sm:$0xff] %v6763_v12  ;;  %v5665_v2 = vld [vmem:[#allocation4 + $0x9a0] sm:$0xf]  ;;  %v6779_v23 = vor.u32 %v6207_v52, %v5537_v22  ;;  %v6127_v48 = vld [vmem:[#allocation4 + $0x62c] sm:$0xf0] }
  0x61   :  { %2990 = vmatpush.bf16.msra.mxu1 %v6756_v20  ;;  %9108 = vst [vmem:[#allocation60_spill] sm:$0xff] %v6766_v60  ;;  %v6171_v20 = vld [vmem:[#allocation4 + $0x78c] sm:$0xf0]  ;;  %2953 = vmatpush.bf16.msrb.mxu2 %v6771_v1  ;;  %v6782_v13 = vor.u32 %v6239_v34, %v5665_v2  ;;  %v5377_v9 = vld [vmem:[#allocation4 + $0x760] sm:$0xf] }
  0x62   :  { %2964 = vmatpush.bf16.msrb.mxu3 %v6763_v12  ;;  %9109 = vst [vmem:[#allocation61_spill] sm:$0xff] %v6769_v51  ;;  %v6775_v17 = vor.u32 %v6171_v20, %v5393_v10  ;;  %v6167_v12 = vld [vmem:[#allocation4 + $0x76c] sm:$0xf0]  ;;  %v6785_v10 = vor.u32 %v6127_v48, %v5217_v36  ;;  %v5201_v22 = vld [vmem:[#allocation4 + $0x600] sm:$0xf] }
  0x63   :  { %9110 = vst [vmem:[#allocation62_spill] sm:$0xff] %v6771_v1  ;;  %2977 = vmatpush.bf16.msra.mxu0 %v6766_v60  ;;  %v6787_v20 = vor.u32 %v6167_v12, %v5377_v9  ;;  %v5521_v60 = vld [vmem:[#allocation4 + $0x880] sm:$0xf]  ;;  %v6203_v62 = vld [vmem:[#allocation4 + $0x88c] sm:$0xf0] }
  0x64   :  { %9111 = vst [vmem:[#allocation63_spill] sm:$0xff] %v6775_v17  ;;  %v6235_v52 = vld [vmem:[#allocation4 + $0x98c] sm:$0xf0]  ;;  %v6791_v2 = vor.u32 %v6203_v62, %v5521_v60  ;;  %v5361_v1 = vld [vmem:[#allocation4 + $0x740] sm:$0xf] }
  0x65   :  { %2991 = vmatpush.bf16.msra.mxu1 %v6769_v51  ;;  %9112 = vst [vmem:[#allocation64_spill] sm:$0xff] %v6779_v23  ;;  %v5649_v51 = vld [vmem:[#allocation4 + $0x980] sm:$0xf]  ;;  %v6123_v43 = vld [vmem:[#allocation4 + $0x60c] sm:$0xf0]  ;;  %2954 = vmatpush.bf16.msrb.mxu2 %v6785_v10 }
  0x66   :  { %9113 = vst [vmem:[#allocation65_spill] sm:$0xff] %v6782_v13  ;;  %2965 = vmatpush.bf16.msrb.mxu3 %v6775_v17  ;;  %v6793_v34 = vor.u32 %v6235_v52, %v5649_v51  ;;  %v6796_v36 = vor.u32 %v6123_v43, %v5201_v22  ;;  %v6163_v12 = vld [vmem:[#allocation4 + $0x74c] sm:$0xf0]  ;;  %v5505_v48 = vld [vmem:[#allocation4 + $0x860] sm:$0xf] }
  0x67   :  { %9114 = vst [vmem:[#allocation66_spill] sm:$0xff] %v6785_v10  ;;  %2978 = vmatpush.bf16.msra.mxu0 %v6779_v23  ;;  %v6199_v9 = vld [vmem:[#allocation4 + $0x86c] sm:$0xf0]  ;;  %v6799_v17 = vor.u32 %v6163_v12, %v5361_v1  ;;  %v5633_v29 = vld [vmem:[#allocation4 + $0x960] sm:$0xf]  ;;  %v9474_v37 = vld [vmem:[#allocation59_spill] sm:$0xff] }
  0x68   :  { %9115 = vst [vmem:[#allocation67_spill] sm:$0xff] %v6787_v20  ;;  %v6231_v23 = vld [vmem:[#allocation4 + $0x96c] sm:$0xf0]  ;;  %v5345_v62 = vld [vmem:[#allocation4 + $0x720] sm:$0xf]  ;;  %v6805_v43 = vor.u32 %v6199_v9, %v5505_v48 }
  0x69   :  { %2992 = vmatpush.bf16.msra.mxu1 %v6782_v13  ;;  %9116 = vst [vmem:[#allocation68_spill] sm:$0xff] %v6791_v2  ;;  %v6159_v60 = vld [vmem:[#allocation4 + $0x72c] sm:$0xf0]  ;;  %v6807_v51 = vor.u32 %v6231_v23, %v5633_v29  ;;  %v5489_v52 = vld [vmem:[#allocation4 + $0x840] sm:$0xf]  ;;  %2955 = vmatpush.bf16.msrb.mxu2 %v6796_v36 }
  0x6a   :  { %9117 = vst [vmem:[#allocation69_spill] sm:$0xff] %v6793_v34  ;;  %2966 = vmatpush.bf16.msrb.mxu3 %v6787_v20  ;;  %v6195_v1 = vld [vmem:[#allocation4 + $0x84c] sm:$0xf0]  ;;  %v5617_v22 = vld [vmem:[#allocation4 + $0x940] sm:$0xf]  ;;  %v6811_v20 = vor.u32 %v6159_v60, %v5345_v62 }
  0x6b   :  { %9118 = vst [vmem:[#allocation70_spill] sm:$0xff] %v6796_v36  ;;  %2979 = vmatpush.bf16.msra.mxu0 %v6791_v2  ;;  %v6227_v12 = vld [vmem:[#allocation4 + $0x94c] sm:$0xf0]  ;;  %v5329_v13 = vld [vmem:[#allocation4 + $0x700] sm:$0xf]  ;;  %v6821_v23 = vor.u32 %v6195_v1, %v5489_v52 }
  0x6c   :  { %9119 = vst [vmem:[#allocation71_spill] sm:$0xff] %v6799_v17  ;;  %v6155_v2 = vld [vmem:[#allocation4 + $0x70c] sm:$0xf0]  ;;  %v6823_v9 = vor.u32 %v6227_v12, %v5617_v22  ;;  %v5473_v62 = vld [vmem:[#allocation4 + $0x820] sm:$0xf] }
  0x6d   :  { %2993 = vmatpush.bf16.msra.mxu1 %v6793_v34  ;;  %9120 = vst [vmem:[#allocation72_spill] sm:$0xff] %v6805_v43  ;;  %v6191_v60 = vld [vmem:[#allocation4 + $0x82c] sm:$0xf0]  ;;  %v6827_v30 = vor.u32 %v6155_v2, %v5329_v13  ;;  %v5585_v13 = vld [vmem:[#allocation4 + $0x900] sm:$0xf] }
  0x6e   :  { %9121 = vst [vmem:[#allocation73_spill] sm:$0xff] %v6807_v51  ;;  %2967 = vmatpush.bf16.msrb.mxu3 %v6799_v17  ;;  %v5601_v17 = vld [vmem:[#allocation4 + $0x920] sm:$0xf]  ;;  %v6223_v36 = vld [vmem:[#allocation4 + $0x92c] sm:$0xf0]  ;;  %v6834_v1 = vor.u32 %v6191_v60, %v5473_v62 }
  0x6f   :  { %9122 = vst [vmem:[#allocation74_spill] sm:$0xff] %v6811_v20  ;;  %2980 = vmatpush.bf16.msra.mxu0 %v6805_v43  ;;  %v6836_v22 = vor.u32 %v6223_v36, %v5601_v17  ;;  %v6187_v12 = vld [vmem:[#allocation4 + $0x80c] sm:$0xf0]  ;;  %v6136_v61 = vld [vmem:[#allocation4 + $0x674] sm:$0xf0] }
  0x70   :  { %9125 = vst [vmem:[#allocation75_spill] sm:$0xff] %v6821_v23  ;;  %v6219_v2 = vld [vmem:[#allocation4 + $0x90c] sm:$0xf0]  ;;  %v6104_v58 = vld [vmem:[#allocation4 + $0x574] sm:$0xf0] }
  0x71   :  { %2994 = vmatpush.bf16.msra.mxu1 %v6807_v51  ;;  %9126 = vst [vmem:[#allocation76_spill] sm:$0xff] %v6823_v9  ;;  %v6847_v17 = vor.u32 %v6219_v2, %v5585_v13  ;;  %v5577_v6 = vld [vmem:[#allocation4 + $0x8e8] sm:$0xf]  ;;  %v6216_v42 = vld [vmem:[#allocation4 + $0x8f4] sm:$0xf0] }
  0x72   :  { %2968 = vmatpush.bf16.msrb.mxu3 %v6811_v20  ;;  %9127 = vst [vmem:[#allocation77_spill] sm:$0xff] %v6827_v30  ;;  %v5241_v32 = vld [vmem:[#allocation4 + $0x648] sm:$0xf]  ;;  %v6204_v27 = vld [vmem:[#allocation4 + $0x894] sm:$0xf0] }
  0x73   :  { %2981 = vmatpush.bf16.msra.mxu0 %v6821_v23  ;;  %9128 = vst [vmem:[#allocation78_spill] sm:$0xff] %v6834_v1  ;;  %v5529_v54 = vld [vmem:[#allocation4 + $0x888] sm:$0xf] }
  0x74   :  { %9129 = vst [vmem:[#allocation79_spill] sm:$0xff] %v6836_v22 }
  0x75   :  { %2995 = vmatpush.bf16.msra.mxu1 %v6823_v9  ;;  %9131 = vst [vmem:[#allocation81_spill] sm:$0xff] %v6847_v17 }
  0x76   :  { %v6773_v15 = vpop.permute.xlu2 %272  ;;  %2969 = vmatpush.bf16.msrb.mxu3 %v6827_v30 }
  0x77   :  { %2982 = vmatpush.bf16.msra.mxu0 %v6834_v1  ;;  %v6287_v1 = vld [vmem:[#allocation4 + $0xb2c] sm:$0xf0] }
  0x79   :  { %2996 = vmatpush.bf16.msra.mxu1 %v6836_v22  ;;  %v5857_v22 = vld [vmem:[#allocation4 + $0xb20] sm:$0xf] }
  0x7a   :  { %v6891_v49 = vor.u32 %v6287_v1, %v5857_v22 }
  0x7c   :  { %9139 = vst [vmem:[#allocation85_spill] sm:$0xff] %v6891_v49 }
  0x7d   :  { %2997 = vmatpush.bf16.msra.mxu1 %v6847_v17 }
  0x7e   :  { %v6801_v53 = vpop.permute.xlu2 %276 }
  0x7f   :  { %v8764_v62 = vrot.slane %v6801_v53, 4 }
  0x82   :  { %v91_v10 = vpop.permute.xlu0 %90 }
  0x83   :  { %v98_v29 = vrot.slane %v91_v10, 4 }
  0x85   :  { %v101_v34 = vsel %vm100_vm9, %v98_v29, %v91_v10  ;;  %v5457_v10 = vld [vmem:[#allocation4 + $0x800] sm:$0xf] }
  0x86   :  { %112 = vst.msk [vmem:[#allocation2 + $0x8] sm:$0xff] %vm6815_vm10, %v101_v34  ;;  %v93_v43 = vpop.permute.xlu2 %92 }
  0x87   :  { %v102_v52 = vsel %vm100_vm9, %v98_v29, %v93_v43  ;;  %v6845_v29 = vor.u32 %v6187_v12, %v5457_v10  ;;  %v8776_v10 = vrot.slane %v6773_v15, 4 }
  0x88   :  { %114 = vst.msk [vmem:[#allocation2 + $0x10] sm:$0xf] %vm113_vm11, %v102_v52  ;;  %v9132_v52 = vmov 0 }
  0x89   :  { %9130 = vst [vmem:[#allocation80_spill] sm:$0xff] %v6845_v29  ;;  %v9133_v52 = vsel %vm6855_vm14, 4294967295, %v9132_v52  ;;  %2983 = vmatpush.bf16.msra.mxu0 %v6845_v29  ;;  %v6279_v29 = vld [vmem:[#allocation4 + $0xaec] sm:$0xf0] }
  0x8a   :  { %v6840_v34 = vpop.permute.xlu0 %94  ;;  %9134 = vst [vmem:[#allocation82_spill] sm:$0xff] %v9133_v52 }
  0x8b   :  { %v8763_v43 = vrot.slane %v6840_v34, 4  ;;  %v9142_v25 = vrot.slane %v6840_v34, 4 }
  0x8d   :  { %v184_v36 = vpop.permute.xlu1 %183  ;;  %v103_v60 = vsel %vm100_vm9, %v8763_v43, %v6840_v34  ;;  %v300_v43 = vld [vmem:[%s8724_s0 + $0x30] sm:$0xff]  ;;  %v4393_v23 = vld [vmem:[#allocation2 + $0x8] sm:$0xf]  ;;  %v6290_v51 = vld [vmem:[#allocation2 + $0xc] sm:$0xf] }
  0x8e   :  { %v191_v30 = vrot.slane %v184_v36, 4  ;;  %115 = vst.msk [vmem:[#allocation2 + $0x38] sm:$0xff] %vm6815_vm10, %v103_v60  ;;  %v279_v12 = vpop.permute.xlu2 %278  ;;  %v301_v60 = vld [vmem:[%s8724_s0 + $0x38] sm:$0xff]  ;;  %v5777_v34 = vld [vmem:[#allocation4 + $0xa80] sm:$0xf] }
  0x8f   :  { %v286_v2 = vsel %vm282_vm15, %v8764_v62, %v279_v12  ;;  %v5825_v12 = vld [vmem:[#allocation4 + $0xae0] sm:$0xf]  ;;  %v283_v62 = vsel %vm282_vm15, %v8776_v10, %v6773_v15  ;;  %v308_v9 = vpack.c.bf16 %v301_v60, %v300_v43 }
  0x90   :  { %v194_v13 = vsel %vm193_vm13, %v191_v30, %v184_v36  ;;  %v9135_v36 = vmov 0  ;;  %296 = vst [vmem:[#allocation2 + $0x50] sm:$0xf] %v286_v2  ;;  %v5841_v2 = vld [vmem:[#allocation4 + $0xb00] sm:$0xf]  ;;  %v6889_v40 = vor.u32 %v6279_v29, %v5825_v12 }
  0x91   :  { %204 = vst.msk [vmem:[#allocation2 + $0x10] sm:$0xff] %vm6855_vm14, %v194_v13  ;;  %v9136_v36 = vsel %vm6877_vm4, 4294967295, %v9135_v36  ;;  %v297_v60 = vld [vmem:[%s8724_s0] sm:$0xfc]  ;;  %v6271_v12 = vld [vmem:[#allocation4 + $0xaac] sm:$0xf0] }
  0x92   :  { %9137 = vst [vmem:[#allocation83_spill] sm:$0xff] %v9136_v36  ;;  %v186_v17 = vpop.permute.xlu0 %185 }
  0x93   :  { %v195_v13 = vsel %vm193_vm13, %v191_v30, %v186_v17  ;;  %9138 = vst [vmem:[#allocation84_spill] sm:$0xff] %v6889_v40  ;;  %v6283_v17 = vld [vmem:[#allocation4 + $0xb0c] sm:$0xf0] }
  0x94   :  { %206 = vst.msk [vmem:[#allocation2 + $0x18] sm:$0xf] %vm205_vm1, %v195_v13  ;;  %v323_v13 = vrot.slane %v308_v9, 5  ;;  %v6912_v9 = vor.u32 %v6275_v59, %v5809_v45  ;;  %v6915_v1 = vor.u32 %v6283_v17, %v5841_v2  ;;  %v6267_v17 = vld [vmem:[#allocation4 + $0xa8c] sm:$0xf0] }
  0x95   :  { %v188_v20 = vpop.permute.xlu1 %187  ;;  %293 = vst.msk [vmem:[#allocation2 + $0x18] sm:$0xff] %vm6877_vm4, %v283_v62  ;;  %v6296_v50 = vld [vmem:[#allocation2 + $0x34] sm:$0xf0]  ;;  %v4395_v10 = vld [vmem:[#allocation2 + $0x38] sm:$0xf0] }
  0x96   :  { %v6893_v43 = vor.u32 %v6296_v50, %v4393_v23  ;;  %v6895_v30 = vor.u32 %v6290_v51, %v4395_v10  ;;  %v298_v62 = vld [vmem:[%s8724_s0 + $0x8] sm:$0xfc]  ;;  %v192_v33 = vrot.slane %v188_v20, 4  ;;  %v303_v50 = vld [vmem:[%s8724_s0 + $0x60] sm:$0x3]  ;;  %9140 = vst [vmem:[#allocation86_spill] sm:$0xff] %v6912_v9 }
  0x97   :  { %v304_v51 = vld [vmem:[%s8724_s0 + $0x68] sm:$0x3]  ;;  %v306_v23 = vpack.c.bf16 %v298_v62, %v297_v60  ;;  %9141 = vst [vmem:[#allocation87_spill] sm:$0xff] %v6915_v1  ;;  %v5793_v10 = vld [vmem:[#allocation4 + $0xaa0] sm:$0xf]  ;;  %v329_v18 = vrot.slane %v323_v13, 4 }
  0x98   :  { %2900 = vmatmul.bf16.vlgmr.msra.gmra.mxu2 %v6893_v43  ;;  %2914 = vmatmul.bf16.vlgmr.msra.gmra.mxu3 %v6895_v30  ;;  %v310_v22 = vpack.c.bf16 %v304_v51, %v303_v50  ;;  %v196_v60 = vsel %vm193_vm13, %v192_v33, %v188_v20  ;;  %v6926_v2 = vor.u32 %v6271_v12, %v5793_v10  ;;  %v9144_v20 = vrot.slane %v6801_v53, 4  ;;  %v5989_v62 = vld [vmem:[#allocation4 + $0x1e4] sm:$0xf]  ;;  %v4675_v50 = vld [vmem:[#allocation4 + $0x1f0] sm:$0xf0] }
  0x99   :  { %3004 = vmatpush.bf16.msra.mxu2 %v6889_v40  ;;  %3024 = vmatpush.bf16.msra.mxu3 %v6891_v49  ;;  %v4377_v26 = vrot.slane %v306_v23, 9  ;;  %v6021_v51 = vld [vmem:[#allocation4 + $0x2e4] sm:$0xf]  ;;  %v6263_v23 = vld [vmem:[#allocation4 + $0xa6c] sm:$0xf0] }
  0x9a   :  { %v97_v29 = vpop.permute.xlu0 %96  ;;  %v330_v11 = vrot.slane %v310_v22, 5  ;;  %9143 = vst [vmem:[#allocation88_spill] sm:$0xff] %v6926_v2  ;;  %v5957_v22 = vld [vmem:[#allocation4 + $0xe4] sm:$0xf]  ;;  %v4401_v10 = vld [vmem:[#allocation2 + $0x10] sm:$0xf] }
  0x9b   :  { %v104_v55 = vsel %vm100_vm9, %v9142_v25, %v97_v29  ;;  %v324_v25 = vsel %vm6702_vm6, %v4377_v26, %v323_v13  ;;  %v6941_v26 = vor.u32 %v6267_v17, %v5777_v34  ;;  %v4803_v13 = vld [vmem:[#allocation4 + $0x2f0] sm:$0xf0]  ;;  %v5985_v12 = vld [vmem:[#allocation4 + $0x1c4] sm:$0xf]  ;;  %v9148_v34 = vrot.slane %v6773_v15, 4 }
  0x9c   :  { %116 = vst.msk [vmem:[#allocation2 + $0x40] sm:$0xf] %vm113_vm11, %v104_v55  ;;  %v285_v55 = vsel %vm282_vm15, %v9144_v20, %v6801_v53  ;;  %v5761_v53 = vld [vmem:[#allocation4 + $0xa60] sm:$0xf]  ;;  %v4547_v29 = vld [vmem:[#allocation4 + $0xf0] sm:$0xf0] }
  0x9d   :  { %v190_v59 = vpop.permute.xlu1 %189  ;;  %207 = vst.msk [vmem:[#allocation2 + $0x40] sm:$0xff] %vm6855_vm14, %v196_v60  ;;  %3005 = vmatpush.bf16.msra.mxu2 %v6912_v9  ;;  %3025 = vmatpush.bf16.msra.mxu3 %v6915_v1  ;;  %v4787_v60 = vld [vmem:[#allocation4 + $0x2d0] sm:$0xf0]  ;;  %v6945_v1 = vor.u32 %v6021_v51, %v4803_v13  ;;  %v6292_v9 = vld [vmem:[#allocation2 + $0x1c] sm:$0xf] }
  0x9e   :  { %v197_v45 = vsel %vm193_vm13, %v192_v33, %v190_v59  ;;  %v331_v33 = vsel %vm6702_vm6, %v329_v18, %v330_v11  ;;  %339 = vst [vmem:[#allocation2 + $0x24] sm:$0xff] %v324_v25  ;;  %v4659_v11 = vld [vmem:[#allocation4 + $0x1d0] sm:$0xf0]  ;;  %v6017_v18 = vld [vmem:[#allocation4 + $0x2c4] sm:$0xf]  ;;  %v6943_v25 = vor.u32 %v5989_v62, %v4675_v50  ;;  %v6955_v62 = vor.u32 %v6263_v23, %v5761_v53 }
  0x9f   :  { %208 = vst.msk [vmem:[#allocation2 + $0x48] sm:$0xf] %vm205_vm1, %v197_v45  ;;  %v6291_v20 = vld [vmem:[#allocation2 + $0x14] sm:$0xf]  ;;  %v5745_v40 = vld [vmem:[#allocation4 + $0xa40] sm:$0xf]  ;;  %v6957_v50 = vor.u32 %v5957_v22, %v4547_v29  ;;  %v6969_v53 = vor.u32 %v6017_v18, %v4787_v60 }
  0xa0   :  { %295 = vst.msk [vmem:[#allocation2 + $0x48] sm:$0xff] %vm6877_vm4, %v285_v55  ;;  %v6259_v13 = vld [vmem:[#allocation4 + $0xa4c] sm:$0xf0]  ;;  %v5981_v23 = vld [vmem:[#allocation4 + $0x1a4] sm:$0xf] }
  0xa1   :  { %3006 = vmatpush.bf16.msra.mxu2 %v6926_v2  ;;  %9145 = vst [vmem:[#allocation89_spill] sm:$0xff] %v6941_v26  ;;  %v4409_v2 = vld [vmem:[#allocation2 + $0x18] sm:$0xf]  ;;  %v5729_v29 = vld [vmem:[#allocation4 + $0xa20] sm:$0xf] }
  0xa2   :  { %341 = vst [vmem:[#allocation2 + $0x54] sm:$0xff] %v331_v33  ;;  %v4515_v18 = vld [vmem:[#allocation4 + $0xb0] sm:$0xf0] }
  0xa3   :  { %9146 = vst [vmem:[#allocation90_spill] sm:$0xff] %v6943_v25 }
  0xa4   :  { %v6297_v45 = vld [vmem:[#allocation2 + $0x3c] sm:$0xf0]  ;;  %v4403_v55 = vld [vmem:[#allocation2 + $0x40] sm:$0xf0]  ;;  %9147 = vst [vmem:[#allocation91_spill] sm:$0xff] %v6945_v1 }
  0xa5   :  { %v275_v59 = vpop.permute.xlu1 %274  ;;  %3007 = vmatpush.bf16.msra.mxu2 %v6941_v26  ;;  %v6951_v33 = vor.u32 %v6297_v45, %v4401_v10  ;;  %v6953_v49 = vor.u32 %v6291_v20, %v4403_v55  ;;  %9149 = vst [vmem:[#allocation92_spill] sm:$0xff] %v6955_v62  ;;  %v5953_v10 = vld [vmem:[#allocation4 + $0xc4] sm:$0xf]  ;;  %v6967_v45 = vor.u32 %v5985_v12, %v4659_v11  ;;  %v6255_v12 = vld [vmem:[#allocation4 + $0xa2c] sm:$0xf0] }
  0xa6   :  { %v284_v17 = vsel %vm282_vm15, %v9148_v34, %v275_v59  ;;  %9150 = vst [vmem:[#allocation93_spill] sm:$0xff] %v6957_v50  ;;  %v4531_v59 = vld [vmem:[#allocation4 + $0xd0] sm:$0xf0]  ;;  %v5949_v11 = vld [vmem:[#allocation4 + $0xa4] sm:$0xf] }
  0xa7   :  { %294 = vst [vmem:[#allocation2 + $0x20] sm:$0xf] %v284_v17  ;;  %v6298_v52 = vld [vmem:[#allocation2 + $0x44] sm:$0xf0]  ;;  %v4411_v31 = vld [vmem:[#allocation2 + $0x48] sm:$0xf0]  ;;  %2928 = vmatmul.bf16.vlgmr.msrb.gmra.mxu0 %v6951_v33  ;;  %2942 = vmatmul.bf16.vlgmr.msrb.gmra.mxu1 %v6953_v49  ;;  %v6977_v22 = vor.u32 %v5953_v10, %v4531_v59 }
  0xa8   :  { %v6961_v15 = vor.u32 %v6298_v52, %v4409_v2  ;;  %v6963_v51 = vor.u32 %v6292_v9, %v4411_v31  ;;  %3046 = vmatpush.bf16.msrb.mxu0 %v6943_v25  ;;  %3060 = vmatpush.bf16.msrb.mxu1 %v6945_v1  ;;  %9151 = vst [vmem:[#allocation94_spill] sm:$0xff] %v6967_v45  ;;  %v4643_v52 = vld [vmem:[#allocation4 + $0x1b0] sm:$0xf0]  ;;  %v6013_v2 = vld [vmem:[#allocation4 + $0x2a4] sm:$0xf] }
  0xa9   :  { %9152 = vst [vmem:[#allocation95_spill] sm:$0xff] %v6969_v53  ;;  %v4771_v31 = vld [vmem:[#allocation4 + $0x2b0] sm:$0xf0]  ;;  %3008 = vmatpush.bf16.msra.mxu2 %v6955_v62  ;;  %v6975_v9 = vor.u32 %v6259_v13, %v5745_v40  ;;  %v6981_v60 = vor.u32 %v5981_v23, %v4643_v52  ;;  %v5977_v55 = vld [vmem:[#allocation4 + $0x184] sm:$0xf]  ;;  %v6987_v40 = vor.u32 %v6255_v12, %v5729_v29 }
  0xaa   :  { %2956 = vmatmul.bf16.vlgmr.msrb.gmra.mxu2 %v6961_v15  ;;  %2970 = vmatmul.bf16.vlgmr.msrb.gmra.mxu3 %v6963_v51  ;;  %9154 = vst [vmem:[#allocation97_spill] sm:$0xff] %v6977_v22  ;;  %v6983_v20 = vor.u32 %v6013_v2, %v4771_v31  ;;  %v4627_v34 = vld [vmem:[#allocation4 + $0x190] sm:$0xf0]  ;;  %v6009_v17 = vld [vmem:[#allocation4 + $0x284] sm:$0xf]  ;;  %v6989_v13 = vor.u32 %v5949_v11, %v4515_v18 }
  0xab   :  { %3032 = vmatpush.bf16.msrb.mxu3 %v6957_v50  ;;  %9153 = vst [vmem:[#allocation96_spill] sm:$0xff] %v6975_v9  ;;  %v4755_v50 = vld [vmem:[#allocation4 + $0x290] sm:$0xf0]  ;;  %v5713_v10 = vld [vmem:[#allocation4 + $0xa00] sm:$0xf]  ;;  %v6993_v2 = vor.u32 %v5977_v55, %v4627_v34 }
  0xac   :  { %3047 = vmatpush.bf16.msrb.mxu0 %v6967_v45  ;;  %3061 = vmatpush.bf16.msrb.mxu1 %v6969_v53  ;;  %9155 = vst [vmem:[#allocation98_spill] sm:$0xff] %v6981_v60  ;;  %v6251_v59 = vld [vmem:[#allocation4 + $0xa0c] sm:$0xf0]  ;;  %v5945_v45 = vld [vmem:[#allocation4 + $0x84] sm:$0xf]  ;;  %v6995_v31 = vor.u32 %v6009_v17, %v4755_v50 }
  0xad   :  { %9156 = vst [vmem:[#allocation99_spill] sm:$0xff] %v6983_v20  ;;  %3009 = vmatpush.bf16.msra.mxu2 %v6975_v9  ;;  %v4499_v53 = vld [vmem:[#allocation4 + $0x90] sm:$0xf0]  ;;  %v6053_v23 = vld [vmem:[#allocation4 + $0x3e4] sm:$0xf]  ;;  %v6999_v62 = vor.u32 %v6251_v59, %v5713_v10 }
  0xae   :  { %9157 = vst [vmem:[#allocation100_spill] sm:$0xff] %v6987_v40  ;;  %v4931_v52 = vld [vmem:[#allocation4 + $0x3f0] sm:$0xf0]  ;;  %v5973_v9 = vld [vmem:[#allocation4 + $0x164] sm:$0xf]  ;;  %v7001_v1 = vor.u32 %v5945_v45, %v4499_v53 }
  0xaf   :  { %3033 = vmatpush.bf16.msrb.mxu3 %v6977_v22  ;;  %9158 = vst [vmem:[#allocation101_spill] sm:$0xff] %v6989_v13  ;;  %v4611_v22 = vld [vmem:[#allocation4 + $0x170] sm:$0xf0]  ;;  %v6005_v29 = vld [vmem:[#allocation4 + $0x264] sm:$0xf]  ;;  %v7003_v50 = vor.u32 %v6053_v23, %v4931_v52 }
  0xb0   :  { %3048 = vmatpush.bf16.msrb.mxu0 %v6981_v60  ;;  %3062 = vmatpush.bf16.msrb.mxu1 %v6983_v20  ;;  %9159 = vst [vmem:[#allocation102_spill] sm:$0xff] %v6993_v2  ;;  %v6293_v12 = vld [vmem:[#allocation2 + $0x24] sm:$0xf]  ;;  %v4419_v11 = vld [vmem:[#allocation2 + $0x50] sm:$0xf0] }
  0xb1   :  { %9160 = vst [vmem:[#allocation103_spill] sm:$0xff] %v6995_v31  ;;  %v4739_v18 = vld [vmem:[#allocation4 + $0x270] sm:$0xf0]  ;;  %3010 = vmatpush.bf16.msra.mxu2 %v6987_v40  ;;  %v4417_v60 = vld [vmem:[#allocation2 + $0x20] sm:$0xf]  ;;  %v7007_v40 = vor.u32 %v6293_v12, %v4419_v11 }
  0xb2   :  { %9161 = vst [vmem:[#allocation104_spill] sm:$0xff] %v6999_v62  ;;  %v6299_v20 = vld [vmem:[#allocation2 + $0x4c] sm:$0xf0]  ;;  %v4425_v55 = vld [vmem:[#allocation2 + $0x28] sm:$0xf]  ;;  %v7013_v36 = vor.u32 %v6005_v29, %v4739_v18 }
  0xb3   :  { %3034 = vmatpush.bf16.msrb.mxu3 %v6989_v13  ;;  %9162 = vst [vmem:[#allocation105_spill] sm:$0xff] %v7001_v1  ;;  %v6300_v34 = vld [vmem:[#allocation2 + $0x54] sm:$0xf0]  ;;  %v6294_v17 = vld [vmem:[#allocation2 + $0x2c] sm:$0xf]  ;;  %v7009_v13 = vor.u32 %v5973_v9, %v4611_v22  ;;  %v7011_v59 = vor.u32 %v6299_v20, %v4417_v60 }
  0xb4   :  { %9163 = vst [vmem:[#allocation106_spill] sm:$0xff] %v7003_v50  ;;  %v4427_v25 = vld [vmem:[#allocation2 + $0x58] sm:$0xf0]  ;;  %v5941_v26 = vld [vmem:[#allocation4 + $0x64] sm:$0xf]  ;;  %3049 = vmatpush.bf16.msrb.mxu0 %v6993_v2  ;;  %3063 = vmatpush.bf16.msrb.mxu1 %v6995_v31  ;;  %v7015_v23 = vor.u32 %v6300_v34, %v4425_v55 }
  0xb5   :  { %9164 = vst [vmem:[#allocation107_spill] sm:$0xff] %v7009_v13  ;;  %v4483_v10 = vld [vmem:[#allocation4 + $0x70] sm:$0xf0]  ;;  %v6049_v45 = vld [vmem:[#allocation4 + $0x3c4] sm:$0xf]  ;;  %3011 = vmatpush.bf16.msra.mxu2 %v6999_v62  ;;  %v7019_v31 = vor.u32 %v6294_v17, %v4427_v25 }
  0xb6   :  { %v4915_v53 = vld [vmem:[#allocation4 + $0x3d0] sm:$0xf0]  ;;  %9165 = vst [vmem:[#allocation108_spill] sm:$0xff] %v7013_v36  ;;  %v5969_v52 = vld [vmem:[#allocation4 + $0x144] sm:$0xf]  ;;  %v7023_v22 = vor.u32 %v5941_v26, %v4483_v10 }
  0xb7   :  { %3035 = vmatpush.bf16.msrb.mxu3 %v7001_v1  ;;  %v6001_v12 = vld [vmem:[#allocation4 + $0x244] sm:$0xf]  ;;  %v4723_v9 = vld [vmem:[#allocation4 + $0x250] sm:$0xf0]  ;;  %2984 = vmatmul.bf16.vlgmr.msra.gmra.mxu0 %v7011_v59  ;;  %v7025_v60 = vor.u32 %v6049_v45, %v4915_v53  ;;  %v7029_v29 = vor.u32 %v5969_v52, %v4595_v7 }
  0xb8   :  { %9166 = vst [vmem:[#allocation109_spill] sm:$0xff] %v7023_v22  ;;  %v5937_v20 = vld [vmem:[#allocation4 + $0x44] sm:$0xf]  ;;  %2998 = vmatmul.bf16.vlgmr.msra.gmra.mxu1 %v7007_v40  ;;  %3050 = vmatpush.bf16.msrb.mxu0 %v7009_v13  ;;  %v4467_v11 = vld [vmem:[#allocation4 + $0x50] sm:$0xf0]  ;;  %v7033_v55 = vor.u32 %v6001_v12, %v4723_v9 }
  0xb9   :  { %3074 = vmatpush.bf16.msrb.mxu2 %v7003_v50  ;;  %9167 = vst [vmem:[#allocation110_spill] sm:$0xff] %v7025_v60  ;;  %v6045_v25 = vld [vmem:[#allocation4 + $0x3a4] sm:$0xf]  ;;  %v4899_v18 = vld [vmem:[#allocation4 + $0x3b0] sm:$0xf0]  ;;  %3064 = vmatpush.bf16.msrb.mxu1 %v7013_v36  ;;  %v7039_v7 = vor.u32 %v5937_v20, %v4467_v11 }
  0xba   :  { %9168 = vst [vmem:[#allocation111_spill] sm:$0xff] %v7029_v29  ;;  %3012 = vmatmul.bf16.vlgmr.msra.gmra.mxu2 %v7015_v23  ;;  %v5965_v26 = vld [vmem:[#allocation4 + $0x124] sm:$0xf]  ;;  %v4579_v34 = vld [vmem:[#allocation4 + $0x130] sm:$0xf0]  ;;  %5871 = vmatmul.msk.bf16.vlgmr.msra.gmra.mxu3 %vm100_vm9, %v7019_v31  ;;  %v7041_v45 = vor.u32 %v6045_v25, %v4899_v18 }
  0xbb   :  { %9169 = vst [vmem:[#allocation112_spill] sm:$0xff] %v7033_v55  ;;  %v5997_v17 = vld [vmem:[#allocation4 + $0x224] sm:$0xf]  ;;  %v4707_v10 = vld [vmem:[#allocation4 + $0x230] sm:$0xf0]  ;;  %3036 = vmatpush.bf16.msrb.mxu3 %v7023_v22  ;;  %v7044_v52 = vor.u32 %v5965_v26, %v4579_v34 }
  0xbc   :  { %9170 = vst [vmem:[#allocation113_spill] sm:$0xff] %v7039_v7  ;;  %v5933_v53 = vld [vmem:[#allocation4 + $0x24] sm:$0xf]  ;;  %3051 = vmatpush.bf16.msrb.mxu0 %v7029_v29  ;;  %v4451_v12 = vld [vmem:[#allocation4 + $0x30] sm:$0xf0]  ;;  %v7047_v13 = vor.u32 %v5997_v17, %v4707_v10 }
  0xbd   :  { %3075 = vmatpush.bf16.msrb.mxu2 %v7025_v60  ;;  %9171 = vst [vmem:[#allocation114_spill] sm:$0xff] %v7041_v45  ;;  %v6041_v9 = vld [vmem:[#allocation4 + $0x384] sm:$0xf]  ;;  %v4883_v36 = vld [vmem:[#allocation4 + $0x390] sm:$0xf0]  ;;  %3065 = vmatpush.bf16.msrb.mxu1 %v7033_v55  ;;  %v7051_v25 = vor.u32 %v5933_v53, %v4451_v12 }
  0xbe   :  { %9172 = vst [vmem:[#allocation115_spill] sm:$0xff] %v7044_v52  ;;  %v5961_v50 = vld [vmem:[#allocation4 + $0x104] sm:$0xf]  ;;  %v4563_v22 = vld [vmem:[#allocation4 + $0x110] sm:$0xf0]  ;;  %v7053_v18 = vor.u32 %v6041_v9, %v4883_v36 }
  0xbf   :  { %9173 = vst [vmem:[#allocation116_spill] sm:$0xff] %v7047_v13  ;;  %v5993_v1 = vld [vmem:[#allocation4 + $0x204] sm:$0xf]  ;;  %v4691_v60 = vld [vmem:[#allocation4 + $0x210] sm:$0xf0]  ;;  %3037 = vmatpush.bf16.msrb.mxu3 %v7039_v7  ;;  %v7056_v17 = vor.u32 %v5961_v50, %v4563_v22 }
  0xc0   :  { %v6117_v20 = vld [vmem:[#allocation4 + $0x5e4] sm:$0xf]  ;;  %v5187_v11 = vld [vmem:[#allocation4 + $0x5f0] sm:$0xf0]  ;;  %9174 = vst [vmem:[#allocation117_spill] sm:$0xff] %v7051_v25  ;;  %3052 = vmatpush.bf16.msrb.mxu0 %v7044_v52  ;;  %v7059_v2 = vor.u32 %v5993_v1, %v4691_v60 }
  0xc1   :  { %3076 = vmatpush.bf16.msrb.mxu2 %v7041_v45  ;;  %9175 = vst [vmem:[#allocation118_spill] sm:$0xff] %v7053_v18  ;;  %v5929_v26 = vld [vmem:[#allocation4 + $0x4] sm:$0xf]  ;;  %v5315_v29 = vld [vmem:[#allocation4 + $0x6f0] sm:$0xf0]  ;;  %3066 = vmatpush.bf16.msrb.mxu1 %v7047_v13  ;;  %v7061_v7 = vor.u32 %v6117_v20, %v5187_v11 }
  0xc2   :  { %v6149_v34 = vld [vmem:[#allocation4 + $0x6e4] sm:$0xf]  ;;  %9176 = vst [vmem:[#allocation119_spill] sm:$0xff] %v7056_v17  ;;  %v4435_v10 = vld [vmem:[#allocation4 + $0x10] sm:$0xf0] }
  0xc3   :  { %v6037_v55 = vld [vmem:[#allocation4 + $0x364] sm:$0xf]  ;;  %v4867_v62 = vld [vmem:[#allocation4 + $0x370] sm:$0xf0]  ;;  %9177 = vst [vmem:[#allocation120_spill] sm:$0xff] %v7059_v2  ;;  %v7063_v36 = vor.u32 %v6149_v34, %v5315_v29  ;;  %3038 = vmatpush.bf16.msrb.mxu3 %v7051_v25  ;;  %v7067_v50 = vor.u32 %v5929_v26, %v4435_v10 }
  0xc4   :  { %9178 = vst [vmem:[#allocation121_spill] sm:$0xff] %v7061_v7  ;;  %v6085_v53 = vld [vmem:[#allocation4 + $0x4e4] sm:$0xf]  ;;  %v5059_v12 = vld [vmem:[#allocation4 + $0x4f0] sm:$0xf0]  ;;  %v7069_v22 = vor.u32 %v6037_v55, %v4867_v62  ;;  %3053 = vmatpush.bf16.msrb.mxu0 %v7056_v17 }
  0xc5   :  { %9179 = vst [vmem:[#allocation122_spill] sm:$0xff] %v7063_v36  ;;  %v6113_v9 = vld [vmem:[#allocation4 + $0x5c4] sm:$0xf]  ;;  %v5171_v45 = vld [vmem:[#allocation4 + $0x5d0] sm:$0xf0]  ;;  %3077 = vmatpush.bf16.msrb.mxu2 %v7053_v18  ;;  %v7072_v1 = vor.u32 %v6085_v53, %v5059_v12  ;;  %3067 = vmatpush.bf16.msrb.mxu1 %v7059_v2 }
  0xc6   :  { %9180 = vst [vmem:[#allocation123_spill] sm:$0xff] %v7067_v50  ;;  %v6145_v52 = vld [vmem:[#allocation4 + $0x6c4] sm:$0xf]  ;;  %v5299_v13 = vld [vmem:[#allocation4 + $0x6d0] sm:$0xf0]  ;;  %v7076_v29 = vor.u32 %v6113_v9, %v5171_v45 }
  0xc7   :  { %9181 = vst [vmem:[#allocation124_spill] sm:$0xff] %v7069_v22  ;;  %v6033_v60 = vld [vmem:[#allocation4 + $0x344] sm:$0xf]  ;;  %v4851_v20 = vld [vmem:[#allocation4 + $0x350] sm:$0xf0]  ;;  %v7079_v62 = vor.u32 %v6145_v52, %v5299_v13  ;;  %3039 = vmatpush.bf16.msrb.mxu3 %v7067_v50  ;;  %3054 = vmatmul.bf16.vlgmr.msrb.gmra.mxu0 %v6750_v0 }
  0xc8   :  { %9182 = vst [vmem:[#allocation125_spill] sm:$0xff] %v7072_v1  ;;  %3102 = vmatpush.bf16.msra.mxu0 %v7061_v7  ;;  %v6081_v11 = vld [vmem:[#allocation4 + $0x4c4] sm:$0xf]  ;;  %v5043_v34 = vld [vmem:[#allocation4 + $0x4d0] sm:$0xf0]  ;;  %v7083_v10 = vor.u32 %v6033_v60, %v4851_v20  ;;  %3068 = vmatmul.bf16.vlgmr.msrb.gmra.mxu1 %v6893_v43 }
  0xc9   :  { %9183 = vst [vmem:[#allocation126_spill] sm:$0xff] %v7076_v29  ;;  %3116 = vmatpush.bf16.msra.mxu1 %v7063_v36  ;;  %v6109_v55 = vld [vmem:[#allocation4 + $0x5a4] sm:$0xf]  ;;  %v5155_v26 = vld [vmem:[#allocation4 + $0x5b0] sm:$0xf0]  ;;  %3078 = vmatpush.bf16.msrb.mxu2 %v7069_v22  ;;  %v7087_v45 = vor.u32 %v6081_v11, %v5043_v34 }
  0xca   :  { %9184 = vst [vmem:[#allocation127_spill] sm:$0xff] %v7079_v62  ;;  %v6141_v53 = vld [vmem:[#allocation4 + $0x6a4] sm:$0xf]  ;;  %v5283_v12 = vld [vmem:[#allocation4 + $0x6b0] sm:$0xf0]  ;;  %v7090_v13 = vor.u32 %v6109_v55, %v5155_v26  ;;  %3040 = vmatmul.bf16.vlgmr.msrb.gmra.mxu3 %v6747_v21 }
  0xcb   :  { %9185 = vst [vmem:[#allocation128_spill] sm:$0xff] %v7083_v10  ;;  %3088 = vmatpush.bf16.msra.mxu3 %v7072_v1  ;;  %v6029_v9 = vld [vmem:[#allocation4 + $0x324] sm:$0xf]  ;;  %v4835_v36 = vld [vmem:[#allocation4 + $0x330] sm:$0xf0]  ;;  %v7094_v60 = vor.u32 %v6141_v53, %v5283_v12 }
  0xcc   :  { %9186 = vst [vmem:[#allocation129_spill] sm:$0xff] %v7087_v45  ;;  %3103 = vmatpush.bf16.msra.mxu0 %v7076_v29  ;;  %v6077_v52 = vld [vmem:[#allocation4 + $0x4a4] sm:$0xf]  ;;  %v5027_v50 = vld [vmem:[#allocation4 + $0x4b0] sm:$0xf0]  ;;  %v7097_v11 = vor.u32 %v6029_v9, %v4835_v36 }
  0xcd   :  { %9187 = vst [vmem:[#allocation130_spill] sm:$0xff] %v7090_v13  ;;  %3117 = vmatpush.bf16.msra.mxu1 %v7079_v62  ;;  %v6105_v20 = vld [vmem:[#allocation4 + $0x584] sm:$0xf]  ;;  %v5139_v1 = vld [vmem:[#allocation4 + $0x590] sm:$0xf0]  ;;  %3079 = vmatpush.bf16.msrb.mxu2 %v7083_v10  ;;  %v7101_v55 = vor.u32 %v6077_v52, %v5027_v50 }
  0xce   :  { %9188 = vst [vmem:[#allocation131_spill] sm:$0xff] %v7094_v60  ;;  %v6137_v34 = vld [vmem:[#allocation4 + $0x684] sm:$0xf]  ;;  %v5267_v29 = vld [vmem:[#allocation4 + $0x690] sm:$0xf0]  ;;  %v7104_v53 = vor.u32 %v6105_v20, %v5139_v1 }
  0xcf   :  { %9189 = vst [vmem:[#allocation132_spill] sm:$0xff] %v7097_v11  ;;  %3089 = vmatpush.bf16.msra.mxu3 %v7087_v45  ;;  %v6025_v26 = vld [vmem:[#allocation4 + $0x304] sm:$0xf]  ;;  %v4819_v22 = vld [vmem:[#allocation4 + $0x310] sm:$0xf0]  ;;  %v7107_v36 = vor.u32 %v6137_v34, %v5267_v29 }
  0xd0   :  { %9190 = vst [vmem:[#allocation133_spill] sm:$0xff] %v7101_v55  ;;  %v6073_v2 = vld [vmem:[#allocation4 + $0x484] sm:$0xf]  ;;  %3104 = vmatpush.bf16.msra.mxu0 %v7090_v13  ;;  %v5011_v12 = vld [vmem:[#allocation4 + $0x490] sm:$0xf0]  ;;  %v7110_v50 = vor.u32 %v6025_v26, %v4819_v22 }
  0xd1   :  { %9191 = vst [vmem:[#allocation134_spill] sm:$0xff] %v7104_v53  ;;  %v6181_v62 = vld [vmem:[#allocation4 + $0x7e4] sm:$0xf]  ;;  %v5443_v10 = vld [vmem:[#allocation4 + $0x7f0] sm:$0xf0]  ;;  %3118 = vmatpush.bf16.msra.mxu1 %v7094_v60  ;;  %3080 = vmatpush.bf16.msrb.mxu2 %v7097_v11  ;;  %v7113_v13 = vor.u32 %v6073_v2, %v5011_v12 }
  0xd2   :  { %9192 = vst [vmem:[#allocation135_spill] sm:$0xff] %v7107_v36  ;;  %v6101_v9 = vld [vmem:[#allocation4 + $0x564] sm:$0xf]  ;;  %v5123_v7 = vld [vmem:[#allocation4 + $0x570] sm:$0xf0]  ;;  %v7115_v1 = vor.u32 %v6181_v62, %v5443_v10 }
  0xd3   :  { %9193 = vst [vmem:[#allocation136_spill] sm:$0xff] %v7110_v50  ;;  %v6133_v52 = vld [vmem:[#allocation4 + $0x664] sm:$0xf]  ;;  %v5251_v45 = vld [vmem:[#allocation4 + $0x670] sm:$0xf0]  ;;  %3090 = vmatpush.bf16.msra.mxu3 %v7101_v55  ;;  %v7118_v60 = vor.u32 %v6101_v9, %v5123_v7 }
  0xd4   :  { %9194 = vst [vmem:[#allocation137_spill] sm:$0xff] %v7113_v13  ;;  %v6069_v20 = vld [vmem:[#allocation4 + $0x464] sm:$0xf]  ;;  %3105 = vmatpush.bf16.msra.mxu0 %v7104_v53  ;;  %v4995_v29 = vld [vmem:[#allocation4 + $0x470] sm:$0xf0]  ;;  %v7121_v22 = vor.u32 %v6133_v52, %v5251_v45 }
  0xd5   :  { %9195 = vst [vmem:[#allocation138_spill] sm:$0xff] %v7115_v1  ;;  %v6177_v34 = vld [vmem:[#allocation4 + $0x7c4] sm:$0xf]  ;;  %v5427_v17 = vld [vmem:[#allocation4 + $0x7d0] sm:$0xf0]  ;;  %3119 = vmatpush.bf16.msra.mxu1 %v7107_v36  ;;  %3081 = vmatpush.bf16.msrb.mxu2 %v7110_v50  ;;  %v7126_v62 = vor.u32 %v6069_v20, %v4995_v29 }
  0xd6   :  { %9196 = vst [vmem:[#allocation139_spill] sm:$0xff] %v7118_v60  ;;  %v6097_v26 = vld [vmem:[#allocation4 + $0x544] sm:$0xf]  ;;  %v5107_v11 = vld [vmem:[#allocation4 + $0x550] sm:$0xf0]  ;;  %v7128_v7 = vor.u32 %v6177_v34, %v5427_v17 }
  0xd7   :  { %9197 = vst [vmem:[#allocation140_spill] sm:$0xff] %v7121_v22  ;;  %v6129_v2 = vld [vmem:[#allocation4 + $0x644] sm:$0xf]  ;;  %v5235_v12 = vld [vmem:[#allocation4 + $0x650] sm:$0xf0]  ;;  %3091 = vmatpush.bf16.msra.mxu3 %v7113_v13  ;;  %v7131_v9 = vor.u32 %v6097_v26, %v5107_v11 }
  0xd8   :  { %9198 = vst [vmem:[#allocation141_spill] sm:$0xff] %v7126_v62  ;;  %v6065_v10 = vld [vmem:[#allocation4 + $0x444] sm:$0xf]  ;;  %3106 = vmatpush.bf16.msra.mxu0 %v7118_v60  ;;  %v4979_v45 = vld [vmem:[#allocation4 + $0x450] sm:$0xf0]  ;;  %3082 = vmatmul.bf16.vlgmr.msrb.gmra.mxu2 %v6895_v30  ;;  %v7135_v50 = vor.u32 %v6129_v2, %v5235_v12 }
  0xd9   :  { %3130 = vmatpush.bf16.msra.mxu2 %v7115_v1  ;;  %9199 = vst [vmem:[#allocation142_spill] sm:$0xff] %v7128_v7  ;;  %v6173_v52 = vld [vmem:[#allocation4 + $0x7a4] sm:$0xf]  ;;  %v5411_v36 = vld [vmem:[#allocation4 + $0x7b0] sm:$0xf0]  ;;  %3120 = vmatpush.bf16.msra.mxu1 %v7121_v22  ;;  %v7139_v17 = vor.u32 %v6065_v10, %v4979_v45 }
  0xda   :  { %9200 = vst [vmem:[#allocation143_spill] sm:$0xff] %v7131_v9  ;;  %v6093_v13 = vld [vmem:[#allocation4 + $0x524] sm:$0xf]  ;;  %v5091_v1 = vld [vmem:[#allocation4 + $0x530] sm:$0xf0]  ;;  %v7141_v11 = vor.u32 %v6173_v52, %v5411_v36 }
  0xdb   :  { %9201 = vst [vmem:[#allocation144_spill] sm:$0xff] %v7135_v50  ;;  %v6125_v20 = vld [vmem:[#allocation4 + $0x624] sm:$0xf]  ;;  %v5219_v29 = vld [vmem:[#allocation4 + $0x630] sm:$0xf0]  ;;  %3092 = vmatpush.bf16.msra.mxu3 %v7126_v62  ;;  %v7144_v26 = vor.u32 %v6093_v13, %v5091_v1 }
  0xdc   :  { %9202 = vst [vmem:[#allocation145_spill] sm:$0xff] %v7139_v17  ;;  %v6061_v34 = vld [vmem:[#allocation4 + $0x424] sm:$0xf]  ;;  %3107 = vmatpush.bf16.msra.mxu0 %v7131_v9  ;;  %v4963_v22 = vld [vmem:[#allocation4 + $0x430] sm:$0xf0]  ;;  %v7147_v60 = vor.u32 %v6125_v20, %v5219_v29 }
  0xdd   :  { %3131 = vmatpush.bf16.msra.mxu2 %v7128_v7  ;;  %9203 = vst [vmem:[#allocation146_spill] sm:$0xff] %v7141_v11  ;;  %v6169_v2 = vld [vmem:[#allocation4 + $0x784] sm:$0xf]  ;;  %v5395_v12 = vld [vmem:[#allocation4 + $0x790] sm:$0xf0]  ;;  %3121 = vmatpush.bf16.msra.mxu1 %v7135_v50  ;;  %v7151_v36 = vor.u32 %v6061_v34, %v4963_v22 }
  0xde   :  { %9204 = vst [vmem:[#allocation147_spill] sm:$0xff] %v7144_v26  ;;  %v6089_v53 = vld [vmem:[#allocation4 + $0x504] sm:$0xf]  ;;  %v5075_v62 = vld [vmem:[#allocation4 + $0x510] sm:$0xf0]  ;;  %v7153_v13 = vor.u32 %v6169_v2, %v5395_v12 }
  0xdf   :  { %9205 = vst [vmem:[#allocation148_spill] sm:$0xff] %v7147_v60  ;;  %v6121_v55 = vld [vmem:[#allocation4 + $0x604] sm:$0xf]  ;;  %v5203_v7 = vld [vmem:[#allocation4 + $0x610] sm:$0xf0]  ;;  %3093 = vmatpush.bf16.msra.mxu3 %v7139_v17  ;;  %v7156_v20 = vor.u32 %v6089_v53, %v5075_v62 }
  0xe0   :  { %v6245_v10 = vld [vmem:[#allocation4 + $0x9e4] sm:$0xf]  ;;  %v5699_v45 = vld [vmem:[#allocation4 + $0x9f0] sm:$0xf0]  ;;  %9206 = vst [vmem:[#allocation149_spill] sm:$0xff] %v7151_v36  ;;  %3108 = vmatpush.bf16.msra.mxu0 %v7144_v26  ;;  %v7159_v25 = vor.u32 %v6121_v55, %v5203_v7 }
  0xe1   :  { %3132 = vmatpush.bf16.msra.mxu2 %v7141_v11  ;;  %9207 = vst [vmem:[#allocation150_spill] sm:$0xff] %v7153_v13  ;;  %v6057_v1 = vld [vmem:[#allocation4 + $0x404] sm:$0xf]  ;;  %v5827_v9 = vld [vmem:[#allocation4 + $0xaf0] sm:$0xf0]  ;;  %3122 = vmatpush.bf16.msra.mxu1 %v7147_v60  ;;  %v7161_v17 = vor.u32 %v6245_v10, %v5699_v45 }
  0xe2   :  { %v6277_v52 = vld [vmem:[#allocation4 + $0xae4] sm:$0xf]  ;;  %9208 = vst [vmem:[#allocation151_spill] sm:$0xff] %v7156_v20  ;;  %v4947_v29 = vld [vmem:[#allocation4 + $0x410] sm:$0xf0] }
  0xe3   :  { %v6165_v50 = vld [vmem:[#allocation4 + $0x764] sm:$0xf]  ;;  %v5379_v18 = vld [vmem:[#allocation4 + $0x770] sm:$0xf0]  ;;  %9209 = vst [vmem:[#allocation152_spill] sm:$0xff] %v7159_v25  ;;  %v7163_v2 = vor.u32 %v6277_v52, %v5827_v9  ;;  %3094 = vmatpush.bf16.msra.mxu3 %v7151_v36  ;;  %v7167_v53 = vor.u32 %v6057_v1, %v4947_v29 }
  0xe4   :  { %9210 = vst [vmem:[#allocation153_spill] sm:$0xff] %v7161_v17  ;;  %v6213_v22 = vld [vmem:[#allocation4 + $0x8e4] sm:$0xf]  ;;  %v5571_v34 = vld [vmem:[#allocation4 + $0x8f0] sm:$0xf0]  ;;  %v7169_v62 = vor.u32 %v6165_v50, %v5379_v18  ;;  %3109 = vmatpush.bf16.msra.mxu0 %v7156_v20 }
  0xe5   :  { %9211 = vst [vmem:[#allocation154_spill] sm:$0xff] %v7163_v2  ;;  %v6241_v12 = vld [vmem:[#allocation4 + $0x9c4] sm:$0xf]  ;;  %v5683_v11 = vld [vmem:[#allocation4 + $0x9d0] sm:$0xf0]  ;;  %3133 = vmatpush.bf16.msra.mxu2 %v7153_v13  ;;  %v7172_v55 = vor.u32 %v6213_v22, %v5571_v34  ;;  %3123 = vmatpush.bf16.msra.mxu1 %v7159_v25 }
  0xe6   :  { %9212 = vst [vmem:[#allocation155_spill] sm:$0xff] %v7167_v53  ;;  %v6273_v26 = vld [vmem:[#allocation4 + $0xac4] sm:$0xf]  ;;  %v5811_v60 = vld [vmem:[#allocation4 + $0xad0] sm:$0xf0]  ;;  %v7176_v9 = vor.u32 %v6241_v12, %v5683_v11 }
  0xe7   :  { %9213 = vst [vmem:[#allocation156_spill] sm:$0xff] %v7169_v62  ;;  %v6161_v7 = vld [vmem:[#allocation4 + $0x744] sm:$0xf]  ;;  %v5363_v10 = vld [vmem:[#allocation4 + $0x750] sm:$0xf0]  ;;  %v7179_v18 = vor.u32 %v6273_v26, %v5811_v60  ;;  %3095 = vmatpush.bf16.msra.mxu3 %v7167_v53  ;;  %3110 = vmatmul.bf16.vlgmr.msra.gmra.mxu0 %v6953_v49 }
  0xe8   :  { %9214 = vst [vmem:[#allocation157_spill] sm:$0xff] %v7172_v55  ;;  %3158 = vmatpush.bf16.msrb.mxu0 %v7161_v17  ;;  %v6209_v45 = vld [vmem:[#allocation4 + $0x8c4] sm:$0xf]  ;;  %v5555_v52 = vld [vmem:[#allocation4 + $0x8d0] sm:$0xf0]  ;;  %v7183_v29 = vor.u32 %v6161_v7, %v5363_v10  ;;  %3124 = vmatmul.bf16.vlgmr.msra.gmra.mxu1 %v6961_v15 }
  0xe9   :  { %9215 = vst [vmem:[#allocation158_spill] sm:$0xff] %v7176_v9  ;;  %3172 = vmatpush.bf16.msrb.mxu1 %v7163_v2  ;;  %v6237_v50 = vld [vmem:[#allocation4 + $0x9a4] sm:$0xf]  ;;  %v5667_v1 = vld [vmem:[#allocation4 + $0x9b0] sm:$0xf0]  ;;  %3134 = vmatpush.bf16.msra.mxu2 %v7169_v62  ;;  %v7187_v11 = vor.u32 %v6209_v45, %v5555_v52 }
  0xea   :  { %9216 = vst [vmem:[#allocation159_spill] sm:$0xff] %v7179_v18  ;;  %v6269_v22 = vld [vmem:[#allocation4 + $0xaa4] sm:$0xf]  ;;  %v5795_v34 = vld [vmem:[#allocation4 + $0xab0] sm:$0xf0]  ;;  %v7191_v60 = vor.u32 %v6237_v50, %v5667_v1  ;;  %3096 = vmatmul.bf16.vlgmr.msra.gmra.mxu3 %v6951_v33 }
  0xeb   :  { %9217 = vst [vmem:[#allocation160_spill] sm:$0xff] %v7183_v29  ;;  %3144 = vmatpush.bf16.msrb.mxu3 %v7172_v55  ;;  %v6157_v12 = vld [vmem:[#allocation4 + $0x724] sm:$0xf]  ;;  %v5347_v2 = vld [vmem:[#allocation4 + $0x730] sm:$0xf0]  ;;  %v7195_v7 = vor.u32 %v6269_v22, %v5795_v34 }
  0xec   :  { %9218 = vst [vmem:[#allocation161_spill] sm:$0xff] %v7187_v11  ;;  %3159 = vmatpush.bf16.msrb.mxu0 %v7176_v9  ;;  %v6205_v26 = vld [vmem:[#allocation4 + $0x8a4] sm:$0xf]  ;;  %v5539_v62 = vld [vmem:[#allocation4 + $0x8b0] sm:$0xf0]  ;;  %v7198_v45 = vor.u32 %v6157_v12, %v5347_v2 }
  0xed   :  { %9219 = vst [vmem:[#allocation162_spill] sm:$0xff] %v7191_v60  ;;  %3173 = vmatpush.bf16.msrb.mxu1 %v7179_v18  ;;  %v6233_v10 = vld [vmem:[#allocation4 + $0x984] sm:$0xf]  ;;  %v5651_v55 = vld [vmem:[#allocation4 + $0x990] sm:$0xf0]  ;;  %3135 = vmatpush.bf16.msra.mxu2 %v7183_v29  ;;  %v7201_v50 = vor.u32 %v6205_v26, %v5539_v62 }
  0xee   :  { %9220 = vst [vmem:[#allocation163_spill] sm:$0xff] %v7195_v7  ;;  %v6265_v52 = vld [vmem:[#allocation4 + $0xa84] sm:$0xf]  ;;  %v5779_v53 = vld [vmem:[#allocation4 + $0xa90] sm:$0xf0]  ;;  %v7204_v18 = vor.u32 %v6233_v10, %v5651_v55 }
  0xef   :  { %9221 = vst [vmem:[#allocation164_spill] sm:$0xff] %v7198_v45  ;;  %3145 = vmatpush.bf16.msrb.mxu3 %v7187_v11  ;;  %v6153_v1 = vld [vmem:[#allocation4 + $0x704] sm:$0xf]  ;;  %v5331_v9 = vld [vmem:[#allocation4 + $0x710] sm:$0xf0]  ;;  %v7207_v2 = vor.u32 %v6265_v52, %v5779_v53 }
  0xf0   :  { %9222 = vst [vmem:[#allocation165_spill] sm:$0xff] %v7201_v50  ;;  %v6201_v25 = vld [vmem:[#allocation4 + $0x884] sm:$0xf]  ;;  %3160 = vmatpush.bf16.msrb.mxu0 %v7191_v60  ;;  %v5523_v22 = vld [vmem:[#allocation4 + $0x890] sm:$0xf0]  ;;  %v7210_v62 = vor.u32 %v6153_v1, %v5331_v9 }
  0xf1   :  { %9223 = vst [vmem:[#allocation166_spill] sm:$0xff] %v7204_v18  ;;  %v6285_v34 = vld [vmem:[#allocation4 + $0xb24] sm:$0xf]  ;;  %v5859_v17 = vld [vmem:[#allocation4 + $0xb30] sm:$0xf0]  ;;  %3174 = vmatpush.bf16.msrb.mxu1 %v7195_v7  ;;  %3136 = vmatpush.bf16.msra.mxu2 %v7198_v45  ;;  %v7213_v60 = vor.u32 %v6201_v25, %v5523_v22 }
  0xf2   :  { %9224 = vst [vmem:[#allocation167_spill] sm:$0xff] %v7207_v2  ;;  %v6229_v12 = vld [vmem:[#allocation4 + $0x964] sm:$0xf]  ;;  %v5635_v29 = vld [vmem:[#allocation4 + $0x970] sm:$0xf0]  ;;  %v7215_v55 = vor.u32 %v6285_v34, %v5859_v17 }
  0xf3   :  { %9225 = vst [vmem:[#allocation168_spill] sm:$0xff] %v7210_v62  ;;  %v6261_v26 = vld [vmem:[#allocation4 + $0xa64] sm:$0xf]  ;;  %v5763_v11 = vld [vmem:[#allocation4 + $0xa70] sm:$0xf0]  ;;  %3146 = vmatpush.bf16.msrb.mxu3 %v7201_v50  ;;  %v7218_v53 = vor.u32 %v6229_v12, %v5635_v29 }
  0xf4   :  { %9226 = vst [vmem:[#allocation169_spill] sm:$0xff] %v7213_v60  ;;  %v6197_v10 = vld [vmem:[#allocation4 + $0x864] sm:$0xf]  ;;  %v5507_v20 = vld [vmem:[#allocation4 + $0x870] sm:$0xf0]  ;;  %3161 = vmatpush.bf16.msrb.mxu0 %v7204_v18  ;;  %v7221_v9 = vor.u32 %v6261_v26, %v5763_v11 }
  0xf5   :  { %9227 = vst [vmem:[#allocation170_spill] sm:$0xff] %v7215_v55  ;;  %v6281_v52 = vld [vmem:[#allocation4 + $0xb04] sm:$0xf]  ;;  %v5843_v7 = vld [vmem:[#allocation4 + $0xb10] sm:$0xf0]  ;;  %3175 = vmatpush.bf16.msrb.mxu1 %v7207_v2  ;;  %3137 = vmatpush.bf16.msra.mxu2 %v7210_v62  ;;  %v7226_v29 = vor.u32 %v6197_v10, %v5507_v20  ;;  %v2887_v62 = vpop.f32.mrf.mxu1 }
  0xf6   :  { %9228 = vst [vmem:[#allocation171_spill] sm:$0xff] %v7218_v53  ;;  %v4553_v13 = vld [vmem:[#allocation4 + $0xe8] sm:$0xf]  ;;  %v5960_v1 = vld [vmem:[#allocation4 + $0xf4] sm:$0xf0]  ;;  %v7228_v22 = vor.u32 %v6281_v52, %v5843_v7 }
  0xf7   :  { %9229 = vst [vmem:[#allocation172_spill] sm:$0xff] %v7221_v9  ;;  %v6225_v45 = vld [vmem:[#allocation4 + $0x944] sm:$0xf]  ;;  %v5619_v50 = vld [vmem:[#allocation4 + $0x950] sm:$0xf0]  ;;  %3147 = vmatpush.bf16.msrb.mxu3 %v7213_v60  ;;  %v7231_v34 = vor.u32 %v5960_v1, %v4553_v13 }
  0xf8   :  { %v6257_v25 = vld [vmem:[#allocation4 + $0xa44] sm:$0xf]  ;;  %v5747_v17 = vld [vmem:[#allocation4 + $0xa50] sm:$0xf0]  ;;  %9230 = vst [vmem:[#allocation173_spill] sm:$0xff] %v7226_v29  ;;  %3162 = vmatpush.bf16.msrb.mxu0 %v7218_v53  ;;  %v7233_v11 = vor.u32 %v6225_v45, %v5619_v50  ;;  %3138 = vmatmul.bf16.vlgmr.msra.gmra.mxu2 %v6963_v51  ;;  %v2873_v53 = vpop.f32.mrf.mxu0 }
  0xf9   :  { %3192 = vmatpush.bf16.msrb.mxu2 %v7215_v55  ;;  %9231 = vst [vmem:[#allocation174_spill] sm:$0xff] %v7228_v22  ;;  %v6193_v12 = vld [vmem:[#allocation4 + $0x844] sm:$0xf]  ;;  %v5491_v26 = vld [vmem:[#allocation4 + $0x850] sm:$0xf0]  ;;  %3176 = vmatpush.bf16.msrb.mxu1 %v7221_v9  ;;  %v7237_v60 = vor.u32 %v6257_v25, %v5747_v17  ;;  %v7252_v18 = vadd.f32 %v2887_v62, %v2873_v53 }
  0xfa   :  { %9232 = vst [vmem:[#allocation175_spill] sm:$0xff] %v7231_v34  ;;  %v4537_v2 = vld [vmem:[#allocation4 + $0xc8] sm:$0xf]  ;;  %v5956_v55 = vld [vmem:[#allocation4 + $0xd4] sm:$0xf0]  ;;  %v7241_v13 = vor.u32 %v6193_v12, %v5491_v26 }
  0xfb   :  { %9233 = vst [vmem:[#allocation176_spill] sm:$0xff] %v7233_v11  ;;  %v6221_v20 = vld [vmem:[#allocation4 + $0x924] sm:$0xf]  ;;  %v5603_v10 = vld [vmem:[#allocation4 + $0x930] sm:$0xf0]  ;;  %3148 = vmatpush.bf16.msrb.mxu3 %v7226_v29  ;;  %v7245_v50 = vor.u32 %v5956_v55, %v4537_v2 }
  0xfc   :  { %9234 = vst [vmem:[#allocation177_spill] sm:$0xff] %v7237_v60  ;;  %v6253_v7 = vld [vmem:[#allocation4 + $0xa24] sm:$0xf]  ;;  %v5731_v52 = vld [vmem:[#allocation4 + $0xa30] sm:$0xf0]  ;;  %3163 = vmatpush.bf16.msrb.mxu0 %v7233_v11  ;;  %v7247_v1 = vor.u32 %v6221_v20, %v5603_v10 }
  0xfd   :  { %3193 = vmatpush.bf16.msrb.mxu2 %v7228_v22  ;;  %9235 = vst [vmem:[#allocation178_spill] sm:$0xff] %v7241_v13  ;;  %v6189_v45 = vld [vmem:[#allocation4 + $0x824] sm:$0xf]  ;;  %v5475_v25 = vld [vmem:[#allocation4 + $0x830] sm:$0xf0]  ;;  %3177 = vmatpush.bf16.msrb.mxu1 %v7237_v60  ;;  %v7250_v29 = vor.u32 %v6253_v7, %v5731_v52 }
  0xfe   :  { %9236 = vst [vmem:[#allocation179_spill] sm:$0xff] %v7245_v50  ;;  %v4521_v17 = vld [vmem:[#allocation4 + $0xa8] sm:$0xf]  ;;  %v5952_v9 = vld [vmem:[#allocation4 + $0xb4] sm:$0xf0]  ;;  %v7255_v55 = vor.u32 %v6189_v45, %v5475_v25 }
  0xff   :  { %9237 = vst [vmem:[#allocation180_spill] sm:$0xff] %v7247_v1  ;;  %v6217_v12 = vld [vmem:[#allocation4 + $0x904] sm:$0xf]  ;;  %v5587_v26 = vld [vmem:[#allocation4 + $0x910] sm:$0xf0]  ;;  %3149 = vmatpush.bf16.msrb.mxu3 %v7241_v13  ;;  %v7259_v7 = vor.u32 %v5952_v9, %v4521_v17 }
 0x100   :  { %9238 = vst [vmem:[#allocation181_spill] sm:$0xff] %v7250_v29  ;;  %v6249_v22 = vld [vmem:[#allocation4 + $0xa04] sm:$0xf]  ;;  %v4809_v11 = vld [vmem:[#allocation4 + $0x2e8] sm:$0xf]  ;;  %3164 = vmatpush.bf16.msrb.mxu0 %v7247_v1  ;;  %v7261_v52 = vor.u32 %v6217_v12, %v5587_v26 }
 0x101   :  { %3200 = vmatpush.bf16.msra.mxu2 %v7231_v34  ;;  %v5715_v34 = vld [vmem:[#allocation4 + $0xa10] sm:$0xf0]  ;;  %v6024_v2 = vld [vmem:[#allocation4 + $0x2f4] sm:$0xf0]  ;;  %9239 = vst [vmem:[#allocation182_spill] sm:$0xff] %v7255_v55  ;;  %3178 = vmatpush.bf16.msrb.mxu1 %v7250_v29 }
 0x102   :  { %v4937_v20 = vld [vmem:[#allocation4 + $0x3e8] sm:$0xf]  ;;  %v6056_v10 = vld [vmem:[#allocation4 + $0x3f4] sm:$0xf0]  ;;  %9240 = vst [vmem:[#allocation183_spill] sm:$0xff] %v7259_v7  ;;  %v7264_v36 = vor.u32 %v6249_v22, %v5715_v34  ;;  %v7266_v13 = vor.u32 %v6024_v2, %v4809_v11 }
 0x103   :  { %9241 = vst [vmem:[#allocation184_spill] sm:$0xff] %v7261_v52  ;;  %v6185_v60 = vld [vmem:[#allocation4 + $0x804] sm:$0xf]  ;;  %v5459_v62 = vld [vmem:[#allocation4 + $0x810] sm:$0xf0]  ;;  %v7268_v5 = vor.u32 %v6056_v10, %v4937_v20  ;;  %3150 = vmatpush.bf16.msrb.mxu3 %v7255_v55 }
 0x104   :  { %v4681_v53 = vld [vmem:[#allocation4 + $0x1e8] sm:$0xf]  ;;  %9242 = vst [vmem:[#allocation185_spill] sm:$0xff] %v7264_v36  ;;  %v5992_v45 = vld [vmem:[#allocation4 + $0x1f4] sm:$0xf0]  ;;  %v7271_v9 = vor.u32 %v6185_v60, %v5459_v62  ;;  %3165 = vmatpush.bf16.msrb.mxu0 %v7261_v52 }
 0x105   :  { %3201 = vmatpush.bf16.msra.mxu2 %v7245_v50  ;;  %9243 = vst [vmem:[#allocation186_spill] sm:$0xff] %v7266_v13  ;;  %v4505_v25 = vld [vmem:[#allocation4 + $0x88] sm:$0xf]  ;;  %v6020_v1 = vld [vmem:[#allocation4 + $0x2d4] sm:$0xf0]  ;;  %v7275_v22 = vor.u32 %v5992_v45, %v4681_v53  ;;  %3179 = vmatpush.bf16.msrb.mxu1 %v7264_v36 }
 0x106   :  { %9244 = vst [vmem:[#allocation187_spill] sm:$0xff] %v7268_v5  ;;  %v4793_v50 = vld [vmem:[#allocation4 + $0x2c8] sm:$0xf]  ;;  %v6052_v12 = vld [vmem:[#allocation4 + $0x3d4] sm:$0xf0]  ;;  %v7277_v34 = vor.u32 %v5948_v41, %v4505_v25 }
 0x107   :  { %9245 = vst [vmem:[#allocation188_spill] sm:$0xff] %v7271_v9  ;;  %v4921_v17 = vld [vmem:[#allocation4 + $0x3c8] sm:$0xf]  ;;  %v7281_v26 = vor.u32 %v6020_v1, %v4793_v50  ;;  %v5988_v2 = vld [vmem:[#allocation4 + $0x1d4] sm:$0xf0]  ;;  %3151 = vmatpush.bf16.msrb.mxu3 %v7271_v9  ;;  %3166 = vmatmul.bf16.vlgmr.msrb.gmra.mxu0 %v7007_v40 }
 0x108   :  { %9246 = vst [vmem:[#allocation189_spill] sm:$0xff] %v7275_v22  ;;  %v4665_v11 = vld [vmem:[#allocation4 + $0x1c8] sm:$0xf]  ;;  %3228 = vmatpush.bf16.msra.mxu0 %v7266_v13  ;;  %v5944_v20 = vld [vmem:[#allocation4 + $0x74] sm:$0xf0]  ;;  %v7284_v10 = vor.u32 %v6052_v12, %v4921_v17  ;;  %5872 = vmatmul.msk.bf16.vlgmr.msrb.gmra.mxu2 %vm100_vm9, %v7019_v31 }
 0x109   :  { %3202 = vmatpush.bf16.msra.mxu2 %v7259_v7  ;;  %9247 = vst [vmem:[#allocation190_spill] sm:$0xff] %v7277_v34  ;;  %v4489_v60 = vld [vmem:[#allocation4 + $0x68] sm:$0xf]  ;;  %3242 = vmatpush.bf16.msra.mxu1 %v7268_v5  ;;  %v6016_v52 = vld [vmem:[#allocation4 + $0x2b4] sm:$0xf0]  ;;  %v7290_v50 = vor.u32 %v5988_v2, %v4665_v11 }
 0x10a   :  { %9248 = vst [vmem:[#allocation191_spill] sm:$0xff] %v7281_v26  ;;  %v4777_v62 = vld [vmem:[#allocation4 + $0x2a8] sm:$0xf]  ;;  %v6048_v53 = vld [vmem:[#allocation4 + $0x3b4] sm:$0xf0]  ;;  %v7292_v1 = vor.u32 %v5944_v20, %v4489_v60  ;;  %3152 = vmatmul.bf16.vlgmr.msrb.gmra.mxu3 %v7011_v59  ;;  %3180 = vmatmul.bf16.vlgmr.msrb.gmra.mxu1 %v7015_v23 }
 0x10b   :  { %9249 = vst [vmem:[#allocation192_spill] sm:$0xff] %v7284_v10  ;;  %v4905_v41 = vld [vmem:[#allocation4 + $0x3a8] sm:$0xf]  ;;  %3214 = vmatpush.bf16.msra.mxu3 %v7275_v22  ;;  %v7295_v25 = vor.u32 %v6016_v52, %v4777_v62  ;;  %v5984_v17 = vld [vmem:[#allocation4 + $0x1b4] sm:$0xf0] }
 0x10c   :  { %9250 = vst [vmem:[#allocation193_spill] sm:$0xff] %v7290_v50  ;;  %v4649_v45 = vld [vmem:[#allocation4 + $0x1a8] sm:$0xf]  ;;  %3229 = vmatpush.bf16.msra.mxu0 %v7281_v26  ;;  %v5940_v5 = vld [vmem:[#allocation4 + $0x54] sm:$0xf0] }
 0x10d   :  { %3203 = vmatpush.bf16.msra.mxu2 %v7277_v34  ;;  %9251 = vst [vmem:[#allocation194_spill] sm:$0xff] %v7292_v1  ;;  %v4473_v12 = vld [vmem:[#allocation4 + $0x48] sm:$0xf]  ;;  %3243 = vmatpush.bf16.msra.mxu1 %v7284_v10  ;;  %v7301_v34 = vor.u32 %v6048_v53, %v4905_v41  ;;  %v6012_v2 = vld [vmem:[#allocation4 + $0x294] sm:$0xf0]  ;;  %v7306_v52 = vor.u32 %v5984_v17, %v4649_v45 }
 0x10e   :  { %9252 = vst [vmem:[#allocation195_spill] sm:$0xff] %v7295_v25  ;;  %v4761_v11 = vld [vmem:[#allocation4 + $0x288] sm:$0xf]  ;;  %v6044_v20 = vld [vmem:[#allocation4 + $0x394] sm:$0xf0]  ;;  %v7308_v62 = vor.u32 %v5940_v5, %v4473_v12 }
 0x10f   :  { %9253 = vst [vmem:[#allocation196_spill] sm:$0xff] %v7301_v34  ;;  %v4889_v60 = vld [vmem:[#allocation4 + $0x388] sm:$0xf]  ;;  %3215 = vmatpush.bf16.msra.mxu3 %v7290_v50  ;;  %v7311_v10 = vor.u32 %v6012_v2, %v4761_v11  ;;  %v5980_v41 = vld [vmem:[#allocation4 + $0x194] sm:$0xf0] }
 0x110   :  { %9254 = vst [vmem:[#allocation197_spill] sm:$0xff] %v7306_v52  ;;  %v4633_v26 = vld [vmem:[#allocation4 + $0x188] sm:$0xf]  ;;  %3230 = vmatpush.bf16.msra.mxu0 %v7295_v25  ;;  %v5936_v22 = vld [vmem:[#allocation4 + $0x34] sm:$0xf0]  ;;  %v7314_v9 = vor.u32 %v6044_v20, %v4889_v60 }
 0x111   :  { %3204 = vmatpush.bf16.msra.mxu2 %v7292_v1  ;;  %9255 = vst [vmem:[#allocation198_spill] sm:$0xff] %v7308_v62  ;;  %v4457_v53 = vld [vmem:[#allocation4 + $0x28] sm:$0xf]  ;;  %3244 = vmatpush.bf16.msra.mxu1 %v7301_v34  ;;  %v6008_v50 = vld [vmem:[#allocation4 + $0x274] sm:$0xf0]  ;;  %v7318_v5 = vor.u32 %v5980_v41, %v4633_v26 }
 0x112   :  { %9256 = vst [vmem:[#allocation199_spill] sm:$0xff] %v7311_v10  ;;  %v4745_v13 = vld [vmem:[#allocation4 + $0x268] sm:$0xf]  ;;  %v6040_v1 = vld [vmem:[#allocation4 + $0x374] sm:$0xf0]  ;;  %v7320_v45 = vor.u32 %v5936_v22, %v4457_v53 }
 0x113   :  { %9257 = vst [vmem:[#allocation200_spill] sm:$0xff] %v7314_v9  ;;  %v4873_v36 = vld [vmem:[#allocation4 + $0x368] sm:$0xf]  ;;  %3216 = vmatpush.bf16.msra.mxu3 %v7306_v52  ;;  %v5976_v12 = vld [vmem:[#allocation4 + $0x174] sm:$0xf0]  ;;  %v7323_v11 = vor.u32 %v6008_v50, %v4745_v13 }
 0x114   :  { %9258 = vst [vmem:[#allocation201_spill] sm:$0xff] %v7318_v5  ;;  %v4617_v17 = vld [vmem:[#allocation4 + $0x168] sm:$0xf]  ;;  %3231 = vmatpush.bf16.msra.mxu0 %v7311_v10  ;;  %v5932_v60 = vld [vmem:[#allocation4 + $0x14] sm:$0xf0]  ;;  %v7326_v34 = vor.u32 %v6040_v1, %v4873_v36 }
 0x115   :  { %3205 = vmatpush.bf16.msra.mxu2 %v7308_v62  ;;  %9259 = vst [vmem:[#allocation202_spill] sm:$0xff] %v7320_v45  ;;  %v4441_v2 = vld [vmem:[#allocation4 + $0x8] sm:$0xf]  ;;  %3245 = vmatpush.bf16.msra.mxu1 %v7314_v9  ;;  %v6088_v52 = vld [vmem:[#allocation4 + $0x4f4] sm:$0xf0]  ;;  %v7330_v22 = vor.u32 %v5976_v12, %v4617_v17 }
 0x116   :  { %9260 = vst [vmem:[#allocation203_spill] sm:$0xff] %v7323_v11  ;;  %v5065_v20 = vld [vmem:[#allocation4 + $0x4e8] sm:$0xf]  ;;  %v6004_v62 = vld [vmem:[#allocation4 + $0x254] sm:$0xf0]  ;;  %v7332_v13 = vor.u32 %v5932_v60, %v4441_v2 }
 0x117   :  { %9261 = vst [vmem:[#allocation204_spill] sm:$0xff] %v7326_v34  ;;  %v4729_v25 = vld [vmem:[#allocation4 + $0x248] sm:$0xf]  ;;  %v6036_v41 = vld [vmem:[#allocation4 + $0x354] sm:$0xf0]  ;;  %3217 = vmatpush.bf16.msra.mxu3 %v7318_v5  ;;  %v7335_v50 = vor.u32 %v6088_v52, %v5065_v20 }
 0x118   :  { %v4857_v26 = vld [vmem:[#allocation4 + $0x348] sm:$0xf]  ;;  %9262 = vst [vmem:[#allocation205_spill] sm:$0xff] %v7330_v22  ;;  %3232 = vmatpush.bf16.msra.mxu0 %v7323_v11  ;;  %v7337_v53 = vor.u32 %v6004_v62, %v4729_v25  ;;  %v5972_v1 = vld [vmem:[#allocation4 + $0x154] sm:$0xf0] }
 0x119   :  { %3206 = vmatpush.bf16.msra.mxu2 %v7320_v45  ;;  %9263 = vst [vmem:[#allocation206_spill] sm:$0xff] %v7332_v13  ;;  %v4601_v36 = vld [vmem:[#allocation4 + $0x148] sm:$0xf]  ;;  %3246 = vmatpush.bf16.msra.mxu1 %v7326_v34  ;;  %v7340_v10 = vor.u32 %v6036_v41, %v4857_v26  ;;  %v6084_v5 = vld [vmem:[#allocation4 + $0x4d4] sm:$0xf0] }
 0x11a   :  { %9264 = vst [vmem:[#allocation207_spill] sm:$0xff] %v7335_v50  ;;  %v5049_v9 = vld [vmem:[#allocation4 + $0x4c8] sm:$0xf]  ;;  %v6000_v45 = vld [vmem:[#allocation4 + $0x234] sm:$0xf0]  ;;  %v7344_v52 = vor.u32 %v5972_v1, %v4601_v36 }
 0x11b   :  { %9265 = vst [vmem:[#allocation208_spill] sm:$0xff] %v7337_v53  ;;  %v4713_v7 = vld [vmem:[#allocation4 + $0x228] sm:$0xf]  ;;  %v6032_v12 = vld [vmem:[#allocation4 + $0x334] sm:$0xf0]  ;;  %3218 = vmatpush.bf16.msra.mxu3 %v7330_v22  ;;  %v7348_v62 = vor.u32 %v6084_v5, %v5049_v9 }
 0x11c   :  { %9266 = vst [vmem:[#allocation209_spill] sm:$0xff] %v7340_v10  ;;  %v4841_v17 = vld [vmem:[#allocation4 + $0x328] sm:$0xf]  ;;  %3233 = vmatpush.bf16.msra.mxu0 %v7337_v53  ;;  %v7350_v2 = vor.u32 %v6000_v45, %v4713_v7  ;;  %v5968_v60 = vld [vmem:[#allocation4 + $0x134] sm:$0xf0] }
 0x11d   :  { %3207 = vmatpush.bf16.msra.mxu2 %v7332_v13  ;;  %9267 = vst [vmem:[#allocation210_spill] sm:$0xff] %v7344_v52  ;;  %v4585_v25 = vld [vmem:[#allocation4 + $0x128] sm:$0xf]  ;;  %v6080_v26 = vld [vmem:[#allocation4 + $0x4b4] sm:$0xf0]  ;;  %3247 = vmatpush.bf16.msra.mxu1 %v7340_v10  ;;  %v7353_v41 = vor.u32 %v6032_v12, %v4841_v17 }
 0x11e   :  { %9268 = vst [vmem:[#allocation211_spill] sm:$0xff] %v7348_v62  ;;  %v5033_v20 = vld [vmem:[#allocation4 + $0x4a8] sm:$0xf]  ;;  %v5996_v13 = vld [vmem:[#allocation4 + $0x214] sm:$0xf0]  ;;  %v7357_v9 = vor.u32 %v5968_v60, %v4585_v25 }
 0x11f   :  { %9269 = vst [vmem:[#allocation212_spill] sm:$0xff] %v7350_v2  ;;  %v4697_v22 = vld [vmem:[#allocation4 + $0x208] sm:$0xf]  ;;  %v6028_v1 = vld [vmem:[#allocation4 + $0x314] sm:$0xf0]  ;;  %3219 = vmatpush.bf16.msra.mxu3 %v7344_v52  ;;  %v7361_v45 = vor.u32 %v6080_v26, %v5033_v20  ;;  %v7377_v20 = vpop.f32.mrf.mxu1 }
 0x120   :  { %9270 = vst [vmem:[#allocation213_spill] sm:$0xff] %v7353_v41  ;;  %v4825_v36 = vld [vmem:[#allocation4 + $0x308] sm:$0xf]  ;;  %v6152_v11 = vld [vmem:[#allocation4 + $0x6f4] sm:$0xf0]  ;;  %3208 = vmatmul.bf16.vlgmr.msra.gmra.mxu2 %v6747_v21  ;;  %3234 = vmatpush.bf16.msra.mxu0 %v7350_v2  ;;  %v7363_v17 = vor.u32 %v5996_v13, %v4697_v22  ;;  %v7375_v13 = vpop.f32.mrf.mxu0 }
 0x121   :  { %3256 = vmatpush.bf16.msrb.mxu2 %v7335_v50  ;;  %v5321_v34 = vld [vmem:[#allocation4 + $0x6e8] sm:$0xf]  ;;  %9271 = vst [vmem:[#allocation214_spill] sm:$0xff] %v7357_v9  ;;  %v6184_v5 = vld [vmem:[#allocation4 + $0x7f4] sm:$0xf0]  ;;  %3248 = vmatpush.bf16.msra.mxu1 %v7353_v41  ;;  %v7366_v53 = vor.u32 %v6028_v1, %v4825_v36 }
 0x122   :  { %v5449_v7 = vld [vmem:[#allocation4 + $0x7e8] sm:$0xf]  ;;  %9272 = vst [vmem:[#allocation215_spill] sm:$0xff] %v7361_v45  ;;  %v5964_v10 = vld [vmem:[#allocation4 + $0x114] sm:$0xf0]  ;;  %v7368_v50 = vor.u32 %v6152_v11, %v5321_v34  ;;  %v2901_v34 = vpop.f32.mrf.mxu2  ;;  %v2915_v11 = vpop.f32.mrf.mxu3 }
 0x123   :  { %9273 = vst [vmem:[#allocation216_spill] sm:$0xff] %v7363_v17  ;;  %v4569_v12 = vld [vmem:[#allocation4 + $0x108] sm:$0xf]  ;;  %v6120_v60 = vld [vmem:[#allocation4 + $0x5f4] sm:$0xf0]  ;;  %v7370_v55 = vor.u32 %v6184_v5, %v5449_v7  ;;  %3220 = vmatpush.bf16.msra.mxu3 %v7357_v9 }
 0x124   :  { %9274 = vst [vmem:[#allocation217_spill] sm:$0xff] %v7366_v53  ;;  %v5193_v25 = vld [vmem:[#allocation4 + $0x5e8] sm:$0xf]  ;;  %v6148_v2 = vld [vmem:[#allocation4 + $0x6d4] sm:$0xf0]  ;;  %v7373_v22 = vor.u32 %v5964_v10, %v4569_v12  ;;  %3235 = vmatpush.bf16.msra.mxu0 %v7363_v17  ;;  %v2902_v10 = vadd.f32 %v2901_v34, %v7252_v18 }
 0x125   :  { %3257 = vmatpush.bf16.msrb.mxu2 %v7348_v62  ;;  %9275 = vst [vmem:[#allocation218_spill] sm:$0xff] %v7368_v50  ;;  %v5017_v52 = vld [vmem:[#allocation4 + $0x488] sm:$0xf]  ;;  %v6076_v62 = vld [vmem:[#allocation4 + $0x494] sm:$0xf0]  ;;  %v7381_v1 = vor.u32 %v6120_v60, %v5193_v25  ;;  %3249 = vmatpush.bf16.msra.mxu1 %v7366_v53 }
 0x126   :  { %9276 = vst [vmem:[#allocation219_spill] sm:$0xff] %v7370_v55  ;;  %v5305_v29 = vld [vmem:[#allocation4 + $0x6c8] sm:$0xf]  ;;  %v6180_v36 = vld [vmem:[#allocation4 + $0x7d4] sm:$0xf0]  ;;  %v7386_v5 = vor.u32 %v6076_v62, %v5017_v52  ;;  %v2916_v41 = vadd.f32 %v2915_v11, %v2902_v10 }
 0x127   :  { %9277 = vst [vmem:[#allocation220_spill] sm:$0xff] %v7373_v22  ;;  %v5433_v26 = vld [vmem:[#allocation4 + $0x7c8] sm:$0xf]  ;;  %v7388_v12 = vor.u32 %v6148_v2, %v5305_v29  ;;  %v6144_v60 = vld [vmem:[#allocation4 + $0x6b4] sm:$0xf0]  ;;  %3221 = vmatpush.bf16.msra.mxu3 %v7373_v22  ;;  %3236 = vmatmul.bf16.vlgmr.msra.gmra.mxu0 %v6893_v43 }
 0x128   :  { %9278 = vst [vmem:[#allocation221_spill] sm:$0xff] %v7375_v13  ;;  %v5177_v7 = vld [vmem:[#allocation4 + $0x5c8] sm:$0xf]  ;;  %3284 = vmatpush.bf16.msrb.mxu0 %v7368_v50  ;;  %v7391_v17 = vor.u32 %v6180_v36, %v5433_v26  ;;  %v6176_v18 = vld [vmem:[#allocation4 + $0x7b4] sm:$0xf0]  ;;  %3250 = vmatmul.bf16.vlgmr.msra.gmra.mxu1 %v6895_v30  ;;  %v360_v36 = vld [vmem:[%s8724_s0 + $0x30] sm:$0xff] }
 0x129   :  { %9279 = vst [vmem:[#allocation222_spill] sm:$0xff] %v7377_v20  ;;  %3258 = vmatpush.bf16.msrb.mxu2 %v7361_v45  ;;  %v6116_v20 = vld [vmem:[#allocation4 + $0x5d4] sm:$0xf0]  ;;  %v5001_v13 = vld [vmem:[#allocation4 + $0x468] sm:$0xf]  ;;  %3298 = vmatpush.bf16.msrb.mxu1 %v7370_v55 }
 0x12a   :  { %9280 = vst [vmem:[#allocation223_spill] sm:$0xff] %v7381_v1  ;;  %v6072_v45 = vld [vmem:[#allocation4 + $0x474] sm:$0xf0]  ;;  %v5289_v25 = vld [vmem:[#allocation4 + $0x6a8] sm:$0xf]  ;;  %v7397_v29 = vor.u32 %v6116_v20, %v5177_v7  ;;  %3222 = vmatmul.bf16.vlgmr.msra.gmra.mxu3 %v6750_v0 }
 0x12b   :  { %9281 = vst [vmem:[#allocation224_spill] sm:$0xff] %v7386_v5  ;;  %v5417_v9 = vld [vmem:[#allocation4 + $0x7a8] sm:$0xf]  ;;  %v6112_v62 = vld [vmem:[#allocation4 + $0x5b4] sm:$0xf0]  ;;  %3270 = vmatpush.bf16.msrb.mxu3 %v7381_v1  ;;  %v7407_v34 = vor.u32 %v6072_v45, %v5001_v13  ;;  %v7409_v11 = vor.u32 %v6144_v60, %v5289_v25 }
 0x12c   :  { %9282 = vst [vmem:[#allocation225_spill] sm:$0xff] %v7388_v12  ;;  %v5161_v52 = vld [vmem:[#allocation4 + $0x5a8] sm:$0xf]  ;;  %v357_v26 = vld [vmem:[%s8724_s0] sm:$0xfe]  ;;  %3285 = vmatpush.bf16.msrb.mxu0 %v7388_v12  ;;  %v7413_v1 = vor.u32 %v6176_v18, %v5417_v9  ;;  %v361_v45 = vld [vmem:[%s8724_s0 + $0x38] sm:$0xff]  ;;  %v7426_v9 = vpop.f32.mrf.mxu3 }
 0x12d   :  { %9283 = vst [vmem:[#allocation226_spill] sm:$0xff] %v7391_v17  ;;  %v4985_v2 = vld [vmem:[#allocation4 + $0x448] sm:$0xf]  ;;  %3259 = vmatpush.bf16.msrb.mxu2 %v7386_v5  ;;  %v6068_v10 = vld [vmem:[#allocation4 + $0x454] sm:$0xf0]  ;;  %3299 = vmatpush.bf16.msrb.mxu1 %v7391_v17  ;;  %v7421_v22 = vpack.c.bf16 %v361_v45, %v360_v36  ;;  %v7424_v17 = vpop.f32.mrf.mxu2  ;;  %v7428_v18 = vor.u32 %v6112_v62, %v5161_v52  ;;  %v2943_v36 = vpop.f32.mrf.mxu1 }
 0x12e   :  { %9284 = vst [vmem:[#allocation227_spill] sm:$0xff] %v7397_v29  ;;  %v5273_v20 = vld [vmem:[#allocation4 + $0x688] sm:$0xf]  ;;  %v6140_v7 = vld [vmem:[#allocation4 + $0x694] sm:$0xf0]  ;;  %v7430_v50 = vor.u32 %v6068_v10, %v4985_v2 }
 0x12f   :  { %9285 = vst [vmem:[#allocation228_spill] sm:$0xff] %v7407_v34  ;;  %v5401_v55 = vld [vmem:[#allocation4 + $0x788] sm:$0xf]  ;;  %v6172_v13 = vld [vmem:[#allocation4 + $0x794] sm:$0xf0]  ;;  %3271 = vmatpush.bf16.msrb.mxu3 %v7397_v29  ;;  %v7437_v45 = vor.u32 %v6140_v7, %v5273_v20  ;;  %v382_v10 = vshll.u32 %v7421_v22, 16 }
 0x130   :  { %9286 = vst [vmem:[#allocation229_spill] sm:$0xff] %v7409_v11  ;;  %v358_v5 = vld [vmem:[%s8724_s0 + $0x8] sm:$0xfe]  ;;  %v6108_v60 = vld [vmem:[#allocation4 + $0x594] sm:$0xf0]  ;;  %3286 = vmatpush.bf16.msrb.mxu0 %v7409_v11  ;;  %v7444_v29 = vor.u32 %v6172_v13, %v5401_v55 }
 0x131   :  { %9287 = vst [vmem:[#allocation230_spill] sm:$0xff] %v7413_v1  ;;  %v5145_v25 = vld [vmem:[#allocation4 + $0x588] sm:$0xf]  ;;  %v366_v12 = vpack.c.bf16 %v358_v5, %v357_v26  ;;  %3260 = vmatpush.bf16.msrb.mxu2 %v7407_v34  ;;  %v2929_v26 = vpop.f32.mrf.mxu0  ;;  %3300 = vmatpush.bf16.msrb.mxu1 %v7413_v1  ;;  %v6168_v34 = vld [vmem:[#allocation4 + $0x774] sm:$0xf0] }
 0x132   :  { %9288 = vst [vmem:[#allocation231_spill] sm:$0xff] %v7424_v17  ;;  %v4969_v53 = vld [vmem:[#allocation4 + $0x428] sm:$0xf]  ;;  %v2930_v17 = vadd.f32 %v2929_v26, %v2916_v41  ;;  %v6060_v7 = vld [vmem:[#allocation4 + $0x414] sm:$0xf0]  ;;  %v7447_v47 = vor.u32 %v6108_v60, %v5145_v25  ;;  %v7453_v41 = vor.u32 %v6136_v61, %v5257_v3 }
 0x133   :  { %9289 = vst [vmem:[#allocation232_spill] sm:$0xff] %v7426_v9  ;;  %v445_v5 = vld [vmem:[%s8724_s0 + $0x48] sm:$0xff]  ;;  %v373_v62 = vshrl.u32 %v366_v12, 16  ;;  %v376_v2 = vshll.u32 %v366_v12, 16  ;;  %v446_v9 = vld [vmem:[%s8724_s0 + $0x50] sm:$0xff]  ;;  %3272 = vmatpush.bf16.msrb.mxu3 %v7428_v18  ;;  %v7451_v55 = vor.u32 %v6064_v19, %v4969_v53 }
 0x134   :  { %9290 = vst [vmem:[#allocation233_spill] sm:$0xff] %v7428_v18  ;;  %v5385_v52 = vld [vmem:[#allocation4 + $0x768] sm:$0xf]  ;;  %v453_v24 = vpack.c.bf16 %v446_v9, %v445_v5  ;;  %v2944_v12 = vadd.f32 %v2943_v36, %v2930_v17  ;;  %3287 = vmatpush.bf16.msrb.mxu0 %v7437_v45  ;;  %v6132_v13 = vld [vmem:[#allocation4 + $0x654] sm:$0xf0]  ;;  %v7455_v5 = vrot.slane %v382_v10, 5 }
 0x135   :  { %9291 = vst [vmem:[#allocation234_spill] sm:$0xff] %v7430_v50  ;;  %v5129_v11 = vld [vmem:[#allocation4 + $0x568] sm:$0xf]  ;;  %v375_v4 = vrot.slane %v373_v62, 4  ;;  %v378_v57 = vrot.slane %v376_v2, 5  ;;  %3261 = vmatpush.bf16.msrb.mxu2 %v7430_v50  ;;  %3301 = vmatpush.bf16.msrb.mxu1 %v7444_v29  ;;  %v7461_v25 = vor.u32 %v6168_v34, %v5385_v52  ;;  %v400_v62 = vshrl.u32 %v7421_v22, 16 }
 0x136   :  { %9292 = vst [vmem:[#allocation235_spill] sm:$0xff] %v7437_v45  ;;  %v4953_v20 = vld [vmem:[#allocation4 + $0x408] sm:$0xf]  ;;  %v448_v17 = vld [vmem:[%s8724_s0 + $0x78] sm:$0x1]  ;;  %v467_v53 = vshll.u32 %v453_v24, 16  ;;  %v7466_v3 = vor.u32 %v6104_v58, %v5129_v11  ;;  %v7472_v34 = vor.u32 %v6216_v42, %v5577_v6  ;;  %v2971_v58 = vpop.f32.mrf.mxu3  ;;  %v7478_v11 = vor.u32 %v6132_v13, %v5241_v32 }
 0x137   :  { %9293 = vst [vmem:[#allocation236_spill] sm:$0xff] %v7444_v29  ;;  %v379_v9 = vor.u32 %v378_v57, %v375_v4  ;;  %v5369_v60 = vld [vmem:[#allocation4 + $0x748] sm:$0xf]  ;;  %v449_v19 = vld [vmem:[%s8724_s0 + $0x80] sm:$0x1]  ;;  %v485_v61 = vshrl.u32 %v453_v24, 16  ;;  %3273 = vmatpush.bf16.msrb.mxu3 %v7447_v47  ;;  %v7470_v2 = vor.u32 %v6060_v7, %v4953_v20  ;;  %v2957_v24 = vpop.f32.mrf.mxu2 }
 0x138   :  { %9294 = vst [vmem:[#allocation237_spill] sm:$0xff] %v7447_v47  ;;  %v6164_v4 = vld [vmem:[#allocation4 + $0x754] sm:$0xf0]  ;;  %v5113_v57 = vld [vmem:[#allocation4 + $0x548] sm:$0xf]  ;;  %v455_v36 = vpack.c.bf16 %v449_v19, %v448_v17  ;;  %v7474_v29 = vrot.slane %v467_v53, 5  ;;  %3288 = vmatpush.bf16.msrb.mxu0 %v7453_v41  ;;  %v2958_v7 = vadd.f32 %v2957_v24, %v2944_v12  ;;  %v7486_v53 = vpop.f32.mrf.mxu1 }
 0x139   :  { %9295 = vst [vmem:[#allocation238_spill] sm:$0xff] %v7451_v55  ;;  %v380_v26 = vrot.slane %v379_v9, 4  ;;  %v6100_v52 = vld [vmem:[#allocation4 + $0x554] sm:$0xf0]  ;;  %v5561_v10 = vld [vmem:[#allocation4 + $0x8c8] sm:$0xf]  ;;  %3262 = vmatpush.bf16.msrb.mxu2 %v7451_v55  ;;  %3302 = vmatpush.bf16.msrb.mxu1 %v7461_v25  ;;  %v7484_v19 = vpop.f32.mrf.mxu0 }
 0x13a   :  { %9296 = vst [vmem:[#allocation239_spill] sm:$0xff] %v7453_v41  ;;  %v487_v45 = vrot.slane %v485_v61, 4  ;;  %v6212_v9 = vld [vmem:[#allocation4 + $0x8d4] sm:$0xf0]  ;;  %v5225_v17 = vld [vmem:[#allocation4 + $0x628] sm:$0xf]  ;;  %v7488_v61 = vor.u32 %v6164_v4, %v5369_v60  ;;  %v7492_v47 = vor.u32 %v6100_v52, %v5113_v57 }
 0x13b   :  { %9297 = vst [vmem:[#allocation240_spill] sm:$0xff] %v7461_v25  ;;  %v385_v6 = vsel %vm6493_vm2, %v380_v26, %v7455_v5  ;;  %v491_v42 = vshll.u32 %v455_v36, 16  ;;  %v402_v20 = vrot.slane %v400_v62, 4  ;;  %v6128_v41 = vld [vmem:[#allocation4 + $0x634] sm:$0xf0]  ;;  %v2972_v62 = vadd.f32 %v2971_v58, %v2958_v7  ;;  %3274 = vmatpush.bf16.msrb.mxu3 %v7466_v3 }
 0x13c   :  { %9298 = vst [vmem:[#allocation241_spill] sm:$0xff] %v7466_v3  ;;  %v5353_v32 = vld [vmem:[#allocation4 + $0x728] sm:$0xf]  ;;  %v6160_v13 = vld [vmem:[#allocation4 + $0x734] sm:$0xf0]  ;;  %420 = vrot.lane.b32.xlu0 %v385_v6, %s6402_s21  ;;  %v488_v55 = vor.u32 %v487_v45, %v7474_v29  ;;  %3289 = vmatpush.bf16.msrb.mxu0 %v7478_v11  ;;  %v7501_v45 = vor.u32 %v6212_v9, %v5561_v10 }
 0x13d   :  { %9299 = vst [vmem:[#allocation242_spill] sm:$0xff] %v7470_v2  ;;  %v5097_v26 = vld [vmem:[#allocation4 + $0x528] sm:$0xf]  ;;  %v6096_v36 = vld [vmem:[#allocation4 + $0x534] sm:$0xf0]  ;;  %v493_v25 = vrot.slane %v491_v42, 5  ;;  %v403_v6 = vor.u32 %v402_v20, %v7455_v5  ;;  %3263 = vmatpush.bf16.msrb.mxu2 %v7470_v2  ;;  %v7503_v57 = vor.u32 %v6128_v41, %v5225_v17  ;;  %3303 = vmatpush.bf16.msrb.mxu1 %v7488_v61 }
 0x13e   :  { %9300 = vst [vmem:[#allocation243_spill] sm:$0xff] %v7472_v34  ;;  %v447_v12 = vld [vmem:[%s8724_s0 + $0x58] sm:$0xff]  ;;  %v5545_v60 = vld [vmem:[#allocation4 + $0x8a8] sm:$0xf]  ;;  %v363_v58 = vld [vmem:[%s8724_s0 + $0x60] sm:$0x1]  ;;  %v7513_v5 = vor.u32 %v6160_v13, %v5353_v32  ;;  %v7520_v20 = vor.u32 %v6096_v36, %v5097_v26 }
 0x13f   :  { %9301 = vst [vmem:[#allocation244_spill] sm:$0xff] %v7478_v11  ;;  %v6208_v4 = vld [vmem:[#allocation4 + $0x8b4] sm:$0xf0]  ;;  %v5209_v24 = vld [vmem:[#allocation4 + $0x608] sm:$0xf]  ;;  %v7515_v41 = vpack.c.bf16 %v447_v12, %v447_v12  ;;  %v362_v17 = vld [vmem:[%s8724_s0 + $0x40] sm:$0xff]  ;;  %3275 = vmatpush.bf16.msrb.mxu3 %v7492_v47 }
 0x140   :  { %9302 = vst [vmem:[#allocation245_spill] sm:$0xff] %v7484_v19  ;;  %v489_v19 = vrot.slane %v488_v55, 4  ;;  %v5337_v52 = vld [vmem:[#allocation4 + $0x708] sm:$0xf]  ;;  %v6156_v42 = vld [vmem:[#allocation4 + $0x714] sm:$0xf0]  ;;  %3264 = vmatmul.bf16.vlgmr.msrb.gmra.mxu2 %v6951_v33  ;;  %3290 = vmatpush.bf16.msrb.mxu0 %v7503_v57  ;;  %v7534_v50 = vor.u32 %v6208_v4, %v5545_v60  ;;  %v7540_v16 = vpack.c.bf16 %v362_v17, %v362_v17 }
 0x141   :  { %9303 = vst [vmem:[#allocation246_spill] sm:$0xff] %v7486_v53  ;;  %v6124_v53 = vld [vmem:[#allocation4 + $0x614] sm:$0xf0]  ;;  %v364_v55 = vld [vmem:[%s8724_s0 + $0x68] sm:$0x1]  ;;  %3312 = vmatpush.bf16.msra.mxu2 %v7472_v34  ;;  %v7531_v34 = vpop.f32.mrf.mxu3  ;;  %v7538_v1 = vor.u32 %v6156_v42, %v5337_v52  ;;  %3304 = vmatpush.bf16.msrb.mxu1 %v7513_v5  ;;  %v481_v60 = vshll.u32 %v7515_v41, 16 }
 0x142   :  { %9304 = vst [vmem:[#allocation247_spill] sm:$0xff] %v7488_v61  ;;  %v5833_v10 = vld [vmem:[#allocation4 + $0xae8] sm:$0xf]  ;;  %v370_v9 = vpack.c.bf16 %v364_v55, %v363_v58  ;;  %v6092_v11 = vld [vmem:[#allocation4 + $0x514] sm:$0xf0]  ;;  %v494_v58 = vsel %vm6493_vm2, %v489_v19, %v493_v25  ;;  %v404_v55 = vrot.slane %v403_v6, 4  ;;  %v7529_v61 = vpop.f32.mrf.mxu2  ;;  %v7536_v18 = vor.u32 %v6124_v53, %v5209_v24  ;;  %v2985_v25 = vpop.f32.mrf.mxu0 }
 0x143   :  { %9305 = vst [vmem:[#allocation248_spill] sm:$0xff] %v7492_v47  ;;  %v5081_v7 = vld [vmem:[#allocation4 + $0x508] sm:$0xf]  ;;  %v6280_v2 = vld [vmem:[#allocation4 + $0xaf4] sm:$0xf0]  ;;  %v2986_v53 = vadd.f32 %v2985_v25, %v2972_v62  ;;  %3276 = vmatpush.bf16.msrb.mxu3 %v7520_v20 }
 0x144   :  { %9306 = vst [vmem:[#allocation249_spill] sm:$0xff] %v7513_v5  ;;  %v5865_v3 = vld [vmem:[#allocation4 + $0xb28] sm:$0xf]  ;;  %v6288_v13 = vld [vmem:[#allocation4 + $0xb34] sm:$0xf0]  ;;  %v406_v26 = vshll.u32 %v370_v9, 16  ;;  %v7545_v4 = vor.u32 %v6280_v2, %v5833_v10  ;;  %509 = vrot.lane.b32.xlu0 %v494_v58, %s6403_s3  ;;  %3291 = vmatpush.bf16.msrb.mxu0 %v7536_v18 }
 0x145   :  { %v444_v32 = vld [vmem:[%s8724_s0 + $0x28] sm:$0xfe]  ;;  %9307 = vst [vmem:[#allocation250_spill] sm:$0xff] %v7529_v61  ;;  %v6248_v47 = vld [vmem:[#allocation4 + $0x9f4] sm:$0xf0]  ;;  %3313 = vmatpush.bf16.msra.mxu2 %v7501_v45  ;;  %v7547_v24 = vor.u32 %v6288_v13, %v5865_v3  ;;  %v7551_v61 = vor.u32 %v6092_v11, %v5081_v7  ;;  %v396_v11 = vshll.u32 %v7540_v16, 16  ;;  %3305 = vmatpush.bf16.msrb.mxu1 %v7538_v1 }
 0x146   :  { %v5705_v12 = vld [vmem:[#allocation4 + $0x9e8] sm:$0xf]  ;;  %v452_v36 = vpack.c.bf16 %v444_v32, %v444_v32  ;;  %9308 = vst [vmem:[#allocation251_spill] sm:$0xff] %v7531_v34  ;;  %v408_v6 = vrot.slane %v406_v26, 5  ;;  %v6276_v52 = vld [vmem:[#allocation4 + $0xad4] sm:$0xf0]  ;;  %v2999_v34 = vpop.f32.mrf.mxu1  ;;  %v7562_v7 = vor.u32 %v6204_v27, %v5529_v54 }
 0x147   :  { %9309 = vst [vmem:[#allocation252_spill] sm:$0xff] %v7536_v18  ;;  %v5817_v19 = vld [vmem:[#allocation4 + $0xac8] sm:$0xf]  ;;  %v6284_v17 = vld [vmem:[#allocation4 + $0xb14] sm:$0xf0]  ;;  %v3000_v3 = vadd.f32 %v2999_v34, %v2986_v53  ;;  %v7556_v13 = vor.u32 %v6248_v47, %v5705_v12  ;;  %v7564_v34 = vrot.slane %v481_v60, 5  ;;  %3277 = vmatpush.bf16.msrb.mxu3 %v7551_v61  ;;  %3292 = vmatmul.bf16.vlgmr.msrb.gmra.mxu0 %v6961_v15 }
 0x148   :  { %9310 = vst [vmem:[#allocation253_spill] sm:$0xff] %v7538_v1  ;;  %v472_v9 = vshrl.u32 %v452_v36, 16  ;;  %v475_v32 = vshll.u32 %v452_v36, 16  ;;  %v5849_v42 = vld [vmem:[#allocation4 + $0xb08] sm:$0xf]  ;;  %v409_v62 = vsel %vm6493_vm2, %v404_v55, %v408_v6  ;;  %3340 = vmatpush.bf16.msra.mxu0 %v7545_v4  ;;  %v7568_v47 = vor.u32 %v6276_v52, %v5817_v19  ;;  %3306 = vmatmul.bf16.vlgmr.msrb.gmra.mxu1 %v6963_v51 }
 0x149   :  { %9311 = vst [vmem:[#allocation254_spill] sm:$0xff] %v7545_v4  ;;  %v5689_v26 = vld [vmem:[#allocation4 + $0x9c8] sm:$0xf]  ;;  %v6244_v5 = vld [vmem:[#allocation4 + $0x9d4] sm:$0xf0]  ;;  %424 = vrot.lane.b32.xlu1 %v409_v62, %s6402_s21  ;;  %3314 = vmatpush.bf16.msra.mxu2 %v7534_v50  ;;  %v7570_v12 = vor.u32 %v6284_v17, %v5849_v42  ;;  %v3027_v17 = vpop.f32.mrf.mxu3 }
 0x14a   :  { %9312 = vst [vmem:[#allocation255_spill] sm:$0xff] %v7547_v24  ;;  %v5958_v36 = vld [vmem:[#allocation4 + $0xec] sm:$0xf]  ;;  %v474_v2 = vrot.slane %v472_v9, 4  ;;  %v477_v10 = vrot.slane %v475_v32, 5  ;;  %3360 = vmatpush.bf16.msra.mxu1 %v7547_v24  ;;  %v7584_v24 = vor.u32 %v6244_v5, %v5689_v26  ;;  %3278 = vmatmul.bf16.vlgmr.msrb.gmra.mxu3 %v6953_v49 }
 0x14b   :  { %9313 = vst [vmem:[#allocation256_spill] sm:$0xff] %v7551_v61  ;;  %v4555_v25 = vld [vmem:[#allocation4 + $0xf8] sm:$0xf0]  ;;  %v5513_v58 = vld [vmem:[#allocation4 + $0x868] sm:$0xf]  ;;  %3326 = vmatpush.bf16.msra.mxu3 %v7556_v13 }
 0x14c   :  { %9314 = vst [vmem:[#allocation257_spill] sm:$0xff] %v7556_v13  ;;  %v6200_v55 = vld [vmem:[#allocation4 + $0x874] sm:$0xf0]  ;;  %v5801_v6 = vld [vmem:[#allocation4 + $0xaa8] sm:$0xf]  ;;  %v478_v9 = vor.u32 %v477_v10, %v474_v2  ;;  %v410_v2 = vshrl.u32 %v7540_v16, 16  ;;  %v3013_v10 = vpop.f32.mrf.mxu2  ;;  %v7586_v61 = vor.u32 %v5958_v36, %v4555_v25  ;;  %3341 = vmatpush.bf16.msra.mxu0 %v7568_v47 }
 0x14d   :  { %9315 = vst [vmem:[#allocation258_spill] sm:$0xff] %v7562_v7  ;;  %v6272_v32 = vld [vmem:[#allocation4 + $0xab4] sm:$0xf0]  ;;  %v527_v53 = vld [vmem:[%s8724_s0] sm:$0xfc]  ;;  %v7588_v4 = vor.u32 %v6200_v55, %v5513_v58  ;;  %3315 = vmatpush.bf16.msra.mxu2 %v7562_v7 }
 0x14e   :  { %9316 = vst [vmem:[#allocation259_spill] sm:$0xff] %v7568_v47  ;;  %v528_v54 = vld [vmem:[%s8724_s0 + $0x8] sm:$0xfc]  ;;  %v6240_v60 = vld [vmem:[#allocation4 + $0x9b4] sm:$0xf0]  ;;  %v479_v52 = vrot.slane %v478_v9, 4  ;;  %v7601_v25 = vor.u32 %v6272_v32, %v5801_v6  ;;  %3361 = vmatpush.bf16.msra.mxu1 %v7570_v12 }
 0x14f   :  { %9317 = vst [vmem:[#allocation260_spill] sm:$0xff] %v7570_v12  ;;  %v5673_v27 = vld [vmem:[#allocation4 + $0x9a8] sm:$0xf]  ;;  %v5954_v62 = vld [vmem:[#allocation4 + $0xcc] sm:$0xf]  ;;  %v536_v42 = vpack.c.bf16 %v528_v54, %v527_v53  ;;  %v7593_v53 = vrot.slane %v396_v11, 5  ;;  %v3014_v54 = vadd.f32 %v3013_v10, %v3000_v3  ;;  %3327 = vmatpush.bf16.msra.mxu3 %v7584_v24 }
 0x150   :  { %v4539_v19 = vld [vmem:[#allocation4 + $0xd8] sm:$0xf0]  ;;  %9318 = vst [vmem:[#allocation261_spill] sm:$0xff] %v7586_v61  ;;  %v5497_v1 = vld [vmem:[#allocation4 + $0x848] sm:$0xf]  ;;  %v484_v5 = vsel %vm6493_vm2, %v479_v52, %v7564_v34  ;;  %v412_v55 = vrot.slane %v410_v2, 4  ;;  %v7613_v6 = vor.u32 %v6240_v60, %v5673_v27  ;;  %3342 = vmatpush.bf16.msra.mxu0 %v7601_v25 }
 0x151   :  { %v365_v9 = vld [vmem:[%s8724_s0 + $0x70] sm:$0x1]  ;;  %v6196_v13 = vld [vmem:[#allocation4 + $0x854] sm:$0xf0]  ;;  %v5785_v18 = vld [vmem:[#allocation4 + $0xa88] sm:$0xf]  ;;  %v7603_v7 = vadd.f32 %v3027_v17, %v3014_v54  ;;  %507 = vrot.lane.b32.xlu0 %v484_v5, %s6403_s3  ;;  %v7615_v32 = vor.u32 %v5954_v62, %v4539_v19  ;;  %3316 = vmatpush.bf16.msra.mxu2 %v7588_v4 }
 0x152   :  { %v4379_v26 = vrot.slane %v536_v42, 9  ;;  %v371_v36 = vpack.c.bf16 %v365_v9, %v365_v9  ;;  %9319 = vst [vmem:[#allocation262_spill] sm:$0xff] %v7601_v25  ;;  %v6268_v58 = vld [vmem:[#allocation4 + $0xa94] sm:$0xf0]  ;;  %v5657_v11 = vld [vmem:[#allocation4 + $0x988] sm:$0xf]  ;;  %3368 = vmatpush.bf16.msrb.mxu1 %v7586_v61  ;;  %v413_v12 = vor.u32 %v412_v55, %v7593_v53  ;;  %v7619_v5 = vor.u32 %v6196_v13, %v5497_v1  ;;  %v7626_v61 = vpop.f32.mrf.mxu0 }
 0x153   :  { %v6236_v3 = vld [vmem:[#allocation4 + $0x994] sm:$0xf0]  ;;  %v5950_v10 = vld [vmem:[#allocation4 + $0xac] sm:$0xf]  ;;  %v9320_v52 = vrot.slane %v7421_v22, 5  ;;  %9321 = vst [vmem:[#allocation263_spill] sm:$0xff] %v7613_v6  ;;  %v7624_v27 = vor.u32 %v6268_v58, %v5785_v18  ;;  %3328 = vmatpush.bf16.msra.mxu3 %v7613_v6 }
 0x154   :  { %v416_v9 = vshll.u32 %v371_v36, 16  ;;  %9322 = vst [vmem:[#allocation264_spill] sm:$0xff] %v7615_v32  ;;  %v4523_v17 = vld [vmem:[#allocation4 + $0xb8] sm:$0xf0]  ;;  %v5481_v2 = vld [vmem:[#allocation4 + $0x828] sm:$0xf]  ;;  %v7628_v55 = vor.u32 %v6236_v3, %v5657_v11  ;;  %v7642_v3 = vpop.f32.mrf.mxu1 }
 0x155   :  { %v551_v42 = vsel %vm6702_vm6, %v4379_v26, %v9320_v52  ;;  %v6192_v54 = vld [vmem:[#allocation4 + $0x834] sm:$0xf0]  ;;  %9323 = vst [vmem:[#allocation265_spill] sm:$0xff] %v7619_v5  ;;  %v5769_v47 = vld [vmem:[#allocation4 + $0xa68] sm:$0xf]  ;;  %v495_v52 = vshrl.u32 %v7515_v41, 16  ;;  %v7635_v41 = vor.u32 %v5950_v10, %v4523_v17  ;;  %3317 = vmatpush.bf16.msra.mxu2 %v7619_v5  ;;  %3343 = vmatpush.bf16.msra.mxu0 %v7624_v27 }
 0x156   :  { %v6264_v26 = vld [vmem:[#allocation4 + $0xa74] sm:$0xf0]  ;;  %562 = vrot.lane.b32.xlu1 %v551_v42, %s6404_s14  ;;  %v418_v36 = vrot.slane %v416_v9, 5  ;;  %9324 = vst [vmem:[#allocation266_spill] sm:$0xff] %v7624_v27  ;;  %v5641_v60 = vld [vmem:[#allocation4 + $0x968] sm:$0xf]  ;;  %3369 = vmatpush.bf16.msrb.mxu1 %v7615_v32 }
 0x157   :  { %v6232_v62 = vld [vmem:[#allocation4 + $0x974] sm:$0xf0]  ;;  %v414_v19 = vrot.slane %v413_v12, 4  ;;  %9325 = vst [vmem:[#allocation267_spill] sm:$0xff] %v7626_v61  ;;  %v5946_v1 = vld [vmem:[#allocation4 + $0x8c] sm:$0xf]  ;;  %v7647_v61 = vor.u32 %v6192_v54, %v5481_v2  ;;  %3329 = vmatpush.bf16.msra.mxu3 %v7628_v55 }
 0x158   :  { %v450_v13 = vld [vmem:[%s8724_s0 + $0x88] sm:$0x1]  ;;  %v497_v42 = vrot.slane %v495_v52, 4  ;;  %9326 = vst [vmem:[#allocation268_spill] sm:$0xff] %v7635_v41  ;;  %v4507_v18 = vld [vmem:[#allocation4 + $0x98] sm:$0xf0]  ;;  %v7645_v52 = vpop.f32.mrf.mxu3  ;;  %v7656_v25 = vor.u32 %v6232_v62, %v5641_v60  ;;  %5873 = vmatmul.msk.bf16.vlgmr.msra.gmra.mxu1 %vm100_vm9, %v7019_v31 }
 0x159   :  { %v5465_v58 = vld [vmem:[#allocation4 + $0x808] sm:$0xf]  ;;  %v419_v12 = vsel %vm6493_vm2, %v414_v19, %v418_v36  ;;  %v456_v9 = vpack.c.bf16 %v450_v13, %v450_v13  ;;  %v442_v11 = vld [vmem:[%s8724_s0 + $0x18] sm:$0xfe]  ;;  %9327 = vst [vmem:[#allocation269_spill] sm:$0xff] %v7642_v3  ;;  %v7654_v19 = vor.u32 %v6264_v26, %v5769_v47  ;;  %3318 = vmatpush.bf16.msra.mxu2 %v7647_v61 }
 0x15a   :  { %9328 = vst [vmem:[#allocation270_spill] sm:$0xff] %v7645_v52  ;;  %v6188_v10 = vld [vmem:[#allocation4 + $0x814] sm:$0xf0]  ;;  %v5990_v17 = vld [vmem:[#allocation4 + $0x1ec] sm:$0xf]  ;;  %v498_v32 = vor.u32 %v497_v42, %v7564_v34  ;;  %426 = vrot.lane.b32.xlu0 %v419_v12, %s6402_s21  ;;  %3370 = vmatpush.bf16.msrb.mxu1 %v7635_v41  ;;  %v7661_v34 = vor.u32 %v5946_v1, %v4507_v18  ;;  %v3055_v41 = vpop.f32.mrf.mxu0 }
 0x15b   :  { %9329 = vst [vmem:[#allocation271_spill] sm:$0xff] %v7647_v61  ;;  %v443_v36 = vld [vmem:[%s8724_s0 + $0x20] sm:$0xfe]  ;;  %v4683_v13 = vld [vmem:[#allocation4 + $0x1f8] sm:$0xf0]  ;;  %v501_v6 = vshll.u32 %v456_v9, 16  ;;  %v7664_v9 = vor.u32 %v6188_v10, %v5465_v58  ;;  %3344 = vmatpush.bf16.msra.mxu0 %v7654_v19  ;;  %3330 = vmatpush.bf16.msra.mxu3 %v7656_v25 }
 0x15c   :  { %9330 = vst [vmem:[#allocation272_spill] sm:$0xff] %v7654_v19  ;;  %v5753_v3 = vld [vmem:[#allocation4 + $0xa48] sm:$0xf]  ;;  %v451_v5 = vpack.c.bf16 %v443_v36, %v442_v11  ;;  %v6260_v2 = vld [vmem:[#allocation4 + $0xa54] sm:$0xf0]  ;;  %v499_v52 = vrot.slane %v498_v32, 4  ;;  %v7666_v60 = vor.u32 %v5990_v17, %v4683_v13 }
 0x15d   :  { %9331 = vst [vmem:[#allocation273_spill] sm:$0xff] %v7656_v25  ;;  %v5625_v54 = vld [vmem:[#allocation4 + $0x948] sm:$0xf]  ;;  %v6228_v42 = vld [vmem:[#allocation4 + $0x954] sm:$0xf0]  ;;  %v503_v47 = vrot.slane %v501_v6, 5  ;;  %v7669_v32 = vor.u32 %v6260_v2, %v5753_v3  ;;  %3319 = vmatpush.bf16.msra.mxu2 %v7664_v9  ;;  %v3069_v25 = vpop.f32.mrf.mxu1 }
 0x15e   :  { %9332 = vst [vmem:[#allocation274_spill] sm:$0xff] %v7661_v34  ;;  %v458_v26 = vshrl.u32 %v451_v5, 16  ;;  %v461_v27 = vshll.u32 %v451_v5, 16  ;;  %v5942_v62 = vld [vmem:[#allocation4 + $0x6c] sm:$0xf]  ;;  %3371 = vmatpush.bf16.msrb.mxu1 %v7661_v34  ;;  %v7676_v17 = vor.u32 %v6228_v42, %v5625_v54 }
 0x15f   :  { %9333 = vst [vmem:[#allocation275_spill] sm:$0xff] %v7664_v9  ;;  %v4491_v11 = vld [vmem:[#allocation4 + $0x78] sm:$0xf0]  ;;  %v5986_v12 = vld [vmem:[#allocation4 + $0x1cc] sm:$0xf]  ;;  %v504_v6 = vsel %vm6493_vm2, %v499_v52, %v503_v47  ;;  %3345 = vmatpush.bf16.msra.mxu0 %v7669_v32 }
 0x160   :  { %9334 = vst [vmem:[#allocation276_spill] sm:$0xff] %v7666_v60  ;;  %v4667_v36 = vld [vmem:[#allocation4 + $0x1d8] sm:$0xf0]  ;;  %v5737_v1 = vld [vmem:[#allocation4 + $0xa28] sm:$0xf]  ;;  %v460_v18 = vrot.slane %v458_v26, 4  ;;  %511 = vrot.lane.b32.xlu1 %v504_v6, %s6403_s3  ;;  %v7682_v47 = vor.u32 %v5942_v62, %v4491_v11  ;;  %3320 = vmatmul.bf16.vlgmr.msra.gmra.mxu2 %v7011_v59 }
 0x161   :  { %9335 = vst [vmem:[#allocation277_spill] sm:$0xff] %v7669_v32  ;;  %v463_v5 = vrot.slane %v461_v27, 5  ;;  %v6256_v61 = vld [vmem:[#allocation4 + $0xa34] sm:$0xf0]  ;;  %v5609_v58 = vld [vmem:[#allocation4 + $0x928] sm:$0xf]  ;;  %v3041_v27 = vpop.f32.mrf.mxu3  ;;  %3382 = vmatpush.bf16.msrb.mxu2 %v7666_v60  ;;  %3331 = vmatpush.bf16.msra.mxu3 %v7676_v17 }
 0x162   :  { %v6224_v10 = vld [vmem:[#allocation4 + $0x934] sm:$0xf0]  ;;  %9336 = vst [vmem:[#allocation278_spill] sm:$0xff] %v7676_v17  ;;  %v5938_v3 = vld [vmem:[#allocation4 + $0x4c] sm:$0xf]  ;;  %v3056_v42 = vadd.f32 %v3055_v41, %v3041_v27  ;;  %v7706_v27 = vpop.f32.mrf.mxu2  ;;  %3372 = vmatpush.bf16.msrb.mxu1 %v7682_v47 }
 0x163   :  { %v4475_v13 = vld [vmem:[#allocation4 + $0x58] sm:$0xf0]  ;;  %v464_v2 = vor.u32 %v463_v5, %v460_v18  ;;  %v529_v52 = vld [vmem:[%s8724_s0 + $0x10] sm:$0xfc]  ;;  %9337 = vst [vmem:[#allocation279_spill] sm:$0xff] %v7682_v47  ;;  %v7689_v18 = vor.u32 %v5986_v12, %v4667_v36  ;;  %v7691_v5 = vor.u32 %v6256_v61, %v5737_v1  ;;  %v7701_v12 = vor.u32 %v6224_v10, %v5609_v58 }
 0x164   :  { %v5982_v26 = vld [vmem:[#allocation4 + $0x1ac] sm:$0xf]  ;;  %v4651_v6 = vld [vmem:[#allocation4 + $0x1b8] sm:$0xf0]  ;;  %v537_v34 = vpack.c.bf16 %v529_v52, %v529_v52  ;;  %v5721_v9 = vld [vmem:[#allocation4 + $0xa08] sm:$0xf]  ;;  %v3070_v1 = vadd.f32 %v3069_v25, %v3056_v42 }
 0x165   :  { %v465_v62 = vrot.slane %v464_v2, 4  ;;  %v533_v11 = vld [vmem:[%s8724_s0 + $0x60] sm:$0x3]  ;;  %v6252_v19 = vld [vmem:[#allocation4 + $0xa14] sm:$0xf0]  ;;  %9338 = vst [vmem:[#allocation280_spill] sm:$0xff] %v7701_v12  ;;  %3383 = vmatpush.bf16.msrb.mxu2 %v7689_v18  ;;  %3346 = vmatpush.bf16.msra.mxu0 %v7691_v5 }
 0x166   :  { %v4380_v52 = vrot.slane %v537_v34, 9  ;;  %v534_v41 = vld [vmem:[%s8724_s0 + $0x68] sm:$0x3]  ;;  %v6054_v61 = vld [vmem:[#allocation4 + $0x3ec] sm:$0xf]  ;;  %9339 = vst [vmem:[#allocation281_spill] sm:$0xff] %v7706_v27  ;;  %v7709_v34 = vor.u32 %v5938_v3, %v4475_v13  ;;  %v7720_v42 = vor.u32 %v6252_v19, %v5721_v9  ;;  %3332 = vmatpush.bf16.msra.mxu3 %v7701_v12 }
 0x167   :  { %v4939_v36 = vld [vmem:[#allocation4 + $0x3f8] sm:$0xf0]  ;;  %v470_v2 = vsel %vm6493_vm2, %v465_v62, %v7474_v29  ;;  %v5593_v54 = vld [vmem:[#allocation4 + $0x908] sm:$0xf]  ;;  %v6220_v32 = vld [vmem:[#allocation4 + $0x914] sm:$0xf0]  ;;  %v540_v10 = vpack.c.bf16 %v534_v41, %v533_v11  ;;  %v7718_v29 = vor.u32 %v5982_v26, %v4651_v6 }
 0x168   :  { %9340 = vst [vmem:[#allocation282_spill] sm:$0xff] %v7709_v34  ;;  %v5934_v60 = vld [vmem:[#allocation4 + $0x2c] sm:$0xf]  ;;  %505 = vrot.lane.b32.xlu2 %v470_v2, %s6403_s3  ;;  %v9341_v58 = vrot.slane %v7540_v16, 5  ;;  %v4459_v3 = vld [vmem:[#allocation4 + $0x38] sm:$0xf0]  ;;  %v7722_v27 = vor.u32 %v6054_v61, %v4939_v36  ;;  %v7726_v11 = vor.u32 %v6220_v32, %v5593_v54  ;;  %3373 = vmatpush.bf16.msrb.mxu1 %v7709_v34 }
 0x169   :  { %9342 = vst [vmem:[#allocation283_spill] sm:$0xff] %v7718_v29  ;;  %v6022_v13 = vld [vmem:[#allocation4 + $0x2ec] sm:$0xf]  ;;  %v4811_v62 = vld [vmem:[#allocation4 + $0x2f8] sm:$0xf0]  ;;  %v7729_v19 = vor.u32 %v5934_v60, %v4459_v3  ;;  %v9347_v61 = vrot.slane %v7421_v22, 5  ;;  %3384 = vmatpush.bf16.msrb.mxu2 %v7718_v29  ;;  %3347 = vmatpush.bf16.msra.mxu0 %v7720_v42 }
 0x16a   :  { %v555_v25 = vsel %vm6702_vm6, %v4380_v52, %v9341_v58  ;;  %9343 = vst [vmem:[#allocation284_spill] sm:$0xff] %v7720_v42  ;;  %v5978_v2 = vld [vmem:[#allocation4 + $0x18c] sm:$0xf]  ;;  %v4635_v47 = vld [vmem:[#allocation4 + $0x198] sm:$0xf0]  ;;  %v7731_v9 = vor.u32 %v6022_v13, %v4811_v62  ;;  %v557_v58 = vrot.slane %v540_v10, 5  ;;  %3333 = vmatpush.bf16.msra.mxu3 %v7726_v11 }
 0x16b   :  { %v5930_v17 = vld [vmem:[#allocation4 + $0xc] sm:$0xf]  ;;  %564 = vrot.lane.b32.xlu1 %v555_v25, %s6404_s14  ;;  %9344 = vst [vmem:[#allocation285_spill] sm:$0xff] %v7726_v11  ;;  %v4443_v52 = vld [vmem:[#allocation4 + $0x18] sm:$0xf0]  ;;  %v556_v36 = vrot.slane %v9347_v61, 4  ;;  %v7740_v32 = vor.u32 %v5978_v2, %v4635_v47  ;;  %v3083_v47 = vpop.f32.mrf.mxu2 }
 0x16c   :  { %v6050_v41 = vld [vmem:[#allocation4 + $0x3cc] sm:$0xf]  ;;  %v4923_v26 = vld [vmem:[#allocation4 + $0x3d8] sm:$0xf0]  ;;  %9345 = vst [vmem:[#allocation286_spill] sm:$0xff] %v7729_v19  ;;  %v7746_v61 = vor.u32 %v5930_v17, %v4443_v52  ;;  %3374 = vmatpush.bf16.msrb.mxu1 %v7729_v19  ;;  %v7756_v11 = vadd.f32 %v3083_v47, %v3070_v1  ;;  %3348 = vmatmul.bf16.vlgmr.msra.gmra.mxu0 %v7015_v23 }
 0x16d   :  { %9346 = vst [vmem:[#allocation287_spill] sm:$0xff] %v7731_v9  ;;  %v6018_v6 = vld [vmem:[#allocation4 + $0x2cc] sm:$0xf]  ;;  %v359_v25 = vld [vmem:[%s8724_s0 + $0x10] sm:$0xfe]  ;;  %3410 = vmatpush.bf16.msrb.mxu0 %v7722_v27  ;;  %v7743_v62 = vor.u32 %v6050_v41, %v4923_v26  ;;  %v558_v26 = vsel %vm6702_vm6, %v556_v36, %v557_v58  ;;  %3385 = vmatpush.bf16.msrb.mxu2 %v7740_v32 }
 0x16e   :  { %v4795_v54 = vld [vmem:[#allocation4 + $0x2d8] sm:$0xf0]  ;;  %v6086_v60 = vld [vmem:[#allocation4 + $0x4ec] sm:$0xf]  ;;  %v367_v13 = vpack.c.bf16 %v359_v25, %v359_v25  ;;  %3396 = vmatpush.bf16.msrb.mxu3 %v7731_v9 }
 0x16f   :  { %v5067_v3 = vld [vmem:[#allocation4 + $0x4f8] sm:$0xf0]  ;;  %v5974_v22 = vld [vmem:[#allocation4 + $0x16c] sm:$0xf]  ;;  %v7750_v2 = vor.u32 %v6018_v6, %v4795_v54  ;;  %3334 = vmatmul.bf16.vlgmr.msra.gmra.mxu3 %v7007_v40 }
 0x170   :  { %v4619_v10 = vld [vmem:[#allocation4 + $0x178] sm:$0xf0]  ;;  %v6046_v34 = vld [vmem:[#allocation4 + $0x3ac] sm:$0xf]  ;;  %v387_v12 = vshrl.u32 %v367_v13, 16  ;;  %v390_v42 = vshll.u32 %v367_v13, 16  ;;  %v7752_v25 = vor.u32 %v6086_v60, %v5067_v3  ;;  %566 = vrot.lane.b32.xlu2 %v558_v26, %s6404_s14  ;;  %3375 = vmatpush.bf16.msrb.mxu1 %v7746_v61 }
 0x171   :  { %v4907_v29 = vld [vmem:[#allocation4 + $0x3b8] sm:$0xf0]  ;;  %9348 = vst [vmem:[#allocation288_spill] sm:$0xff] %v7750_v2  ;;  %v6014_v41 = vld [vmem:[#allocation4 + $0x2ac] sm:$0xf]  ;;  %v7759_v17 = vor.u32 %v5974_v22, %v4619_v10  ;;  %3411 = vmatpush.bf16.msrb.mxu0 %v7743_v62 }
 0x172   :  { %v4779_v52 = vld [vmem:[#allocation4 + $0x2b8] sm:$0xf0]  ;;  %v6082_v13 = vld [vmem:[#allocation4 + $0x4cc] sm:$0xf]  ;;  %v389_v9 = vrot.slane %v387_v12, 4  ;;  %v392_v19 = vrot.slane %v390_v42, 5  ;;  %v7764_v6 = vor.u32 %v6046_v34, %v4907_v29  ;;  %3397 = vmatpush.bf16.msrb.mxu3 %v7750_v2 }
 0x173   :  { %9349 = vst [vmem:[#allocation289_spill] sm:$0xff] %v7759_v17  ;;  %v5051_v54 = vld [vmem:[#allocation4 + $0x4d8] sm:$0xf0]  ;;  %v5970_v36 = vld [vmem:[#allocation4 + $0x14c] sm:$0xf]  ;;  %v7769_v12 = vor.u32 %v6014_v41, %v4779_v52  ;;  %3386 = vmatpush.bf16.msrb.mxu2 %v7759_v17  ;;  %3376 = vmatmul.bf16.vlgmr.msrb.gmra.mxu1 %v6747_v21 }
 0x174   :  { %9350 = vst [vmem:[#allocation290_spill] sm:$0xff] %v7764_v6  ;;  %v4603_v1 = vld [vmem:[#allocation4 + $0x158] sm:$0xf0]  ;;  %v6042_v58 = vld [vmem:[#allocation4 + $0x38c] sm:$0xf]  ;;  %v393_v3 = vor.u32 %v392_v19, %v389_v9  ;;  %3424 = vmatpush.bf16.msra.mxu1 %v7752_v25  ;;  %v7773_v34 = vor.u32 %v6082_v13, %v5051_v54 }
 0x175   :  { %v4891_v60 = vld [vmem:[#allocation4 + $0x398] sm:$0xf0]  ;;  %9351 = vst [vmem:[#allocation291_spill] sm:$0xff] %v7769_v12  ;;  %v6010_v42 = vld [vmem:[#allocation4 + $0x28c] sm:$0xf]  ;;  %v7775_v29 = vor.u32 %v5970_v36, %v4603_v1  ;;  %3412 = vmatpush.bf16.msrb.mxu0 %v7764_v6 }
 0x176   :  { %9352 = vst [vmem:[#allocation292_spill] sm:$0xff] %v7773_v34  ;;  %v4763_v22 = vld [vmem:[#allocation4 + $0x298] sm:$0xf0]  ;;  %v6078_v10 = vld [vmem:[#allocation4 + $0x4ac] sm:$0xf]  ;;  %v394_v47 = vrot.slane %v393_v3, 4  ;;  %v7778_v19 = vor.u32 %v6042_v58, %v4891_v60  ;;  %3398 = vmatpush.bf16.msrb.mxu3 %v7769_v12  ;;  %v7790_v58 = vpop.f32.mrf.mxu3 }
 0x177   :  { %9353 = vst [vmem:[#allocation293_spill] sm:$0xff] %v7775_v29  ;;  %v5035_v9 = vld [vmem:[#allocation4 + $0x4b8] sm:$0xf0]  ;;  %v5966_v26 = vld [vmem:[#allocation4 + $0x12c] sm:$0xf]  ;;  %v7782_v13 = vor.u32 %v6010_v42, %v4763_v22  ;;  %3387 = vmatpush.bf16.msrb.mxu2 %v7775_v29 }
 0x178   :  { %v4587_v41 = vld [vmem:[#allocation4 + $0x138] sm:$0xf0]  ;;  %v6038_v52 = vld [vmem:[#allocation4 + $0x36c] sm:$0xf]  ;;  %v399_v36 = vsel %vm6493_vm2, %v394_v47, %v7593_v53  ;;  %v535_v1 = vld [vmem:[%s8724_s0 + $0x70] sm:$0x3]  ;;  %3425 = vmatpush.bf16.msra.mxu1 %v7773_v34  ;;  %v7794_v21 = vor.u32 %v6078_v10, %v5035_v9 }
 0x179   :  { %v4875_v2 = vld [vmem:[#allocation4 + $0x378] sm:$0xf0]  ;;  %9354 = vst [vmem:[#allocation294_spill] sm:$0xff] %v7782_v13  ;;  %v6006_v54 = vld [vmem:[#allocation4 + $0x26c] sm:$0xf]  ;;  %v7796_v60 = vor.u32 %v5966_v26, %v4587_v41  ;;  %v541_v12 = vpack.c.bf16 %v535_v1, %v535_v1  ;;  %3413 = vmatpush.bf16.msrb.mxu0 %v7778_v19  ;;  %422 = vrot.lane.b32.xlu2 %v399_v36, %s6402_s21  ;;  %v9360_v9 = vrot.slane %v7540_v16, 5 }
 0x17a   :  { %9355 = vst [vmem:[#allocation295_spill] sm:$0xff] %v7790_v58  ;;  %v4747_v3 = vld [vmem:[#allocation4 + $0x278] sm:$0xf0]  ;;  %v6074_v42 = vld [vmem:[#allocation4 + $0x48c] sm:$0xf]  ;;  %v7799_v39 = vor.u32 %v6038_v52, %v4875_v2  ;;  %v7801_v58 = vpop.f32.mrf.mxu0  ;;  %3399 = vmatpush.bf16.msrb.mxu3 %v7782_v13  ;;  %v7809_v2 = vpop.f32.mrf.mxu1 }
 0x17b   :  { %9356 = vst [vmem:[#allocation296_spill] sm:$0xff] %v7794_v21  ;;  %v5019_v22 = vld [vmem:[#allocation4 + $0x498] sm:$0xf0]  ;;  %v5962_v53 = vld [vmem:[#allocation4 + $0x10c] sm:$0xf]  ;;  %v7805_v10 = vor.u32 %v6006_v54, %v4747_v3  ;;  %v559_v26 = vrot.slane %v9360_v9, 4  ;;  %3388 = vmatpush.bf16.msrb.mxu2 %v7796_v60 }
 0x17c   :  { %9357 = vst [vmem:[#allocation297_spill] sm:$0xff] %v7799_v39  ;;  %v4571_v47 = vld [vmem:[#allocation4 + $0x118] sm:$0xf0]  ;;  %v6118_v6 = vld [vmem:[#allocation4 + $0x5ec] sm:$0xf]  ;;  %v560_v41 = vrot.slane %v541_v12, 5  ;;  %3426 = vmatpush.bf16.msra.mxu1 %v7794_v21  ;;  %v7813_v52 = vor.u32 %v6074_v42, %v5019_v22 }
 0x17d   :  { %9358 = vst [vmem:[#allocation298_spill] sm:$0xff] %v7801_v58  ;;  %v5195_v34 = vld [vmem:[#allocation4 + $0x5f8] sm:$0xf0]  ;;  %v6034_v17 = vld [vmem:[#allocation4 + $0x34c] sm:$0xf]  ;;  %v7815_v1 = vor.u32 %v5962_v53, %v4571_v47  ;;  %3414 = vmatpush.bf16.msrb.mxu0 %v7799_v39 }
 0x17e   :  { %v4859_v29 = vld [vmem:[#allocation4 + $0x358] sm:$0xf0]  ;;  %9359 = vst [vmem:[#allocation299_spill] sm:$0xff] %v7805_v10  ;;  %v6002_v58 = vld [vmem:[#allocation4 + $0x24c] sm:$0xf]  ;;  %v7818_v54 = vor.u32 %v6118_v6, %v5195_v34  ;;  %3400 = vmatpush.bf16.msrb.mxu3 %v7805_v10  ;;  %v561_v22 = vsel %vm6702_vm6, %v559_v26, %v560_v41  ;;  %v3097_v53 = vpop.f32.mrf.mxu3 }
 0x17f   :  { %9361 = vst [vmem:[#allocation300_spill] sm:$0xff] %v7809_v2  ;;  %v4731_v36 = vld [vmem:[#allocation4 + $0x258] sm:$0xf0]  ;;  %v7820_v3 = vor.u32 %v6034_v17, %v4859_v29  ;;  %v6070_v16 = vld [vmem:[#allocation4 + $0x46c] sm:$0xf]  ;;  %3389 = vmatpush.bf16.msrb.mxu2 %v7815_v1  ;;  %v3098_v29 = vadd.f32 %v3097_v53, %v7756_v11 }
 0x180   :  { %9362 = vst [vmem:[#allocation301_spill] sm:$0xff] %v7813_v52  ;;  %v5003_v12 = vld [vmem:[#allocation4 + $0x478] sm:$0xf0]  ;;  %v6114_v9 = vld [vmem:[#allocation4 + $0x5cc] sm:$0xf]  ;;  %v7823_v42 = vor.u32 %v6002_v58, %v4731_v36  ;;  %3427 = vmatpush.bf16.msra.mxu1 %v7813_v52 }
 0x181   :  { %9363 = vst [vmem:[#allocation302_spill] sm:$0xff] %v7815_v1  ;;  %v5179_v2 = vld [vmem:[#allocation4 + $0x5d8] sm:$0xf0]  ;;  %v6030_v13 = vld [vmem:[#allocation4 + $0x32c] sm:$0xf]  ;;  %v7829_v17 = vor.u32 %v6070_v16, %v5003_v12  ;;  %3415 = vmatpush.bf16.msrb.mxu0 %v7820_v3  ;;  %568 = vrot.lane.b32.xlu2 %v561_v22, %s6404_s14 }
 0x182   :  { %9364 = vst [vmem:[#allocation303_spill] sm:$0xff] %v7818_v54  ;;  %v4843_v21 = vld [vmem:[#allocation4 + $0x338] sm:$0xf0]  ;;  %v5998_v6 = vld [vmem:[#allocation4 + $0x22c] sm:$0xf]  ;;  %v7834_v58 = vor.u32 %v6114_v9, %v5179_v2  ;;  %v3111_v52 = vpop.f32.mrf.mxu0  ;;  %3401 = vmatpush.bf16.msrb.mxu3 %v7823_v42  ;;  %3390 = vmatmul.bf16.vlgmr.msrb.gmra.mxu2 %v6750_v0 }
 0x183   :  { %9365 = vst [vmem:[#allocation304_spill] sm:$0xff] %v7820_v3  ;;  %v4715_v34 = vld [vmem:[#allocation4 + $0x238] sm:$0xf0]  ;;  %3438 = vmatpush.bf16.msra.mxu2 %v7818_v54  ;;  %v7836_v47 = vor.u32 %v6030_v13, %v4843_v21  ;;  %v6066_v26 = vld [vmem:[#allocation4 + $0x44c] sm:$0xf]  ;;  %v3112_v12 = vadd.f32 %v3111_v52, %v3098_v29  ;;  %v7843_v13 = vpop.f32.mrf.mxu2  ;;  %v3125_v21 = vpop.f32.mrf.mxu1 }
 0x184   :  { %9366 = vst [vmem:[#allocation305_spill] sm:$0xff] %v7823_v42  ;;  %v4987_v41 = vld [vmem:[#allocation4 + $0x458] sm:$0xf0]  ;;  %v6110_v36 = vld [vmem:[#allocation4 + $0x5ac] sm:$0xf]  ;;  %v7840_v11 = vor.u32 %v5998_v6, %v4715_v34  ;;  %3428 = vmatpush.bf16.msra.mxu1 %v7829_v17 }
 0x185   :  { %9367 = vst [vmem:[#allocation306_spill] sm:$0xff] %v7829_v17  ;;  %v5163_v10 = vld [vmem:[#allocation4 + $0x5b8] sm:$0xf0]  ;;  %v6026_v1 = vld [vmem:[#allocation4 + $0x30c] sm:$0xf]  ;;  %v7846_v2 = vor.u32 %v6066_v26, %v4987_v41  ;;  %3416 = vmatpush.bf16.msrb.mxu0 %v7836_v47  ;;  %v3126_v29 = vadd.f32 %v3125_v21, %v3112_v12 }
 0x186   :  { %9368 = vst [vmem:[#allocation307_spill] sm:$0xff] %v7834_v58  ;;  %v4827_v16 = vld [vmem:[#allocation4 + $0x318] sm:$0xf0]  ;;  %v6182_v53 = vld [vmem:[#allocation4 + $0x7ec] sm:$0xf]  ;;  %v7850_v52 = vor.u32 %v6110_v36, %v5163_v10  ;;  %3402 = vmatpush.bf16.msrb.mxu3 %v7840_v11 }
 0x187   :  { %v5451_v3 = vld [vmem:[#allocation4 + $0x7f8] sm:$0xf0]  ;;  %9369 = vst [vmem:[#allocation308_spill] sm:$0xff] %v7843_v13  ;;  %v5994_v9 = vld [vmem:[#allocation4 + $0x20c] sm:$0xf]  ;;  %3439 = vmatpush.bf16.msra.mxu2 %v7834_v58  ;;  %v7852_v22 = vor.u32 %v6026_v1, %v4827_v16 }
 0x188   :  { %v4699_v54 = vld [vmem:[#allocation4 + $0x218] sm:$0xf0]  ;;  %v6062_v39 = vld [vmem:[#allocation4 + $0x42c] sm:$0xf]  ;;  %9370 = vst [vmem:[#allocation309_spill] sm:$0xff] %v7850_v52  ;;  %v7854_v13 = vor.u32 %v6182_v53, %v5451_v3  ;;  %3429 = vmatpush.bf16.msra.mxu1 %v7846_v2 }
 0x189   :  { %9371 = vst [vmem:[#allocation310_spill] sm:$0xff] %v7852_v22  ;;  %v4971_v6 = vld [vmem:[#allocation4 + $0x438] sm:$0xf0]  ;;  %v6150_v0 = vld [vmem:[#allocation4 + $0x6ec] sm:$0xf]  ;;  %v7857_v41 = vor.u32 %v5994_v9, %v4699_v54  ;;  %3417 = vmatpush.bf16.msrb.mxu0 %v7852_v22 }
 0x18a   :  { %v5323_v34 = vld [vmem:[#allocation4 + $0x6f8] sm:$0xf0]  ;;  %9372 = vst [vmem:[#allocation311_spill] sm:$0xff] %v7854_v13  ;;  %v6106_v17 = vld [vmem:[#allocation4 + $0x58c] sm:$0xf]  ;;  %v7860_v10 = vor.u32 %v6062_v39, %v4971_v6 }
 0x18b   :  { %v5147_v26 = vld [vmem:[#allocation4 + $0x598] sm:$0xf0]  ;;  %9373 = vst [vmem:[#allocation312_spill] sm:$0xff] %v7857_v41  ;;  %v6178_v42 = vld [vmem:[#allocation4 + $0x7cc] sm:$0xf]  ;;  %v7862_v1 = vor.u32 %v6150_v0, %v5323_v34  ;;  %3440 = vmatpush.bf16.msra.mxu2 %v7850_v52  ;;  %3403 = vmatpush.bf16.msrb.mxu3 %v7857_v41 }
 0x18c   :  { %v5435_v58 = vld [vmem:[#allocation4 + $0x7d8] sm:$0xf0]  ;;  %9374 = vst [vmem:[#allocation313_spill] sm:$0xff] %v7860_v10  ;;  %v6058_v36 = vld [vmem:[#allocation4 + $0x40c] sm:$0xf]  ;;  %v7866_v3 = vor.u32 %v6106_v17, %v5147_v26  ;;  %3430 = vmatpush.bf16.msra.mxu1 %v7860_v10  ;;  %v3139_v17 = vpop.f32.mrf.mxu2  ;;  %3418 = vmatmul.bf16.vlgmr.msrb.gmra.mxu0 %v6895_v30 }
 0x18d   :  { %v4955_v16 = vld [vmem:[#allocation4 + $0x418] sm:$0xf0]  ;;  %v6146_v12 = vld [vmem:[#allocation4 + $0x6cc] sm:$0xf]  ;;  %3466 = vmatpush.bf16.msra.mxu0 %v7854_v13  ;;  %v7869_v21 = vor.u32 %v6178_v42, %v5435_v58  ;;  %v7878_v52 = vadd.f32 %v3139_v17, %v3126_v29 }
 0x18e   :  { %9375 = vst [vmem:[#allocation314_spill] sm:$0xff] %v7866_v3  ;;  %v5307_v53 = vld [vmem:[#allocation4 + $0x6d8] sm:$0xf0]  ;;  %v6214_v54 = vld [vmem:[#allocation4 + $0x8ec] sm:$0xf]  ;;  %v7874_v26 = vor.u32 %v6058_v36, %v4955_v16  ;;  %3404 = vmatmul.bf16.vlgmr.msrb.gmra.mxu3 %v6893_v43 }
 0x18f   :  { %9376 = vst [vmem:[#allocation315_spill] sm:$0xff] %v7869_v21  ;;  %v5579_v9 = vld [vmem:[#allocation4 + $0x8f8] sm:$0xf0]  ;;  %v6102_v39 = vld [vmem:[#allocation4 + $0x56c] sm:$0xf]  ;;  %3452 = vmatpush.bf16.msra.mxu3 %v7862_v1  ;;  %v7876_v22 = vor.u32 %v6146_v12, %v5307_v53  ;;  %3441 = vmatpush.bf16.msra.mxu2 %v7866_v3 }
 0x190   :  { %v5131_v6 = vld [vmem:[#allocation4 + $0x578] sm:$0xf0]  ;;  %v6174_v0 = vld [vmem:[#allocation4 + $0x7ac] sm:$0xf]  ;;  %9377 = vst [vmem:[#allocation316_spill] sm:$0xff] %v7874_v26  ;;  %v7882_v42 = vor.u32 %v6214_v54, %v5579_v9  ;;  %3431 = vmatpush.bf16.msra.mxu1 %v7874_v26 }
 0x191   :  { %v5419_v34 = vld [vmem:[#allocation4 + $0x7b8] sm:$0xf0]  ;;  %9378 = vst [vmem:[#allocation317_spill] sm:$0xff] %v7876_v22  ;;  %v7884_v58 = vor.u32 %v6102_v39, %v5131_v6  ;;  %v6142_v41 = vld [vmem:[#allocation4 + $0x6ac] sm:$0xf]  ;;  %3467 = vmatpush.bf16.msra.mxu0 %v7869_v21 }
 0x192   :  { %9379 = vst [vmem:[#allocation318_spill] sm:$0xff] %v7882_v42  ;;  %v5291_v13 = vld [vmem:[#allocation4 + $0x6b8] sm:$0xf0]  ;;  %v6210_v10 = vld [vmem:[#allocation4 + $0x8cc] sm:$0xf]  ;;  %v7888_v36 = vor.u32 %v6174_v0, %v5419_v34 }
 0x193   :  { %9380 = vst [vmem:[#allocation319_spill] sm:$0xff] %v7884_v58  ;;  %v5563_v16 = vld [vmem:[#allocation4 + $0x8d8] sm:$0xf0]  ;;  %v6098_v29 = vld [vmem:[#allocation4 + $0x54c] sm:$0xf]  ;;  %3453 = vmatpush.bf16.msra.mxu3 %v7876_v22  ;;  %v7892_v54 = vor.u32 %v6142_v41, %v5291_v13  ;;  %3442 = vmatpush.bf16.msra.mxu2 %v7884_v58 }
 0x194   :  { %9381 = vst [vmem:[#allocation320_spill] sm:$0xff] %v7888_v36  ;;  %v5115_v12 = vld [vmem:[#allocation4 + $0x558] sm:$0xf0]  ;;  %v6170_v53 = vld [vmem:[#allocation4 + $0x78c] sm:$0xf]  ;;  %3480 = vmatpush.bf16.msrb.mxu1 %v7882_v42  ;;  %v7896_v43 = vor.u32 %v6210_v10, %v5563_v16  ;;  %v7920_v42 = vpop.f32.mrf.mxu1 }
 0x195   :  { %v5403_v30 = vld [vmem:[#allocation4 + $0x798] sm:$0xf0]  ;;  %9382 = vst [vmem:[#allocation321_spill] sm:$0xff] %v7892_v54  ;;  %v7898_v9 = vor.u32 %v6098_v29, %v5115_v12  ;;  %v6138_v39 = vld [vmem:[#allocation4 + $0x68c] sm:$0xf]  ;;  %3468 = vmatpush.bf16.msra.mxu0 %v7888_v36  ;;  %3432 = vmatmul.bf16.vlgmr.msra.gmra.mxu1 %v6951_v33  ;;  %v7907_v29 = vpop.f32.mrf.mxu0  ;;  %v7909_v12 = vpop.f32.mrf.mxu3 }
 0x196   :  { %9383 = vst [vmem:[#allocation322_spill] sm:$0xff] %v7896_v43  ;;  %v5275_v6 = vld [vmem:[#allocation4 + $0x698] sm:$0xf0]  ;;  %v6206_v0 = vld [vmem:[#allocation4 + $0x8ac] sm:$0xf]  ;;  %v7901_v34 = vor.u32 %v6170_v53, %v5403_v30 }
 0x197   :  { %9384 = vst [vmem:[#allocation323_spill] sm:$0xff] %v7898_v9  ;;  %v5547_v17 = vld [vmem:[#allocation4 + $0x8b8] sm:$0xf0]  ;;  %v6094_v26 = vld [vmem:[#allocation4 + $0x52c] sm:$0xf]  ;;  %3454 = vmatpush.bf16.msra.mxu3 %v7892_v54  ;;  %v7905_v10 = vor.u32 %v6138_v39, %v5275_v6  ;;  %3443 = vmatpush.bf16.msra.mxu2 %v7898_v9 }
 0x198   :  { %9385 = vst [vmem:[#allocation324_spill] sm:$0xff] %v7901_v34  ;;  %v5099_v22 = vld [vmem:[#allocation4 + $0x538] sm:$0xf0]  ;;  %v6166_v13 = vld [vmem:[#allocation4 + $0x76c] sm:$0xf]  ;;  %3481 = vmatpush.bf16.msrb.mxu1 %v7896_v43  ;;  %v7913_v53 = vor.u32 %v6206_v0, %v5547_v17 }
 0x199   :  { %v5387_v41 = vld [vmem:[#allocation4 + $0x778] sm:$0xf0]  ;;  %9386 = vst [vmem:[#allocation325_spill] sm:$0xff] %v7905_v10  ;;  %v6134_v16 = vld [vmem:[#allocation4 + $0x66c] sm:$0xf]  ;;  %v7915_v30 = vor.u32 %v6094_v26, %v5099_v22  ;;  %3469 = vmatpush.bf16.msra.mxu0 %v7901_v34  ;;  %v7925_v22 = vpop.f32.mrf.mxu2 }
 0x19a   :  { %9387 = vst [vmem:[#allocation326_spill] sm:$0xff] %v7907_v29  ;;  %v5259_v33 = vld [vmem:[#allocation4 + $0x678] sm:$0xf0]  ;;  %v6202_v36 = vld [vmem:[#allocation4 + $0x88c] sm:$0xf]  ;;  %v7918_v39 = vor.u32 %v6166_v13, %v5387_v41 }
 0x19b   :  { %9388 = vst [vmem:[#allocation327_spill] sm:$0xff] %v7909_v12  ;;  %v5531_v58 = vld [vmem:[#allocation4 + $0x898] sm:$0xf0]  ;;  %v6090_v6 = vld [vmem:[#allocation4 + $0x50c] sm:$0xf]  ;;  %3455 = vmatpush.bf16.msra.mxu3 %v7905_v10  ;;  %v7923_v0 = vor.u32 %v6134_v16, %v5259_v33  ;;  %3444 = vmatpush.bf16.msra.mxu2 %v7915_v30 }
 0x19c   :  { %9389 = vst [vmem:[#allocation328_spill] sm:$0xff] %v7913_v53  ;;  %v5083_v54 = vld [vmem:[#allocation4 + $0x518] sm:$0xf0]  ;;  %v6246_v29 = vld [vmem:[#allocation4 + $0x9ec] sm:$0xf]  ;;  %3482 = vmatpush.bf16.msrb.mxu1 %v7913_v53  ;;  %v7929_v26 = vor.u32 %v6202_v36, %v5531_v58 }
 0x19d   :  { %9390 = vst [vmem:[#allocation329_spill] sm:$0xff] %v7915_v30  ;;  %v5707_v12 = vld [vmem:[#allocation4 + $0x9f8] sm:$0xf0]  ;;  %v6162_v43 = vld [vmem:[#allocation4 + $0x74c] sm:$0xf]  ;;  %v7931_v17 = vor.u32 %v6090_v6, %v5083_v54  ;;  %3470 = vmatpush.bf16.msra.mxu0 %v7918_v39  ;;  %v3153_v36 = vpop.f32.mrf.mxu3  ;;  %v3167_v54 = vpop.f32.mrf.mxu0 }
 0x19e   :  { %9391 = vst [vmem:[#allocation330_spill] sm:$0xff] %v7918_v39  ;;  %v5371_v21 = vld [vmem:[#allocation4 + $0x758] sm:$0xf0]  ;;  %v6130_v13 = vld [vmem:[#allocation4 + $0x64c] sm:$0xf]  ;;  %v3181_v39 = vpop.f32.mrf.mxu1 }
 0x19f   :  { %9392 = vst [vmem:[#allocation331_spill] sm:$0xff] %v7920_v42  ;;  %v5243_v41 = vld [vmem:[#allocation4 + $0x658] sm:$0xf0]  ;;  %v7934_v42 = vor.u32 %v6246_v29, %v5707_v12  ;;  %v7936_v34 = vor.u32 %v6162_v43, %v5371_v21  ;;  %v6198_v16 = vld [vmem:[#allocation4 + $0x86c] sm:$0xf]  ;;  %3456 = vmatpush.bf16.msra.mxu3 %v7923_v0  ;;  %3445 = vmatpush.bf16.msra.mxu2 %v7931_v17 }
 0x1a0   :  { %9393 = vst [vmem:[#allocation332_spill] sm:$0xff] %v7923_v0  ;;  %v5515_v33 = vld [vmem:[#allocation4 + $0x878] sm:$0xf0]  ;;  %v6242_v10 = vld [vmem:[#allocation4 + $0x9cc] sm:$0xf]  ;;  %v7939_v58 = vor.u32 %v6130_v13, %v5243_v41  ;;  %3483 = vmatpush.bf16.msrb.mxu1 %v7929_v26  ;;  %v3154_v12 = vadd.f32 %v3153_v36, %v7878_v52 }
 0x1a1   :  { %9394 = vst [vmem:[#allocation333_spill] sm:$0xff] %v7925_v22  ;;  %v5691_v22 = vld [vmem:[#allocation4 + $0x9d8] sm:$0xf0]  ;;  %v6158_v9 = vld [vmem:[#allocation4 + $0x72c] sm:$0xf]  ;;  %v7943_v29 = vor.u32 %v6198_v16, %v5515_v33  ;;  %3471 = vmatpush.bf16.msra.mxu0 %v7936_v34 }
 0x1a2   :  { %9395 = vst [vmem:[#allocation334_spill] sm:$0xff] %v7929_v26  ;;  %v5355_v53 = vld [vmem:[#allocation4 + $0x738] sm:$0xf0]  ;;  %v6126_v21 = vld [vmem:[#allocation4 + $0x62c] sm:$0xf]  ;;  %v7948_v6 = vor.u32 %v6242_v10, %v5691_v22  ;;  %v3168_v33 = vadd.f32 %v3167_v54, %v3154_v12  ;;  %3446 = vmatmul.bf16.vlgmr.msra.gmra.mxu2 %v6953_v49 }
 0x1a3   :  { %9396 = vst [vmem:[#allocation335_spill] sm:$0xff] %v7931_v17  ;;  %v5227_v43 = vld [vmem:[#allocation4 + $0x638] sm:$0xf0]  ;;  %3494 = vmatpush.bf16.msrb.mxu2 %v7934_v42  ;;  %v7950_v13 = vor.u32 %v6158_v9, %v5355_v53  ;;  %v6194_v41 = vld [vmem:[#allocation4 + $0x84c] sm:$0xf]  ;;  %3457 = vmatpush.bf16.msra.mxu3 %v7939_v58  ;;  %v3195_v9 = vpop.f32.mrf.mxu2 }
 0x1a4   :  { %9397 = vst [vmem:[#allocation336_spill] sm:$0xff] %v7934_v42  ;;  %v5499_v26 = vld [vmem:[#allocation4 + $0x858] sm:$0xf0]  ;;  %v6238_v0 = vld [vmem:[#allocation4 + $0x9ac] sm:$0xf]  ;;  %v7954_v52 = vor.u32 %v6126_v21, %v5227_v43  ;;  %3484 = vmatpush.bf16.msrb.mxu1 %v7943_v29  ;;  %v3182_v3 = vadd.f32 %v3181_v39, %v3168_v33 }
 0x1a5   :  { %9398 = vst [vmem:[#allocation337_spill] sm:$0xff] %v7936_v34  ;;  %v5675_v17 = vld [vmem:[#allocation4 + $0x9b8] sm:$0xf0]  ;;  %v6154_v30 = vld [vmem:[#allocation4 + $0x70c] sm:$0xf]  ;;  %v7957_v10 = vor.u32 %v6194_v41, %v5499_v26  ;;  %3472 = vmatpush.bf16.msra.mxu0 %v7950_v13 }
 0x1a6   :  { %9399 = vst [vmem:[#allocation338_spill] sm:$0xff] %v7939_v58  ;;  %v5339_v16 = vld [vmem:[#allocation4 + $0x718] sm:$0xf0]  ;;  %v6286_v36 = vld [vmem:[#allocation4 + $0xb2c] sm:$0xf]  ;;  %v7961_v49 = vor.u32 %v6238_v0, %v5675_v17  ;;  %v7967_v41 = vadd.f32 %v3195_v9, %v3182_v3 }
 0x1a7   :  { %9400 = vst [vmem:[#allocation339_spill] sm:$0xff] %v7943_v29  ;;  %v5867_v34 = vld [vmem:[#allocation4 + $0xb38] sm:$0xf0]  ;;  %v6122_v53 = vld [vmem:[#allocation4 + $0x60c] sm:$0xf]  ;;  %3495 = vmatpush.bf16.msrb.mxu2 %v7948_v6  ;;  %v7963_v54 = vor.u32 %v6154_v30, %v5339_v16  ;;  %3458 = vmatpush.bf16.msra.mxu3 %v7954_v52 }
 0x1a8   :  { %9401 = vst [vmem:[#allocation340_spill] sm:$0xff] %v7948_v6  ;;  %v5211_v22 = vld [vmem:[#allocation4 + $0x618] sm:$0xf0]  ;;  %v6190_v42 = vld [vmem:[#allocation4 + $0x82c] sm:$0xf]  ;;  %v7965_v58 = vor.u32 %v6286_v36, %v5867_v34  ;;  %3485 = vmatpush.bf16.msrb.mxu1 %v7957_v10 }
 0x1a9   :  { %v5483_v21 = vld [vmem:[#allocation4 + $0x838] sm:$0xf0]  ;;  %v6278_v43 = vld [vmem:[#allocation4 + $0xaec] sm:$0xf]  ;;  %v7970_v39 = vor.u32 %v6122_v53, %v5211_v22  ;;  %3473 = vmatpush.bf16.msra.mxu0 %v7963_v54 }
 0x1aa   :  { %v5835_v12 = vld [vmem:[#allocation4 + $0xaf8] sm:$0xf0]  ;;  %v6234_v29 = vld [vmem:[#allocation4 + $0x98c] sm:$0xf]  ;;  %v7973_v0 = vor.u32 %v6190_v42, %v5483_v21 }
 0x1ab   :  { %v5659_v26 = vld [vmem:[#allocation4 + $0x998] sm:$0xf0]  ;;  %v6282_v33 = vld [vmem:[#allocation4 + $0xb0c] sm:$0xf]  ;;  %v7975_v30 = vor.u32 %v6278_v43, %v5835_v12  ;;  %3496 = vmatpush.bf16.msrb.mxu2 %v7961_v49  ;;  %3459 = vmatpush.bf16.msra.mxu3 %v7970_v39 }
 0x1ac   :  { %v5851_v6 = vld [vmem:[#allocation4 + $0xb18] sm:$0xf0]  ;;  %v6186_v17 = vld [vmem:[#allocation4 + $0x80c] sm:$0xf]  ;;  %v7979_v34 = vor.u32 %v6234_v29, %v5659_v26  ;;  %3486 = vmatpush.bf16.msrb.mxu1 %v7973_v0  ;;  %3474 = vmatmul.bf16.vlgmr.msra.gmra.mxu0 %v6963_v51 }
 0x1ad   :  { %v5467_v3 = vld [vmem:[#allocation4 + $0x818] sm:$0xf0]  ;;  %v6274_v16 = vld [vmem:[#allocation4 + $0xacc] sm:$0xf]  ;;  %3528 = vmatpush.bf16.msrb.mxu0 %v7965_v58  ;;  %v7982_v9 = vor.u32 %v6282_v33, %v5851_v6 }
 0x1ae   :  { %v5819_v36 = vld [vmem:[#allocation4 + $0xad8] sm:$0xf0]  ;;  %v6230_v53 = vld [vmem:[#allocation4 + $0x96c] sm:$0xf]  ;;  %v7987_v42 = vor.u32 %v6186_v17, %v5467_v3  ;;  %3460 = vmatmul.bf16.vlgmr.msra.gmra.mxu3 %v6961_v15 }
 0x1af   :  { %v5643_v22 = vld [vmem:[#allocation4 + $0x978] sm:$0xf0]  ;;  %3508 = vmatpush.bf16.msrb.mxu3 %v7975_v30  ;;  %v7989_v21 = vor.u32 %v6274_v16, %v5819_v36  ;;  %3497 = vmatpush.bf16.msrb.mxu2 %v7979_v34  ;;  %v6270_v6 = vld [vmem:[#allocation4 + $0xaac] sm:$0xf] }
 0x1b0   :  { %v7993_v29 = vor.u32 %v6230_v53, %v5643_v22  ;;  %v5803_v43 = vld [vmem:[#allocation4 + $0xab8] sm:$0xf0]  ;;  %v6226_v12 = vld [vmem:[#allocation4 + $0x94c] sm:$0xf]  ;;  %3487 = vmatpush.bf16.msrb.mxu1 %v7987_v42 }
 0x1b1   :  { %3529 = vmatpush.bf16.msrb.mxu0 %v7982_v9  ;;  %v5627_v26 = vld [vmem:[#allocation4 + $0x958] sm:$0xf0]  ;;  %v345_v33 = vld [vmem:[%s8724_s0 + $0x28] sm:$0xff]  ;;  %v8003_v51 = vor.u32 %v6270_v6, %v5803_v43 }
 0x1b2   :  { %9402 = vst [vmem:[#allocation341_spill] sm:$0xff] %v7993_v29  ;;  %v350_v17 = vpack.c.bf16 %v345_v33, %v345_v33  ;;  %v8007_v15 = vor.u32 %v6226_v12, %v5627_v26  ;;  %v6266_v3 = vld [vmem:[#allocation4 + $0xa8c] sm:$0xf]  ;;  %v5787_v16 = vld [vmem:[#allocation4 + $0xa98] sm:$0xf0] }
 0x1b3   :  { %3509 = vmatpush.bf16.msrb.mxu3 %v7989_v21  ;;  %9403 = vst [vmem:[#allocation342_spill] sm:$0xff] %v8003_v51  ;;  %3498 = vmatpush.bf16.msrb.mxu2 %v7993_v29  ;;  %v6222_v36 = vld [vmem:[#allocation4 + $0x92c] sm:$0xf]  ;;  %v5611_v53 = vld [vmem:[#allocation4 + $0x938] sm:$0xf0]  ;;  %v8015_v22 = vor.u32 %v6266_v3, %v5787_v16  ;;  %v344_v3 = vld [vmem:[%s8724_s0 + $0x20] sm:$0xff] }
 0x1b4   :  { %3666 = vmatpush.bf16.msra.mxu1 %v6530_v28  ;;  %9404 = vst [vmem:[#allocation343_spill] sm:$0xff] %v8007_v15  ;;  %v8017_v28 = vpop.f32.mrf.mxu3  ;;  %v8021_v6 = vor.u32 %v6222_v36, %v5611_v53  ;;  %v6262_v43 = vld [vmem:[#allocation4 + $0xa6c] sm:$0xf]  ;;  %v5771_v12 = vld [vmem:[#allocation4 + $0xa78] sm:$0xf0]  ;;  %v8040_v36 = vpop.f32.mrf.mxu1 }
 0x1b5   :  { %3652 = vmatpush.bf16.msra.mxu0 %v6520_v14  ;;  %354 = vst.msk [vmem:[#allocation3 + $0x8] sm:$0xf] %vm72_vm3, %v350_v17  ;;  %v8010_v14 = vpop.f32.mrf.mxu2  ;;  %3488 = vmatmul.bf16.vlgmr.msrb.gmra.mxu1 %v7011_v59  ;;  %v6218_v26 = vld [vmem:[#allocation4 + $0x90c] sm:$0xf]  ;;  %v5595_v33 = vld [vmem:[#allocation4 + $0x918] sm:$0xf0]  ;;  %v8023_v17 = vpop.f32.mrf.mxu0 }
 0x1b6   :  { %9405 = vst [vmem:[#allocation344_spill] sm:$0xff] %v8010_v14  ;;  %v8029_v59 = vpop.permute.xlu0 %420  ;;  %v346_v16 = vld [vmem:[%s8724_s0 + $0x48] sm:$0xff]  ;;  %v347_v14 = vld [vmem:[%s8724_s0 + $0x50] sm:$0xff]  ;;  %v9637_v29 = vld [vmem:[#allocation205_spill] sm:$0xff] }
 0x1b7   :  { %3510 = vmatpush.bf16.msrb.mxu3 %v8003_v51  ;;  %9406 = vst [vmem:[#allocation345_spill] sm:$0xff] %v8015_v22  ;;  %3499 = vmatpush.bf16.msrb.mxu2 %v8007_v15  ;;  %v6258_v53 = vld [vmem:[#allocation4 + $0xa4c] sm:$0xf]  ;;  %v9634_v51 = vld [vmem:[#allocation202_spill] sm:$0xff] }
 0x1b8   :  { %9407 = vst [vmem:[#allocation346_spill] sm:$0xff] %v8017_v28  ;;  %3667 = vmatpush.bf16.msra.mxu1 %v6537_v38  ;;  %v343_v38 = vld [vmem:[%s8724_s0 + $0x18] sm:$0xff]  ;;  %v8050_v28 = vpack.c.bf16 %v347_v14, %v346_v16 }
 0x1b9   :  { %3653 = vmatpush.bf16.msra.mxu0 %v6534_v35  ;;  %9408 = vst [vmem:[#allocation347_spill] sm:$0xff] %v8021_v6  ;;  %v8027_v35 = vor.u32 %v6262_v43, %v5771_v12  ;;  %v5755_v43 = vld [vmem:[#allocation4 + $0xa58] sm:$0xf0]  ;;  %v9044_v12 = vrot.slane %v8029_v59, 4 }
 0x1ba   :  { %9409 = vst [vmem:[#allocation348_spill] sm:$0xff] %v8023_v17  ;;  %v349_v17 = vpack.c.bf16 %v344_v3, %v343_v38  ;;  %v348_v38 = vld [vmem:[%s8724_s0 + $0x58] sm:$0xff] }
 0x1bb   :  { %3511 = vmatpush.bf16.msrb.mxu3 %v8015_v22  ;;  %9410 = vst [vmem:[#allocation349_spill] sm:$0xff] %v8027_v35  ;;  %3500 = vmatpush.bf16.msrb.mxu2 %v8021_v6  ;;  %v352_v3 = vpack.c.bf16 %v348_v38, %v348_v38 }
 0x1bc   :  { %9411 = vst [vmem:[#allocation350_spill] sm:$0xff] %v8040_v36  ;;  %3668 = vmatpush.bf16.msra.mxu1 %v6554_v56  ;;  %v430_v56 = vsel %vm100_vm9, %v9044_v12, %v8029_v59  ;;  %v3223_v14 = vpop.f32.mrf.mxu3  ;;  %5874 = vmatmul.msk.bf16.vlgmr.msrb.gmra.mxu0 %vm100_vm9, %v7019_v31  ;;  %v9417_v31 = vld [vmem:[#allocation11_spill] sm:$0xff] }
 0x1bd   :  { %3654 = vmatpush.bf16.msra.mxu0 %v6541_v44  ;;  %v8044_v44 = vor.u32 %v6218_v26, %v5595_v33  ;;  %v3209_v36 = vpop.f32.mrf.mxu2  ;;  %353 = vst [vmem:[#allocation3] sm:$0xff] %v349_v17  ;;  %v8058_v26 = vor.u32 %v6258_v53, %v5755_v43  ;;  %v5739_v33 = vld [vmem:[#allocation4 + $0xa38] sm:$0xf0]  ;;  %v3237_v16 = vpop.f32.mrf.mxu0 }
 0x1be   :  { %438 = vst.msk [vmem:[#allocation3 + $0x8] sm:$0xff] %vm6815_vm10, %v430_v56  ;;  %v3224_v17 = vadd.f32 %v3223_v14, %v3209_v36  ;;  %v3251_v56 = vpop.f32.mrf.mxu1  ;;  %v9416_v36 = vld [vmem:[#allocation17_spill] sm:$0xff]  ;;  %v8078_v12 = vpop.permute.xlu0 %509 }
 0x1bf   :  { %9412 = vst [vmem:[#allocation351_spill] sm:$0xff] %v8044_v44  ;;  %3512 = vmatpush.bf16.msrb.mxu3 %v8027_v35  ;;  %3501 = vmatpush.bf16.msrb.mxu2 %v8044_v44  ;;  %v5723_v14 = vld [vmem:[#allocation4 + $0xa18] sm:$0xf0]  ;;  %v9423_v44 = vld [vmem:[#allocation22_spill] sm:$0xff] }
 0x1c0   :  { %9413 = vst [vmem:[#allocation352_spill] sm:$0xff] %v8058_v26  ;;  %3669 = vmatpush.bf16.msra.mxu1 %v6568_v8  ;;  %v9414_v8 = vld [vmem:[#allocation14_spill] sm:$0xff]  ;;  %v3238_v53 = vadd.f32 %v3237_v16, %v3224_v17  ;;  %v425_v17 = vpop.permute.xlu1 %424  ;;  %v9421_v16 = vld [vmem:[#allocation13_spill] sm:$0xff] }
 0x1c1   :  { %3655 = vmatpush.bf16.msra.mxu0 %v6559_v63  ;;  %v6254_v63 = vld [vmem:[#allocation4 + $0xa2c] sm:$0xf]  ;;  %355 = vst [vmem:[#allocation3 + $0x30] sm:$0xff] %v8050_v28 }
 0x1c2   :  { %3502 = vmatmul.bf16.vlgmr.msrb.gmra.mxu2 %v7007_v40  ;;  %v8074_v43 = vor.u32 %v6254_v63, %v5739_v33  ;;  %356 = vst.msk [vmem:[#allocation3 + $0x38] sm:$0xf] %vm72_vm3, %v352_v3  ;;  %v3252_v38 = vadd.f32 %v3251_v56, %v3238_v53  ;;  %v429_v63 = vrot.slane %v425_v17, 4  ;;  %v9420_v33 = vld [vmem:[#allocation21_spill] sm:$0xff]  ;;  %v506_v3 = vpop.permute.xlu2 %505 }
 0x1c3   :  { %3680 = vmatpush.bf16.msra.mxu2 %v6543_v46  ;;  %3513 = vmatpush.bf16.msrb.mxu3 %v8058_v26  ;;  %v6250_v46 = vld [vmem:[#allocation4 + $0xa0c] sm:$0xf] }
 0x1c4   :  { %9415 = vst [vmem:[#allocation14_spill] sm:$0xff] %v8074_v43  ;;  %3670 = vmatpush.bf16.msra.mxu1 %v9416_v36  ;;  %v8083_v40 = vor.u32 %v6250_v46, %v5723_v14  ;;  %v432_v36 = vsel %vm100_vm9, %v429_v63, %v425_v17  ;;  %v5877_v53 = vld [vmem:[#allocation3] sm:$0xf]  ;;  %v9424_v46 = vld [vmem:[#allocation24_spill] sm:$0xff] }
 0x1c5   :  { %3656 = vmatpush.bf16.msra.mxu0 %v9414_v8  ;;  %v9418_v8 = vld [vmem:[#allocation19_spill] sm:$0xff]  ;;  %v8088_v26 = vpop.f32.mrf.mxu2  ;;  %440 = vst.msk [vmem:[#allocation3 + $0x38] sm:$0xff] %vm6815_vm10, %v432_v36  ;;  %v9425_v14 = vld [vmem:[#allocation12_spill] sm:$0xff] }
 0x1c6   :  { %9419 = vst [vmem:[#allocation17_spill] sm:$0xff] %v8083_v40  ;;  %v508_v17 = vpop.permute.xlu0 %507  ;;  %v5885_v6 = vld [vmem:[#allocation3 + $0x8] sm:$0xf] }
 0x1c7   :  { %3681 = vmatpush.bf16.msra.mxu2 %v9417_v31  ;;  %3514 = vmatpush.bf16.msrb.mxu3 %v8074_v43  ;;  %9422 = vst [vmem:[#allocation11_spill] sm:$0xff] %v8088_v26  ;;  %v513_v31 = vrot.slane %v506_v3, 4  ;;  %v9428_v26 = vld [vmem:[#allocation26_spill] sm:$0xff]  ;;  %v9431_v43 = vld [vmem:[#allocation28_spill] sm:$0xff] }
 0x1c8   :  { %3671 = vmatpush.bf16.msra.mxu1 %v9420_v33  ;;  %v6307_v56 = vld [vmem:[#allocation3 + $0x2c] sm:$0xf0]  ;;  %v5879_v33 = vld [vmem:[#allocation3 + $0x30] sm:$0xf0] }
 0x1c9   :  { %3657 = vmatpush.bf16.msra.mxu0 %v9418_v8  ;;  %v6301_v8 = vld [vmem:[#allocation3 + $0x4] sm:$0xf]  ;;  %v516_v48 = vsel %vm193_vm13, %v513_v31, %v508_v17  ;;  %v8100_v36 = vor.u32 %v6307_v56, %v5877_v53  ;;  %v514_v53 = vrot.slane %v8078_v12, 4  ;;  %v9433_v17 = vld [vmem:[#allocation29_spill] sm:$0xff] }
 0x1ca   :  { %524 = vst.msk [vmem:[#allocation3 + $0x18] sm:$0xf] %vm205_vm1, %v516_v48  ;;  %v8122_v48 = vpop.f32.mrf.mxu3 }
 0x1cb   :  { %3682 = vmatpush.bf16.msra.mxu2 %v9421_v16  ;;  %3515 = vmatpush.bf16.msrb.mxu3 %v8083_v40  ;;  %v9426_v16 = vld [vmem:[#allocation16_spill] sm:$0xff]  ;;  %v9429_v40 = vld [vmem:[#allocation27_spill] sm:$0xff]  ;;  %9436 = vst [vmem:[#allocation19_spill] sm:$0xff] %v8122_v48  ;;  %v517_v35 = vsel %vm193_vm13, %v514_v53, %v8078_v12  ;;  %v9445_v12 = vld [vmem:[#allocation34_spill] sm:$0xff] }
 0x1cc   :  { %3672 = vmatpush.bf16.msra.mxu1 %v9424_v46  ;;  %v8104_v46 = vpop.permute.xlu1 %562  ;;  %v9455_v48 = vld [vmem:[#allocation43_spill] sm:$0xff] }
 0x1cd   :  { %3658 = vmatpush.bf16.msra.mxu0 %v9423_v44  ;;  %v9427_v44 = vld [vmem:[#allocation25_spill] sm:$0xff]  ;;  %v3265_v56 = vpop.f32.mrf.mxu2 }
 0x1ce   :  { %3516 = vmatmul.bf16.vlgmr.msrb.gmra.mxu3 %v7015_v23  ;;  %v570_v23 = vrot.slane %v8104_v46, 4 }
 0x1cf   :  { %3694 = vmatpush.bf16.msra.mxu3 %v9425_v14  ;;  %3683 = vmatpush.bf16.msra.mxu2 %v9426_v16  ;;  %v8106_v14 = vor.u32 %v6301_v8, %v5879_v33  ;;  %v9430_v16 = vld [vmem:[#allocation15_spill] sm:$0xff]  ;;  %v3266_v33 = vadd.f32 %v3265_v56, %v3252_v38  ;;  %v8129_v56 = vpop.f32.mrf.mxu0 }
 0x1d0   :  { %3673 = vmatpush.bf16.msra.mxu1 %v9429_v40  ;;  %v572_v8 = vsel %vm282_vm15, %v570_v23, %v8104_v46  ;;  %v427_v46 = vpop.permute.xlu0 %426  ;;  %9439 = vst [vmem:[#allocation21_spill] sm:$0xff] %v8129_v56  ;;  %v515_v56 = vsel %vm193_vm13, %v513_v31, %v506_v3  ;;  %v9449_v3 = vld [vmem:[#allocation37_spill] sm:$0xff] }
 0x1d1   :  { %3659 = vmatpush.bf16.msra.mxu0 %v9427_v44  ;;  %v9432_v44 = vld [vmem:[#allocation20_spill] sm:$0xff]  ;;  %580 = vst.msk [vmem:[#allocation3 + $0x18] sm:$0xff] %vm6877_vm4, %v572_v8  ;;  %v433_v38 = vsel %vm100_vm9, %v429_v63, %v427_v46  ;;  %v6308_v63 = vld [vmem:[#allocation3 + $0x34] sm:$0xf0] }
 0x1d2   :  { %441 = vst.msk [vmem:[#allocation3 + $0x40] sm:$0xf] %vm113_vm11, %v433_v38  ;;  %v9446_v38 = vld [vmem:[#allocation36_spill] sm:$0xff]  ;;  %v3279_v31 = vpop.f32.mrf.mxu3  ;;  %v9456_v40 = vld [vmem:[#allocation45_spill] sm:$0xff] }
 0x1d3   :  { %3695 = vmatpush.bf16.msra.mxu3 %v9430_v16  ;;  %3684 = vmatpush.bf16.msra.mxu2 %v9432_v44  ;;  %v9437_v16 = vld [vmem:[#allocation30_spill] sm:$0xff]  ;;  %v9438_v44 = vld [vmem:[#allocation23_spill] sm:$0xff]  ;;  %525 = vst.msk [vmem:[#allocation3 + $0x40] sm:$0xff] %vm6855_vm14, %v517_v35  ;;  %v9447_v35 = vrot.slane %v8029_v59, 4 }
 0x1d4   :  { %3722 = vmatpush.bf16.msrb.mxu1 %v9431_v43  ;;  %3660 = vmatmul.bf16.vlgmr.msra.gmra.mxu0 %v8100_v36  ;;  %v9435_v43 = vld [vmem:[#allocation18_spill] sm:$0xff]  ;;  %v512_v46 = vpop.permute.xlu1 %511  ;;  %v9451_v59 = vld [vmem:[#allocation39_spill] sm:$0xff] }
 0x1d5   :  { %3708 = vmatpush.bf16.msrb.mxu0 %v9428_v26  ;;  %v567_v26 = vpop.permute.xlu2 %566  ;;  %3674 = vmatmul.bf16.vlgmr.msra.gmra.mxu1 %v8106_v14  ;;  %v518_v22 = vsel %vm193_vm13, %v514_v53, %v512_v46  ;;  %v9450_v53 = vld [vmem:[#allocation38_spill] sm:$0xff]  ;;  %v9452_v46 = vld [vmem:[#allocation41_spill] sm:$0xff] }
 0x1d6   :  { %v571_v8 = vrot.slane %v567_v26, 4  ;;  %526 = vst.msk [vmem:[#allocation3 + $0x48] sm:$0xf] %vm205_vm1, %v518_v22 }
 0x1d7   :  { %3696 = vmatpush.bf16.msra.mxu3 %v9435_v43  ;;  %3685 = vmatpush.bf16.msra.mxu2 %v9438_v44  ;;  %v9441_v43 = vld [vmem:[#allocation31_spill] sm:$0xff]  ;;  %v9444_v44 = vld [vmem:[#allocation33_spill] sm:$0xff]  ;;  %v3293_v22 = vpop.f32.mrf.mxu0 }
 0x1d8   :  { %3723 = vmatpush.bf16.msrb.mxu1 %v9437_v16  ;;  %v8136_v16 = vpop.f32.mrf.mxu1 }
 0x1d9   :  { %3709 = vmatpush.bf16.msrb.mxu0 %v9433_v17  ;;  %v9440_v17 = vld [vmem:[#allocation32_spill] sm:$0xff]  ;;  %9443 = vst [vmem:[#allocation13_spill] sm:$0xff] %v8136_v16 }
 0x1db   :  { %3697 = vmatpush.bf16.msra.mxu3 %v9441_v43  ;;  %3686 = vmatpush.bf16.msra.mxu2 %v9445_v12  ;;  %v574_v43 = vsel %vm282_vm15, %v571_v8, %v567_v26  ;;  %v8150_v12 = vor.u32 %v6308_v63, %v5885_v6  ;;  %v3280_v26 = vadd.f32 %v3279_v31, %v3266_v33  ;;  %v9453_v6 = vld [vmem:[#allocation40_spill] sm:$0xff] }
 0x1dc   :  { %3724 = vmatpush.bf16.msrb.mxu1 %v9444_v44  ;;  %v9448_v44 = vld [vmem:[#allocation35_spill] sm:$0xff]  ;;  %582 = vst.msk [vmem:[#allocation3 + $0x48] sm:$0xff] %vm6877_vm4, %v574_v43  ;;  %v9457_v31 = vld [vmem:[#allocation44_spill] sm:$0xff] }
 0x1dd   :  { %3710 = vmatpush.bf16.msrb.mxu0 %v9440_v17  ;;  %v423_v17 = vpop.permute.xlu2 %422 }
 0x1de   :  { %v431_v16 = vsel %vm100_vm9, %v9447_v35, %v423_v17  ;;  %v9454_v17 = vld [vmem:[#allocation42_spill] sm:$0xff] }
 0x1df   :  { %3698 = vmatpush.bf16.msra.mxu3 %v9448_v44  ;;  %439 = vst.msk [vmem:[#allocation3 + $0x10] sm:$0xf] %vm113_vm11, %v431_v16  ;;  %3687 = vmatpush.bf16.msra.mxu2 %v9450_v53  ;;  %v3294_v16 = vadd.f32 %v3293_v22, %v3280_v26  ;;  %v584_v44 = vld [vmem:[%s8724_s0 + $0x18] sm:$0xfc]  ;;  %v6302_v53 = vld [vmem:[#allocation3 + $0xc] sm:$0xf] }
 0x1e0   :  { %3725 = vmatpush.bf16.msrb.mxu1 %v9449_v3  ;;  %523 = vst.msk [vmem:[#allocation3 + $0x10] sm:$0xff] %vm6855_vm14, %v515_v56  ;;  %v3307_v63 = vpop.f32.mrf.mxu1  ;;  %v585_v3 = vld [vmem:[%s8724_s0 + $0x20] sm:$0xfc]  ;;  %v5887_v26 = vld [vmem:[#allocation3 + $0x38] sm:$0xf0]  ;;  %v9459_v22 = vld [vmem:[#allocation47_spill] sm:$0xff] }
 0x1e1   :  { %3711 = vmatpush.bf16.msrb.mxu0 %v9446_v38  ;;  %v565_v38 = vpop.permute.xlu1 %564  ;;  %v3308_v33 = vadd.f32 %v3307_v63, %v3294_v16  ;;  %v9461_v63 = vld [vmem:[#allocation49_spill] sm:$0xff] }
 0x1e2   :  { %3688 = vmatmul.bf16.vlgmr.msra.gmra.mxu2 %v8150_v12  ;;  %v573_v56 = vsel %vm282_vm15, %v570_v23, %v565_v38  ;;  %v593_v23 = vpack.c.bf16 %v585_v3, %v584_v44  ;;  %v9464_v44 = vld [vmem:[#allocation51_spill] sm:$0xff] }
 0x1e3   :  { %3736 = vmatpush.bf16.msrb.mxu2 %v9451_v59  ;;  %3699 = vmatpush.bf16.msra.mxu3 %v9453_v6  ;;  %581 = vst [vmem:[#allocation3 + $0x20] sm:$0xf] %v573_v56  ;;  %v9458_v59 = vld [vmem:[#allocation46_spill] sm:$0xff]  ;;  %v8182_v6 = vpop.f32.mrf.mxu2  ;;  %v9462_v56 = vld [vmem:[#allocation48_spill] sm:$0xff] }
 0x1e4   :  { %3726 = vmatpush.bf16.msrb.mxu1 %v9454_v17  ;;  %v4381_v16 = vrot.slane %v593_v23, 9  ;;  %9460 = vst [vmem:[#allocation22_spill] sm:$0xff] %v8182_v6  ;;  %v8185_v17 = vor.u32 %v6302_v53, %v5887_v26  ;;  %v9465_v53 = vld [vmem:[#allocation52_spill] sm:$0xff]  ;;  %v9525_v6 = vld [vmem:[#allocation105_spill] sm:$0xff] }
 0x1e5   :  { %3712 = vmatpush.bf16.msrb.mxu0 %v9452_v46  ;;  %v569_v35 = vpop.permute.xlu2 %568  ;;  %v591_v46 = vld [vmem:[%s8724_s0 + $0x80] sm:$0x3] }
 0x1e6   :  { %v575_v43 = vsel %vm282_vm15, %v571_v8, %v569_v35  ;;  %v590_v8 = vld [vmem:[%s8724_s0 + $0x78] sm:$0x3] }
 0x1e7   :  { %3737 = vmatpush.bf16.msrb.mxu2 %v9455_v48  ;;  %3700 = vmatpush.bf16.msra.mxu3 %v9457_v31  ;;  %583 = vst [vmem:[#allocation3 + $0x50] sm:$0xf] %v575_v43  ;;  %v597_v38 = vpack.c.bf16 %v591_v46, %v590_v8  ;;  %v607_v48 = vrot.slane %v8050_v28, 5  ;;  %v5893_v35 = vld [vmem:[#allocation3 + $0x10] sm:$0xf]  ;;  %v9463_v43 = vld [vmem:[#allocation50_spill] sm:$0xff] }
 0x1e8   :  { %3727 = vmatpush.bf16.msrb.mxu1 %v9458_v59  ;;  %v6303_v3 = vld [vmem:[#allocation3 + $0x14] sm:$0xf]  ;;  %v5895_v31 = vld [vmem:[#allocation3 + $0x40] sm:$0xf0]  ;;  %v8194_v26 = vpop.f32.mrf.mxu1  ;;  %v9467_v28 = vld [vmem:[#allocation53_spill] sm:$0xff] }
 0x1e9   :  { %3713 = vmatpush.bf16.msrb.mxu0 %v9456_v40  ;;  %v6309_v40 = vld [vmem:[#allocation3 + $0x3c] sm:$0xf0]  ;;  %v608_v23 = vsel %vm6702_vm6, %v4381_v16, %v607_v48  ;;  %v613_v59 = vrot.slane %v607_v48, 4  ;;  %9466 = vst [vmem:[#allocation24_spill] sm:$0xff] %v8194_v26  ;;  %v9471_v48 = vld [vmem:[#allocation57_spill] sm:$0xff] }
 0x1ea   :  { %623 = vst [vmem:[#allocation3 + $0x24] sm:$0xff] %v608_v23  ;;  %v8198_v8 = vor.u32 %v6309_v40, %v5893_v35  ;;  %v9469_v16 = vld [vmem:[#allocation54_spill] sm:$0xff]  ;;  %v9473_v40 = vld [vmem:[#allocation60_spill] sm:$0xff]  ;;  %v9477_v23 = vld [vmem:[#allocation61_spill] sm:$0xff] }
 0x1eb   :  { %3738 = vmatpush.bf16.msrb.mxu2 %v9459_v22  ;;  %3701 = vmatpush.bf16.msra.mxu3 %v9462_v56  ;;  %v614_v22 = vrot.slane %v597_v38, 5  ;;  %v8203_v56 = vor.u32 %v6303_v3, %v5895_v31  ;;  %v9470_v38 = vld [vmem:[#allocation55_spill] sm:$0xff]  ;;  %v8213_v3 = vpop.f32.mrf.mxu0  ;;  %v8215_v31 = vpop.f32.mrf.mxu3 }
 0x1ec   :  { %3728 = vmatpush.bf16.msrb.mxu1 %v9463_v43  ;;  %v9472_v43 = vld [vmem:[#allocation58_spill] sm:$0xff]  ;;  %9475 = vst [vmem:[#allocation12_spill] sm:$0xff] %v8213_v3  ;;  %v9520_v3 = vld [vmem:[#allocation100_spill] sm:$0xff] }
 0x1ed   :  { %3714 = vmatpush.bf16.msrb.mxu0 %v9461_v63  ;;  %v615_v46 = vsel %vm6702_vm6, %v613_v59, %v614_v22  ;;  %v9468_v63 = vld [vmem:[#allocation56_spill] sm:$0xff]  ;;  %9476 = vst [vmem:[#allocation16_spill] sm:$0xff] %v8215_v31  ;;  %v9478_v59 = vld [vmem:[#allocation62_spill] sm:$0xff] }
 0x1ee   :  { %3702 = vmatmul.bf16.vlgmr.msra.gmra.mxu3 %v8185_v17  ;;  %625 = vst [vmem:[#allocation3 + $0x54] sm:$0xff] %v615_v46  ;;  %v9482_v46 = vld [vmem:[#allocation66_spill] sm:$0xff] }
 0x1ef   :  { %3750 = vmatpush.bf16.msrb.mxu3 %v9464_v44  ;;  %3739 = vmatpush.bf16.msrb.mxu2 %v9465_v53  ;;  %v3321_v44 = vpop.f32.mrf.mxu2  ;;  %v9479_v53 = vld [vmem:[#allocation64_spill] sm:$0xff] }
 0x1f0   :  { %3729 = vmatpush.bf16.msrb.mxu1 %v9469_v16  ;;  %v3322_v35 = vadd.f32 %v3321_v44, %v3308_v33  ;;  %v3363_v22 = vpop.f32.mrf.mxu1  ;;  %v9481_v33 = vld [vmem:[#allocation65_spill] sm:$0xff]  ;;  %v6310_v16 = vld [vmem:[#allocation3 + $0x44] sm:$0xf0] }
 0x1f1   :  { %3715 = vmatpush.bf16.msrb.mxu0 %v9467_v28  ;;  %v9480_v28 = vld [vmem:[#allocation63_spill] sm:$0xff]  ;;  %v9485_v44 = vld [vmem:[#allocation69_spill] sm:$0xff] }
 0x1f3   :  { %3751 = vmatpush.bf16.msrb.mxu3 %v9470_v38  ;;  %3740 = vmatpush.bf16.msrb.mxu2 %v9472_v43  ;;  %v9483_v38 = vld [vmem:[#allocation68_spill] sm:$0xff] }
 0x1f4   :  { %3778 = vmatpush.bf16.msra.mxu1 %v9471_v48  ;;  %3716 = vmatmul.bf16.vlgmr.msrb.gmra.mxu0 %v8198_v8  ;;  %v9484_v48 = vld [vmem:[#allocation67_spill] sm:$0xff] }
 0x1f5   :  { %3764 = vmatpush.bf16.msra.mxu0 %v9468_v63  ;;  %3730 = vmatmul.bf16.vlgmr.msrb.gmra.mxu1 %v8203_v56  ;;  %v5901_v63 = vld [vmem:[#allocation3 + $0x18] sm:$0xf] }
 0x1f6   :  { %v8225_v43 = vor.u32 %v6310_v16, %v5901_v63  ;;  %v9491_v63 = vld [vmem:[#allocation73_spill] sm:$0xff] }
 0x1f7   :  { %3752 = vmatpush.bf16.msrb.mxu3 %v9474_v37  ;;  %3741 = vmatpush.bf16.msrb.mxu2 %v9478_v59  ;;  %v9486_v37 = vld [vmem:[#allocation70_spill] sm:$0xff] }
 0x1f8   :  { %3779 = vmatpush.bf16.msra.mxu1 %v9477_v23  ;;  %v3349_v23 = vpop.f32.mrf.mxu0 }
 0x1f9   :  { %3765 = vmatpush.bf16.msra.mxu0 %v9473_v40  ;;  %v3335_v40 = vpop.f32.mrf.mxu3 }
 0x1fa   :  { %v3336_v59 = vadd.f32 %v3335_v40, %v3322_v35  ;;  %v9495_v35 = vld [vmem:[#allocation74_spill] sm:$0xff]  ;;  %v9496_v40 = vld [vmem:[#allocation76_spill] sm:$0xff] }
 0x1fb   :  { %3753 = vmatpush.bf16.msrb.mxu3 %v9480_v28  ;;  %3742 = vmatpush.bf16.msrb.mxu2 %v9482_v46  ;;  %v9488_v28 = vld [vmem:[#allocation72_spill] sm:$0xff]  ;;  %v8231_v46 = vpop.f32.mrf.mxu1 }
 0x1fc   :  { %3780 = vmatpush.bf16.msra.mxu1 %v9481_v33  ;;  %v3350_v33 = vadd.f32 %v3349_v23, %v3336_v59  ;;  %9489 = vst [vmem:[#allocation25_spill] sm:$0xff] %v8231_v46  ;;  %v6304_v23 = vld [vmem:[#allocation3 + $0x1c] sm:$0xf]  ;;  %v5903_v59 = vld [vmem:[#allocation3 + $0x48] sm:$0xf0] }
 0x1fd   :  { %3766 = vmatpush.bf16.msra.mxu0 %v9479_v53  ;;  %v9487_v53 = vld [vmem:[#allocation84_spill] sm:$0xff] }
 0x1fe   :  { %v8236_v16 = vadd.f32 %v3363_v22, %v3350_v33  ;;  %v9501_v22 = vld [vmem:[#allocation79_spill] sm:$0xff]  ;;  %v9502_v33 = vld [vmem:[#allocation85_spill] sm:$0xff]  ;;  %v6311_v46 = vld [vmem:[#allocation3 + $0x4c] sm:$0xf0] }
 0x1ff   :  { %3754 = vmatpush.bf16.msrb.mxu3 %v9484_v48  ;;  %3743 = vmatpush.bf16.msrb.mxu2 %v9486_v37  ;;  %v9493_v48 = vld [vmem:[#allocation86_spill] sm:$0xff]  ;;  %v9497_v37 = vld [vmem:[#allocation88_spill] sm:$0xff] }
 0x200   :  { %3781 = vmatpush.bf16.msra.mxu1 %v9485_v44  ;;  %9492 = vst [vmem:[#allocation26_spill] sm:$0xff] %v8236_v16  ;;  %v9494_v44 = vld [vmem:[#allocation75_spill] sm:$0xff]  ;;  %v9504_v16 = vld [vmem:[#allocation80_spill] sm:$0xff] }
 0x201   :  { %3767 = vmatpush.bf16.msra.mxu0 %v9483_v38  ;;  %v9490_v38 = vld [vmem:[#allocation71_spill] sm:$0xff] }
 0x202   :  { %3744 = vmatmul.bf16.vlgmr.msrb.gmra.mxu2 %v8225_v43 }
 0x203   :  { %3792 = vmatpush.bf16.msra.mxu2 %v9487_v53  ;;  %3755 = vmatpush.bf16.msrb.mxu3 %v9490_v38  ;;  %v8243_v53 = vpop.f32.mrf.mxu2  ;;  %v9500_v38 = vld [vmem:[#allocation77_spill] sm:$0xff] }
 0x204   :  { %3782 = vmatpush.bf16.msra.mxu1 %v9491_v63  ;;  %9498 = vst [vmem:[#allocation27_spill] sm:$0xff] %v8243_v53  ;;  %v8249_v63 = vor.u32 %v6304_v23, %v5903_v59  ;;  %v9508_v59 = vld [vmem:[#allocation91_spill] sm:$0xff]  ;;  %v9509_v53 = vld [vmem:[#allocation92_spill] sm:$0xff] }
 0x205   :  { %3768 = vmatpush.bf16.msra.mxu0 %v9488_v28  ;;  %v9499_v28 = vld [vmem:[#allocation78_spill] sm:$0xff] }
 0x207   :  { %3793 = vmatpush.bf16.msra.mxu2 %v9493_v48  ;;  %3756 = vmatpush.bf16.msrb.mxu3 %v9495_v35  ;;  %v6305_v48 = vld [vmem:[#allocation3 + $0x24] sm:$0xf]  ;;  %v3377_v35 = vpop.f32.mrf.mxu1 }
 0x208   :  { %3783 = vmatpush.bf16.msra.mxu1 %v9496_v40  ;;  %v9503_v40 = vld [vmem:[#allocation89_spill] sm:$0xff] }
 0x209   :  { %3769 = vmatpush.bf16.msra.mxu0 %v9494_v44  ;;  %v5911_v44 = vld [vmem:[#allocation3 + $0x50] sm:$0xf0] }
 0x20b   :  { %3794 = vmatpush.bf16.msra.mxu2 %v9497_v37  ;;  %3757 = vmatpush.bf16.msrb.mxu3 %v9500_v38  ;;  %v5909_v37 = vld [vmem:[#allocation3 + $0x20] sm:$0xf]  ;;  %v8255_v38 = vor.u32 %v6305_v48, %v5911_v44  ;;  %v3391_v26 = vpop.f32.mrf.mxu2  ;;  %v8267_v44 = vpop.f32.mrf.mxu3 }
 0x20c   :  { %3784 = vmatpush.bf16.msra.mxu1 %v9501_v22  ;;  %v9506_v22 = vld [vmem:[#allocation81_spill] sm:$0xff]  ;;  %v8259_v23 = vor.u32 %v6311_v46, %v5909_v37  ;;  %v3392_v48 = vadd.f32 %v3391_v26, %v3377_v35  ;;  %9512 = vst [vmem:[#allocation15_spill] sm:$0xff] %v8267_v44  ;;  %v9514_v46 = vld [vmem:[#allocation96_spill] sm:$0xff]  ;;  %v5917_v26 = vld [vmem:[#allocation3 + $0x28] sm:$0xf] }
 0x20d   :  { %3770 = vmatpush.bf16.msra.mxu0 %v9499_v28  ;;  %v9505_v28 = vld [vmem:[#allocation90_spill] sm:$0xff]  ;;  %v9515_v37 = vld [vmem:[#allocation97_spill] sm:$0xff] }
 0x20e   :  { %3758 = vmatmul.bf16.vlgmr.msrb.gmra.mxu3 %v8249_v63  ;;  %v6312_v35 = vld [vmem:[#allocation3 + $0x54] sm:$0xf0] }
 0x20f   :  { %3812 = vmatpush.bf16.msra.mxu3 %v9502_v33  ;;  %3795 = vmatpush.bf16.msra.mxu2 %v9503_v40  ;;  %v9507_v33 = vld [vmem:[#allocation87_spill] sm:$0xff]  ;;  %v9510_v40 = vld [vmem:[#allocation93_spill] sm:$0xff] }
 0x210   :  { %3785 = vmatpush.bf16.msra.mxu1 %v9506_v22  ;;  %v8272_v22 = vpop.f32.mrf.mxu0  ;;  %v9521_v44 = vld [vmem:[#allocation101_spill] sm:$0xff] }
 0x211   :  { %3771 = vmatpush.bf16.msra.mxu0 %v9504_v16  ;;  %v9511_v16 = vld [vmem:[#allocation94_spill] sm:$0xff]  ;;  %9516 = vst [vmem:[#allocation28_spill] sm:$0xff] %v8272_v22  ;;  %v9523_v22 = vld [vmem:[#allocation103_spill] sm:$0xff] }
 0x213   :  { %3813 = vmatpush.bf16.msra.mxu3 %v9507_v33  ;;  %3796 = vmatpush.bf16.msra.mxu2 %v9509_v53  ;;  %v8274_v53 = vpop.f32.mrf.mxu1  ;;  %v9518_v33 = vld [vmem:[#allocation98_spill] sm:$0xff] }
 0x214   :  { %3848 = vmatpush.bf16.msrb.mxu1 %v9508_v59  ;;  %3772 = vmatmul.bf16.vlgmr.msra.gmra.mxu0 %v8259_v23  ;;  %9517 = vst [vmem:[#allocation20_spill] sm:$0xff] %v8274_v53  ;;  %v6306_v59 = vld [vmem:[#allocation3 + $0x2c] sm:$0xf]  ;;  %v3405_v53 = vpop.f32.mrf.mxu3 }
 0x215   :  { %3834 = vmatpush.bf16.msrb.mxu0 %v9505_v28  ;;  %3786 = vmatmul.bf16.vlgmr.msra.gmra.mxu1 %v8255_v38  ;;  %v9513_v28 = vld [vmem:[#allocation95_spill] sm:$0xff]  ;;  %v3406_v31 = vadd.f32 %v3405_v53, %v3392_v48  ;;  %v9532_v53 = vld [vmem:[#allocation112_spill] sm:$0xff] }
 0x217   :  { %3820 = vmatpush.bf16.msrb.mxu3 %v9510_v40  ;;  %3797 = vmatpush.bf16.msra.mxu2 %v9514_v46  ;;  %v5919_v40 = vld [vmem:[#allocation3 + $0x58] sm:$0xf0] }
 0x218   :  { %3849 = vmatpush.bf16.msrb.mxu1 %v9513_v28  ;;  %v9522_v28 = vld [vmem:[#allocation102_spill] sm:$0xff]  ;;  %v8281_v46 = vor.u32 %v6306_v59, %v5919_v40 }
 0x219   :  { %3835 = vmatpush.bf16.msrb.mxu0 %v9511_v16  ;;  %v9519_v16 = vld [vmem:[#allocation99_spill] sm:$0xff] }
 0x21b   :  { %3821 = vmatpush.bf16.msrb.mxu3 %v9515_v37  ;;  %3798 = vmatpush.bf16.msra.mxu2 %v9520_v3  ;;  %v8283_v37 = vor.u32 %v6312_v35, %v5917_v26  ;;  %v3419_v3 = vpop.f32.mrf.mxu0  ;;  %v3433_v40 = vpop.f32.mrf.mxu1  ;;  %v9528_v26 = vld [vmem:[#allocation108_spill] sm:$0xff]  ;;  %v9530_v35 = vld [vmem:[#allocation110_spill] sm:$0xff] }
 0x21c   :  { %3850 = vmatpush.bf16.msrb.mxu1 %v9519_v16  ;;  %v9526_v16 = vld [vmem:[#allocation106_spill] sm:$0xff]  ;;  %v3420_v59 = vadd.f32 %v3419_v3, %v3406_v31  ;;  %v9536_v31 = vld [vmem:[#allocation115_spill] sm:$0xff]  ;;  %v9537_v3 = vld [vmem:[#allocation116_spill] sm:$0xff] }
 0x21d   :  { %3836 = vmatpush.bf16.msrb.mxu0 %v9518_v33  ;;  %v9524_v33 = vld [vmem:[#allocation104_spill] sm:$0xff] }
 0x21e   :  { %5923 = vmatmul.msk.bf16.vlgmr.msra.gmra.mxu3 %vm100_vm9, %v8281_v46  ;;  %v3434_v48 = vadd.f32 %v3433_v40, %v3420_v59  ;;  %v9541_v59 = vld [vmem:[#allocation119_spill] sm:$0xff]  ;;  %v9542_v40 = vld [vmem:[#allocation121_spill] sm:$0xff] }
 0x21f   :  { %3822 = vmatpush.bf16.msrb.mxu3 %v9521_v44  ;;  %3799 = vmatpush.bf16.msra.mxu2 %v9524_v33  ;;  %v9527_v44 = vld [vmem:[#allocation107_spill] sm:$0xff]  ;;  %v9534_v33 = vld [vmem:[#allocation114_spill] sm:$0xff] }
 0x220   :  { %3851 = vmatpush.bf16.msrb.mxu1 %v9523_v22  ;;  %v9529_v22 = vld [vmem:[#allocation109_spill] sm:$0xff] }
 0x221   :  { %3837 = vmatpush.bf16.msrb.mxu0 %v9522_v28  ;;  %v9533_v28 = vld [vmem:[#allocation113_spill] sm:$0xff] }
 0x222   :  { %3800 = vmatmul.bf16.vlgmr.msra.gmra.mxu2 %v8283_v37 }
 0x223   :  { %3823 = vmatpush.bf16.msrb.mxu3 %v9525_v6  ;;  %3862 = vmatpush.bf16.msrb.mxu2 %v9526_v16  ;;  %v9531_v6 = vld [vmem:[#allocation111_spill] sm:$0xff]  ;;  %v8300_v16 = vpop.f32.mrf.mxu2 }
 0x224   :  { %3852 = vmatpush.bf16.msrb.mxu1 %v9528_v26  ;;  %9535 = vst [vmem:[#allocation29_spill] sm:$0xff] %v8300_v16  ;;  %v9539_v26 = vld [vmem:[#allocation118_spill] sm:$0xff] }
 0x225   :  { %3838 = vmatpush.bf16.msrb.mxu0 %v9527_v44  ;;  %v9538_v44 = vld [vmem:[#allocation117_spill] sm:$0xff] }
 0x227   :  { %3824 = vmatpush.bf16.msrb.mxu3 %v9529_v22  ;;  %3863 = vmatpush.bf16.msrb.mxu2 %v9530_v35  ;;  %v8306_v22 = vpop.f32.mrf.mxu0  ;;  %v9543_v35 = vld [vmem:[#allocation120_spill] sm:$0xff] }
 0x228   :  { %3853 = vmatpush.bf16.msrb.mxu1 %v9532_v53  ;;  %9540 = vst [vmem:[#allocation83_spill] sm:$0xff] %v8306_v22  ;;  %v9545_v53 = vld [vmem:[#allocation122_spill] sm:$0xff]  ;;  %v9559_v22 = vld [vmem:[#allocation135_spill] sm:$0xff] }
 0x229   :  { %3839 = vmatpush.bf16.msrb.mxu0 %v9531_v6  ;;  %v9544_v6 = vld [vmem:[#allocation123_spill] sm:$0xff] }
 0x22b   :  { %3825 = vmatpush.bf16.msrb.mxu3 %v9533_v28  ;;  %3864 = vmatpush.bf16.msrb.mxu2 %v9534_v33  ;;  %v9546_v28 = vld [vmem:[#allocation124_spill] sm:$0xff]  ;;  %v9547_v33 = vld [vmem:[#allocation125_spill] sm:$0xff] }
 0x22c   :  { %3854 = vmatpush.bf16.msrb.mxu1 %v9537_v3 }
 0x22d   :  { %3840 = vmatpush.bf16.msrb.mxu0 %v9536_v31  ;;  %v3447_v31 = vpop.f32.mrf.mxu2 }
 0x22e   :  { %v3448_v3 = vadd.f32 %v3447_v31, %v3434_v48  ;;  %v8325_v48 = vpop.f32.mrf.mxu1  ;;  %v9557_v31 = vld [vmem:[#allocation133_spill] sm:$0xff] }
 0x22f   :  { %3826 = vmatpush.bf16.msrb.mxu3 %v9538_v44  ;;  %3865 = vmatpush.bf16.msrb.mxu2 %v9539_v26  ;;  %v9548_v44 = vld [vmem:[#allocation126_spill] sm:$0xff]  ;;  %v8319_v26 = vpop.f32.mrf.mxu3  ;;  %9554 = vst [vmem:[#allocation30_spill] sm:$0xff] %v8325_v48  ;;  %v9564_v48 = vld [vmem:[#allocation139_spill] sm:$0xff] }
 0x230   :  { %3855 = vmatpush.bf16.msrb.mxu1 %v9543_v35  ;;  %9549 = vst [vmem:[#allocation18_spill] sm:$0xff] %v8319_v26  ;;  %v9552_v35 = vld [vmem:[#allocation129_spill] sm:$0xff] }
 0x231   :  { %3841 = vmatpush.bf16.msrb.mxu0 %v9541_v59  ;;  %v9550_v59 = vld [vmem:[#allocation127_spill] sm:$0xff] }
 0x233   :  { %3827 = vmatpush.bf16.msrb.mxu3 %v9544_v6  ;;  %3866 = vmatpush.bf16.msrb.mxu2 %v9546_v28  ;;  %v3475_v6 = vpop.f32.mrf.mxu0  ;;  %v9555_v28 = vld [vmem:[#allocation131_spill] sm:$0xff] }
 0x234   :  { %3904 = vmatpush.bf16.msra.mxu1 %v9545_v53  ;;  %3842 = vmatmul.bf16.vlgmr.msrb.gmra.mxu0 %v8106_v14  ;;  %v9553_v53 = vld [vmem:[#allocation130_spill] sm:$0xff] }
 0x235   :  { %3890 = vmatpush.bf16.msra.mxu0 %v9542_v40  ;;  %3856 = vmatmul.bf16.vlgmr.msrb.gmra.mxu1 %v8150_v12  ;;  %v9551_v40 = vld [vmem:[#allocation128_spill] sm:$0xff] }
 0x236   :  { %3828 = vmatmul.bf16.vlgmr.msrb.gmra.mxu3 %v8100_v36 }
 0x237   :  { %3876 = vmatpush.bf16.msra.mxu3 %v9547_v33  ;;  %3867 = vmatpush.bf16.msrb.mxu2 %v9551_v40  ;;  %v9556_v33 = vld [vmem:[#allocation132_spill] sm:$0xff] }
 0x238   :  { %3905 = vmatpush.bf16.msra.mxu1 %v9550_v59  ;;  %v3461_v59 = vpop.f32.mrf.mxu3  ;;  %v9560_v40 = vld [vmem:[#allocation136_spill] sm:$0xff] }
 0x239   :  { %3891 = vmatpush.bf16.msra.mxu0 %v9548_v44  ;;  %v9558_v44 = vld [vmem:[#allocation134_spill] sm:$0xff]  ;;  %v3462_v26 = vadd.f32 %v3461_v59, %v3448_v3  ;;  %v9568_v59 = vld [vmem:[#allocation143_spill] sm:$0xff] }
 0x23a   :  { %v9567_v3 = vld [vmem:[#allocation142_spill] sm:$0xff] }
 0x23b   :  { %3877 = vmatpush.bf16.msra.mxu3 %v9552_v35  ;;  %3868 = vmatpush.bf16.msrb.mxu2 %v9556_v33  ;;  %v9561_v35 = vld [vmem:[#allocation137_spill] sm:$0xff]  ;;  %v8334_v16 = vpop.f32.mrf.mxu0  ;;  %v3489_v33 = vpop.f32.mrf.mxu1 }
 0x23c   :  { %3906 = vmatpush.bf16.msra.mxu1 %v9555_v28  ;;  %9562 = vst [vmem:[#allocation23_spill] sm:$0xff] %v8334_v16  ;;  %v3476_v28 = vadd.f32 %v3475_v6, %v3462_v26  ;;  %v9573_v26 = vld [vmem:[#allocation147_spill] sm:$0xff]  ;;  %v9574_v16 = vld [vmem:[#allocation148_spill] sm:$0xff] }
 0x23d   :  { %3892 = vmatpush.bf16.msra.mxu0 %v9553_v53  ;;  %v9563_v53 = vld [vmem:[#allocation138_spill] sm:$0xff] }
 0x23f   :  { %3878 = vmatpush.bf16.msra.mxu3 %v9557_v31  ;;  %3869 = vmatpush.bf16.msrb.mxu2 %v9560_v40  ;;  %v9565_v31 = vld [vmem:[#allocation140_spill] sm:$0xff] }
 0x240   :  { %3907 = vmatpush.bf16.msra.mxu1 %v9559_v22  ;;  %v3490_v22 = vadd.f32 %v3489_v33, %v3476_v28  ;;  %v9569_v40 = vld [vmem:[#allocation144_spill] sm:$0xff]  ;;  %v9576_v28 = vld [vmem:[#allocation150_spill] sm:$0xff]  ;;  %v9577_v33 = vld [vmem:[#allocation151_spill] sm:$0xff] }
 0x241   :  { %3893 = vmatpush.bf16.msra.mxu0 %v9558_v44  ;;  %v9566_v44 = vld [vmem:[#allocation141_spill] sm:$0xff] }
 0x242   :  { %3870 = vmatmul.bf16.vlgmr.msrb.gmra.mxu2 %v8185_v17 }
 0x243   :  { %3879 = vmatpush.bf16.msra.mxu3 %v9561_v35  ;;  %3918 = vmatpush.bf16.msra.mxu2 %v9563_v53  ;;  %v9570_v35 = vld [vmem:[#allocation145_spill] sm:$0xff]  ;;  %v8345_v53 = vpop.f32.mrf.mxu2  ;;  %v3531_v6 = vpop.f32.mrf.mxu0 }
 0x244   :  { %3908 = vmatpush.bf16.msra.mxu1 %v9565_v31  ;;  %9571 = vst [vmem:[#allocation32_spill] sm:$0xff] %v8345_v53  ;;  %v9575_v31 = vld [vmem:[#allocation149_spill] sm:$0xff]  ;;  %v9596_v53 = vld [vmem:[#allocation167_spill] sm:$0xff] }
 0x245   :  { %3894 = vmatpush.bf16.msra.mxu0 %v9564_v48  ;;  %v9572_v48 = vld [vmem:[#allocation146_spill] sm:$0xff] }
 0x247   :  { %3880 = vmatpush.bf16.msra.mxu3 %v9566_v44  ;;  %3919 = vmatpush.bf16.msra.mxu2 %v9567_v3  ;;  %v9578_v44 = vld [vmem:[#allocation153_spill] sm:$0xff]  ;;  %v9579_v3 = vld [vmem:[#allocation152_spill] sm:$0xff] }
 0x248   :  { %3909 = vmatpush.bf16.msra.mxu1 %v9569_v40  ;;  %v9581_v40 = vld [vmem:[#allocation154_spill] sm:$0xff] }
 0x249   :  { %3895 = vmatpush.bf16.msra.mxu0 %v9568_v59  ;;  %v9580_v59 = vld [vmem:[#allocation155_spill] sm:$0xff] }
 0x24b   :  { %3881 = vmatpush.bf16.msra.mxu3 %v9570_v35  ;;  %3920 = vmatpush.bf16.msra.mxu2 %v9572_v48  ;;  %v9582_v35 = vld [vmem:[#allocation156_spill] sm:$0xff]  ;;  %v9583_v48 = vld [vmem:[#allocation157_spill] sm:$0xff] }
 0x24c   :  { %3910 = vmatpush.bf16.msra.mxu1 %v9574_v16  ;;  %v8359_v16 = vpop.f32.mrf.mxu0 }
 0x24d   :  { %3896 = vmatpush.bf16.msra.mxu0 %v9573_v26  ;;  %v3503_v26 = vpop.f32.mrf.mxu2  ;;  %9584 = vst [vmem:[#allocation31_spill] sm:$0xff] %v8359_v16 }
 0x24f   :  { %3882 = vmatpush.bf16.msra.mxu3 %v9575_v31  ;;  %3921 = vmatpush.bf16.msra.mxu2 %v9576_v28  ;;  %v3504_v31 = vadd.f32 %v3503_v26, %v3490_v22  ;;  %v8363_v28 = vpop.f32.mrf.mxu1  ;;  %v9592_v22 = vld [vmem:[#allocation163_spill] sm:$0xff]  ;;  %v9594_v26 = vld [vmem:[#allocation165_spill] sm:$0xff] }
 0x250   :  { %3911 = vmatpush.bf16.msra.mxu1 %v9579_v3  ;;  %9585 = vst [vmem:[#allocation82_spill] sm:$0xff] %v8363_v28  ;;  %v9588_v3 = vld [vmem:[#allocation159_spill] sm:$0xff]  ;;  %v9595_v28 = vld [vmem:[#allocation166_spill] sm:$0xff] }
 0x251   :  { %3897 = vmatpush.bf16.msra.mxu0 %v9577_v33  ;;  %v9586_v33 = vld [vmem:[#allocation158_spill] sm:$0xff] }
 0x253   :  { %3883 = vmatpush.bf16.msra.mxu3 %v9580_v59  ;;  %3922 = vmatpush.bf16.msra.mxu2 %v9582_v35  ;;  %v9589_v59 = vld [vmem:[#allocation160_spill] sm:$0xff]  ;;  %v9591_v35 = vld [vmem:[#allocation162_spill] sm:$0xff] }
 0x254   :  { %3960 = vmatpush.bf16.msrb.mxu1 %v9581_v40  ;;  %3898 = vmatmul.bf16.vlgmr.msra.gmra.mxu0 %v8203_v56  ;;  %v9590_v40 = vld [vmem:[#allocation161_spill] sm:$0xff]  ;;  %v3661_v16 = vpop.f32.mrf.mxu0 }
 0x255   :  { %3946 = vmatpush.bf16.msrb.mxu0 %v9578_v44  ;;  %3912 = vmatmul.bf16.vlgmr.msra.gmra.mxu1 %v8225_v43  ;;  %v8367_v44 = vpop.f32.mrf.mxu3 }
 0x256   :  { %3884 = vmatmul.bf16.vlgmr.msra.gmra.mxu3 %v8198_v8  ;;  %9587 = vst [vmem:[#allocation33_spill] sm:$0xff] %v8367_v44 }
 0x257   :  { %3932 = vmatpush.bf16.msrb.mxu3 %v9583_v48  ;;  %3923 = vmatpush.bf16.msra.mxu2 %v9589_v59  ;;  %v9593_v48 = vld [vmem:[#allocation164_spill] sm:$0xff] }
 0x258   :  { %3961 = vmatpush.bf16.msrb.mxu1 %v9588_v3  ;;  %v9597_v59 = vld [vmem:[#allocation168_spill] sm:$0xff] }
 0x259   :  { %3947 = vmatpush.bf16.msrb.mxu0 %v9586_v33  ;;  %v3675_v33 = vpop.f32.mrf.mxu1 }
 0x25a   :  { %v3676_v3 = vadd.f32 %v3675_v33, %v3661_v16  ;;  %v9605_v16 = vld [vmem:[#allocation175_spill] sm:$0xff] }
 0x25b   :  { %3933 = vmatpush.bf16.msrb.mxu3 %v9590_v40  ;;  %3924 = vmatpush.bf16.msra.mxu2 %v9593_v48  ;;  %v9598_v40 = vld [vmem:[#allocation169_spill] sm:$0xff]  ;;  %v9601_v48 = vld [vmem:[#allocation171_spill] sm:$0xff] }
 0x25c   :  { %3962 = vmatpush.bf16.msrb.mxu1 %v9592_v22 }
 0x25d   :  { %3948 = vmatpush.bf16.msrb.mxu0 %v9591_v35  ;;  %v3517_v44 = vpop.f32.mrf.mxu3  ;;  %v9599_v35 = vld [vmem:[#allocation170_spill] sm:$0xff] }
 0x25e   :  { %v3518_v15 = vadd.f32 %v3517_v44, %v3504_v31  ;;  %v9606_v31 = vld [vmem:[#allocation176_spill] sm:$0xff]  ;;  %v3663_v44 = vpop.f32.mrf.mxu0 }
 0x25f   :  { %3934 = vmatpush.bf16.msrb.mxu3 %v9594_v26  ;;  %3925 = vmatpush.bf16.msra.mxu2 %v9597_v59  ;;  %v9602_v26 = vld [vmem:[#allocation172_spill] sm:$0xff]  ;;  %v9607_v59 = vld [vmem:[#allocation177_spill] sm:$0xff] }
 0x260   :  { %3963 = vmatpush.bf16.msrb.mxu1 %v9596_v53  ;;  %v8381_v22 = vadd.f32 %v3531_v6, %v3518_v15  ;;  %v9604_v53 = vld [vmem:[#allocation174_spill] sm:$0xff] }
 0x261   :  { %3949 = vmatpush.bf16.msrb.mxu0 %v9595_v28  ;;  %v9603_v28 = vld [vmem:[#allocation173_spill] sm:$0xff]  ;;  %v3677_v33 = vpop.f32.mrf.mxu1  ;;  %v9608_v6 = vld [vmem:[#allocation178_spill] sm:$0xff] }
 0x262   :  { %9600 = vst [vmem:[#allocation34_spill] sm:$0xff] %v8381_v22  ;;  %3926 = vmatmul.bf16.vlgmr.msra.gmra.mxu2 %v8249_v63  ;;  %v3678_v15 = vadd.f32 %v3677_v33, %v3663_v44  ;;  %v9618_v44 = vld [vmem:[#allocation188_spill] sm:$0xff]  ;;  %v9619_v33 = vld [vmem:[#allocation187_spill] sm:$0xff] }
 0x263   :  { %3935 = vmatpush.bf16.msrb.mxu3 %v9598_v40  ;;  %3980 = vmatpush.bf16.msrb.mxu2 %v9599_v35  ;;  %v8392_v40 = vpop.f32.mrf.mxu2  ;;  %v9610_v35 = vld [vmem:[#allocation179_spill] sm:$0xff] }
 0x264   :  { %3964 = vmatpush.bf16.msrb.mxu1 %v9602_v26  ;;  %9609 = vst [vmem:[#allocation36_spill] sm:$0xff] %v8392_v40  ;;  %v9612_v26 = vld [vmem:[#allocation181_spill] sm:$0xff] }
 0x265   :  { %3950 = vmatpush.bf16.msrb.mxu0 %v9601_v48  ;;  %v9611_v48 = vld [vmem:[#allocation180_spill] sm:$0xff] }
 0x267   :  { %3936 = vmatpush.bf16.msrb.mxu3 %v9603_v28  ;;  %3981 = vmatpush.bf16.msrb.mxu2 %v9604_v53  ;;  %v9613_v28 = vld [vmem:[#allocation182_spill] sm:$0xff]  ;;  %v9614_v53 = vld [vmem:[#allocation183_spill] sm:$0xff] }
 0x268   :  { %3965 = vmatpush.bf16.msrb.mxu1 %v9607_v59  ;;  %v9617_v59 = vld [vmem:[#allocation186_spill] sm:$0xff] }
 0x269   :  { %3951 = vmatpush.bf16.msrb.mxu0 %v9606_v31  ;;  %v9616_v31 = vld [vmem:[#allocation185_spill] sm:$0xff] }
 0x26b   :  { %3988 = vmatpush.bf16.msra.mxu2 %v9605_v16  ;;  %3937 = vmatpush.bf16.msrb.mxu3 %v9608_v6  ;;  %v9615_v16 = vld [vmem:[#allocation184_spill] sm:$0xff]  ;;  %v9620_v6 = vld [vmem:[#allocation189_spill] sm:$0xff] }
 0x26c   :  { %3966 = vmatpush.bf16.msrb.mxu1 %v9612_v26 }
 0x26d   :  { %3952 = vmatpush.bf16.msrb.mxu0 %v9611_v48  ;;  %v9621_v48 = vld [vmem:[#allocation190_spill] sm:$0xff] }
 0x26f   :  { %3989 = vmatpush.bf16.msra.mxu2 %v9610_v35  ;;  %3938 = vmatpush.bf16.msrb.mxu3 %v9613_v28  ;;  %v3689_v35 = vpop.f32.mrf.mxu2  ;;  %v9622_v28 = vld [vmem:[#allocation191_spill] sm:$0xff] }
 0x270   :  { %3967 = vmatpush.bf16.msrb.mxu1 %v9616_v31  ;;  %v3690_v26 = vadd.f32 %v3689_v35, %v3676_v3  ;;  %v9625_v31 = vld [vmem:[#allocation193_spill] sm:$0xff]  ;;  %v9630_v35 = vld [vmem:[#allocation198_spill] sm:$0xff] }
 0x271   :  { %3953 = vmatpush.bf16.msrb.mxu0 %v9615_v16  ;;  %v9624_v16 = vld [vmem:[#allocation192_spill] sm:$0xff]  ;;  %v9629_v3 = vld [vmem:[#allocation197_spill] sm:$0xff] }
 0x272   :  { %5924 = vmatmul.msk.bf16.vlgmr.msrb.gmra.mxu2 %vm100_vm9, %v8281_v46  ;;  %v3731_v40 = vpop.f32.mrf.mxu1 }
 0x273   :  { %3990 = vmatpush.bf16.msra.mxu2 %v9614_v53  ;;  %3939 = vmatpush.bf16.msrb.mxu3 %v9618_v44  ;;  %v8410_v53 = vpop.f32.mrf.mxu3  ;;  %v9627_v44 = vld [vmem:[#allocation195_spill] sm:$0xff] }
 0x274   :  { %4030 = vmatpush.bf16.msra.mxu1 %v9619_v33  ;;  %3954 = vmatmul.bf16.vlgmr.msrb.gmra.mxu0 %v8255_v38  ;;  %9623 = vst [vmem:[#allocation35_spill] sm:$0xff] %v8410_v53  ;;  %v9628_v33 = vld [vmem:[#allocation196_spill] sm:$0xff]  ;;  %v9631_v53 = vld [vmem:[#allocation199_spill] sm:$0xff] }
 0x275   :  { %4016 = vmatpush.bf16.msra.mxu0 %v9617_v59  ;;  %3968 = vmatmul.bf16.vlgmr.msrb.gmra.mxu1 %v8283_v37  ;;  %v9626_v59 = vld [vmem:[#allocation194_spill] sm:$0xff] }
 0x276   :  { %3940 = vmatmul.bf16.vlgmr.msrb.gmra.mxu3 %v8259_v23 }
 0x277   :  { %4002 = vmatpush.bf16.msra.mxu3 %v9620_v6  ;;  %3991 = vmatpush.bf16.msra.mxu2 %v9621_v48  ;;  %v3691_v6 = vpop.f32.mrf.mxu2  ;;  %v3717_v48 = vpop.f32.mrf.mxu0 }
 0x278   :  { %4031 = vmatpush.bf16.msra.mxu1 %v9624_v16  ;;  %v9632_v16 = vld [vmem:[#allocation200_spill] sm:$0xff] }
 0x279   :  { %4017 = vmatpush.bf16.msra.mxu0 %v9622_v28  ;;  %v3692_v28 = vadd.f32 %v3691_v6, %v3678_v15  ;;  %v9638_v15 = vld [vmem:[#allocation206_spill] sm:$0xff]  ;;  %v9640_v6 = vld [vmem:[#allocation208_spill] sm:$0xff] }
 0x27b   :  { %4003 = vmatpush.bf16.msra.mxu3 %v9625_v31  ;;  %3992 = vmatpush.bf16.msra.mxu2 %v9626_v59  ;;  %v3703_v22 = vpop.f32.mrf.mxu3  ;;  %v9633_v31 = vld [vmem:[#allocation201_spill] sm:$0xff] }
 0x27c   :  { %4032 = vmatpush.bf16.msra.mxu1 %v9628_v33  ;;  %v3704_v59 = vadd.f32 %v3703_v22, %v3690_v26  ;;  %v9642_v26 = vld [vmem:[#allocation210_spill] sm:$0xff] }
 0x27d   :  { %4018 = vmatpush.bf16.msra.mxu0 %v9627_v44  ;;  %v9635_v44 = vld [vmem:[#allocation203_spill] sm:$0xff] }
 0x27e   :  { %v3718_v33 = vadd.f32 %v3717_v48, %v3704_v59  ;;  %v3733_v48 = vpop.f32.mrf.mxu1  ;;  %v9643_v59 = vld [vmem:[#allocation211_spill] sm:$0xff] }
 0x27f   :  { %4004 = vmatpush.bf16.msra.mxu3 %v9629_v3  ;;  %3993 = vmatpush.bf16.msra.mxu2 %v9630_v35  ;;  %v9636_v3 = vld [vmem:[#allocation204_spill] sm:$0xff]  ;;  %v3719_v22 = vpop.f32.mrf.mxu0 }
 0x280   :  { %4033 = vmatpush.bf16.msra.mxu1 %v9632_v16  ;;  %v3732_v35 = vadd.f32 %v3731_v40, %v3718_v33  ;;  %v9641_v16 = vld [vmem:[#allocation209_spill] sm:$0xff]  ;;  %v9646_v33 = vld [vmem:[#allocation214_spill] sm:$0xff] }
 0x281   :  { %4019 = vmatpush.bf16.msra.mxu0 %v9631_v53  ;;  %v9639_v53 = vld [vmem:[#allocation207_spill] sm:$0xff] }
 0x283   :  { %4005 = vmatpush.bf16.msra.mxu3 %v9633_v31  ;;  %3994 = vmatpush.bf16.msra.mxu2 %v9634_v51  ;;  %v3705_v31 = vpop.f32.mrf.mxu3 }
 0x284   :  { %4034 = vmatpush.bf16.msra.mxu1 %v9636_v3  ;;  %v3706_v51 = vadd.f32 %v3705_v31, %v3692_v28  ;;  %v9650_v28 = vld [vmem:[#allocation218_spill] sm:$0xff]  ;;  %v9652_v31 = vld [vmem:[#allocation219_spill] sm:$0xff] }
 0x285   :  { %4020 = vmatpush.bf16.msra.mxu0 %v9635_v44  ;;  %v9645_v44 = vld [vmem:[#allocation213_spill] sm:$0xff] }
 0x286   :  { %v3720_v40 = vadd.f32 %v3719_v22, %v3706_v51  ;;  %v3745_v22 = vpop.f32.mrf.mxu2 }
 0x287   :  { %4006 = vmatpush.bf16.msra.mxu3 %v9637_v29  ;;  %3995 = vmatpush.bf16.msra.mxu2 %v9638_v15  ;;  %v9644_v29 = vld [vmem:[#allocation212_spill] sm:$0xff]  ;;  %v9647_v15 = vld [vmem:[#allocation215_spill] sm:$0xff]  ;;  %v3746_v51 = vadd.f32 %v3745_v22, %v3732_v35 }
 0x288   :  { %4035 = vmatpush.bf16.msra.mxu1 %v9641_v16  ;;  %v3734_v3 = vadd.f32 %v3733_v48, %v3720_v40  ;;  %v9651_v16 = vld [vmem:[#allocation220_spill] sm:$0xff]  ;;  %v9657_v40 = vld [vmem:[#allocation227_spill] sm:$0xff] }
 0x289   :  { %4021 = vmatpush.bf16.msra.mxu0 %v9640_v6  ;;  %v9649_v6 = vld [vmem:[#allocation217_spill] sm:$0xff]  ;;  %v9654_v48 = vld [vmem:[#allocation224_spill] sm:$0xff] }
 0x28a   :  { %3996 = vmatmul.bf16.vlgmr.msra.gmra.mxu2 %v8100_v36 }
 0x28b   :  { %4044 = vmatpush.bf16.msrb.mxu2 %v9639_v53  ;;  %4007 = vmatpush.bf16.msra.mxu3 %v9642_v26  ;;  %v9648_v53 = vld [vmem:[#allocation216_spill] sm:$0xff]  ;;  %v9653_v26 = vld [vmem:[#allocation223_spill] sm:$0xff] }
 0x28c   :  { %4036 = vmatpush.bf16.msra.mxu1 %v9645_v44  ;;  %v9658_v44 = vld [vmem:[#allocation228_spill] sm:$0xff] }
 0x28d   :  { %4022 = vmatpush.bf16.msra.mxu0 %v9644_v29  ;;  %v9656_v29 = vld [vmem:[#allocation226_spill] sm:$0xff] }
 0x28e   :  { %v3747_v35 = vpop.f32.mrf.mxu2 }
 0x28f   :  { %4045 = vmatpush.bf16.msrb.mxu2 %v9643_v59  ;;  %4008 = vmatpush.bf16.msra.mxu3 %v9646_v33  ;;  %v9655_v59 = vld [vmem:[#allocation225_spill] sm:$0xff] }
 0x290   :  { %4037 = vmatpush.bf16.msra.mxu1 %v9649_v6  ;;  %v9659_v33 = vld [vmem:[#allocation229_spill] sm:$0xff]  ;;  %v3748_v6 = vadd.f32 %v3747_v35, %v3734_v3  ;;  %v9670_v35 = vld [vmem:[#allocation242_spill] sm:$0xff] }
 0x291   :  { %4023 = vmatpush.bf16.msra.mxu0 %v9648_v53  ;;  %v9661_v53 = vld [vmem:[#allocation233_spill] sm:$0xff]  ;;  %v3759_v22 = vpop.f32.mrf.mxu3 }
 0x293   :  { %4046 = vmatpush.bf16.msrb.mxu2 %v9647_v15  ;;  %4009 = vmatpush.bf16.msra.mxu3 %v9651_v16  ;;  %v9660_v15 = vld [vmem:[#allocation230_spill] sm:$0xff]  ;;  %v3773_v16 = vpop.f32.mrf.mxu0 }
 0x294   :  { %4086 = vmatpush.bf16.msrb.mxu1 %v9652_v31  ;;  %4024 = vmatmul.bf16.vlgmr.msra.gmra.mxu0 %v8150_v12  ;;  %v9663_v31 = vld [vmem:[#allocation235_spill] sm:$0xff] }
 0x295   :  { %4072 = vmatpush.bf16.msrb.mxu0 %v9650_v28  ;;  %4038 = vmatmul.bf16.vlgmr.msra.gmra.mxu1 %v8185_v17  ;;  %v9662_v28 = vld [vmem:[#allocation234_spill] sm:$0xff] }
 0x296   :  { %4010 = vmatmul.bf16.vlgmr.msra.gmra.mxu3 %v8106_v14 }
 0x297   :  { %4058 = vmatpush.bf16.msrb.mxu3 %v9653_v26  ;;  %4047 = vmatpush.bf16.msrb.mxu2 %v9654_v48  ;;  %v9664_v26 = vld [vmem:[#allocation236_spill] sm:$0xff]  ;;  %v3787_v48 = vpop.f32.mrf.mxu1 }
 0x298   :  { %4087 = vmatpush.bf16.msrb.mxu1 %v9656_v29  ;;  %v9665_v29 = vld [vmem:[#allocation237_spill] sm:$0xff] }
 0x299   :  { %4073 = vmatpush.bf16.msrb.mxu0 %v9655_v59  ;;  %v3760_v59 = vadd.f32 %v3759_v22, %v3746_v51  ;;  %v3761_v51 = vpop.f32.mrf.mxu3 }
 0x29a   :  { %v3762_v22 = vadd.f32 %v3761_v51, %v3748_v6 }
 0x29b   :  { %4059 = vmatpush.bf16.msrb.mxu3 %v9657_v40  ;;  %4048 = vmatpush.bf16.msrb.mxu2 %v9658_v44  ;;  %v9666_v40 = vld [vmem:[#allocation238_spill] sm:$0xff]  ;;  %v9667_v44 = vld [vmem:[#allocation239_spill] sm:$0xff] }
 0x29c   :  { %4088 = vmatpush.bf16.msrb.mxu1 %v9660_v15  ;;  %v9668_v15 = vld [vmem:[#allocation240_spill] sm:$0xff] }
 0x29d   :  { %4074 = vmatpush.bf16.msrb.mxu0 %v9659_v33  ;;  %v3774_v33 = vadd.f32 %v3773_v16, %v3760_v59  ;;  %v3775_v16 = vpop.f32.mrf.mxu0 }
 0x29f   :  { %4060 = vmatpush.bf16.msrb.mxu3 %v9661_v53  ;;  %4049 = vmatpush.bf16.msrb.mxu2 %v9662_v28  ;;  %v3788_v3 = vadd.f32 %v3787_v48, %v3774_v33  ;;  %v9669_v53 = vld [vmem:[#allocation241_spill] sm:$0xff]  ;;  %v9671_v28 = vld [vmem:[#allocation243_spill] sm:$0xff]  ;;  %v3789_v59 = vpop.f32.mrf.mxu1  ;;  %v3776_v48 = vadd.f32 %v3775_v16, %v3762_v22 }
 0x2a0   :  { %4089 = vmatpush.bf16.msrb.mxu1 %v9664_v26  ;;  %v9673_v26 = vld [vmem:[#allocation247_spill] sm:$0xff] }
 0x2a1   :  { %4075 = vmatpush.bf16.msrb.mxu0 %v9663_v31  ;;  %v9672_v31 = vld [vmem:[#allocation244_spill] sm:$0xff]  ;;  %v3790_v33 = vadd.f32 %v3789_v59, %v3776_v48  ;;  %v9683_v16 = vld [vmem:[#allocation259_spill] sm:$0xff] }
 0x2a2   :  { %v9684_v48 = vld [vmem:[#allocation260_spill] sm:$0xff] }
 0x2a3   :  { %4061 = vmatpush.bf16.msrb.mxu3 %v9665_v29  ;;  %4050 = vmatpush.bf16.msrb.mxu2 %v9666_v40  ;;  %v9674_v29 = vld [vmem:[#allocation248_spill] sm:$0xff]  ;;  %v8472_v40 = vld [vmem:[#allocation6] sm:$0xf] }
 0x2a4   :  { %4090 = vmatpush.bf16.msrb.mxu1 %v9668_v15  ;;  %v8477_v6 = vperm.slane %v8472_v40, 0  ;;  %v9676_v15 = vld [vmem:[#allocation252_spill] sm:$0xff] }
 0x2a5   :  { %4076 = vmatpush.bf16.msrb.mxu0 %v9667_v44  ;;  %v9675_v44 = vld [vmem:[#allocation249_spill] sm:$0xff] }
 0x2a7   :  { %4062 = vmatpush.bf16.msrb.mxu3 %v9669_v53  ;;  %4051 = vmatpush.bf16.msrb.mxu2 %v9670_v35  ;;  %v8481_v53 = vld [vmem:[#allocation8] sm:$0xf]  ;;  %v9679_v35 = vld [vmem:[#allocation256_spill] sm:$0xff] }
 0x2a8   :  { %4091 = vmatpush.bf16.msrb.mxu1 %v9673_v26  ;;  %v9681_v26 = vld [vmem:[#allocation257_spill] sm:$0xff]  ;;  %v8492_v51 = vperm.slane %v8481_v53, 0 }
 0x2a9   :  { %4077 = vmatpush.bf16.msrb.mxu0 %v9672_v31  ;;  %v3815_v31 = vpop.f32.mrf.mxu3 }
 0x2aa   :  { %4052 = vmatmul.bf16.vlgmr.msrb.gmra.mxu2 %v8198_v8 }
 0x2ab   :  { %4100 = vmatpush.bf16.msra.mxu2 %v9671_v28  ;;  %4063 = vmatpush.bf16.msrb.mxu3 %v9674_v29  ;;  %v9680_v28 = vld [vmem:[#allocation255_spill] sm:$0xff]  ;;  %v9682_v29 = vld [vmem:[#allocation258_spill] sm:$0xff] }
 0x2ac   :  { %4092 = vmatpush.bf16.msrb.mxu1 %v9675_v44  ;;  %v9685_v44 = vld [vmem:[#allocation261_spill] sm:$0xff] }
 0x2ad   :  { %4078 = vmatpush.bf16.msrb.mxu0 %v7503_v57  ;;  %v9678_v57 = vld [vmem:[#allocation254_spill] sm:$0xff] }
 0x2af   :  { %4101 = vmatpush.bf16.msra.mxu2 %v7501_v45  ;;  %4064 = vmatpush.bf16.msrb.mxu3 %v7520_v20  ;;  %v9677_v45 = vld [vmem:[#allocation253_spill] sm:$0xff]  ;;  %v3801_v20 = vpop.f32.mrf.mxu2 }
 0x2b0   :  { %4093 = vmatpush.bf16.msrb.mxu1 %v9677_v45  ;;  %v3802_v22 = vadd.f32 %v3801_v20, %v3788_v3  ;;  %v9686_v3 = vld [vmem:[#allocation262_spill] sm:$0xff] }
 0x2b1   :  { %4079 = vmatpush.bf16.msrb.mxu0 %v9676_v15 }
 0x2b2   :  { %v3816_v59 = vadd.f32 %v3815_v31, %v3802_v22  ;;  %v9689_v22 = vld [vmem:[#allocation265_spill] sm:$0xff] }
 0x2b3   :  { %4102 = vmatpush.bf16.msra.mxu2 %v7534_v50  ;;  %4065 = vmatpush.bf16.msrb.mxu3 %v9679_v35  ;;  %v3545_v50 = vmul.f32 %v8477_v6, %v7603_v7  ;;  %v9687_v35 = vld [vmem:[#allocation263_spill] sm:$0xff] }
 0x2b4   :  { %4148 = vmatpush.bf16.msra.mxu1 %v9680_v28  ;;  %4080 = vmatmul.bf16.vlgmr.msrb.gmra.mxu0 %v8225_v43  ;;  %v4324_v15 = vmul.f32 %v3816_v59, %v8477_v6  ;;  %v9688_v28 = vld [vmem:[#allocation264_spill] sm:$0xff]  ;;  %v9692_v59 = vld [vmem:[#allocation271_spill] sm:$0xff] }
 0x2b5   :  { %4128 = vmatpush.bf16.msra.mxu0 %v9678_v57  ;;  %4094 = vmatmul.bf16.vlgmr.msrb.gmra.mxu1 %v8249_v63  ;;  %v3562_v7 = vadd.f32 %v8492_v51, %v3545_v50  ;;  %v3817_v57 = vpop.f32.mrf.mxu3  ;;  %v9690_v50 = vld [vmem:[#allocation266_spill] sm:$0xff] }
 0x2b6   :  { %4066 = vmatmul.bf16.vlgmr.msrb.gmra.mxu3 %v8203_v56  ;;  %v4332_v45 = vadd.f32 %v4324_v15, %v8492_v51  ;;  %v3857_v15 = vpop.f32.mrf.mxu1 }
 0x2b7   :  { %4114 = vmatpush.bf16.msra.mxu3 %v9681_v26  ;;  %4103 = vmatpush.bf16.msra.mxu2 %v9682_v29  ;;  %v3803_v31 = vpop.f32.mrf.mxu2  ;;  %v3570_v26 = vmax.f32 %v3562_v7, 0.0  ;;  %v9694_v7 = vld [vmem:[#allocation273_spill] sm:$0xff] }
 0x2b8   :  { %4149 = vmatpush.bf16.msra.mxu1 %v9684_v48  ;;  %v3804_v20 = vadd.f32 %v3803_v31, %v3790_v33  ;;  %v3843_v48 = vpop.f32.mrf.mxu0  ;;  %v9695_v33 = vld [vmem:[#allocation274_spill] sm:$0xff] }
 0x2b9   :  { %4129 = vmatpush.bf16.msra.mxu0 %v9683_v16  ;;  %v9691_v16 = vld [vmem:[#allocation268_spill] sm:$0xff] }
 0x2bb   :  { %4115 = vmatpush.bf16.msra.mxu3 %v7584_v24  ;;  %4104 = vmatpush.bf16.msra.mxu2 %v7588_v4  ;;  %v4340_v24 = vmax.f32 %v4332_v45, 0.0  ;;  %v8512_v4 = vadd.f32 %v3817_v57, %v3804_v20  ;;  %v9696_v45 = vld [vmem:[#allocation275_spill] sm:$0xff]  ;;  %v9701_v20 = vld [vmem:[#allocation280_spill] sm:$0xff] }
 0x2bc   :  { %4156 = vmatpush.bf16.msrb.mxu1 %v9685_v44  ;;  %v9693_v44 = vld [vmem:[#allocation272_spill] sm:$0xff] }
 0x2bd   :  { %4130 = vmatpush.bf16.msra.mxu0 %v9686_v3  ;;  %v8510_v29 = vmax.f32 %v3570_v26, %v4340_v24  ;;  %v3829_v3 = vpop.f32.mrf.mxu3  ;;  %v9700_v26 = vld [vmem:[#allocation279_spill] sm:$0xff] }
 0x2be   :  { %v3844_v57 = vadd.f32 %v3843_v48, %v3829_v3  ;;  %v9704_v48 = vld [vmem:[#allocation284_spill] sm:$0xff] }
 0x2bf   :  { %4116 = vmatpush.bf16.msra.mxu3 %v9687_v35  ;;  %4105 = vmatpush.bf16.msra.mxu2 %v9689_v22  ;;  %v9698_v35 = vld [vmem:[#allocation277_spill] sm:$0xff]  ;;  %v9702_v22 = vld [vmem:[#allocation282_spill] sm:$0xff] }
 0x2c0   :  { %4157 = vmatpush.bf16.msrb.mxu1 %v9688_v28  ;;  %v9699_v28 = vld [vmem:[#allocation278_spill] sm:$0xff]  ;;  %v3858_v31 = vadd.f32 %v3857_v15, %v3844_v57  ;;  %v3845_v24 = vpop.f32.mrf.mxu0 }
 0x2c1   :  { %4131 = vmatpush.bf16.msra.mxu0 %v9690_v50  ;;  %v9710_v57 = vld [vmem:[#allocation290_spill] sm:$0xff] }
 0x2c3   :  { %4117 = vmatpush.bf16.msra.mxu3 %v7628_v55  ;;  %4106 = vmatpush.bf16.msra.mxu2 %v9692_v59  ;;  %v9697_v55 = vld [vmem:[#allocation276_spill] sm:$0xff]  ;;  %v9703_v59 = vld [vmem:[#allocation283_spill] sm:$0xff] }
 0x2c4   :  { %4158 = vmatpush.bf16.msrb.mxu1 %v9691_v16 }
 0x2c5   :  { %4132 = vmatpush.bf16.msra.mxu0 %v9693_v44  ;;  %5925 = vmatmul.msk.bf16.vlgmr.msra.gmra.mxu1 %vm100_vm9, %v8281_v46  ;;  %v3831_v50 = vpop.f32.mrf.mxu3  ;;  %v3859_v44 = vpop.f32.mrf.mxu1 }
 0x2c6   :  { %v3846_v16 = vadd.f32 %v3845_v24, %v3831_v50  ;;  %v3871_v15 = vpop.f32.mrf.mxu2  ;;  %v9718_v24 = vld [vmem:[#allocation301_spill] sm:$0xff] }
 0x2c7   :  { %4118 = vmatpush.bf16.msra.mxu3 %v9694_v7  ;;  %4107 = vmatpush.bf16.msra.mxu2 %v9696_v45  ;;  %v9705_v7 = vld [vmem:[#allocation285_spill] sm:$0xff]  ;;  %v3872_v3 = vadd.f32 %v3871_v15, %v3858_v31  ;;  %v9715_v31 = vld [vmem:[#allocation296_spill] sm:$0xff] }
 0x2c8   :  { %4159 = vmatpush.bf16.msrb.mxu1 %v9695_v33  ;;  %v3860_v33 = vadd.f32 %v3859_v44, %v3846_v16  ;;  %v9709_v45 = vld [vmem:[#allocation289_spill] sm:$0xff]  ;;  %v9720_v16 = vld [vmem:[#allocation303_spill] sm:$0xff] }
 0x2c9   :  { %4133 = vmatpush.bf16.msra.mxu0 %v9698_v35  ;;  %v9722_v44 = vld [vmem:[#allocation305_spill] sm:$0xff] }
 0x2ca   :  { %4108 = vmatmul.bf16.vlgmr.msra.gmra.mxu2 %v8259_v23  ;;  %v9725_v15 = vld [vmem:[#allocation309_spill] sm:$0xff] }
 0x2cb   :  { %4170 = vmatpush.bf16.msrb.mxu2 %v9697_v55  ;;  %4119 = vmatpush.bf16.msra.mxu3 %v9699_v28  ;;  %v9712_v55 = vld [vmem:[#allocation292_spill] sm:$0xff]  ;;  %v9713_v28 = vld [vmem:[#allocation293_spill] sm:$0xff] }
 0x2cc   :  { %4160 = vmatpush.bf16.msrb.mxu1 %v9700_v26  ;;  %v9717_v26 = vld [vmem:[#allocation299_spill] sm:$0xff] }
 0x2cd   :  { %4134 = vmatpush.bf16.msra.mxu0 %v7691_v5  ;;  %v9707_v5 = vld [vmem:[#allocation287_spill] sm:$0xff] }
 0x2ce   :  { %v3873_v35 = vpop.f32.mrf.mxu2 }
 0x2cf   :  { %4171 = vmatpush.bf16.msrb.mxu2 %v7689_v18  ;;  %4120 = vmatpush.bf16.msra.mxu3 %v9701_v20  ;;  %v9706_v18 = vld [vmem:[#allocation286_spill] sm:$0xff] }
 0x2d0   :  { %4161 = vmatpush.bf16.msrb.mxu1 %v9702_v22  ;;  %v9719_v22 = vld [vmem:[#allocation302_spill] sm:$0xff] }
 0x2d1   :  { %4135 = vmatpush.bf16.msra.mxu0 %v9704_v48 }
 0x2d3   :  { %4172 = vmatpush.bf16.msrb.mxu2 %v9703_v59  ;;  %4121 = vmatpush.bf16.msra.mxu3 %v9705_v7  ;;  %v3913_v59 = vpop.f32.mrf.mxu1  ;;  %v9724_v7 = vld [vmem:[#allocation307_spill] sm:$0xff] }
 0x2d4   :  { %4162 = vmatpush.bf16.msrb.mxu1 %v9706_v18  ;;  %4136 = vmatmul.bf16.vlgmr.msra.gmra.mxu0 %v8283_v37 }
 0x2d5   :  { %4198 = vmatpush.bf16.msrb.mxu0 %v7722_v27  ;;  %v9708_v27 = vld [vmem:[#allocation288_spill] sm:$0xff] }
 0x2d6   :  { %4122 = vmatmul.bf16.vlgmr.msra.gmra.mxu3 %v8255_v38 }
 0x2d7   :  { %4184 = vmatpush.bf16.msrb.mxu3 %v9707_v5  ;;  %4173 = vmatpush.bf16.msrb.mxu2 %v7740_v32  ;;  %v9711_v32 = vld [vmem:[#allocation291_spill] sm:$0xff] }
 0x2d8   :  { %4163 = vmatpush.bf16.msrb.mxu1 %v7746_v61  ;;  %v9714_v61 = vld [vmem:[#allocation294_spill] sm:$0xff] }
 0x2d9   :  { %4199 = vmatpush.bf16.msrb.mxu0 %v7743_v62  ;;  %v3874_v62 = vadd.f32 %v3873_v35, %v3860_v33  ;;  %v3885_v20 = vpop.f32.mrf.mxu3 }
 0x2da   :  { %v3886_v50 = vadd.f32 %v3885_v20, %v3872_v3  ;;  %v9726_v3 = vld [vmem:[#allocation310_spill] sm:$0xff]  ;;  %v9740_v20 = vld [vmem:[#allocation324_spill] sm:$0xff] }
 0x2db   :  { %4185 = vmatpush.bf16.msrb.mxu3 %v9708_v27  ;;  %4174 = vmatpush.bf16.msrb.mxu2 %v9709_v45  ;;  %v9727_v45 = vld [vmem:[#allocation311_spill] sm:$0xff] }
 0x2dc   :  { %4212 = vmatpush.bf16.msra.mxu1 %v7752_v25  ;;  %v9716_v25 = vld [vmem:[#allocation297_spill] sm:$0xff] }
 0x2dd   :  { %4200 = vmatpush.bf16.msrb.mxu0 %v9710_v57  ;;  %4164 = vmatmul.bf16.vlgmr.msrb.gmra.mxu1 %v8100_v36  ;;  %v3899_v36 = vpop.f32.mrf.mxu0  ;;  %v9728_v57 = vld [vmem:[#allocation312_spill] sm:$0xff] }
 0x2de   :  { %v3900_v48 = vadd.f32 %v3899_v36, %v3886_v50  ;;  %v9742_v50 = vld [vmem:[#allocation328_spill] sm:$0xff] }
 0x2df   :  { %4186 = vmatpush.bf16.msrb.mxu3 %v9711_v32  ;;  %4175 = vmatpush.bf16.msrb.mxu2 %v9713_v28  ;;  %v3915_v32 = vpop.f32.mrf.mxu1  ;;  %v9731_v28 = vld [vmem:[#allocation315_spill] sm:$0xff] }
 0x2e0   :  { %4213 = vmatpush.bf16.msra.mxu1 %v9712_v55  ;;  %v3914_v33 = vadd.f32 %v3913_v59, %v3900_v48  ;;  %v9729_v55 = vld [vmem:[#allocation313_spill] sm:$0xff]  ;;  %v9746_v48 = vld [vmem:[#allocation334_spill] sm:$0xff] }
 0x2e1   :  { %4201 = vmatpush.bf16.msrb.mxu0 %v7778_v19  ;;  %v9721_v19 = vld [vmem:[#allocation304_spill] sm:$0xff]  ;;  %v3887_v18 = vpop.f32.mrf.mxu3 }
 0x2e2   :  { %v3888_v5 = vadd.f32 %v3887_v18, %v3874_v62  ;;  %v9732_v62 = vld [vmem:[#allocation316_spill] sm:$0xff] }
 0x2e3   :  { %4187 = vmatpush.bf16.msrb.mxu3 %v9714_v61  ;;  %4176 = vmatpush.bf16.msrb.mxu2 %v7796_v60  ;;  %v9723_v60 = vld [vmem:[#allocation306_spill] sm:$0xff]  ;;  %v9733_v61 = vld [vmem:[#allocation317_spill] sm:$0xff] }
 0x2e4   :  { %4214 = vmatpush.bf16.msra.mxu1 %v9715_v31  ;;  %v9734_v31 = vld [vmem:[#allocation318_spill] sm:$0xff] }
 0x2e5   :  { %4202 = vmatpush.bf16.msrb.mxu0 %v9716_v25  ;;  %v3901_v27 = vpop.f32.mrf.mxu0  ;;  %v9735_v25 = vld [vmem:[#allocation319_spill] sm:$0xff] }
 0x2e7   :  { %4188 = vmatpush.bf16.msrb.mxu3 %v9717_v26  ;;  %4177 = vmatpush.bf16.msrb.mxu2 %v9719_v22  ;;  %v9738_v26 = vld [vmem:[#allocation322_spill] sm:$0xff]  ;;  %v9741_v22 = vld [vmem:[#allocation325_spill] sm:$0xff] }
 0x2e8   :  { %4215 = vmatpush.bf16.msra.mxu1 %v9718_v24 }
 0x2e9   :  { %4203 = vmatpush.bf16.msrb.mxu0 %v9721_v19  ;;  %v9744_v19 = vld [vmem:[#allocation330_spill] sm:$0xff] }
 0x2ea   :  { %4178 = vmatmul.bf16.vlgmr.msrb.gmra.mxu2 %v8106_v14  ;;  %v3902_v14 = vadd.f32 %v3901_v27, %v3888_v5  ;;  %v9748_v5 = vld [vmem:[#allocation336_spill] sm:$0xff] }
 0x2eb   :  { %4226 = vmatpush.bf16.msra.mxu2 %v9720_v16  ;;  %4189 = vmatpush.bf16.msrb.mxu3 %v9722_v44  ;;  %v9743_v16 = vld [vmem:[#allocation329_spill] sm:$0xff] }
 0x2ec   :  { %4216 = vmatpush.bf16.msra.mxu1 %v9723_v60  ;;  %v9747_v60 = vld [vmem:[#allocation335_spill] sm:$0xff] }
 0x2ed   :  { %4204 = vmatpush.bf16.msrb.mxu0 %v7836_v47  ;;  %v3927_v47 = vpop.f32.mrf.mxu2 }
 0x2ee   :  { %v3928_v35 = vadd.f32 %v3927_v47, %v3914_v33  ;;  %v8596_v33 = vperm.slane %v8472_v40, 1  ;;  %v9752_v47 = vld [vmem:[#allocation340_spill] sm:$0xff] }
 0x2ef   :  { %4227 = vmatpush.bf16.msra.mxu2 %v9724_v7  ;;  %4190 = vmatpush.bf16.msrb.mxu3 %v7840_v11  ;;  %v9730_v11 = vld [vmem:[#allocation314_spill] sm:$0xff] }
 0x2f0   :  { %4217 = vmatpush.bf16.msra.mxu1 %v7846_v2  ;;  %v3916_v2 = vadd.f32 %v3915_v32, %v3902_v14  ;;  %v9751_v14 = vld [vmem:[#allocation339_spill] sm:$0xff]  ;;  %v8606_v32 = vperm.slane %v8481_v53, 1 }
 0x2f1   :  { %4205 = vmatpush.bf16.msrb.mxu0 %v9726_v3  ;;  %v3955_v59 = vpop.f32.mrf.mxu0 }
 0x2f2   :  { %v3969_v7 = vpop.f32.mrf.mxu1 }
 0x2f3   :  { %4228 = vmatpush.bf16.msra.mxu2 %v9725_v15  ;;  %4191 = vmatpush.bf16.msrb.mxu3 %v9728_v57  ;;  %v9749_v15 = vld [vmem:[#allocation337_spill] sm:$0xff]  ;;  %v3546_v57 = vmul.f32 %v8596_v33, %v7967_v41 }
 0x2f4   :  { %4218 = vmatpush.bf16.msra.mxu1 %v9729_v55  ;;  %4206 = vmatmul.bf16.vlgmr.msrb.gmra.mxu0 %v8185_v17  ;;  %v9737_v17 = vld [vmem:[#allocation321_spill] sm:$0xff] }
 0x2f5   :  { %4254 = vmatpush.bf16.msra.mxu0 %v9727_v45  ;;  %v3929_v36 = vpop.f32.mrf.mxu2  ;;  %v9750_v45 = vld [vmem:[#allocation338_spill] sm:$0xff] }
 0x2f6   :  { %4192 = vmatmul.bf16.vlgmr.msrb.gmra.mxu3 %v8150_v12  ;;  %v9739_v12 = vld [vmem:[#allocation323_spill] sm:$0xff]  ;;  %v3930_v24 = vadd.f32 %v3929_v36, %v3916_v2 }
 0x2f7   :  { %4240 = vmatpush.bf16.msra.mxu3 %v7862_v1  ;;  %4229 = vmatpush.bf16.msra.mxu2 %v9730_v11  ;;  %v9736_v1 = vld [vmem:[#allocation320_spill] sm:$0xff] }
 0x2f8   :  { %4219 = vmatpush.bf16.msra.mxu1 %v9732_v62 }
 0x2f9   :  { %4255 = vmatpush.bf16.msra.mxu0 %v9731_v28  ;;  %v3941_v44 = vpop.f32.mrf.mxu3  ;;  %v3957_v2 = vpop.f32.mrf.mxu0 }
 0x2fa   :  { %v3942_v18 = vadd.f32 %v3941_v44, %v3928_v35  ;;  %v3563_v35 = vadd.f32 %v8606_v32, %v3546_v57  ;;  %v3971_v62 = vpop.f32.mrf.mxu1 }
 0x2fb   :  { %4241 = vmatpush.bf16.msra.mxu3 %v9733_v61  ;;  %4230 = vmatpush.bf16.msra.mxu2 %v9735_v25 }
 0x2fc   :  { %4268 = vmatpush.bf16.msrb.mxu1 %v9734_v31  ;;  %v3956_v27 = vadd.f32 %v3955_v59, %v3942_v18 }
 0x2fd   :  { %4256 = vmatpush.bf16.msra.mxu0 %v9736_v1  ;;  %4220 = vmatmul.bf16.vlgmr.msra.gmra.mxu1 %v8198_v8  ;;  %v9745_v8 = vld [vmem:[#allocation332_spill] sm:$0xff]  ;;  %v3983_v3 = vpop.f32.mrf.mxu2 }
 0x2fe   :  { %v3970_v55 = vadd.f32 %v3969_v7, %v3956_v27  ;;  %v9770_v27 = vld [vmem:[#allocation13_spill] sm:$0xff] }
 0x2ff   :  { %4242 = vmatpush.bf16.msra.mxu3 %v9737_v17  ;;  %4231 = vmatpush.bf16.msra.mxu2 %v9739_v12 }
 0x300   :  { %4269 = vmatpush.bf16.msrb.mxu1 %v9738_v26  ;;  %v3984_v11 = vadd.f32 %v3983_v3, %v3970_v55 }
 0x301   :  { %4257 = vmatpush.bf16.msra.mxu0 %v9740_v20  ;;  %v9763_v20 = vld [vmem:[#allocation11_spill] sm:$0xff] }
 0x302   :  { %v4325_v28 = vmul.f32 %v3984_v11, %v8596_v33 }
 0x303   :  { %4243 = vmatpush.bf16.msra.mxu3 %v9741_v22  ;;  %4232 = vmatpush.bf16.msra.mxu2 %v9743_v16  ;;  %v9764_v22 = vld [vmem:[#allocation19_spill] sm:$0xff] }
 0x304   :  { %4270 = vmatpush.bf16.msrb.mxu1 %v9742_v50  ;;  %v9765_v50 = vld [vmem:[#allocation221_spill] sm:$0xff] }
 0x305   :  { %4258 = vmatpush.bf16.msra.mxu0 %v9744_v19 }
 0x307   :  { %4244 = vmatpush.bf16.msra.mxu3 %v9745_v8  ;;  %4233 = vmatpush.bf16.msra.mxu2 %v9747_v60  ;;  %v9768_v60 = vld [vmem:[#allocation21_spill] sm:$0xff] }
 0x308   :  { %4271 = vmatpush.bf16.msrb.mxu1 %v9746_v48  ;;  %v9767_v48 = vld [vmem:[#allocation231_spill] sm:$0xff] }
 0x309   :  { %4259 = vmatpush.bf16.msra.mxu0 %v9749_v15 }
 0x30a   :  { %4234 = vmatmul.bf16.vlgmr.msra.gmra.mxu2 %v8203_v56  ;;  %v3943_v56 = vpop.f32.mrf.mxu3 }
 0x30b   :  { %4282 = vmatpush.bf16.msrb.mxu2 %v9748_v5  ;;  %4245 = vmatpush.bf16.msra.mxu3 %v9750_v45  ;;  %v3944_v41 = vadd.f32 %v3943_v56, %v3930_v24  ;;  %v9769_v5 = vld [vmem:[#allocation232_spill] sm:$0xff] }
 0x30c   :  { %4272 = vmatpush.bf16.msrb.mxu1 %v9751_v14  ;;  %v9771_v14 = vld [vmem:[#allocation245_spill] sm:$0xff] }
 0x30d   :  { %4260 = vmatpush.bf16.msra.mxu0 %v7950_v13  ;;  %v4333_v13 = vadd.f32 %v4325_v28, %v8606_v32  ;;  %v3958_v61 = vadd.f32 %v3957_v2, %v3944_v41  ;;  %v9773_v28 = vld [vmem:[#allocation16_spill] sm:$0xff] }
 0x30f   :  { %4283 = vmatpush.bf16.msrb.mxu2 %v9752_v47  ;;  %4246 = vmatpush.bf16.msra.mxu3 %v7954_v52  ;;  %v3985_v52 = vpop.f32.mrf.mxu2  ;;  %v4341_v31 = vmax.f32 %v4333_v13, 0.0  ;;  %v3972_v25 = vadd.f32 %v3971_v62, %v3958_v61  ;;  %v9772_v47 = vld [vmem:[#allocation22_spill] sm:$0xff] }
 0x310   :  { %4273 = vmatpush.bf16.msrb.mxu1 %v7957_v10  ;;  %v3571_v10 = vmax.f32 %v3563_v35, 0.0  ;;  %v9774_v13 = vld [vmem:[#allocation246_spill] sm:$0xff] }
 0x311   :  { %4261 = vmatpush.bf16.msra.mxu0 %v7963_v54  ;;  %v9753_v54 = vld [vmem:[#allocation341_spill] sm:$0xff]  ;;  %v4025_v1 = vpop.f32.mrf.mxu0 }
 0x312   :  { %v4039_v26 = vpop.f32.mrf.mxu1 }
 0x313   :  { %4284 = vmatpush.bf16.msrb.mxu2 %v7961_v49  ;;  %4247 = vmatpush.bf16.msra.mxu3 %v7970_v39  ;;  %v8627_v49 = vadd.f32 %v3985_v52, %v3972_v25  ;;  %v9754_v39 = vld [vmem:[#allocation342_spill] sm:$0xff] }
 0x314   :  { %4274 = vmatpush.bf16.msrb.mxu1 %v7973_v0  ;;  %4262 = vmatmul.bf16.vlgmr.msra.gmra.mxu0 %v8249_v63  ;;  %v9755_v0 = vld [vmem:[#allocation343_spill] sm:$0xff]  ;;  %v9762_v63 = vld [vmem:[#allocation17_spill] sm:$0xff] }
 0x315   :  { %4316 = vmatpush.bf16.msrb.mxu0 %v7965_v58  ;;  %v8625_v58 = vmax.f32 %v3571_v10, %v4341_v31  ;;  %v9775_v31 = vld [vmem:[#allocation250_spill] sm:$0xff] }
 0x316   :  { %4248 = vmatmul.bf16.vlgmr.msra.gmra.mxu3 %v8225_v43  ;;  %v9759_v43 = vld [vmem:[#allocation351_spill] sm:$0xff] }
 0x317   :  { %4296 = vmatpush.bf16.msrb.mxu3 %v7975_v30  ;;  %4285 = vmatpush.bf16.msrb.mxu2 %v7979_v34  ;;  %v9756_v30 = vld [vmem:[#allocation345_spill] sm:$0xff]  ;;  %v9757_v34 = vld [vmem:[#allocation347_spill] sm:$0xff] }
 0x318   :  { %4275 = vmatpush.bf16.msrb.mxu1 %v7987_v42  ;;  %v9760_v42 = vld [vmem:[#allocation352_spill] sm:$0xff] }
 0x319   :  { %4317 = vmatpush.bf16.msrb.mxu0 %v7982_v9  ;;  %v9758_v9 = vld [vmem:[#allocation349_spill] sm:$0xff]  ;;  %v4011_v17 = vpop.f32.mrf.mxu3  ;;  %v4027_v12 = vpop.f32.mrf.mxu0 }
 0x31a   :  { %v4041_v19 = vpop.f32.mrf.mxu1 }
 0x31b   :  { %4297 = vmatpush.bf16.msrb.mxu3 %v7989_v21  ;;  %4286 = vmatpush.bf16.msrb.mxu2 %v9753_v54  ;;  %v9761_v21 = vld [vmem:[#allocation14_spill] sm:$0xff] }
 0x31c   :  { %4276 = vmatmul.bf16.vlgmr.msrb.gmra.mxu1 %v8259_v23  ;;  %v3997_v23 = vpop.f32.mrf.mxu2 }
 0x31d   :  { %v4012_v8 = vadd.f32 %v4011_v17, %v3997_v23  ;;  %v9778_v23 = vld [vmem:[#allocation24_spill] sm:$0xff] }
 0x31f   :  { %4298 = vmatpush.bf16.msrb.mxu3 %v9754_v39  ;;  %4287 = vmatpush.bf16.msrb.mxu2 %v9755_v0  ;;  %v4026_v18 = vadd.f32 %v4025_v1, %v4012_v8  ;;  %v9776_v39 = vld [vmem:[#allocation12_spill] sm:$0xff] }
 0x321   :  { %v4013_v24 = vpop.f32.mrf.mxu3  ;;  %v4040_v2 = vadd.f32 %v4039_v26, %v4026_v18  ;;  %v9779_v26 = vld [vmem:[#allocation267_spill] sm:$0xff] }
 0x323   :  { %4299 = vmatpush.bf16.msrb.mxu3 %v9756_v30  ;;  %4288 = vmatpush.bf16.msrb.mxu2 %v9757_v34 }
 0x324   :  { %5926 = vmatmul.msk.bf16.vlgmr.msrb.gmra.mxu0 %vm100_vm9, %v8281_v46  ;;  %v3999_v36 = vpop.f32.mrf.mxu2  ;;  %v3226_v46 = vadd.f32 %v9764_v22, %v9763_v20 }
 0x325   :  { %v4014_v56 = vadd.f32 %v4013_v24, %v3999_v36  ;;  %v9780_v24 = vld [vmem:[#allocation27_spill] sm:$0xff] }
 0x327   :  { %4300 = vmatpush.bf16.msrb.mxu3 %v9758_v9  ;;  %4289 = vmatpush.bf16.msrb.mxu2 %v9759_v43  ;;  %v4028_v52 = vadd.f32 %v4027_v12, %v4014_v56  ;;  %v9777_v43 = vld [vmem:[#allocation251_spill] sm:$0xff] }
 0x329   :  { %v4042_v34 = vadd.f32 %v4041_v19, %v4028_v52  ;;  %v4328_v52 = vmul.f32 %v8512_v4, %v8477_v6 }
 0x32a   :  { %4290 = vmatmul.bf16.vlgmr.msrb.gmra.mxu2 %v8255_v38  ;;  %v9766_v38 = vld [vmem:[#allocation222_spill] sm:$0xff] }
 0x32b   :  { %4301 = vmatpush.bf16.msrb.mxu3 %v9760_v42  ;;  %v2890_v16 = vadd.f32 %v9766_v38, %v9765_v50  ;;  %v3539_v50 = vperm.slane %v8472_v40, 2  ;;  %v9781_v38 = vld [vmem:[#allocation15_spill] sm:$0xff] }
 0x32d   :  { %v4053_v59 = vpop.f32.mrf.mxu2  ;;  %v2904_v44 = vadd.f32 %v9767_v48, %v2890_v16 }
 0x32e   :  { %v4054_v62 = vadd.f32 %v4053_v59, %v4040_v2  ;;  %v9782_v59 = vld [vmem:[#allocation269_spill] sm:$0xff] }
 0x32f   :  { %4302 = vmatpush.bf16.msrb.mxu3 %v9761_v21  ;;  %v2918_v15 = vadd.f32 %v9769_v5, %v2904_v44  ;;  %v9784_v5 = vld [vmem:[#allocation26_spill] sm:$0xff] }
 0x331   :  { %v4081_v7 = vpop.f32.mrf.mxu0  ;;  %v2932_v57 = vadd.f32 %v9771_v14, %v2918_v15  ;;  %v3547_v15 = vmul.f32 %v3539_v50, %v9784_v5  ;;  %v9792_v5 = vld [vmem:[#allocation300_spill] sm:$0xff] }
 0x332   :  { %v4095_v55 = vpop.f32.mrf.mxu1 }
 0x333   :  { %4303 = vmatpush.bf16.msrb.mxu3 %v9762_v63  ;;  %v2946_v61 = vadd.f32 %v9774_v13, %v2932_v57 }
 0x335   :  { %v4055_v35 = vpop.f32.mrf.mxu2  ;;  %v2960_v25 = vadd.f32 %v9775_v31, %v2946_v61 }
 0x336   :  { %4304 = vmatmul.bf16.vlgmr.msrb.gmra.mxu3 %v8283_v37  ;;  %v3240_v37 = vadd.f32 %v9768_v60, %v3226_v46  ;;  %v4056_v17 = vadd.f32 %v4055_v35, %v4042_v34  ;;  %v9787_v35 = vld [vmem:[#allocation25_spill] sm:$0xff] }
 0x337   :  { %v2974_v42 = vadd.f32 %v9777_v43, %v2960_v25 }
 0x338   :  { %v3254_v45 = vadd.f32 %v9770_v27, %v3240_v37  ;;  %v9783_v37 = vld [vmem:[#allocation281_spill] sm:$0xff]  ;;  %v9785_v27 = vld [vmem:[#allocation28_spill] sm:$0xff] }
 0x339   :  { %v4067_v3 = vpop.f32.mrf.mxu3  ;;  %v4083_v54 = vpop.f32.mrf.mxu0  ;;  %v2988_v36 = vadd.f32 %v9779_v26, %v2974_v42 }
 0x33a   :  { %v3268_v11 = vadd.f32 %v9772_v47, %v3254_v45  ;;  %v4068_v10 = vadd.f32 %v4067_v3, %v4054_v62  ;;  %v4097_v21 = vpop.f32.mrf.mxu1  ;;  %v3556_v3 = vperm.slane %v8481_v53, 2 }
 0x33b   :  { %v3002_v8 = vadd.f32 %v9782_v59, %v2988_v36  ;;  %v9789_v59 = vld [vmem:[#allocation298_spill] sm:$0xff] }
 0x33c   :  { %v3282_v41 = vadd.f32 %v9773_v28, %v3268_v11  ;;  %v4082_v9 = vadd.f32 %v4081_v7, %v4068_v10  ;;  %v9786_v11 = vld [vmem:[#allocation270_spill] sm:$0xff]  ;;  %v3564_v2 = vadd.f32 %v3556_v3, %v3547_v15 }
 0x33d   :  { %v3016_v7 = vadd.f32 %v9783_v37, %v3002_v8 }
 0x33e   :  { %v3296_v0 = vadd.f32 %v9776_v39, %v3282_v41  ;;  %v4096_v22 = vadd.f32 %v4095_v55, %v4082_v9  ;;  %v4336_v9 = vadd.f32 %v4328_v52, %v8492_v51 }
 0x33f   :  { %v3030_v56 = vadd.f32 %v9786_v11, %v3016_v7  ;;  %v9795_v11 = vld [vmem:[#allocation327_spill] sm:$0xff] }
 0x340   :  { %v3310_v1 = vadd.f32 %v9778_v23, %v3296_v0  ;;  %v4344_v4 = vmax.f32 %v4336_v9, 0.0 }
 0x341   :  { %v4069_v30 = vpop.f32.mrf.mxu3  ;;  %v3549_v25 = vmul.f32 %v8477_v6, %v3030_v56 }
 0x342   :  { %v3324_v12 = vadd.f32 %v9780_v24, %v3310_v1  ;;  %v4070_v20 = vadd.f32 %v4069_v30, %v4056_v17  ;;  %v4151_v18 = vpop.f32.mrf.mxu1 }
 0x344   :  { %v3338_v16 = vadd.f32 %v9781_v38, %v3324_v12  ;;  %v4084_v44 = vadd.f32 %v4083_v54, %v4070_v20  ;;  %v3572_v54 = vmax.f32 %v3564_v2, 0.0  ;;  %v9796_v2 = vld [vmem:[#allocation83_spill] sm:$0xff] }
 0x346   :  { %v3352_v45 = vadd.f32 %v9785_v27, %v3338_v16  ;;  %v4098_v55 = vadd.f32 %v4097_v21, %v4084_v44  ;;  %v3566_v21 = vadd.f32 %v8492_v51, %v3549_v25  ;;  %v9791_v44 = vld [vmem:[#allocation29_spill] sm:$0xff] }
 0x348   :  { %v3366_v28 = vadd.f32 %v9787_v35, %v3352_v45  ;;  %v3574_v17 = vmax.f32 %v3566_v21, 0.0  ;;  %v9793_v45 = vld [vmem:[#allocation18_spill] sm:$0xff]  ;;  %v9801_v21 = vld [vmem:[#allocation33_spill] sm:$0xff] }
 0x34a   :  { %v3551_v39 = vmul.f32 %v3539_v50, %v3366_v28  ;;  %v4153_v34 = vpop.f32.mrf.mxu1  ;;  %v4352_v24 = vmax.f32 %v3574_v17, %v4344_v4  ;;  %v9802_v4 = vld [vmem:[#allocation333_spill] sm:$0xff]  ;;  %v9803_v17 = vld [vmem:[#allocation346_spill] sm:$0xff] }
 0x34d   :  { %v4109_v63 = vpop.f32.mrf.mxu2 }
 0x34e   :  { %v4110_v19 = vadd.f32 %v4109_v63, %v4096_v22  ;;  %v3568_v63 = vadd.f32 %v3556_v3, %v3551_v39 }
 0x350   :  { %v3576_v26 = vmax.f32 %v3568_v63, 0.0 }
 0x351   :  { %v4137_v46 = vpop.f32.mrf.mxu0 }
 0x355   :  { %v4111_v57 = vpop.f32.mrf.mxu2 }
 0x356   :  { %v4112_v41 = vadd.f32 %v4111_v57, %v4098_v55  ;;  %v9794_v55 = vld [vmem:[#allocation308_spill] sm:$0xff] }
 0x359   :  { %v4123_v48 = vpop.f32.mrf.mxu3  ;;  %v4139_v61 = vpop.f32.mrf.mxu0 }
 0x35a   :  { %v4124_v60 = vadd.f32 %v4123_v48, %v4110_v19  ;;  %v4165_v51 = vpop.f32.mrf.mxu1  ;;  %v9788_v19 = vld [vmem:[#allocation295_spill] sm:$0xff]  ;;  %v9790_v48 = vld [vmem:[#allocation20_spill] sm:$0xff] }
 0x35b   :  { %v3058_v8 = vadd.f32 %v9789_v59, %v9788_v19  ;;  %v9806_v19 = vld [vmem:[#allocation82_spill] sm:$0xff] }
 0x35c   :  { %v4138_v14 = vadd.f32 %v4137_v46, %v4124_v60  ;;  %v3394_v60 = vadd.f32 %v9791_v44, %v9790_v48 }
 0x35d   :  { %v3072_v15 = vadd.f32 %v9792_v5, %v3058_v8  ;;  %v3540_v8 = vperm.slane %v8472_v40, 3 }
 0x35e   :  { %v4152_v47 = vadd.f32 %v4151_v18, %v4138_v14  ;;  %v3408_v14 = vadd.f32 %v9793_v45, %v3394_v60  ;;  %v9807_v60 = vld [vmem:[#allocation36_spill] sm:$0xff]  ;;  %v9809_v45 = vld [vmem:[#allocation34_spill] sm:$0xff] }
 0x360   :  { %v4326_v62 = vmul.f32 %v4152_v47, %v3539_v50  ;;  %v3086_v47 = vadd.f32 %v9794_v55, %v3072_v15  ;;  %v3422_v35 = vadd.f32 %v9796_v2, %v3408_v14  ;;  %v3557_v15 = vperm.slane %v8481_v53, 3  ;;  %v9811_v2 = vld [vmem:[#allocation344_spill] sm:$0xff] }
 0x361   :  { %v4125_v13 = vpop.f32.mrf.mxu3  ;;  %v3548_v14 = vmul.f32 %v3540_v8, %v9809_v45  ;;  %v4329_v53 = vmul.f32 %v8627_v49, %v8596_v33 }
 0x362   :  { %v4334_v10 = vadd.f32 %v4326_v62, %v3556_v3  ;;  %v4126_v31 = vadd.f32 %v4125_v13, %v4112_v41  ;;  %v4167_v38 = vpop.f32.mrf.mxu1  ;;  %v3100_v56 = vadd.f32 %v9795_v11, %v3086_v47 }
 0x364   :  { %v4342_v0 = vmax.f32 %v4334_v10, 0.0  ;;  %v4140_v30 = vadd.f32 %v4139_v61, %v4126_v31  ;;  %v9797_v61 = vld [vmem:[#allocation326_spill] sm:$0xff] }
 0x365   :  { %v3114_v52 = vadd.f32 %v9797_v61, %v3100_v56  ;;  %v9798_v10 = vld [vmem:[#allocation30_spill] sm:$0xff] }
 0x366   :  { %v4350_v43 = vmax.f32 %v3572_v54, %v4342_v0  ;;  %v4154_v42 = vadd.f32 %v4153_v34, %v4140_v30  ;;  %v3436_v31 = vadd.f32 %v9798_v10, %v3422_v35  ;;  %v9799_v30 = vld [vmem:[#allocation32_spill] sm:$0xff] }
 0x368   :  { %v4356_v23 = vmax.f32 %v8510_v29, %v4350_v43  ;;  %v4330_v1 = vmul.f32 %v4154_v42, %v3539_v50  ;;  %v3450_v34 = vadd.f32 %v9799_v30, %v3436_v31  ;;  %v9800_v43 = vld [vmem:[#allocation331_spill] sm:$0xff] }
 0x369   :  { %v3128_v42 = vadd.f32 %v9800_v43, %v3114_v52  ;;  %v4337_v43 = vadd.f32 %v4329_v53, %v8606_v32 }
 0x36a   :  { %4360 = vst [vmem:[%s8728_s4] sm:$0x7f] %v4356_v23  ;;  %v4338_v6 = vadd.f32 %v4330_v1, %v3556_v3  ;;  %v3464_v63 = vadd.f32 %v9801_v21, %v3450_v34 }
 0x36c   :  { %v4346_v36 = vmax.f32 %v4338_v6, 0.0  ;;  %v3142_v6 = vadd.f32 %v9802_v4, %v3128_v42  ;;  %v4345_v4 = vmax.f32 %v4337_v43, 0.0 }
 0x36d   :  { %v4179_v29 = vpop.f32.mrf.mxu2 }
 0x36e   :  { %v4354_v12 = vmax.f32 %v3576_v26, %v4346_v36  ;;  %v4180_v37 = vadd.f32 %v4179_v29, %v4165_v51  ;;  %v3156_v26 = vadd.f32 %v9803_v17, %v3142_v6 }
 0x370   :  { %v4358_v20 = vmax.f32 %v4352_v24, %v4354_v12  ;;  %v9804_v12 = vld [vmem:[#allocation23_spill] sm:$0xff] }
 0x371   :  { %v4207_v46 = vpop.f32.mrf.mxu0 }
 0x372   :  { %v4364_v22 = vrot.slane %v4358_v20, 1  ;;  %v3478_v20 = vadd.f32 %v9804_v12, %v3464_v63 }
 0x374   :  { %5927 = vst [vmem:[%s8728_s4 + $0x10] sm:$0x7f] %v4364_v22  ;;  %v3492_v59 = vadd.f32 %v9806_v19, %v3478_v20 }
 0x375   :  { %v4181_v16 = vpop.f32.mrf.mxu2 }
 0x376   :  { %v4182_v41 = vadd.f32 %v4181_v16, %v4167_v38  ;;  %v9805_v38 = vld [vmem:[#allocation348_spill] sm:$0xff] }
 0x377   :  { %v3170_v16 = vadd.f32 %v9805_v38, %v3156_v26 }
 0x379   :  { %v4193_v50 = vpop.f32.mrf.mxu3  ;;  %v4209_v7 = vpop.f32.mrf.mxu0 }
 0x37a   :  { %v4221_v3 = vpop.f32.mrf.mxu1  ;;  %v4194_v57 = vadd.f32 %v4193_v50, %v4180_v37  ;;  %v3506_v37 = vadd.f32 %v9807_v60, %v3492_v59 }
 0x37c   :  { %v4208_v28 = vadd.f32 %v4207_v46, %v4194_v57  ;;  %v9810_v57 = vld [vmem:[#allocation35_spill] sm:$0xff] }
 0x37d   :  { %v3520_v55 = vadd.f32 %v9810_v57, %v3506_v37 }
 0x37e   :  { %v4222_v54 = vadd.f32 %v4221_v3, %v4208_v28 }
 0x381   :  { %v4195_v18 = vpop.f32.mrf.mxu3 }
 0x382   :  { %v4196_v25 = vadd.f32 %v4195_v18, %v4182_v41  ;;  %v4223_v39 = vpop.f32.mrf.mxu1  ;;  %v9808_v18 = vld [vmem:[#allocation350_spill] sm:$0xff]  ;;  %v3565_v41 = vadd.f32 %v3557_v15, %v3548_v14 }
 0x383   :  { %v3184_v5 = vadd.f32 %v9808_v18, %v3170_v16 }
 0x384   :  { %v4210_v23 = vadd.f32 %v4209_v7, %v4196_v25 }
 0x385   :  { %v3198_v40 = vadd.f32 %v9811_v2, %v3184_v5 }
 0x386   :  { %v4224_v22 = vadd.f32 %v4223_v39, %v4210_v23  ;;  %v3573_v39 = vmax.f32 %v3565_v41, 0.0 }
 0x387   :  { %v3550_v25 = vmul.f32 %v8596_v33, %v3198_v40 }
 0x389   :  { %v3567_v63 = vadd.f32 %v8606_v32, %v3550_v25 }
 0x38b   :  { %v3575_v6 = vmax.f32 %v3567_v63, 0.0 }
 0x38d   :  { %v4235_v27 = vpop.f32.mrf.mxu2 }
 0x38e   :  { %v4236_v9 = vadd.f32 %v4235_v27, %v4222_v54 }
 0x391   :  { %v4263_v62 = vpop.f32.mrf.mxu0 }
 0x395   :  { %v4237_v0 = vpop.f32.mrf.mxu2 }
 0x396   :  { %v4238_v50 = vadd.f32 %v4237_v0, %v4224_v22 }
 0x399   :  { %v4249_v13 = vpop.f32.mrf.mxu3  ;;  %v4265_v36 = vpop.f32.mrf.mxu0 }
 0x39a   :  { %v4250_v1 = vadd.f32 %v4249_v13, %v4236_v9  ;;  %v4277_v29 = vpop.f32.mrf.mxu1 }
 0x39c   :  { %v4264_v51 = vadd.f32 %v4263_v62, %v4250_v1  ;;  %v9812_v62 = vld [vmem:[#allocation31_spill] sm:$0xff] }
 0x39d   :  { %v3534_v13 = vadd.f32 %v9812_v62, %v3520_v55 }
 0x39e   :  { %v4278_v44 = vadd.f32 %v4277_v29, %v4264_v51 }
 0x39f   :  { %v3552_v0 = vmul.f32 %v3540_v8, %v3534_v13 }
 0x3a1   :  { %v4251_v24 = vpop.f32.mrf.mxu3  ;;  %v4319_v3 = vpop.f32.mrf.mxu0  ;;  %v3569_v23 = vadd.f32 %v3557_v15, %v3552_v0 }
 0x3a2   :  { %v4252_v48 = vadd.f32 %v4251_v24, %v4238_v50  ;;  %v4279_v35 = vpop.f32.mrf.mxu1 }
 0x3a3   :  { %v3577_v17 = vmax.f32 %v3569_v23, 0.0 }
 0x3a4   :  { %v4266_v47 = vadd.f32 %v4265_v36, %v4252_v48  ;;  %v4353_v36 = vmax.f32 %v3575_v6, %v4345_v4 }
 0x3a6   :  { %v4280_v61 = vadd.f32 %v4279_v35, %v4266_v47 }
 0x3a9   :  { %v4321_v9 = vpop.f32.mrf.mxu0 }
 0x3ad   :  { %v4291_v46 = vpop.f32.mrf.mxu2 }
 0x3ae   :  { %v4292_v7 = vadd.f32 %v4291_v46, %v4278_v44 }
 0x3b5   :  { %v4293_v28 = vpop.f32.mrf.mxu2 }
 0x3b6   :  { %v4294_v10 = vadd.f32 %v4293_v28, %v4280_v61 }
 0x3b9   :  { %v4305_v27 = vpop.f32.mrf.mxu3 }
 0x3ba   :  { %v4306_v11 = vadd.f32 %v4305_v27, %v4292_v7 }
 0x3bc   :  { %v4320_v56 = vadd.f32 %v4319_v3, %v4306_v11 }
 0x3be   :  { %v4327_v52 = vmul.f32 %v4320_v56, %v3540_v8 }
 0x3c0   :  { %v4335_v31 = vadd.f32 %v4327_v52, %v3557_v15 }
 0x3c1   :  { %v4307_v54 = vpop.f32.mrf.mxu3 }
 0x3c2   :  { %v4343_v30 = vmax.f32 %v4335_v31, 0.0  ;;  %v4308_v34 = vadd.f32 %v4307_v54, %v4294_v10 }
 0x3c4   :  { %v4351_v42 = vmax.f32 %v3573_v39, %v4343_v30  ;;  %v4322_v21 = vadd.f32 %v4321_v9, %v4308_v34 }
 0x3c6   :  { %v4357_v1 = vmax.f32 %v8625_v58, %v4351_v42  ;;  %v4331_v49 = vmul.f32 %v4322_v21, %v3540_v8 }
 0x3c8   :  { %4361 = vst [vmem:[%s8728_s4 + $0x8] sm:$0x7f] %v4357_v1  ;;  %v4339_v33 = vadd.f32 %v4331_v49, %v3557_v15 }
 0x3ca   :  { %v4347_v26 = vmax.f32 %v4339_v33, 0.0 }
 0x3cc   :  { %v4355_v24 = vmax.f32 %v3577_v17, %v4347_v26 }
 0x3ce   :  { %v4359_v12 = vmax.f32 %v4353_v36, %v4355_v24 }
 0x3d0   :  { %v4365_v20 = vrot.slane %v4359_v12, 1 }
 0x3d2   :  { %5928 = vst [vmem:[%s8728_s4 + $0x18] sm:$0x7f] %v4365_v20 }
 0x3d3   :  { %4375 = vsyncpa [#allocation5], 1 }
 0x3d4   :  { %4376 = vsyncpa [#allocation7], 1 }

</bundles_post_ra>
